<compile_context>
chip_gen: v5e
topology: v5e:2x2
jax: 0.10.0
libtpu: 0.0.40
codegen_flags: <defaults>
</compile_context>

<pallas_src>
import math

import numpy as np

import jax
import jax.numpy as jnp
from jax.experimental import pallas as pl
from jax.experimental.pallas import tpu as pltpu

BN_EPS = 1e-5
LANES = 128          # channel padding (TPU lane width)
STEM_KPAD = 256      # 7*7*3 = 147 im2col features, padded to a lane multiple


# ----------------------------- in-kernel helpers ------------------------------

def _conv3x3_flat(x, wt_ref, shift, H, W):
    """3x3 / stride-1 / pad-1 conv on a flattened (H*W, 128) f32 activation.

    Implemented as 9 shifted bf16 matmuls (f32 accumulation): the spatial shift of
    tap (di, dj) is a roll of di*W+dj along the flattened row axis plus an iota
    validity mask (zero padding).  wt_ref: (9, 128, 128) bf16 ref (tap-major, BN
    scale folded in).  shift: (1, 128) f32 folded BN shift.  Returns (H*W, 128)
    f32 WITHOUT ReLU.  Requires W to be a power of two.
    """
    M = H * W
    lw = W.bit_length() - 1
    m = jax.lax.broadcasted_iota(jnp.int32, (M, LANES), 0)
    row = m >> lw
    col = m & (W - 1)
    acc = jnp.broadcast_to(shift, (M, LANES)).astype(jnp.float32)
    for di in (-1, 0, 1):
        for dj in (-1, 0, 1):
            tap = (di + 1) * 3 + (dj + 1)
            d = di * W + dj
            xs = x if d == 0 else pltpu.roll(x, shift=(-d) % M, axis=0)
            conds = []
            if di == -1:
                conds.append(row >= 1)
            elif di == 1:
                conds.append(row <= H - 2)
            if dj == -1:
                conds.append(col >= 1)
            elif dj == 1:
                conds.append(col <= W - 2)
            if conds:
                ok = conds[0]
                for c in conds[1:]:
                    ok = jnp.logical_and(ok, c)
                xs = jnp.where(ok, xs, 0.0)
            acc = acc + jnp.dot(xs.astype(jnp.bfloat16), wt_ref[tap],
                                preferred_element_type=jnp.float32)
    return acc


def _make_kernel(H1, W1, Hm, Wm, H2, W2, H3, W3):
    """Whole-network fused kernel (one batch sample per grid program)."""
    M1, M3 = H1 * W1, H3 * W3
    f32, bf16 = jnp.float32, jnp.bfloat16

    def kernel(p_ref, wstem_ref, w11_ref, w12_ref, w21_ref, w22_ref, wd2_ref,
               w31_ref, w32_ref, wd3_ref, wfc_ref, bfc_ref, sh_ref,
               s1_ref, s2_ref, s3_ref, out_ref):
        # ---- stem: 7x7/s2/p3 conv (im2col'd outside) + folded BN + ReLU ------
        y = jnp.dot(p_ref[0], wstem_ref[...], preferred_element_type=f32)
        y = jnp.maximum(y + sh_ref[0], 0.0)                         # (M1, 128)

        # ---- maxpool 3x3 / stride 2 / pad 1 (separable, clipped windows) -----
        m = jax.lax.broadcasted_iota(jnp.int32, (M1, LANES), 0)
        lw = W1.bit_length() - 1
        row, col = m >> lw, m & (W1 - 1)
        left = jnp.where(col >= 1, pltpu.roll(y, shift=1, axis=0), y)
        right = jnp.where(col <= W1 - 2, pltpu.roll(y, shift=M1 - 1, axis=0), y)
        cmax = jnp.maximum(jnp.maximum(left, right), y)
        up = jnp.where(row >= 1, pltpu.roll(cmax, shift=W1, axis=0), cmax)
        dn = jnp.where(row <= H1 - 2, pltpu.roll(cmax, shift=M1 - W1, axis=0), cmax)
        wmax = jnp.maximum(jnp.maximum(up, dn), cmax)                # (M1, 128)
        x0 = jnp.dot(s1_ref[...], wmax, preferred_element_type=f32)  # (Mm, 128)

        # ---- layer1: BasicBlock(16 -> 16), identity residual -----------------
        h = jnp.maximum(_conv3x3_flat(x0, w11_ref, sh_ref[1], Hm, Wm), 0.0)
        h = _conv3x3_flat(h, w12_ref, sh_ref[2], Hm, Wm)
        z1 = jnp.maximum(h + x0, 0.0)

        # ---- layer2: BasicBlock(16 -> 32, stride 2, 1x1 downsample) ----------
        h = _conv3x3_flat(z1, w21_ref, sh_ref[3], Hm, Wm)   # stride-1 at full res
        h = jnp.maximum(jnp.dot(s2_ref[...], h, preferred_element_type=f32), 0.0)
        h = _conv3x3_flat(h, w22_ref, sh_ref[4], H2, W2)
        r = jnp.dot(s2_ref[...], z1, preferred_element_type=f32)     # x[:, ::2, ::2]
        r = jnp.dot(r.astype(bf16), wd2_ref[...],
                    preferred_element_type=f32) + sh_ref[5]
        z2 = jnp.maximum(h + r, 0.0)

        # ---- layer3: BasicBlock(32 -> 64, stride 2, 1x1 downsample) ----------
        h = _conv3x3_flat(z2, w31_ref, sh_ref[6], H2, W2)
        h = jnp.maximum(jnp.dot(s3_ref[...], h, preferred_element_type=f32), 0.0)
        h = _conv3x3_flat(h, w32_ref, sh_ref[7], H3, W3)
        r = jnp.dot(s3_ref[...], z2, preferred_element_type=f32)
        r = jnp.dot(r.astype(bf16), wd3_ref[...],
                    preferred_element_type=f32) + sh_ref[8]
        z3 = jnp.maximum(h + r, 0.0)                                  # (M3, 128)

        # ---- global average pool + fc -----------------------------------------
        feat = jnp.sum(z3, axis=0, keepdims=True) * (1.0 / M3)        # (1, 128)
        logits = jnp.dot(feat.astype(bf16), wfc_ref[...],
                         preferred_element_type=f32) + bfc_ref[...]
        out_ref[...] = jnp.broadcast_to(logits.reshape(1, 1, LANES), (1, 8, LANES))

    return kernel


# ------------------------------- JAX-side glue --------------------------------

def _stem_patches(x_nhwc, Ho, Wo):
    """7x7 / stride-2 / pad-3 im2col of the raw input (plain-JAX glue, one-time)."""
    B, H, W, C = x_nhwc.shape
    xp = jnp.pad(x_nhwc, ((0, 0), (3, 3), (3, 3), (0, 0)))
    cols = [xp[:, i:i + 2 * Ho:2, j:j + 2 * Wo:2, :]
            for i in range(7) for j in range(7)]
    p = jnp.stack(cols, axis=3).reshape(B, Ho * Wo, 49 * C)
    p = jnp.pad(p, ((0, 0), (0, 0), (0, STEM_KPAD - 49 * C)))
    return p.astype(jnp.bfloat16)


def _subsample_matrix(H, W):
    """(H//2*W//2, H*W) 0/1 matrix selecting rows (2i, 2j) of a flattened HxW grid
    (implements the stride-2 spatial subsample for maxpool / stride-2 convs / 1x1
    downsample as a tiny in-kernel matmul).  Built with numpy -> an XLA constant."""
    Ho, Wo = H // 2, W // 2
    s = np.zeros((Ho * Wo, H * W), np.float32)
    for i in range(Ho):
        for j in range(Wo):
            s[i * Wo + j, 2 * i * W + 2 * j] = 1.0
    return jnp.asarray(s)


def resnet2_forward(x_nchw, prep, num_classes=8):
    x = jnp.transpose(x_nchw, (0, 2, 3, 1)).astype(jnp.float32)     # NCHW -> NHWC
    B, H, W, C = x.shape
    assert C == 3 and 49 * C <= STEM_KPAD
    H1, W1 = (H - 1) // 2 + 1, (W - 1) // 2 + 1      # conv1 (7x7/s2/p3) output
    Hm, Wm = H1 // 2, W1 // 2                        # maxpool (3x3/s2/p1) output
    H2, W2 = Hm // 2, Wm // 2                        # layer2 output
    H3, W3 = H2 // 2, W2 // 2                        # layer3 output
    for d in (W1, Wm, W2, W3):                       # flattened-roll convs need 2^k widths
        assert d >= 2 and (d & (d - 1)) == 0, "spatial dims must stay powers of two"
    assert H1 % 2 == 0 and Hm % 2 == 0 and H2 % 2 == 0
    M1, Mm, M2, M3 = H1 * W1, Hm * Wm, H2 * W2, H3 * W3
    assert M1 % 8 == 0

    patches = _stem_patches(x, H1, W1)                               # (B, M1, 256) bf16
    s1 = _subsample_matrix(H1, W1)
    s2 = _subsample_matrix(Hm, Wm)
    s3 = _subsample_matrix(H2, W2)

    def _bcast(shape):
        return pl.BlockSpec(shape, lambda b: (0,) * len(shape))

    out = pl.pallas_call(
        _make_kernel(H1, W1, Hm, Wm, H2, W2, H3, W3),
        out_shape=jax.ShapeDtypeStruct((B, 8, LANES), jnp.float32),
        grid=(B,),
        in_specs=[
            pl.BlockSpec((1, M1, STEM_KPAD), lambda b: (b, 0, 0)),   # im2col patches
            _bcast((STEM_KPAD, LANES)),                              # stem weight
            _bcast((9, LANES, LANES)),                               # layer1 conv1
            _bcast((9, LANES, LANES)),                               # layer1 conv2
            _bcast((9, LANES, LANES)),                               # layer2 conv1
            _bcast((9, LANES, LANES)),                               # layer2 conv2
            _bcast((LANES, LANES)),                                  # layer2 downsample 1x1
            _bcast((9, LANES, LANES)),                               # layer3 conv1
            _bcast((9, LANES, LANES)),                               # layer3 conv2
            _bcast((LANES, LANES)),                                  # layer3 downsample 1x1
            _bcast((LANES, LANES)),                                  # fc weight
            _bcast((1, LANES)),                                      # fc bias
            _bcast((9, 1, LANES)),                                   # folded BN shifts
            _bcast((Mm, M1)),                                        # maxpool subsample
            _bcast((M2, Mm)),                                        # layer2 stride-2 subsample
            _bcast((M3, M2)),                                        # layer3 stride-2 subsample
        ],
        out_specs=pl.BlockSpec((1, 8, LANES), lambda b: (b, 0, 0)),
        compiler_params=pltpu.CompilerParams(
            dimension_semantics=("parallel",)),
    )(patches, prep["w_stem"],
      prep["w_l1c1"], prep["w_l1c2"],
      prep["w_l2c1"], prep["w_l2c2"], prep["w_l2ds"],
      prep["w_l3c1"], prep["w_l3c2"], prep["w_l3ds"],
      prep["w_fc"], prep["b_fc"], prep["shifts"], s1, s2, s3)
    return out[:, 0, :num_classes]


# ------------------------- parameter init & one-time prep ---------------------

def init_params(key):
    def conv_init(k, c_out, c_in, kh, kw):
        n = kh * kw * c_out                          # matches the PyTorch init
        return jax.random.normal(k, (c_out, c_in, kh, kw),
                                 jnp.float32) * math.sqrt(2.0 / n)

    ks = jax.random.split(key, 11)
    bound = 1.0 / math.sqrt(64.0)
    return {
        "conv1_w": conv_init(ks[0], 16, 3, 7, 7),
        "l1b0": {"conv1_w": conv_init(ks[1], 16, 16, 3, 3),
                 "conv2_w": conv_init(ks[2], 16, 16, 3, 3)},
        "l2b0": {"conv1_w": conv_init(ks[3], 32, 16, 3, 3),
                 "conv2_w": conv_init(ks[4], 32, 32, 3, 3),
                 "ds_w":    conv_init(ks[5], 32, 16, 1, 1)},
        "l3b0": {"conv1_w": conv_init(ks[6], 64, 32, 3, 3),
                 "conv2_w": conv_init(ks[7], 64, 64, 3, 3),
                 "ds_w":    conv_init(ks[8], 64, 32, 1, 1)},
        "fc_w": jax.random.uniform(ks[9], (64, 8), jnp.float32, -bound, bound),
        "fc_b": jax.random.uniform(ks[10], (8,), jnp.float32, -bound, bound),
    }


def prepare_params(params):
    """One-time fold of eval-mode BN into the weights + transpose/pad/cast to bf16.
    BN is gamma=1, beta=0, running_mean=0, running_var=1 (PyTorch init): scale =
    1/sqrt(1+eps) folded into weights, shift = beta - mean*scale = 0 (rows kept for
    generality).  Returns ONLY arrays so the dict is safe to pass through jax.jit.
    # TODO(synk): training-mode BN (batch statistics) is not reproduced."""
    scale = 1.0 / math.sqrt(1.0 + BN_EPS)

    def prep3(w):                                    # (Co,Ci,3,3) -> (9,128,128) bf16
        co, ci = w.shape[0], w.shape[1]
        wt = jnp.transpose(w, (2, 3, 1, 0)).reshape(9, ci, co) * scale
        return jnp.pad(wt, ((0, 0), (0, LANES - ci),
                            (0, LANES - co))).astype(jnp.bfloat16)

    def prep1(w):                                    # (Co,Ci,1,1) -> (128,128) bf16
        co, ci = w.shape[0], w.shape[1]
        wt = w.reshape(co, ci).T * scale
        return jnp.pad(wt, ((0, LANES - ci), (0, LANES - co))).astype(jnp.bfloat16)

    def prep7(w):                                    # (Co,Ci,7,7) -> (256,128) bf16
        co, ci = w.shape[0], w.shape[1]
        wt = jnp.transpose(w, (2, 3, 1, 0)).reshape(49 * ci, co) * scale
        return jnp.pad(wt, ((0, STEM_KPAD - 49 * ci),
                            (0, LANES - co))).astype(jnp.bfloat16)

    nf, nc = params["fc_w"].shape
    return {
        "w_stem": prep7(params["conv1_w"]),
        "w_l1c1": prep3(params["l1b0"]["conv1_w"]),
        "w_l1c2": prep3(params["l1b0"]["conv2_w"]),
        "w_l2c1": prep3(params["l2b0"]["conv1_w"]),
        "w_l2c2": prep3(params["l2b0"]["conv2_w"]),
        "w_l2ds": prep1(params["l2b0"]["ds_w"]),
        "w_l3c1": prep3(params["l3b0"]["conv1_w"]),
        "w_l3c2": prep3(params["l3b0"]["conv2_w"]),
        "w_l3ds": prep1(params["l3b0"]["ds_w"]),
        "w_fc": jnp.pad(params["fc_w"], ((0, LANES - nf),
                                         (0, LANES - nc))).astype(jnp.bfloat16),
        "b_fc": jnp.pad(params["fc_b"].reshape(1, nc),
                        ((0, 0), (0, LANES - nc))).astype(jnp.float32),
        # rows: [stem, l1c1, l1c2, l2c1, l2c2, l2ds, l3c1, l3c2, l3ds]
        "shifts": jnp.zeros((9, 1, LANES), jnp.float32),
    }


if __name__ == "__main__":
    key = jax.random.PRNGKey(0)
    pkey, xkey = jax.random.split(key)
    params = init_params(pkey)
    prep = prepare_params(params)                    # one-time weight prep, outside jit
    x = jax.random.normal(xkey, (2, 3, 32, 32), jnp.float32)   # NCHW like PyTorch
    out = jax.jit(resnet2_forward)(x, prep)
    out = jax.block_until_ready(out)
    assert out.shape == (2, 8) and out.dtype == jnp.float32
    print("KERNEL_OK")
</pallas_src>

<mosaic_0001>
module attributes {stable_mosaic.version = 11 : i64} {
  func.func @kernel(%arg0: i32, %arg1: memref<1x256x256xbf16, #tpu.memory_space<vmem>>, %arg2: memref<256x128xbf16, #tpu.memory_space<vmem>>, %arg3: memref<9x128x128xbf16, #tpu.memory_space<vmem>>, %arg4: memref<9x128x128xbf16, #tpu.memory_space<vmem>>, %arg5: memref<9x128x128xbf16, #tpu.memory_space<vmem>>, %arg6: memref<9x128x128xbf16, #tpu.memory_space<vmem>>, %arg7: memref<128x128xbf16, #tpu.memory_space<vmem>>, %arg8: memref<9x128x128xbf16, #tpu.memory_space<vmem>>, %arg9: memref<9x128x128xbf16, #tpu.memory_space<vmem>>, %arg10: memref<128x128xbf16, #tpu.memory_space<vmem>>, %arg11: memref<128x128xbf16, #tpu.memory_space<vmem>>, %arg12: memref<1x128xf32, #tpu.memory_space<vmem>>, %arg13: memref<9x1x128xf32, #tpu.memory_space<vmem>>, %arg14: memref<64x256xf32, #tpu.memory_space<vmem>>, %arg15: memref<16x64xf32, #tpu.memory_space<vmem>>, %arg16: memref<4x16xf32, #tpu.memory_space<vmem>>, %arg17: memref<1x8x128xf32, #tpu.memory_space<vmem>>) attributes {dimension_semantics = [#tpu.dimension_semantics<parallel>], iteration_bounds = array<i64: 2>, scalar_prefetch = 0 : i64, scratch_operands = 0 : i64, tpu.core_type = #tpu.core_type<tc>, window_params = [{transform_indices = @transform_0, window_bounds = array<i64: 1, 256, 256>}, {pipeline_mode = #tpu.pipeline_mode<synchronous>, transform_indices = @transform_1, window_bounds = array<i64: 256, 128>}, {pipeline_mode = #tpu.pipeline_mode<synchronous>, transform_indices = @transform_2, window_bounds = array<i64: 9, 128, 128>}, {pipeline_mode = #tpu.pipeline_mode<synchronous>, transform_indices = @transform_3, window_bounds = array<i64: 9, 128, 128>}, {pipeline_mode = #tpu.pipeline_mode<synchronous>, transform_indices = @transform_4, window_bounds = array<i64: 9, 128, 128>}, {pipeline_mode = #tpu.pipeline_mode<synchronous>, transform_indices = @transform_5, window_bounds = array<i64: 9, 128, 128>}, {pipeline_mode = #tpu.pipeline_mode<synchronous>, transform_indices = @transform_6, window_bounds = array<i64: 128, 128>}, {pipeline_mode = #tpu.pipeline_mode<synchronous>, transform_indices = @transform_7, window_bounds = array<i64: 9, 128, 128>}, {pipeline_mode = #tpu.pipeline_mode<synchronous>, transform_indices = @transform_8, window_bounds = array<i64: 9, 128, 128>}, {pipeline_mode = #tpu.pipeline_mode<synchronous>, transform_indices = @transform_9, window_bounds = array<i64: 128, 128>}, {pipeline_mode = #tpu.pipeline_mode<synchronous>, transform_indices = @transform_10, window_bounds = array<i64: 128, 128>}, {pipeline_mode = #tpu.pipeline_mode<synchronous>, transform_indices = @transform_11, window_bounds = array<i64: 1, 128>}, {pipeline_mode = #tpu.pipeline_mode<synchronous>, transform_indices = @transform_12, window_bounds = array<i64: 9, 1, 128>}, {pipeline_mode = #tpu.pipeline_mode<synchronous>, transform_indices = @transform_13, window_bounds = array<i64: 64, 256>}, {pipeline_mode = #tpu.pipeline_mode<synchronous>, transform_indices = @transform_14, window_bounds = array<i64: 16, 64>}, {pipeline_mode = #tpu.pipeline_mode<synchronous>, transform_indices = @transform_15, window_bounds = array<i64: 4, 16>}, {transform_indices = @transform_16, window_bounds = array<i64: 1, 8, 128>}]} {
    %c0 = arith.constant 0 : index
    %c0_0 = arith.constant 0 : index
    %c0_1 = arith.constant 0 : index
    %0 = vector.load %arg1[%c0, %c0_0, %c0_1] : memref<1x256x256xbf16, #tpu.memory_space<vmem>>, vector<1x256x256xbf16>
    %1 = vector.shape_cast %0 : vector<1x256x256xbf16> to vector<256x256xbf16>
    %c0_2 = arith.constant 0 : index
    %c0_3 = arith.constant 0 : index
    %2 = vector.load %arg2[%c0_2, %c0_3] : memref<256x128xbf16, #tpu.memory_space<vmem>>, vector<256x128xbf16>
    %cst = arith.constant dense<0.000000e+00> : vector<256x128xf32>
    %3 = tpu.matmul %1, %2, %cst {dimension_numbers = #tpu.dot_dimension_numbers<[1], [0], [0], [1], [0, 0, 1, 1], [], []>} : vector<256x256xbf16>, vector<256x128xbf16>, vector<256x128xf32> -> vector<256x128xf32>
    %c0_4 = arith.constant 0 : index
    %c0_5 = arith.constant 0 : index
    %c0_6 = arith.constant 0 : index
    %4 = vector.load %arg13[%c0_4, %c0_5, %c0_6] : memref<9x1x128xf32, #tpu.memory_space<vmem>>, vector<1x1x128xf32>
    %5 = vector.shape_cast %4 : vector<1x1x128xf32> to vector<1x128xf32>
    %6 = vector.broadcast %5 : vector<1x128xf32> to vector<256x128xf32>
    %7 = arith.addf %3, %6 : vector<256x128xf32>
    %cst_7 = arith.constant 0.000000e+00 : f32
    %8 = vector.broadcast %cst_7 : f32 to vector<256x128xf32>
    %9 = arith.maximumf %7, %8 : vector<256x128xf32>
    %10 = tpu.iota {dimensions = array<i32: 0>} : vector<256x128xi32>
    %c4_i32 = arith.constant 4 : i32
    %11 = vector.broadcast %c4_i32 : i32 to vector<256x128xi32>
    %12 = arith.shrsi %10, %11 : vector<256x128xi32>
    %c15_i32 = arith.constant 15 : i32
    %13 = vector.broadcast %c15_i32 : i32 to vector<256x128xi32>
    %14 = arith.andi %10, %13 : vector<256x128xi32>
    %c1_i32 = arith.constant 1 : i32
    %15 = vector.broadcast %c1_i32 : i32 to vector<256x128xi32>
    %16 = arith.cmpi sge, %14, %15 : vector<256x128xi32>
    %c1_i32_8 = arith.constant 1 : i32
    %17 = tpu.dynamic_rotate %9 by %c1_i32_8 dim 0 : vector<256x128xf32>, i32 -> vector<256x128xf32>
    %18 = arith.select %16, %17, %9 : vector<256x128xi1>, vector<256x128xf32>
    %c14_i32 = arith.constant 14 : i32
    %19 = vector.broadcast %c14_i32 : i32 to vector<256x128xi32>
    %20 = arith.cmpi sle, %14, %19 : vector<256x128xi32>
    %c255_i32 = arith.constant 255 : i32
    %21 = tpu.dynamic_rotate %9 by %c255_i32 dim 0 : vector<256x128xf32>, i32 -> vector<256x128xf32>
    %22 = arith.select %20, %21, %9 : vector<256x128xi1>, vector<256x128xf32>
    %23 = arith.maximumf %18, %22 : vector<256x128xf32>
    %24 = arith.maximumf %23, %9 : vector<256x128xf32>
    %c1_i32_9 = arith.constant 1 : i32
    %25 = vector.broadcast %c1_i32_9 : i32 to vector<256x128xi32>
    %26 = arith.cmpi sge, %12, %25 : vector<256x128xi32>
    %c16_i32 = arith.constant 16 : i32
    %27 = tpu.dynamic_rotate %24 by %c16_i32 dim 0 : vector<256x128xf32>, i32 -> vector<256x128xf32>
    %28 = arith.select %26, %27, %24 : vector<256x128xi1>, vector<256x128xf32>
    %c14_i32_10 = arith.constant 14 : i32
    %29 = vector.broadcast %c14_i32_10 : i32 to vector<256x128xi32>
    %30 = arith.cmpi sle, %12, %29 : vector<256x128xi32>
    %c240_i32 = arith.constant 240 : i32
    %31 = tpu.dynamic_rotate %24 by %c240_i32 dim 0 : vector<256x128xf32>, i32 -> vector<256x128xf32>
    %32 = arith.select %30, %31, %24 : vector<256x128xi1>, vector<256x128xf32>
    %33 = arith.maximumf %28, %32 : vector<256x128xf32>
    %34 = arith.maximumf %33, %24 : vector<256x128xf32>
    %c0_11 = arith.constant 0 : index
    %c0_12 = arith.constant 0 : index
    %35 = vector.load %arg14[%c0_11, %c0_12] : memref<64x256xf32, #tpu.memory_space<vmem>>, vector<64x256xf32>
    %cst_13 = arith.constant dense<0.000000e+00> : vector<64x128xf32>
    %36 = tpu.matmul %35, %34, %cst_13 {dimension_numbers = #tpu.dot_dimension_numbers<[1], [0], [0], [1], [0, 0, 1, 1], [], []>} : vector<64x256xf32>, vector<256x128xf32>, vector<64x128xf32> -> vector<64x128xf32>
    %c1 = arith.constant 1 : index
    %c0_14 = arith.constant 0 : index
    %c0_15 = arith.constant 0 : index
    %37 = vector.load %arg13[%c1, %c0_14, %c0_15] : memref<9x1x128xf32, #tpu.memory_space<vmem>>, vector<1x1x128xf32>
    %38 = vector.shape_cast %37 : vector<1x1x128xf32> to vector<1x128xf32>
    %39 = tpu.iota {dimensions = array<i32: 0>} : vector<64x128xi32>
    %c3_i32 = arith.constant 3 : i32
    %40 = vector.broadcast %c3_i32 : i32 to vector<64x128xi32>
    %41 = arith.shrsi %39, %40 : vector<64x128xi32>
    %c7_i32 = arith.constant 7 : i32
    %42 = vector.broadcast %c7_i32 : i32 to vector<64x128xi32>
    %43 = arith.andi %39, %42 : vector<64x128xi32>
    %44 = vector.shape_cast %38 : vector<1x128xf32> to vector<1x128xf32>
    %45 = vector.broadcast %44 : vector<1x128xf32> to vector<64x128xf32>
    %c9_i32 = arith.constant 9 : i32
    %46 = tpu.dynamic_rotate %36 by %c9_i32 dim 0 : vector<64x128xf32>, i32 -> vector<64x128xf32>
    %c1_i32_16 = arith.constant 1 : i32
    %47 = vector.broadcast %c1_i32_16 : i32 to vector<64x128xi32>
    %48 = arith.cmpi sge, %41, %47 : vector<64x128xi32>
    %c1_i32_17 = arith.constant 1 : i32
    %49 = vector.broadcast %c1_i32_17 : i32 to vector<64x128xi32>
    %50 = arith.cmpi sge, %43, %49 : vector<64x128xi32>
    %51 = arith.andi %48, %50 : vector<64x128xi1>
    %cst_18 = arith.constant 0.000000e+00 : f32
    %52 = vector.broadcast %cst_18 : f32 to vector<64x128xf32>
    %53 = arith.select %51, %46, %52 : vector<64x128xi1>, vector<64x128xf32>
    %54 = arith.truncf %53 : vector<64x128xf32> to vector<64x128xbf16>
    %c0_19 = arith.constant 0 : index
    %c0_20 = arith.constant 0 : index
    %c0_21 = arith.constant 0 : index
    %55 = vector.load %arg3[%c0_19, %c0_20, %c0_21] : memref<9x128x128xbf16, #tpu.memory_space<vmem>>, vector<1x128x128xbf16>
    %56 = vector.shape_cast %55 : vector<1x128x128xbf16> to vector<128x128xbf16>
    %cst_22 = arith.constant dense<0.000000e+00> : vector<64x128xf32>
    %57 = tpu.matmul %54, %56, %cst_22 {dimension_numbers = #tpu.dot_dimension_numbers<[1], [0], [0], [1], [0, 0, 1, 1], [], []>} : vector<64x128xbf16>, vector<128x128xbf16>, vector<64x128xf32> -> vector<64x128xf32>
    %58 = arith.addf %45, %57 : vector<64x128xf32>
    %c8_i32 = arith.constant 8 : i32
    %59 = tpu.dynamic_rotate %36 by %c8_i32 dim 0 : vector<64x128xf32>, i32 -> vector<64x128xf32>
    %c1_i32_23 = arith.constant 1 : i32
    %60 = vector.broadcast %c1_i32_23 : i32 to vector<64x128xi32>
    %61 = arith.cmpi sge, %41, %60 : vector<64x128xi32>
    %cst_24 = arith.constant 0.000000e+00 : f32
    %62 = vector.broadcast %cst_24 : f32 to vector<64x128xf32>
    %63 = arith.select %61, %59, %62 : vector<64x128xi1>, vector<64x128xf32>
    %64 = arith.truncf %63 : vector<64x128xf32> to vector<64x128xbf16>
    %c1_25 = arith.constant 1 : index
    %c0_26 = arith.constant 0 : index
    %c0_27 = arith.constant 0 : index
    %65 = vector.load %arg3[%c1_25, %c0_26, %c0_27] : memref<9x128x128xbf16, #tpu.memory_space<vmem>>, vector<1x128x128xbf16>
    %66 = vector.shape_cast %65 : vector<1x128x128xbf16> to vector<128x128xbf16>
    %cst_28 = arith.constant dense<0.000000e+00> : vector<64x128xf32>
    %67 = tpu.matmul %64, %66, %cst_28 {dimension_numbers = #tpu.dot_dimension_numbers<[1], [0], [0], [1], [0, 0, 1, 1], [], []>} : vector<64x128xbf16>, vector<128x128xbf16>, vector<64x128xf32> -> vector<64x128xf32>
    %68 = arith.addf %58, %67 : vector<64x128xf32>
    %c7_i32_29 = arith.constant 7 : i32
    %69 = tpu.dynamic_rotate %36 by %c7_i32_29 dim 0 : vector<64x128xf32>, i32 -> vector<64x128xf32>
    %c1_i32_30 = arith.constant 1 : i32
    %70 = vector.broadcast %c1_i32_30 : i32 to vector<64x128xi32>
    %71 = arith.cmpi sge, %41, %70 : vector<64x128xi32>
    %c6_i32 = arith.constant 6 : i32
    %72 = vector.broadcast %c6_i32 : i32 to vector<64x128xi32>
    %73 = arith.cmpi sle, %43, %72 : vector<64x128xi32>
    %74 = arith.andi %71, %73 : vector<64x128xi1>
    %cst_31 = arith.constant 0.000000e+00 : f32
    %75 = vector.broadcast %cst_31 : f32 to vector<64x128xf32>
    %76 = arith.select %74, %69, %75 : vector<64x128xi1>, vector<64x128xf32>
    %77 = arith.truncf %76 : vector<64x128xf32> to vector<64x128xbf16>
    %c2 = arith.constant 2 : index
    %c0_32 = arith.constant 0 : index
    %c0_33 = arith.constant 0 : index
    %78 = vector.load %arg3[%c2, %c0_32, %c0_33] : memref<9x128x128xbf16, #tpu.memory_space<vmem>>, vector<1x128x128xbf16>
    %79 = vector.shape_cast %78 : vector<1x128x128xbf16> to vector<128x128xbf16>
    %cst_34 = arith.constant dense<0.000000e+00> : vector<64x128xf32>
    %80 = tpu.matmul %77, %79, %cst_34 {dimension_numbers = #tpu.dot_dimension_numbers<[1], [0], [0], [1], [0, 0, 1, 1], [], []>} : vector<64x128xbf16>, vector<128x128xbf16>, vector<64x128xf32> -> vector<64x128xf32>
    %81 = arith.addf %68, %80 : vector<64x128xf32>
    %c1_i32_35 = arith.constant 1 : i32
    %82 = tpu.dynamic_rotate %36 by %c1_i32_35 dim 0 : vector<64x128xf32>, i32 -> vector<64x128xf32>
    %c1_i32_36 = arith.constant 1 : i32
    %83 = vector.broadcast %c1_i32_36 : i32 to vector<64x128xi32>
    %84 = arith.cmpi sge, %43, %83 : vector<64x128xi32>
    %cst_37 = arith.constant 0.000000e+00 : f32
    %85 = vector.broadcast %cst_37 : f32 to vector<64x128xf32>
    %86 = arith.select %84, %82, %85 : vector<64x128xi1>, vector<64x128xf32>
    %87 = arith.truncf %86 : vector<64x128xf32> to vector<64x128xbf16>
    %c3 = arith.constant 3 : index
    %c0_38 = arith.constant 0 : index
    %c0_39 = arith.constant 0 : index
    %88 = vector.load %arg3[%c3, %c0_38, %c0_39] : memref<9x128x128xbf16, #tpu.memory_space<vmem>>, vector<1x128x128xbf16>
    %89 = vector.shape_cast %88 : vector<1x128x128xbf16> to vector<128x128xbf16>
    %cst_40 = arith.constant dense<0.000000e+00> : vector<64x128xf32>
    %90 = tpu.matmul %87, %89, %cst_40 {dimension_numbers = #tpu.dot_dimension_numbers<[1], [0], [0], [1], [0, 0, 1, 1], [], []>} : vector<64x128xbf16>, vector<128x128xbf16>, vector<64x128xf32> -> vector<64x128xf32>
    %91 = arith.addf %81, %90 : vector<64x128xf32>
    %92 = arith.truncf %36 : vector<64x128xf32> to vector<64x128xbf16>
    %c4 = arith.constant 4 : index
    %c0_41 = arith.constant 0 : index
    %c0_42 = arith.constant 0 : index
    %93 = vector.load %arg3[%c4, %c0_41, %c0_42] : memref<9x128x128xbf16, #tpu.memory_space<vmem>>, vector<1x128x128xbf16>
    %94 = vector.shape_cast %93 : vector<1x128x128xbf16> to vector<128x128xbf16>
    %cst_43 = arith.constant dense<0.000000e+00> : vector<64x128xf32>
    %95 = tpu.matmul %92, %94, %cst_43 {dimension_numbers = #tpu.dot_dimension_numbers<[1], [0], [0], [1], [0, 0, 1, 1], [], []>} : vector<64x128xbf16>, vector<128x128xbf16>, vector<64x128xf32> -> vector<64x128xf32>
    %96 = arith.addf %91, %95 : vector<64x128xf32>
    %c63_i32 = arith.constant 63 : i32
    %97 = tpu.dynamic_rotate %36 by %c63_i32 dim 0 : vector<64x128xf32>, i32 -> vector<64x128xf32>
    %c6_i32_44 = arith.constant 6 : i32
    %98 = vector.broadcast %c6_i32_44 : i32 to vector<64x128xi32>
    %99 = arith.cmpi sle, %43, %98 : vector<64x128xi32>
    %cst_45 = arith.constant 0.000000e+00 : f32
    %100 = vector.broadcast %cst_45 : f32 to vector<64x128xf32>
    %101 = arith.select %99, %97, %100 : vector<64x128xi1>, vector<64x128xf32>
    %102 = arith.truncf %101 : vector<64x128xf32> to vector<64x128xbf16>
    %c5 = arith.constant 5 : index
    %c0_46 = arith.constant 0 : index
    %c0_47 = arith.constant 0 : index
    %103 = vector.load %arg3[%c5, %c0_46, %c0_47] : memref<9x128x128xbf16, #tpu.memory_space<vmem>>, vector<1x128x128xbf16>
    %104 = vector.shape_cast %103 : vector<1x128x128xbf16> to vector<128x128xbf16>
    %cst_48 = arith.constant dense<0.000000e+00> : vector<64x128xf32>
    %105 = tpu.matmul %102, %104, %cst_48 {dimension_numbers = #tpu.dot_dimension_numbers<[1], [0], [0], [1], [0, 0, 1, 1], [], []>} : vector<64x128xbf16>, vector<128x128xbf16>, vector<64x128xf32> -> vector<64x128xf32>
    %106 = arith.addf %96, %105 : vector<64x128xf32>
    %c57_i32 = arith.constant 57 : i32
    %107 = tpu.dynamic_rotate %36 by %c57_i32 dim 0 : vector<64x128xf32>, i32 -> vector<64x128xf32>
    %c6_i32_49 = arith.constant 6 : i32
    %108 = vector.broadcast %c6_i32_49 : i32 to vector<64x128xi32>
    %109 = arith.cmpi sle, %41, %108 : vector<64x128xi32>
    %c1_i32_50 = arith.constant 1 : i32
    %110 = vector.broadcast %c1_i32_50 : i32 to vector<64x128xi32>
    %111 = arith.cmpi sge, %43, %110 : vector<64x128xi32>
    %112 = arith.andi %109, %111 : vector<64x128xi1>
    %cst_51 = arith.constant 0.000000e+00 : f32
    %113 = vector.broadcast %cst_51 : f32 to vector<64x128xf32>
    %114 = arith.select %112, %107, %113 : vector<64x128xi1>, vector<64x128xf32>
    %115 = arith.truncf %114 : vector<64x128xf32> to vector<64x128xbf16>
    %c6 = arith.constant 6 : index
    %c0_52 = arith.constant 0 : index
    %c0_53 = arith.constant 0 : index
    %116 = vector.load %arg3[%c6, %c0_52, %c0_53] : memref<9x128x128xbf16, #tpu.memory_space<vmem>>, vector<1x128x128xbf16>
    %117 = vector.shape_cast %116 : vector<1x128x128xbf16> to vector<128x128xbf16>
    %cst_54 = arith.constant dense<0.000000e+00> : vector<64x128xf32>
    %118 = tpu.matmul %115, %117, %cst_54 {dimension_numbers = #tpu.dot_dimension_numbers<[1], [0], [0], [1], [0, 0, 1, 1], [], []>} : vector<64x128xbf16>, vector<128x128xbf16>, vector<64x128xf32> -> vector<64x128xf32>
    %119 = arith.addf %106, %118 : vector<64x128xf32>
    %c56_i32 = arith.constant 56 : i32
    %120 = tpu.dynamic_rotate %36 by %c56_i32 dim 0 : vector<64x128xf32>, i32 -> vector<64x128xf32>
    %c6_i32_55 = arith.constant 6 : i32
    %121 = vector.broadcast %c6_i32_55 : i32 to vector<64x128xi32>
    %122 = arith.cmpi sle, %41, %121 : vector<64x128xi32>
    %cst_56 = arith.constant 0.000000e+00 : f32
    %123 = vector.broadcast %cst_56 : f32 to vector<64x128xf32>
    %124 = arith.select %122, %120, %123 : vector<64x128xi1>, vector<64x128xf32>
    %125 = arith.truncf %124 : vector<64x128xf32> to vector<64x128xbf16>
    %c7 = arith.constant 7 : index
    %c0_57 = arith.constant 0 : index
    %c0_58 = arith.constant 0 : index
    %126 = vector.load %arg3[%c7, %c0_57, %c0_58] : memref<9x128x128xbf16, #tpu.memory_space<vmem>>, vector<1x128x128xbf16>
    %127 = vector.shape_cast %126 : vector<1x128x128xbf16> to vector<128x128xbf16>
    %cst_59 = arith.constant dense<0.000000e+00> : vector<64x128xf32>
    %128 = tpu.matmul %125, %127, %cst_59 {dimension_numbers = #tpu.dot_dimension_numbers<[1], [0], [0], [1], [0, 0, 1, 1], [], []>} : vector<64x128xbf16>, vector<128x128xbf16>, vector<64x128xf32> -> vector<64x128xf32>
    %129 = arith.addf %119, %128 : vector<64x128xf32>
    %c55_i32 = arith.constant 55 : i32
    %130 = tpu.dynamic_rotate %36 by %c55_i32 dim 0 : vector<64x128xf32>, i32 -> vector<64x128xf32>
    %c6_i32_60 = arith.constant 6 : i32
    %131 = vector.broadcast %c6_i32_60 : i32 to vector<64x128xi32>
    %132 = arith.cmpi sle, %41, %131 : vector<64x128xi32>
    %c6_i32_61 = arith.constant 6 : i32
    %133 = vector.broadcast %c6_i32_61 : i32 to vector<64x128xi32>
    %134 = arith.cmpi sle, %43, %133 : vector<64x128xi32>
    %135 = arith.andi %132, %134 : vector<64x128xi1>
    %cst_62 = arith.constant 0.000000e+00 : f32
    %136 = vector.broadcast %cst_62 : f32 to vector<64x128xf32>
    %137 = arith.select %135, %130, %136 : vector<64x128xi1>, vector<64x128xf32>
    %138 = arith.truncf %137 : vector<64x128xf32> to vector<64x128xbf16>
    %c8 = arith.constant 8 : index
    %c0_63 = arith.constant 0 : index
    %c0_64 = arith.constant 0 : index
    %139 = vector.load %arg3[%c8, %c0_63, %c0_64] : memref<9x128x128xbf16, #tpu.memory_space<vmem>>, vector<1x128x128xbf16>
    %140 = vector.shape_cast %139 : vector<1x128x128xbf16> to vector<128x128xbf16>
    %cst_65 = arith.constant dense<0.000000e+00> : vector<64x128xf32>
    %141 = tpu.matmul %138, %140, %cst_65 {dimension_numbers = #tpu.dot_dimension_numbers<[1], [0], [0], [1], [0, 0, 1, 1], [], []>} : vector<64x128xbf16>, vector<128x128xbf16>, vector<64x128xf32> -> vector<64x128xf32>
    %142 = arith.addf %129, %141 : vector<64x128xf32>
    %cst_66 = arith.constant 0.000000e+00 : f32
    %143 = vector.broadcast %cst_66 : f32 to vector<64x128xf32>
    %144 = arith.maximumf %142, %143 : vector<64x128xf32>
    %c2_67 = arith.constant 2 : index
    %c0_68 = arith.constant 0 : index
    %c0_69 = arith.constant 0 : index
    %145 = vector.load %arg13[%c2_67, %c0_68, %c0_69] : memref<9x1x128xf32, #tpu.memory_space<vmem>>, vector<1x1x128xf32>
    %146 = vector.shape_cast %145 : vector<1x1x128xf32> to vector<1x128xf32>
    %147 = tpu.iota {dimensions = array<i32: 0>} : vector<64x128xi32>
    %c3_i32_70 = arith.constant 3 : i32
    %148 = vector.broadcast %c3_i32_70 : i32 to vector<64x128xi32>
    %149 = arith.shrsi %147, %148 : vector<64x128xi32>
    %c7_i32_71 = arith.constant 7 : i32
    %150 = vector.broadcast %c7_i32_71 : i32 to vector<64x128xi32>
    %151 = arith.andi %147, %150 : vector<64x128xi32>
    %152 = vector.shape_cast %146 : vector<1x128xf32> to vector<1x128xf32>
    %153 = vector.broadcast %152 : vector<1x128xf32> to vector<64x128xf32>
    %c9_i32_72 = arith.constant 9 : i32
    %154 = tpu.dynamic_rotate %144 by %c9_i32_72 dim 0 : vector<64x128xf32>, i32 -> vector<64x128xf32>
    %c1_i32_73 = arith.constant 1 : i32
    %155 = vector.broadcast %c1_i32_73 : i32 to vector<64x128xi32>
    %156 = arith.cmpi sge, %149, %155 : vector<64x128xi32>
    %c1_i32_74 = arith.constant 1 : i32
    %157 = vector.broadcast %c1_i32_74 : i32 to vector<64x128xi32>
    %158 = arith.cmpi sge, %151, %157 : vector<64x128xi32>
    %159 = arith.andi %156, %158 : vector<64x128xi1>
    %cst_75 = arith.constant 0.000000e+00 : f32
    %160 = vector.broadcast %cst_75 : f32 to vector<64x128xf32>
    %161 = arith.select %159, %154, %160 : vector<64x128xi1>, vector<64x128xf32>
    %162 = arith.truncf %161 : vector<64x128xf32> to vector<64x128xbf16>
    %c0_76 = arith.constant 0 : index
    %c0_77 = arith.constant 0 : index
    %c0_78 = arith.constant 0 : index
    %163 = vector.load %arg4[%c0_76, %c0_77, %c0_78] : memref<9x128x128xbf16, #tpu.memory_space<vmem>>, vector<1x128x128xbf16>
    %164 = vector.shape_cast %163 : vector<1x128x128xbf16> to vector<128x128xbf16>
    %cst_79 = arith.constant dense<0.000000e+00> : vector<64x128xf32>
    %165 = tpu.matmul %162, %164, %cst_79 {dimension_numbers = #tpu.dot_dimension_numbers<[1], [0], [0], [1], [0, 0, 1, 1], [], []>} : vector<64x128xbf16>, vector<128x128xbf16>, vector<64x128xf32> -> vector<64x128xf32>
    %166 = arith.addf %153, %165 : vector<64x128xf32>
    %c8_i32_80 = arith.constant 8 : i32
    %167 = tpu.dynamic_rotate %144 by %c8_i32_80 dim 0 : vector<64x128xf32>, i32 -> vector<64x128xf32>
    %c1_i32_81 = arith.constant 1 : i32
    %168 = vector.broadcast %c1_i32_81 : i32 to vector<64x128xi32>
    %169 = arith.cmpi sge, %149, %168 : vector<64x128xi32>
    %cst_82 = arith.constant 0.000000e+00 : f32
    %170 = vector.broadcast %cst_82 : f32 to vector<64x128xf32>
    %171 = arith.select %169, %167, %170 : vector<64x128xi1>, vector<64x128xf32>
    %172 = arith.truncf %171 : vector<64x128xf32> to vector<64x128xbf16>
    %c1_83 = arith.constant 1 : index
    %c0_84 = arith.constant 0 : index
    %c0_85 = arith.constant 0 : index
    %173 = vector.load %arg4[%c1_83, %c0_84, %c0_85] : memref<9x128x128xbf16, #tpu.memory_space<vmem>>, vector<1x128x128xbf16>
    %174 = vector.shape_cast %173 : vector<1x128x128xbf16> to vector<128x128xbf16>
    %cst_86 = arith.constant dense<0.000000e+00> : vector<64x128xf32>
    %175 = tpu.matmul %172, %174, %cst_86 {dimension_numbers = #tpu.dot_dimension_numbers<[1], [0], [0], [1], [0, 0, 1, 1], [], []>} : vector<64x128xbf16>, vector<128x128xbf16>, vector<64x128xf32> -> vector<64x128xf32>
    %176 = arith.addf %166, %175 : vector<64x128xf32>
    %c7_i32_87 = arith.constant 7 : i32
    %177 = tpu.dynamic_rotate %144 by %c7_i32_87 dim 0 : vector<64x128xf32>, i32 -> vector<64x128xf32>
    %c1_i32_88 = arith.constant 1 : i32
    %178 = vector.broadcast %c1_i32_88 : i32 to vector<64x128xi32>
    %179 = arith.cmpi sge, %149, %178 : vector<64x128xi32>
    %c6_i32_89 = arith.constant 6 : i32
    %180 = vector.broadcast %c6_i32_89 : i32 to vector<64x128xi32>
    %181 = arith.cmpi sle, %151, %180 : vector<64x128xi32>
    %182 = arith.andi %179, %181 : vector<64x128xi1>
    %cst_90 = arith.constant 0.000000e+00 : f32
    %183 = vector.broadcast %cst_90 : f32 to vector<64x128xf32>
    %184 = arith.select %182, %177, %183 : vector<64x128xi1>, vector<64x128xf32>
    %185 = arith.truncf %184 : vector<64x128xf32> to vector<64x128xbf16>
    %c2_91 = arith.constant 2 : index
    %c0_92 = arith.constant 0 : index
    %c0_93 = arith.constant 0 : index
    %186 = vector.load %arg4[%c2_91, %c0_92, %c0_93] : memref<9x128x128xbf16, #tpu.memory_space<vmem>>, vector<1x128x128xbf16>
    %187 = vector.shape_cast %186 : vector<1x128x128xbf16> to vector<128x128xbf16>
    %cst_94 = arith.constant dense<0.000000e+00> : vector<64x128xf32>
    %188 = tpu.matmul %185, %187, %cst_94 {dimension_numbers = #tpu.dot_dimension_numbers<[1], [0], [0], [1], [0, 0, 1, 1], [], []>} : vector<64x128xbf16>, vector<128x128xbf16>, vector<64x128xf32> -> vector<64x128xf32>
    %189 = arith.addf %176, %188 : vector<64x128xf32>
    %c1_i32_95 = arith.constant 1 : i32
    %190 = tpu.dynamic_rotate %144 by %c1_i32_95 dim 0 : vector<64x128xf32>, i32 -> vector<64x128xf32>
    %c1_i32_96 = arith.constant 1 : i32
    %191 = vector.broadcast %c1_i32_96 : i32 to vector<64x128xi32>
    %192 = arith.cmpi sge, %151, %191 : vector<64x128xi32>
    %cst_97 = arith.constant 0.000000e+00 : f32
    %193 = vector.broadcast %cst_97 : f32 to vector<64x128xf32>
    %194 = arith.select %192, %190, %193 : vector<64x128xi1>, vector<64x128xf32>
    %195 = arith.truncf %194 : vector<64x128xf32> to vector<64x128xbf16>
    %c3_98 = arith.constant 3 : index
    %c0_99 = arith.constant 0 : index
    %c0_100 = arith.constant 0 : index
    %196 = vector.load %arg4[%c3_98, %c0_99, %c0_100] : memref<9x128x128xbf16, #tpu.memory_space<vmem>>, vector<1x128x128xbf16>
    %197 = vector.shape_cast %196 : vector<1x128x128xbf16> to vector<128x128xbf16>
    %cst_101 = arith.constant dense<0.000000e+00> : vector<64x128xf32>
    %198 = tpu.matmul %195, %197, %cst_101 {dimension_numbers = #tpu.dot_dimension_numbers<[1], [0], [0], [1], [0, 0, 1, 1], [], []>} : vector<64x128xbf16>, vector<128x128xbf16>, vector<64x128xf32> -> vector<64x128xf32>
    %199 = arith.addf %189, %198 : vector<64x128xf32>
    %200 = arith.truncf %144 : vector<64x128xf32> to vector<64x128xbf16>
    %c4_102 = arith.constant 4 : index
    %c0_103 = arith.constant 0 : index
    %c0_104 = arith.constant 0 : index
    %201 = vector.load %arg4[%c4_102, %c0_103, %c0_104] : memref<9x128x128xbf16, #tpu.memory_space<vmem>>, vector<1x128x128xbf16>
    %202 = vector.shape_cast %201 : vector<1x128x128xbf16> to vector<128x128xbf16>
    %cst_105 = arith.constant dense<0.000000e+00> : vector<64x128xf32>
    %203 = tpu.matmul %200, %202, %cst_105 {dimension_numbers = #tpu.dot_dimension_numbers<[1], [0], [0], [1], [0, 0, 1, 1], [], []>} : vector<64x128xbf16>, vector<128x128xbf16>, vector<64x128xf32> -> vector<64x128xf32>
    %204 = arith.addf %199, %203 : vector<64x128xf32>
    %c63_i32_106 = arith.constant 63 : i32
    %205 = tpu.dynamic_rotate %144 by %c63_i32_106 dim 0 : vector<64x128xf32>, i32 -> vector<64x128xf32>
    %c6_i32_107 = arith.constant 6 : i32
    %206 = vector.broadcast %c6_i32_107 : i32 to vector<64x128xi32>
    %207 = arith.cmpi sle, %151, %206 : vector<64x128xi32>
    %cst_108 = arith.constant 0.000000e+00 : f32
    %208 = vector.broadcast %cst_108 : f32 to vector<64x128xf32>
    %209 = arith.select %207, %205, %208 : vector<64x128xi1>, vector<64x128xf32>
    %210 = arith.truncf %209 : vector<64x128xf32> to vector<64x128xbf16>
    %c5_109 = arith.constant 5 : index
    %c0_110 = arith.constant 0 : index
    %c0_111 = arith.constant 0 : index
    %211 = vector.load %arg4[%c5_109, %c0_110, %c0_111] : memref<9x128x128xbf16, #tpu.memory_space<vmem>>, vector<1x128x128xbf16>
    %212 = vector.shape_cast %211 : vector<1x128x128xbf16> to vector<128x128xbf16>
    %cst_112 = arith.constant dense<0.000000e+00> : vector<64x128xf32>
    %213 = tpu.matmul %210, %212, %cst_112 {dimension_numbers = #tpu.dot_dimension_numbers<[1], [0], [0], [1], [0, 0, 1, 1], [], []>} : vector<64x128xbf16>, vector<128x128xbf16>, vector<64x128xf32> -> vector<64x128xf32>
    %214 = arith.addf %204, %213 : vector<64x128xf32>
    %c57_i32_113 = arith.constant 57 : i32
    %215 = tpu.dynamic_rotate %144 by %c57_i32_113 dim 0 : vector<64x128xf32>, i32 -> vector<64x128xf32>
    %c6_i32_114 = arith.constant 6 : i32
    %216 = vector.broadcast %c6_i32_114 : i32 to vector<64x128xi32>
    %217 = arith.cmpi sle, %149, %216 : vector<64x128xi32>
    %c1_i32_115 = arith.constant 1 : i32
    %218 = vector.broadcast %c1_i32_115 : i32 to vector<64x128xi32>
    %219 = arith.cmpi sge, %151, %218 : vector<64x128xi32>
    %220 = arith.andi %217, %219 : vector<64x128xi1>
    %cst_116 = arith.constant 0.000000e+00 : f32
    %221 = vector.broadcast %cst_116 : f32 to vector<64x128xf32>
    %222 = arith.select %220, %215, %221 : vector<64x128xi1>, vector<64x128xf32>
    %223 = arith.truncf %222 : vector<64x128xf32> to vector<64x128xbf16>
    %c6_117 = arith.constant 6 : index
    %c0_118 = arith.constant 0 : index
    %c0_119 = arith.constant 0 : index
    %224 = vector.load %arg4[%c6_117, %c0_118, %c0_119] : memref<9x128x128xbf16, #tpu.memory_space<vmem>>, vector<1x128x128xbf16>
    %225 = vector.shape_cast %224 : vector<1x128x128xbf16> to vector<128x128xbf16>
    %cst_120 = arith.constant dense<0.000000e+00> : vector<64x128xf32>
    %226 = tpu.matmul %223, %225, %cst_120 {dimension_numbers = #tpu.dot_dimension_numbers<[1], [0], [0], [1], [0, 0, 1, 1], [], []>} : vector<64x128xbf16>, vector<128x128xbf16>, vector<64x128xf32> -> vector<64x128xf32>
    %227 = arith.addf %214, %226 : vector<64x128xf32>
    %c56_i32_121 = arith.constant 56 : i32
    %228 = tpu.dynamic_rotate %144 by %c56_i32_121 dim 0 : vector<64x128xf32>, i32 -> vector<64x128xf32>
    %c6_i32_122 = arith.constant 6 : i32
    %229 = vector.broadcast %c6_i32_122 : i32 to vector<64x128xi32>
    %230 = arith.cmpi sle, %149, %229 : vector<64x128xi32>
    %cst_123 = arith.constant 0.000000e+00 : f32
    %231 = vector.broadcast %cst_123 : f32 to vector<64x128xf32>
    %232 = arith.select %230, %228, %231 : vector<64x128xi1>, vector<64x128xf32>
    %233 = arith.truncf %232 : vector<64x128xf32> to vector<64x128xbf16>
    %c7_124 = arith.constant 7 : index
    %c0_125 = arith.constant 0 : index
    %c0_126 = arith.constant 0 : index
    %234 = vector.load %arg4[%c7_124, %c0_125, %c0_126] : memref<9x128x128xbf16, #tpu.memory_space<vmem>>, vector<1x128x128xbf16>
    %235 = vector.shape_cast %234 : vector<1x128x128xbf16> to vector<128x128xbf16>
    %cst_127 = arith.constant dense<0.000000e+00> : vector<64x128xf32>
    %236 = tpu.matmul %233, %235, %cst_127 {dimension_numbers = #tpu.dot_dimension_numbers<[1], [0], [0], [1], [0, 0, 1, 1], [], []>} : vector<64x128xbf16>, vector<128x128xbf16>, vector<64x128xf32> -> vector<64x128xf32>
    %237 = arith.addf %227, %236 : vector<64x128xf32>
    %c55_i32_128 = arith.constant 55 : i32
    %238 = tpu.dynamic_rotate %144 by %c55_i32_128 dim 0 : vector<64x128xf32>, i32 -> vector<64x128xf32>
    %c6_i32_129 = arith.constant 6 : i32
    %239 = vector.broadcast %c6_i32_129 : i32 to vector<64x128xi32>
    %240 = arith.cmpi sle, %149, %239 : vector<64x128xi32>
    %c6_i32_130 = arith.constant 6 : i32
    %241 = vector.broadcast %c6_i32_130 : i32 to vector<64x128xi32>
    %242 = arith.cmpi sle, %151, %241 : vector<64x128xi32>
    %243 = arith.andi %240, %242 : vector<64x128xi1>
    %cst_131 = arith.constant 0.000000e+00 : f32
    %244 = vector.broadcast %cst_131 : f32 to vector<64x128xf32>
    %245 = arith.select %243, %238, %244 : vector<64x128xi1>, vector<64x128xf32>
    %246 = arith.truncf %245 : vector<64x128xf32> to vector<64x128xbf16>
    %c8_132 = arith.constant 8 : index
    %c0_133 = arith.constant 0 : index
    %c0_134 = arith.constant 0 : index
    %247 = vector.load %arg4[%c8_132, %c0_133, %c0_134] : memref<9x128x128xbf16, #tpu.memory_space<vmem>>, vector<1x128x128xbf16>
    %248 = vector.shape_cast %247 : vector<1x128x128xbf16> to vector<128x128xbf16>
    %cst_135 = arith.constant dense<0.000000e+00> : vector<64x128xf32>
    %249 = tpu.matmul %246, %248, %cst_135 {dimension_numbers = #tpu.dot_dimension_numbers<[1], [0], [0], [1], [0, 0, 1, 1], [], []>} : vector<64x128xbf16>, vector<128x128xbf16>, vector<64x128xf32> -> vector<64x128xf32>
    %250 = arith.addf %237, %249 : vector<64x128xf32>
    %251 = arith.addf %250, %36 : vector<64x128xf32>
    %cst_136 = arith.constant 0.000000e+00 : f32
    %252 = vector.broadcast %cst_136 : f32 to vector<64x128xf32>
    %253 = arith.maximumf %251, %252 : vector<64x128xf32>
    %c3_137 = arith.constant 3 : index
    %c0_138 = arith.constant 0 : index
    %c0_139 = arith.constant 0 : index
    %254 = vector.load %arg13[%c3_137, %c0_138, %c0_139] : memref<9x1x128xf32, #tpu.memory_space<vmem>>, vector<1x1x128xf32>
    %255 = vector.shape_cast %254 : vector<1x1x128xf32> to vector<1x128xf32>
    %256 = tpu.iota {dimensions = array<i32: 0>} : vector<64x128xi32>
    %c3_i32_140 = arith.constant 3 : i32
    %257 = vector.broadcast %c3_i32_140 : i32 to vector<64x128xi32>
    %258 = arith.shrsi %256, %257 : vector<64x128xi32>
    %c7_i32_141 = arith.constant 7 : i32
    %259 = vector.broadcast %c7_i32_141 : i32 to vector<64x128xi32>
    %260 = arith.andi %256, %259 : vector<64x128xi32>
    %261 = vector.shape_cast %255 : vector<1x128xf32> to vector<1x128xf32>
    %262 = vector.broadcast %261 : vector<1x128xf32> to vector<64x128xf32>
    %c9_i32_142 = arith.constant 9 : i32
    %263 = tpu.dynamic_rotate %253 by %c9_i32_142 dim 0 : vector<64x128xf32>, i32 -> vector<64x128xf32>
    %c1_i32_143 = arith.constant 1 : i32
    %264 = vector.broadcast %c1_i32_143 : i32 to vector<64x128xi32>
    %265 = arith.cmpi sge, %258, %264 : vector<64x128xi32>
    %c1_i32_144 = arith.constant 1 : i32
    %266 = vector.broadcast %c1_i32_144 : i32 to vector<64x128xi32>
    %267 = arith.cmpi sge, %260, %266 : vector<64x128xi32>
    %268 = arith.andi %265, %267 : vector<64x128xi1>
    %cst_145 = arith.constant 0.000000e+00 : f32
    %269 = vector.broadcast %cst_145 : f32 to vector<64x128xf32>
    %270 = arith.select %268, %263, %269 : vector<64x128xi1>, vector<64x128xf32>
    %271 = arith.truncf %270 : vector<64x128xf32> to vector<64x128xbf16>
    %c0_146 = arith.constant 0 : index
    %c0_147 = arith.constant 0 : index
    %c0_148 = arith.constant 0 : index
    %272 = vector.load %arg5[%c0_146, %c0_147, %c0_148] : memref<9x128x128xbf16, #tpu.memory_space<vmem>>, vector<1x128x128xbf16>
    %273 = vector.shape_cast %272 : vector<1x128x128xbf16> to vector<128x128xbf16>
    %cst_149 = arith.constant dense<0.000000e+00> : vector<64x128xf32>
    %274 = tpu.matmul %271, %273, %cst_149 {dimension_numbers = #tpu.dot_dimension_numbers<[1], [0], [0], [1], [0, 0, 1, 1], [], []>} : vector<64x128xbf16>, vector<128x128xbf16>, vector<64x128xf32> -> vector<64x128xf32>
    %275 = arith.addf %262, %274 : vector<64x128xf32>
    %c8_i32_150 = arith.constant 8 : i32
    %276 = tpu.dynamic_rotate %253 by %c8_i32_150 dim 0 : vector<64x128xf32>, i32 -> vector<64x128xf32>
    %c1_i32_151 = arith.constant 1 : i32
    %277 = vector.broadcast %c1_i32_151 : i32 to vector<64x128xi32>
    %278 = arith.cmpi sge, %258, %277 : vector<64x128xi32>
    %cst_152 = arith.constant 0.000000e+00 : f32
    %279 = vector.broadcast %cst_152 : f32 to vector<64x128xf32>
    %280 = arith.select %278, %276, %279 : vector<64x128xi1>, vector<64x128xf32>
    %281 = arith.truncf %280 : vector<64x128xf32> to vector<64x128xbf16>
    %c1_153 = arith.constant 1 : index
    %c0_154 = arith.constant 0 : index
    %c0_155 = arith.constant 0 : index
    %282 = vector.load %arg5[%c1_153, %c0_154, %c0_155] : memref<9x128x128xbf16, #tpu.memory_space<vmem>>, vector<1x128x128xbf16>
    %283 = vector.shape_cast %282 : vector<1x128x128xbf16> to vector<128x128xbf16>
    %cst_156 = arith.constant dense<0.000000e+00> : vector<64x128xf32>
    %284 = tpu.matmul %281, %283, %cst_156 {dimension_numbers = #tpu.dot_dimension_numbers<[1], [0], [0], [1], [0, 0, 1, 1], [], []>} : vector<64x128xbf16>, vector<128x128xbf16>, vector<64x128xf32> -> vector<64x128xf32>
    %285 = arith.addf %275, %284 : vector<64x128xf32>
    %c7_i32_157 = arith.constant 7 : i32
    %286 = tpu.dynamic_rotate %253 by %c7_i32_157 dim 0 : vector<64x128xf32>, i32 -> vector<64x128xf32>
    %c1_i32_158 = arith.constant 1 : i32
    %287 = vector.broadcast %c1_i32_158 : i32 to vector<64x128xi32>
    %288 = arith.cmpi sge, %258, %287 : vector<64x128xi32>
    %c6_i32_159 = arith.constant 6 : i32
    %289 = vector.broadcast %c6_i32_159 : i32 to vector<64x128xi32>
    %290 = arith.cmpi sle, %260, %289 : vector<64x128xi32>
    %291 = arith.andi %288, %290 : vector<64x128xi1>
    %cst_160 = arith.constant 0.000000e+00 : f32
    %292 = vector.broadcast %cst_160 : f32 to vector<64x128xf32>
    %293 = arith.select %291, %286, %292 : vector<64x128xi1>, vector<64x128xf32>
    %294 = arith.truncf %293 : vector<64x128xf32> to vector<64x128xbf16>
    %c2_161 = arith.constant 2 : index
    %c0_162 = arith.constant 0 : index
    %c0_163 = arith.constant 0 : index
    %295 = vector.load %arg5[%c2_161, %c0_162, %c0_163] : memref<9x128x128xbf16, #tpu.memory_space<vmem>>, vector<1x128x128xbf16>
    %296 = vector.shape_cast %295 : vector<1x128x128xbf16> to vector<128x128xbf16>
    %cst_164 = arith.constant dense<0.000000e+00> : vector<64x128xf32>
    %297 = tpu.matmul %294, %296, %cst_164 {dimension_numbers = #tpu.dot_dimension_numbers<[1], [0], [0], [1], [0, 0, 1, 1], [], []>} : vector<64x128xbf16>, vector<128x128xbf16>, vector<64x128xf32> -> vector<64x128xf32>
    %298 = arith.addf %285, %297 : vector<64x128xf32>
    %c1_i32_165 = arith.constant 1 : i32
    %299 = tpu.dynamic_rotate %253 by %c1_i32_165 dim 0 : vector<64x128xf32>, i32 -> vector<64x128xf32>
    %c1_i32_166 = arith.constant 1 : i32
    %300 = vector.broadcast %c1_i32_166 : i32 to vector<64x128xi32>
    %301 = arith.cmpi sge, %260, %300 : vector<64x128xi32>
    %cst_167 = arith.constant 0.000000e+00 : f32
    %302 = vector.broadcast %cst_167 : f32 to vector<64x128xf32>
    %303 = arith.select %301, %299, %302 : vector<64x128xi1>, vector<64x128xf32>
    %304 = arith.truncf %303 : vector<64x128xf32> to vector<64x128xbf16>
    %c3_168 = arith.constant 3 : index
    %c0_169 = arith.constant 0 : index
    %c0_170 = arith.constant 0 : index
    %305 = vector.load %arg5[%c3_168, %c0_169, %c0_170] : memref<9x128x128xbf16, #tpu.memory_space<vmem>>, vector<1x128x128xbf16>
    %306 = vector.shape_cast %305 : vector<1x128x128xbf16> to vector<128x128xbf16>
    %cst_171 = arith.constant dense<0.000000e+00> : vector<64x128xf32>
    %307 = tpu.matmul %304, %306, %cst_171 {dimension_numbers = #tpu.dot_dimension_numbers<[1], [0], [0], [1], [0, 0, 1, 1], [], []>} : vector<64x128xbf16>, vector<128x128xbf16>, vector<64x128xf32> -> vector<64x128xf32>
    %308 = arith.addf %298, %307 : vector<64x128xf32>
    %309 = arith.truncf %253 : vector<64x128xf32> to vector<64x128xbf16>
    %c4_172 = arith.constant 4 : index
    %c0_173 = arith.constant 0 : index
    %c0_174 = arith.constant 0 : index
    %310 = vector.load %arg5[%c4_172, %c0_173, %c0_174] : memref<9x128x128xbf16, #tpu.memory_space<vmem>>, vector<1x128x128xbf16>
    %311 = vector.shape_cast %310 : vector<1x128x128xbf16> to vector<128x128xbf16>
    %cst_175 = arith.constant dense<0.000000e+00> : vector<64x128xf32>
    %312 = tpu.matmul %309, %311, %cst_175 {dimension_numbers = #tpu.dot_dimension_numbers<[1], [0], [0], [1], [0, 0, 1, 1], [], []>} : vector<64x128xbf16>, vector<128x128xbf16>, vector<64x128xf32> -> vector<64x128xf32>
    %313 = arith.addf %308, %312 : vector<64x128xf32>
    %c63_i32_176 = arith.constant 63 : i32
    %314 = tpu.dynamic_rotate %253 by %c63_i32_176 dim 0 : vector<64x128xf32>, i32 -> vector<64x128xf32>
    %c6_i32_177 = arith.constant 6 : i32
    %315 = vector.broadcast %c6_i32_177 : i32 to vector<64x128xi32>
    %316 = arith.cmpi sle, %260, %315 : vector<64x128xi32>
    %cst_178 = arith.constant 0.000000e+00 : f32
    %317 = vector.broadcast %cst_178 : f32 to vector<64x128xf32>
    %318 = arith.select %316, %314, %317 : vector<64x128xi1>, vector<64x128xf32>
    %319 = arith.truncf %318 : vector<64x128xf32> to vector<64x128xbf16>
    %c5_179 = arith.constant 5 : index
    %c0_180 = arith.constant 0 : index
    %c0_181 = arith.constant 0 : index
    %320 = vector.load %arg5[%c5_179, %c0_180, %c0_181] : memref<9x128x128xbf16, #tpu.memory_space<vmem>>, vector<1x128x128xbf16>
    %321 = vector.shape_cast %320 : vector<1x128x128xbf16> to vector<128x128xbf16>
    %cst_182 = arith.constant dense<0.000000e+00> : vector<64x128xf32>
    %322 = tpu.matmul %319, %321, %cst_182 {dimension_numbers = #tpu.dot_dimension_numbers<[1], [0], [0], [1], [0, 0, 1, 1], [], []>} : vector<64x128xbf16>, vector<128x128xbf16>, vector<64x128xf32> -> vector<64x128xf32>
    %323 = arith.addf %313, %322 : vector<64x128xf32>
    %c57_i32_183 = arith.constant 57 : i32
    %324 = tpu.dynamic_rotate %253 by %c57_i32_183 dim 0 : vector<64x128xf32>, i32 -> vector<64x128xf32>
    %c6_i32_184 = arith.constant 6 : i32
    %325 = vector.broadcast %c6_i32_184 : i32 to vector<64x128xi32>
    %326 = arith.cmpi sle, %258, %325 : vector<64x128xi32>
    %c1_i32_185 = arith.constant 1 : i32
    %327 = vector.broadcast %c1_i32_185 : i32 to vector<64x128xi32>
    %328 = arith.cmpi sge, %260, %327 : vector<64x128xi32>
    %329 = arith.andi %326, %328 : vector<64x128xi1>
    %cst_186 = arith.constant 0.000000e+00 : f32
    %330 = vector.broadcast %cst_186 : f32 to vector<64x128xf32>
    %331 = arith.select %329, %324, %330 : vector<64x128xi1>, vector<64x128xf32>
    %332 = arith.truncf %331 : vector<64x128xf32> to vector<64x128xbf16>
    %c6_187 = arith.constant 6 : index
    %c0_188 = arith.constant 0 : index
    %c0_189 = arith.constant 0 : index
    %333 = vector.load %arg5[%c6_187, %c0_188, %c0_189] : memref<9x128x128xbf16, #tpu.memory_space<vmem>>, vector<1x128x128xbf16>
    %334 = vector.shape_cast %333 : vector<1x128x128xbf16> to vector<128x128xbf16>
    %cst_190 = arith.constant dense<0.000000e+00> : vector<64x128xf32>
    %335 = tpu.matmul %332, %334, %cst_190 {dimension_numbers = #tpu.dot_dimension_numbers<[1], [0], [0], [1], [0, 0, 1, 1], [], []>} : vector<64x128xbf16>, vector<128x128xbf16>, vector<64x128xf32> -> vector<64x128xf32>
    %336 = arith.addf %323, %335 : vector<64x128xf32>
    %c56_i32_191 = arith.constant 56 : i32
    %337 = tpu.dynamic_rotate %253 by %c56_i32_191 dim 0 : vector<64x128xf32>, i32 -> vector<64x128xf32>
    %c6_i32_192 = arith.constant 6 : i32
    %338 = vector.broadcast %c6_i32_192 : i32 to vector<64x128xi32>
    %339 = arith.cmpi sle, %258, %338 : vector<64x128xi32>
    %cst_193 = arith.constant 0.000000e+00 : f32
    %340 = vector.broadcast %cst_193 : f32 to vector<64x128xf32>
    %341 = arith.select %339, %337, %340 : vector<64x128xi1>, vector<64x128xf32>
    %342 = arith.truncf %341 : vector<64x128xf32> to vector<64x128xbf16>
    %c7_194 = arith.constant 7 : index
    %c0_195 = arith.constant 0 : index
    %c0_196 = arith.constant 0 : index
    %343 = vector.load %arg5[%c7_194, %c0_195, %c0_196] : memref<9x128x128xbf16, #tpu.memory_space<vmem>>, vector<1x128x128xbf16>
    %344 = vector.shape_cast %343 : vector<1x128x128xbf16> to vector<128x128xbf16>
    %cst_197 = arith.constant dense<0.000000e+00> : vector<64x128xf32>
    %345 = tpu.matmul %342, %344, %cst_197 {dimension_numbers = #tpu.dot_dimension_numbers<[1], [0], [0], [1], [0, 0, 1, 1], [], []>} : vector<64x128xbf16>, vector<128x128xbf16>, vector<64x128xf32> -> vector<64x128xf32>
    %346 = arith.addf %336, %345 : vector<64x128xf32>
    %c55_i32_198 = arith.constant 55 : i32
    %347 = tpu.dynamic_rotate %253 by %c55_i32_198 dim 0 : vector<64x128xf32>, i32 -> vector<64x128xf32>
    %c6_i32_199 = arith.constant 6 : i32
    %348 = vector.broadcast %c6_i32_199 : i32 to vector<64x128xi32>
    %349 = arith.cmpi sle, %258, %348 : vector<64x128xi32>
    %c6_i32_200 = arith.constant 6 : i32
    %350 = vector.broadcast %c6_i32_200 : i32 to vector<64x128xi32>
    %351 = arith.cmpi sle, %260, %350 : vector<64x128xi32>
    %352 = arith.andi %349, %351 : vector<64x128xi1>
    %cst_201 = arith.constant 0.000000e+00 : f32
    %353 = vector.broadcast %cst_201 : f32 to vector<64x128xf32>
    %354 = arith.select %352, %347, %353 : vector<64x128xi1>, vector<64x128xf32>
    %355 = arith.truncf %354 : vector<64x128xf32> to vector<64x128xbf16>
    %c8_202 = arith.constant 8 : index
    %c0_203 = arith.constant 0 : index
    %c0_204 = arith.constant 0 : index
    %356 = vector.load %arg5[%c8_202, %c0_203, %c0_204] : memref<9x128x128xbf16, #tpu.memory_space<vmem>>, vector<1x128x128xbf16>
    %357 = vector.shape_cast %356 : vector<1x128x128xbf16> to vector<128x128xbf16>
    %cst_205 = arith.constant dense<0.000000e+00> : vector<64x128xf32>
    %358 = tpu.matmul %355, %357, %cst_205 {dimension_numbers = #tpu.dot_dimension_numbers<[1], [0], [0], [1], [0, 0, 1, 1], [], []>} : vector<64x128xbf16>, vector<128x128xbf16>, vector<64x128xf32> -> vector<64x128xf32>
    %359 = arith.addf %346, %358 : vector<64x128xf32>
    %c0_206 = arith.constant 0 : index
    %c0_207 = arith.constant 0 : index
    %360 = vector.load %arg15[%c0_206, %c0_207] : memref<16x64xf32, #tpu.memory_space<vmem>>, vector<16x64xf32>
    %cst_208 = arith.constant dense<0.000000e+00> : vector<16x128xf32>
    %361 = tpu.matmul %360, %359, %cst_208 {dimension_numbers = #tpu.dot_dimension_numbers<[1], [0], [0], [1], [0, 0, 1, 1], [], []>} : vector<16x64xf32>, vector<64x128xf32>, vector<16x128xf32> -> vector<16x128xf32>
    %cst_209 = arith.constant 0.000000e+00 : f32
    %362 = vector.broadcast %cst_209 : f32 to vector<16x128xf32>
    %363 = arith.maximumf %361, %362 : vector<16x128xf32>
    %c4_210 = arith.constant 4 : index
    %c0_211 = arith.constant 0 : index
    %c0_212 = arith.constant 0 : index
    %364 = vector.load %arg13[%c4_210, %c0_211, %c0_212] : memref<9x1x128xf32, #tpu.memory_space<vmem>>, vector<1x1x128xf32>
    %365 = vector.shape_cast %364 : vector<1x1x128xf32> to vector<1x128xf32>
    %366 = tpu.iota {dimensions = array<i32: 0>} : vector<16x128xi32>
    %c2_i32 = arith.constant 2 : i32
    %367 = vector.broadcast %c2_i32 : i32 to vector<16x128xi32>
    %368 = arith.shrsi %366, %367 : vector<16x128xi32>
    %c3_i32_213 = arith.constant 3 : i32
    %369 = vector.broadcast %c3_i32_213 : i32 to vector<16x128xi32>
    %370 = arith.andi %366, %369 : vector<16x128xi32>
    %371 = vector.shape_cast %365 : vector<1x128xf32> to vector<1x128xf32>
    %372 = vector.broadcast %371 : vector<1x128xf32> to vector<16x128xf32>
    %c5_i32 = arith.constant 5 : i32
    %373 = tpu.dynamic_rotate %363 by %c5_i32 dim 0 : vector<16x128xf32>, i32 -> vector<16x128xf32>
    %c1_i32_214 = arith.constant 1 : i32
    %374 = vector.broadcast %c1_i32_214 : i32 to vector<16x128xi32>
    %375 = arith.cmpi sge, %368, %374 : vector<16x128xi32>
    %c1_i32_215 = arith.constant 1 : i32
    %376 = vector.broadcast %c1_i32_215 : i32 to vector<16x128xi32>
    %377 = arith.cmpi sge, %370, %376 : vector<16x128xi32>
    %378 = arith.andi %375, %377 : vector<16x128xi1>
    %cst_216 = arith.constant 0.000000e+00 : f32
    %379 = vector.broadcast %cst_216 : f32 to vector<16x128xf32>
    %380 = arith.select %378, %373, %379 : vector<16x128xi1>, vector<16x128xf32>
    %381 = arith.truncf %380 : vector<16x128xf32> to vector<16x128xbf16>
    %c0_217 = arith.constant 0 : index
    %c0_218 = arith.constant 0 : index
    %c0_219 = arith.constant 0 : index
    %382 = vector.load %arg6[%c0_217, %c0_218, %c0_219] : memref<9x128x128xbf16, #tpu.memory_space<vmem>>, vector<1x128x128xbf16>
    %383 = vector.shape_cast %382 : vector<1x128x128xbf16> to vector<128x128xbf16>
    %cst_220 = arith.constant dense<0.000000e+00> : vector<16x128xf32>
    %384 = tpu.matmul %381, %383, %cst_220 {dimension_numbers = #tpu.dot_dimension_numbers<[1], [0], [0], [1], [0, 0, 1, 1], [], []>} : vector<16x128xbf16>, vector<128x128xbf16>, vector<16x128xf32> -> vector<16x128xf32>
    %385 = arith.addf %372, %384 : vector<16x128xf32>
    %c4_i32_221 = arith.constant 4 : i32
    %386 = tpu.dynamic_rotate %363 by %c4_i32_221 dim 0 : vector<16x128xf32>, i32 -> vector<16x128xf32>
    %c1_i32_222 = arith.constant 1 : i32
    %387 = vector.broadcast %c1_i32_222 : i32 to vector<16x128xi32>
    %388 = arith.cmpi sge, %368, %387 : vector<16x128xi32>
    %cst_223 = arith.constant 0.000000e+00 : f32
    %389 = vector.broadcast %cst_223 : f32 to vector<16x128xf32>
    %390 = arith.select %388, %386, %389 : vector<16x128xi1>, vector<16x128xf32>
    %391 = arith.truncf %390 : vector<16x128xf32> to vector<16x128xbf16>
    %c1_224 = arith.constant 1 : index
    %c0_225 = arith.constant 0 : index
    %c0_226 = arith.constant 0 : index
    %392 = vector.load %arg6[%c1_224, %c0_225, %c0_226] : memref<9x128x128xbf16, #tpu.memory_space<vmem>>, vector<1x128x128xbf16>
    %393 = vector.shape_cast %392 : vector<1x128x128xbf16> to vector<128x128xbf16>
    %cst_227 = arith.constant dense<0.000000e+00> : vector<16x128xf32>
    %394 = tpu.matmul %391, %393, %cst_227 {dimension_numbers = #tpu.dot_dimension_numbers<[1], [0], [0], [1], [0, 0, 1, 1], [], []>} : vector<16x128xbf16>, vector<128x128xbf16>, vector<16x128xf32> -> vector<16x128xf32>
    %395 = arith.addf %385, %394 : vector<16x128xf32>
    %c3_i32_228 = arith.constant 3 : i32
    %396 = tpu.dynamic_rotate %363 by %c3_i32_228 dim 0 : vector<16x128xf32>, i32 -> vector<16x128xf32>
    %c1_i32_229 = arith.constant 1 : i32
    %397 = vector.broadcast %c1_i32_229 : i32 to vector<16x128xi32>
    %398 = arith.cmpi sge, %368, %397 : vector<16x128xi32>
    %c2_i32_230 = arith.constant 2 : i32
    %399 = vector.broadcast %c2_i32_230 : i32 to vector<16x128xi32>
    %400 = arith.cmpi sle, %370, %399 : vector<16x128xi32>
    %401 = arith.andi %398, %400 : vector<16x128xi1>
    %cst_231 = arith.constant 0.000000e+00 : f32
    %402 = vector.broadcast %cst_231 : f32 to vector<16x128xf32>
    %403 = arith.select %401, %396, %402 : vector<16x128xi1>, vector<16x128xf32>
    %404 = arith.truncf %403 : vector<16x128xf32> to vector<16x128xbf16>
    %c2_232 = arith.constant 2 : index
    %c0_233 = arith.constant 0 : index
    %c0_234 = arith.constant 0 : index
    %405 = vector.load %arg6[%c2_232, %c0_233, %c0_234] : memref<9x128x128xbf16, #tpu.memory_space<vmem>>, vector<1x128x128xbf16>
    %406 = vector.shape_cast %405 : vector<1x128x128xbf16> to vector<128x128xbf16>
    %cst_235 = arith.constant dense<0.000000e+00> : vector<16x128xf32>
    %407 = tpu.matmul %404, %406, %cst_235 {dimension_numbers = #tpu.dot_dimension_numbers<[1], [0], [0], [1], [0, 0, 1, 1], [], []>} : vector<16x128xbf16>, vector<128x128xbf16>, vector<16x128xf32> -> vector<16x128xf32>
    %408 = arith.addf %395, %407 : vector<16x128xf32>
    %c1_i32_236 = arith.constant 1 : i32
    %409 = tpu.dynamic_rotate %363 by %c1_i32_236 dim 0 : vector<16x128xf32>, i32 -> vector<16x128xf32>
    %c1_i32_237 = arith.constant 1 : i32
    %410 = vector.broadcast %c1_i32_237 : i32 to vector<16x128xi32>
    %411 = arith.cmpi sge, %370, %410 : vector<16x128xi32>
    %cst_238 = arith.constant 0.000000e+00 : f32
    %412 = vector.broadcast %cst_238 : f32 to vector<16x128xf32>
    %413 = arith.select %411, %409, %412 : vector<16x128xi1>, vector<16x128xf32>
    %414 = arith.truncf %413 : vector<16x128xf32> to vector<16x128xbf16>
    %c3_239 = arith.constant 3 : index
    %c0_240 = arith.constant 0 : index
    %c0_241 = arith.constant 0 : index
    %415 = vector.load %arg6[%c3_239, %c0_240, %c0_241] : memref<9x128x128xbf16, #tpu.memory_space<vmem>>, vector<1x128x128xbf16>
    %416 = vector.shape_cast %415 : vector<1x128x128xbf16> to vector<128x128xbf16>
    %cst_242 = arith.constant dense<0.000000e+00> : vector<16x128xf32>
    %417 = tpu.matmul %414, %416, %cst_242 {dimension_numbers = #tpu.dot_dimension_numbers<[1], [0], [0], [1], [0, 0, 1, 1], [], []>} : vector<16x128xbf16>, vector<128x128xbf16>, vector<16x128xf32> -> vector<16x128xf32>
    %418 = arith.addf %408, %417 : vector<16x128xf32>
    %419 = arith.truncf %363 : vector<16x128xf32> to vector<16x128xbf16>
    %c4_243 = arith.constant 4 : index
    %c0_244 = arith.constant 0 : index
    %c0_245 = arith.constant 0 : index
    %420 = vector.load %arg6[%c4_243, %c0_244, %c0_245] : memref<9x128x128xbf16, #tpu.memory_space<vmem>>, vector<1x128x128xbf16>
    %421 = vector.shape_cast %420 : vector<1x128x128xbf16> to vector<128x128xbf16>
    %cst_246 = arith.constant dense<0.000000e+00> : vector<16x128xf32>
    %422 = tpu.matmul %419, %421, %cst_246 {dimension_numbers = #tpu.dot_dimension_numbers<[1], [0], [0], [1], [0, 0, 1, 1], [], []>} : vector<16x128xbf16>, vector<128x128xbf16>, vector<16x128xf32> -> vector<16x128xf32>
    %423 = arith.addf %418, %422 : vector<16x128xf32>
    %c15_i32_247 = arith.constant 15 : i32
    %424 = tpu.dynamic_rotate %363 by %c15_i32_247 dim 0 : vector<16x128xf32>, i32 -> vector<16x128xf32>
    %c2_i32_248 = arith.constant 2 : i32
    %425 = vector.broadcast %c2_i32_248 : i32 to vector<16x128xi32>
    %426 = arith.cmpi sle, %370, %425 : vector<16x128xi32>
    %cst_249 = arith.constant 0.000000e+00 : f32
    %427 = vector.broadcast %cst_249 : f32 to vector<16x128xf32>
    %428 = arith.select %426, %424, %427 : vector<16x128xi1>, vector<16x128xf32>
    %429 = arith.truncf %428 : vector<16x128xf32> to vector<16x128xbf16>
    %c5_250 = arith.constant 5 : index
    %c0_251 = arith.constant 0 : index
    %c0_252 = arith.constant 0 : index
    %430 = vector.load %arg6[%c5_250, %c0_251, %c0_252] : memref<9x128x128xbf16, #tpu.memory_space<vmem>>, vector<1x128x128xbf16>
    %431 = vector.shape_cast %430 : vector<1x128x128xbf16> to vector<128x128xbf16>
    %cst_253 = arith.constant dense<0.000000e+00> : vector<16x128xf32>
    %432 = tpu.matmul %429, %431, %cst_253 {dimension_numbers = #tpu.dot_dimension_numbers<[1], [0], [0], [1], [0, 0, 1, 1], [], []>} : vector<16x128xbf16>, vector<128x128xbf16>, vector<16x128xf32> -> vector<16x128xf32>
    %433 = arith.addf %423, %432 : vector<16x128xf32>
    %c13_i32 = arith.constant 13 : i32
    %434 = tpu.dynamic_rotate %363 by %c13_i32 dim 0 : vector<16x128xf32>, i32 -> vector<16x128xf32>
    %c2_i32_254 = arith.constant 2 : i32
    %435 = vector.broadcast %c2_i32_254 : i32 to vector<16x128xi32>
    %436 = arith.cmpi sle, %368, %435 : vector<16x128xi32>
    %c1_i32_255 = arith.constant 1 : i32
    %437 = vector.broadcast %c1_i32_255 : i32 to vector<16x128xi32>
    %438 = arith.cmpi sge, %370, %437 : vector<16x128xi32>
    %439 = arith.andi %436, %438 : vector<16x128xi1>
    %cst_256 = arith.constant 0.000000e+00 : f32
    %440 = vector.broadcast %cst_256 : f32 to vector<16x128xf32>
    %441 = arith.select %439, %434, %440 : vector<16x128xi1>, vector<16x128xf32>
    %442 = arith.truncf %441 : vector<16x128xf32> to vector<16x128xbf16>
    %c6_257 = arith.constant 6 : index
    %c0_258 = arith.constant 0 : index
    %c0_259 = arith.constant 0 : index
    %443 = vector.load %arg6[%c6_257, %c0_258, %c0_259] : memref<9x128x128xbf16, #tpu.memory_space<vmem>>, vector<1x128x128xbf16>
    %444 = vector.shape_cast %443 : vector<1x128x128xbf16> to vector<128x128xbf16>
    %cst_260 = arith.constant dense<0.000000e+00> : vector<16x128xf32>
    %445 = tpu.matmul %442, %444, %cst_260 {dimension_numbers = #tpu.dot_dimension_numbers<[1], [0], [0], [1], [0, 0, 1, 1], [], []>} : vector<16x128xbf16>, vector<128x128xbf16>, vector<16x128xf32> -> vector<16x128xf32>
    %446 = arith.addf %433, %445 : vector<16x128xf32>
    %c12_i32 = arith.constant 12 : i32
    %447 = tpu.dynamic_rotate %363 by %c12_i32 dim 0 : vector<16x128xf32>, i32 -> vector<16x128xf32>
    %c2_i32_261 = arith.constant 2 : i32
    %448 = vector.broadcast %c2_i32_261 : i32 to vector<16x128xi32>
    %449 = arith.cmpi sle, %368, %448 : vector<16x128xi32>
    %cst_262 = arith.constant 0.000000e+00 : f32
    %450 = vector.broadcast %cst_262 : f32 to vector<16x128xf32>
    %451 = arith.select %449, %447, %450 : vector<16x128xi1>, vector<16x128xf32>
    %452 = arith.truncf %451 : vector<16x128xf32> to vector<16x128xbf16>
    %c7_263 = arith.constant 7 : index
    %c0_264 = arith.constant 0 : index
    %c0_265 = arith.constant 0 : index
    %453 = vector.load %arg6[%c7_263, %c0_264, %c0_265] : memref<9x128x128xbf16, #tpu.memory_space<vmem>>, vector<1x128x128xbf16>
    %454 = vector.shape_cast %453 : vector<1x128x128xbf16> to vector<128x128xbf16>
    %cst_266 = arith.constant dense<0.000000e+00> : vector<16x128xf32>
    %455 = tpu.matmul %452, %454, %cst_266 {dimension_numbers = #tpu.dot_dimension_numbers<[1], [0], [0], [1], [0, 0, 1, 1], [], []>} : vector<16x128xbf16>, vector<128x128xbf16>, vector<16x128xf32> -> vector<16x128xf32>
    %456 = arith.addf %446, %455 : vector<16x128xf32>
    %c11_i32 = arith.constant 11 : i32
    %457 = tpu.dynamic_rotate %363 by %c11_i32 dim 0 : vector<16x128xf32>, i32 -> vector<16x128xf32>
    %c2_i32_267 = arith.constant 2 : i32
    %458 = vector.broadcast %c2_i32_267 : i32 to vector<16x128xi32>
    %459 = arith.cmpi sle, %368, %458 : vector<16x128xi32>
    %c2_i32_268 = arith.constant 2 : i32
    %460 = vector.broadcast %c2_i32_268 : i32 to vector<16x128xi32>
    %461 = arith.cmpi sle, %370, %460 : vector<16x128xi32>
    %462 = arith.andi %459, %461 : vector<16x128xi1>
    %cst_269 = arith.constant 0.000000e+00 : f32
    %463 = vector.broadcast %cst_269 : f32 to vector<16x128xf32>
    %464 = arith.select %462, %457, %463 : vector<16x128xi1>, vector<16x128xf32>
    %465 = arith.truncf %464 : vector<16x128xf32> to vector<16x128xbf16>
    %c8_270 = arith.constant 8 : index
    %c0_271 = arith.constant 0 : index
    %c0_272 = arith.constant 0 : index
    %466 = vector.load %arg6[%c8_270, %c0_271, %c0_272] : memref<9x128x128xbf16, #tpu.memory_space<vmem>>, vector<1x128x128xbf16>
    %467 = vector.shape_cast %466 : vector<1x128x128xbf16> to vector<128x128xbf16>
    %cst_273 = arith.constant dense<0.000000e+00> : vector<16x128xf32>
    %468 = tpu.matmul %465, %467, %cst_273 {dimension_numbers = #tpu.dot_dimension_numbers<[1], [0], [0], [1], [0, 0, 1, 1], [], []>} : vector<16x128xbf16>, vector<128x128xbf16>, vector<16x128xf32> -> vector<16x128xf32>
    %469 = arith.addf %456, %468 : vector<16x128xf32>
    %c0_274 = arith.constant 0 : index
    %c0_275 = arith.constant 0 : index
    %470 = vector.load %arg15[%c0_274, %c0_275] : memref<16x64xf32, #tpu.memory_space<vmem>>, vector<16x64xf32>
    %cst_276 = arith.constant dense<0.000000e+00> : vector<16x128xf32>
    %471 = tpu.matmul %470, %253, %cst_276 {dimension_numbers = #tpu.dot_dimension_numbers<[1], [0], [0], [1], [0, 0, 1, 1], [], []>} : vector<16x64xf32>, vector<64x128xf32>, vector<16x128xf32> -> vector<16x128xf32>
    %472 = arith.truncf %471 : vector<16x128xf32> to vector<16x128xbf16>
    %c0_277 = arith.constant 0 : index
    %c0_278 = arith.constant 0 : index
    %473 = vector.load %arg7[%c0_277, %c0_278] : memref<128x128xbf16, #tpu.memory_space<vmem>>, vector<128x128xbf16>
    %cst_279 = arith.constant dense<0.000000e+00> : vector<16x128xf32>
    %474 = tpu.matmul %472, %473, %cst_279 {dimension_numbers = #tpu.dot_dimension_numbers<[1], [0], [0], [1], [0, 0, 1, 1], [], []>} : vector<16x128xbf16>, vector<128x128xbf16>, vector<16x128xf32> -> vector<16x128xf32>
    %c5_280 = arith.constant 5 : index
    %c0_281 = arith.constant 0 : index
    %c0_282 = arith.constant 0 : index
    %475 = vector.load %arg13[%c5_280, %c0_281, %c0_282] : memref<9x1x128xf32, #tpu.memory_space<vmem>>, vector<1x1x128xf32>
    %476 = vector.shape_cast %475 : vector<1x1x128xf32> to vector<1x128xf32>
    %477 = vector.broadcast %476 : vector<1x128xf32> to vector<16x128xf32>
    %478 = arith.addf %474, %477 : vector<16x128xf32>
    %479 = arith.addf %469, %478 : vector<16x128xf32>
    %cst_283 = arith.constant 0.000000e+00 : f32
    %480 = vector.broadcast %cst_283 : f32 to vector<16x128xf32>
    %481 = arith.maximumf %479, %480 : vector<16x128xf32>
    %c6_284 = arith.constant 6 : index
    %c0_285 = arith.constant 0 : index
    %c0_286 = arith.constant 0 : index
    %482 = vector.load %arg13[%c6_284, %c0_285, %c0_286] : memref<9x1x128xf32, #tpu.memory_space<vmem>>, vector<1x1x128xf32>
    %483 = vector.shape_cast %482 : vector<1x1x128xf32> to vector<1x128xf32>
    %484 = tpu.iota {dimensions = array<i32: 0>} : vector<16x128xi32>
    %c2_i32_287 = arith.constant 2 : i32
    %485 = vector.broadcast %c2_i32_287 : i32 to vector<16x128xi32>
    %486 = arith.shrsi %484, %485 : vector<16x128xi32>
    %c3_i32_288 = arith.constant 3 : i32
    %487 = vector.broadcast %c3_i32_288 : i32 to vector<16x128xi32>
    %488 = arith.andi %484, %487 : vector<16x128xi32>
    %489 = vector.shape_cast %483 : vector<1x128xf32> to vector<1x128xf32>
    %490 = vector.broadcast %489 : vector<1x128xf32> to vector<16x128xf32>
    %c5_i32_289 = arith.constant 5 : i32
    %491 = tpu.dynamic_rotate %481 by %c5_i32_289 dim 0 : vector<16x128xf32>, i32 -> vector<16x128xf32>
    %c1_i32_290 = arith.constant 1 : i32
    %492 = vector.broadcast %c1_i32_290 : i32 to vector<16x128xi32>
    %493 = arith.cmpi sge, %486, %492 : vector<16x128xi32>
    %c1_i32_291 = arith.constant 1 : i32
    %494 = vector.broadcast %c1_i32_291 : i32 to vector<16x128xi32>
    %495 = arith.cmpi sge, %488, %494 : vector<16x128xi32>
    %496 = arith.andi %493, %495 : vector<16x128xi1>
    %cst_292 = arith.constant 0.000000e+00 : f32
    %497 = vector.broadcast %cst_292 : f32 to vector<16x128xf32>
    %498 = arith.select %496, %491, %497 : vector<16x128xi1>, vector<16x128xf32>
    %499 = arith.truncf %498 : vector<16x128xf32> to vector<16x128xbf16>
    %c0_293 = arith.constant 0 : index
    %c0_294 = arith.constant 0 : index
    %c0_295 = arith.constant 0 : index
    %500 = vector.load %arg8[%c0_293, %c0_294, %c0_295] : memref<9x128x128xbf16, #tpu.memory_space<vmem>>, vector<1x128x128xbf16>
    %501 = vector.shape_cast %500 : vector<1x128x128xbf16> to vector<128x128xbf16>
    %cst_296 = arith.constant dense<0.000000e+00> : vector<16x128xf32>
    %502 = tpu.matmul %499, %501, %cst_296 {dimension_numbers = #tpu.dot_dimension_numbers<[1], [0], [0], [1], [0, 0, 1, 1], [], []>} : vector<16x128xbf16>, vector<128x128xbf16>, vector<16x128xf32> -> vector<16x128xf32>
    %503 = arith.addf %490, %502 : vector<16x128xf32>
    %c4_i32_297 = arith.constant 4 : i32
    %504 = tpu.dynamic_rotate %481 by %c4_i32_297 dim 0 : vector<16x128xf32>, i32 -> vector<16x128xf32>
    %c1_i32_298 = arith.constant 1 : i32
    %505 = vector.broadcast %c1_i32_298 : i32 to vector<16x128xi32>
    %506 = arith.cmpi sge, %486, %505 : vector<16x128xi32>
    %cst_299 = arith.constant 0.000000e+00 : f32
    %507 = vector.broadcast %cst_299 : f32 to vector<16x128xf32>
    %508 = arith.select %506, %504, %507 : vector<16x128xi1>, vector<16x128xf32>
    %509 = arith.truncf %508 : vector<16x128xf32> to vector<16x128xbf16>
    %c1_300 = arith.constant 1 : index
    %c0_301 = arith.constant 0 : index
    %c0_302 = arith.constant 0 : index
    %510 = vector.load %arg8[%c1_300, %c0_301, %c0_302] : memref<9x128x128xbf16, #tpu.memory_space<vmem>>, vector<1x128x128xbf16>
    %511 = vector.shape_cast %510 : vector<1x128x128xbf16> to vector<128x128xbf16>
    %cst_303 = arith.constant dense<0.000000e+00> : vector<16x128xf32>
    %512 = tpu.matmul %509, %511, %cst_303 {dimension_numbers = #tpu.dot_dimension_numbers<[1], [0], [0], [1], [0, 0, 1, 1], [], []>} : vector<16x128xbf16>, vector<128x128xbf16>, vector<16x128xf32> -> vector<16x128xf32>
    %513 = arith.addf %503, %512 : vector<16x128xf32>
    %c3_i32_304 = arith.constant 3 : i32
    %514 = tpu.dynamic_rotate %481 by %c3_i32_304 dim 0 : vector<16x128xf32>, i32 -> vector<16x128xf32>
    %c1_i32_305 = arith.constant 1 : i32
    %515 = vector.broadcast %c1_i32_305 : i32 to vector<16x128xi32>
    %516 = arith.cmpi sge, %486, %515 : vector<16x128xi32>
    %c2_i32_306 = arith.constant 2 : i32
    %517 = vector.broadcast %c2_i32_306 : i32 to vector<16x128xi32>
    %518 = arith.cmpi sle, %488, %517 : vector<16x128xi32>
    %519 = arith.andi %516, %518 : vector<16x128xi1>
    %cst_307 = arith.constant 0.000000e+00 : f32
    %520 = vector.broadcast %cst_307 : f32 to vector<16x128xf32>
    %521 = arith.select %519, %514, %520 : vector<16x128xi1>, vector<16x128xf32>
    %522 = arith.truncf %521 : vector<16x128xf32> to vector<16x128xbf16>
    %c2_308 = arith.constant 2 : index
    %c0_309 = arith.constant 0 : index
    %c0_310 = arith.constant 0 : index
    %523 = vector.load %arg8[%c2_308, %c0_309, %c0_310] : memref<9x128x128xbf16, #tpu.memory_space<vmem>>, vector<1x128x128xbf16>
    %524 = vector.shape_cast %523 : vector<1x128x128xbf16> to vector<128x128xbf16>
    %cst_311 = arith.constant dense<0.000000e+00> : vector<16x128xf32>
    %525 = tpu.matmul %522, %524, %cst_311 {dimension_numbers = #tpu.dot_dimension_numbers<[1], [0], [0], [1], [0, 0, 1, 1], [], []>} : vector<16x128xbf16>, vector<128x128xbf16>, vector<16x128xf32> -> vector<16x128xf32>
    %526 = arith.addf %513, %525 : vector<16x128xf32>
    %c1_i32_312 = arith.constant 1 : i32
    %527 = tpu.dynamic_rotate %481 by %c1_i32_312 dim 0 : vector<16x128xf32>, i32 -> vector<16x128xf32>
    %c1_i32_313 = arith.constant 1 : i32
    %528 = vector.broadcast %c1_i32_313 : i32 to vector<16x128xi32>
    %529 = arith.cmpi sge, %488, %528 : vector<16x128xi32>
    %cst_314 = arith.constant 0.000000e+00 : f32
    %530 = vector.broadcast %cst_314 : f32 to vector<16x128xf32>
    %531 = arith.select %529, %527, %530 : vector<16x128xi1>, vector<16x128xf32>
    %532 = arith.truncf %531 : vector<16x128xf32> to vector<16x128xbf16>
    %c3_315 = arith.constant 3 : index
    %c0_316 = arith.constant 0 : index
    %c0_317 = arith.constant 0 : index
    %533 = vector.load %arg8[%c3_315, %c0_316, %c0_317] : memref<9x128x128xbf16, #tpu.memory_space<vmem>>, vector<1x128x128xbf16>
    %534 = vector.shape_cast %533 : vector<1x128x128xbf16> to vector<128x128xbf16>
    %cst_318 = arith.constant dense<0.000000e+00> : vector<16x128xf32>
    %535 = tpu.matmul %532, %534, %cst_318 {dimension_numbers = #tpu.dot_dimension_numbers<[1], [0], [0], [1], [0, 0, 1, 1], [], []>} : vector<16x128xbf16>, vector<128x128xbf16>, vector<16x128xf32> -> vector<16x128xf32>
    %536 = arith.addf %526, %535 : vector<16x128xf32>
    %537 = arith.truncf %481 : vector<16x128xf32> to vector<16x128xbf16>
    %c4_319 = arith.constant 4 : index
    %c0_320 = arith.constant 0 : index
    %c0_321 = arith.constant 0 : index
    %538 = vector.load %arg8[%c4_319, %c0_320, %c0_321] : memref<9x128x128xbf16, #tpu.memory_space<vmem>>, vector<1x128x128xbf16>
    %539 = vector.shape_cast %538 : vector<1x128x128xbf16> to vector<128x128xbf16>
    %cst_322 = arith.constant dense<0.000000e+00> : vector<16x128xf32>
    %540 = tpu.matmul %537, %539, %cst_322 {dimension_numbers = #tpu.dot_dimension_numbers<[1], [0], [0], [1], [0, 0, 1, 1], [], []>} : vector<16x128xbf16>, vector<128x128xbf16>, vector<16x128xf32> -> vector<16x128xf32>
    %541 = arith.addf %536, %540 : vector<16x128xf32>
    %c15_i32_323 = arith.constant 15 : i32
    %542 = tpu.dynamic_rotate %481 by %c15_i32_323 dim 0 : vector<16x128xf32>, i32 -> vector<16x128xf32>
    %c2_i32_324 = arith.constant 2 : i32
    %543 = vector.broadcast %c2_i32_324 : i32 to vector<16x128xi32>
    %544 = arith.cmpi sle, %488, %543 : vector<16x128xi32>
    %cst_325 = arith.constant 0.000000e+00 : f32
    %545 = vector.broadcast %cst_325 : f32 to vector<16x128xf32>
    %546 = arith.select %544, %542, %545 : vector<16x128xi1>, vector<16x128xf32>
    %547 = arith.truncf %546 : vector<16x128xf32> to vector<16x128xbf16>
    %c5_326 = arith.constant 5 : index
    %c0_327 = arith.constant 0 : index
    %c0_328 = arith.constant 0 : index
    %548 = vector.load %arg8[%c5_326, %c0_327, %c0_328] : memref<9x128x128xbf16, #tpu.memory_space<vmem>>, vector<1x128x128xbf16>
    %549 = vector.shape_cast %548 : vector<1x128x128xbf16> to vector<128x128xbf16>
    %cst_329 = arith.constant dense<0.000000e+00> : vector<16x128xf32>
    %550 = tpu.matmul %547, %549, %cst_329 {dimension_numbers = #tpu.dot_dimension_numbers<[1], [0], [0], [1], [0, 0, 1, 1], [], []>} : vector<16x128xbf16>, vector<128x128xbf16>, vector<16x128xf32> -> vector<16x128xf32>
    %551 = arith.addf %541, %550 : vector<16x128xf32>
    %c13_i32_330 = arith.constant 13 : i32
    %552 = tpu.dynamic_rotate %481 by %c13_i32_330 dim 0 : vector<16x128xf32>, i32 -> vector<16x128xf32>
    %c2_i32_331 = arith.constant 2 : i32
    %553 = vector.broadcast %c2_i32_331 : i32 to vector<16x128xi32>
    %554 = arith.cmpi sle, %486, %553 : vector<16x128xi32>
    %c1_i32_332 = arith.constant 1 : i32
    %555 = vector.broadcast %c1_i32_332 : i32 to vector<16x128xi32>
    %556 = arith.cmpi sge, %488, %555 : vector<16x128xi32>
    %557 = arith.andi %554, %556 : vector<16x128xi1>
    %cst_333 = arith.constant 0.000000e+00 : f32
    %558 = vector.broadcast %cst_333 : f32 to vector<16x128xf32>
    %559 = arith.select %557, %552, %558 : vector<16x128xi1>, vector<16x128xf32>
    %560 = arith.truncf %559 : vector<16x128xf32> to vector<16x128xbf16>
    %c6_334 = arith.constant 6 : index
    %c0_335 = arith.constant 0 : index
    %c0_336 = arith.constant 0 : index
    %561 = vector.load %arg8[%c6_334, %c0_335, %c0_336] : memref<9x128x128xbf16, #tpu.memory_space<vmem>>, vector<1x128x128xbf16>
    %562 = vector.shape_cast %561 : vector<1x128x128xbf16> to vector<128x128xbf16>
    %cst_337 = arith.constant dense<0.000000e+00> : vector<16x128xf32>
    %563 = tpu.matmul %560, %562, %cst_337 {dimension_numbers = #tpu.dot_dimension_numbers<[1], [0], [0], [1], [0, 0, 1, 1], [], []>} : vector<16x128xbf16>, vector<128x128xbf16>, vector<16x128xf32> -> vector<16x128xf32>
    %564 = arith.addf %551, %563 : vector<16x128xf32>
    %c12_i32_338 = arith.constant 12 : i32
    %565 = tpu.dynamic_rotate %481 by %c12_i32_338 dim 0 : vector<16x128xf32>, i32 -> vector<16x128xf32>
    %c2_i32_339 = arith.constant 2 : i32
    %566 = vector.broadcast %c2_i32_339 : i32 to vector<16x128xi32>
    %567 = arith.cmpi sle, %486, %566 : vector<16x128xi32>
    %cst_340 = arith.constant 0.000000e+00 : f32
    %568 = vector.broadcast %cst_340 : f32 to vector<16x128xf32>
    %569 = arith.select %567, %565, %568 : vector<16x128xi1>, vector<16x128xf32>
    %570 = arith.truncf %569 : vector<16x128xf32> to vector<16x128xbf16>
    %c7_341 = arith.constant 7 : index
    %c0_342 = arith.constant 0 : index
    %c0_343 = arith.constant 0 : index
    %571 = vector.load %arg8[%c7_341, %c0_342, %c0_343] : memref<9x128x128xbf16, #tpu.memory_space<vmem>>, vector<1x128x128xbf16>
    %572 = vector.shape_cast %571 : vector<1x128x128xbf16> to vector<128x128xbf16>
    %cst_344 = arith.constant dense<0.000000e+00> : vector<16x128xf32>
    %573 = tpu.matmul %570, %572, %cst_344 {dimension_numbers = #tpu.dot_dimension_numbers<[1], [0], [0], [1], [0, 0, 1, 1], [], []>} : vector<16x128xbf16>, vector<128x128xbf16>, vector<16x128xf32> -> vector<16x128xf32>
    %574 = arith.addf %564, %573 : vector<16x128xf32>
    %c11_i32_345 = arith.constant 11 : i32
    %575 = tpu.dynamic_rotate %481 by %c11_i32_345 dim 0 : vector<16x128xf32>, i32 -> vector<16x128xf32>
    %c2_i32_346 = arith.constant 2 : i32
    %576 = vector.broadcast %c2_i32_346 : i32 to vector<16x128xi32>
    %577 = arith.cmpi sle, %486, %576 : vector<16x128xi32>
    %c2_i32_347 = arith.constant 2 : i32
    %578 = vector.broadcast %c2_i32_347 : i32 to vector<16x128xi32>
    %579 = arith.cmpi sle, %488, %578 : vector<16x128xi32>
    %580 = arith.andi %577, %579 : vector<16x128xi1>
    %cst_348 = arith.constant 0.000000e+00 : f32
    %581 = vector.broadcast %cst_348 : f32 to vector<16x128xf32>
    %582 = arith.select %580, %575, %581 : vector<16x128xi1>, vector<16x128xf32>
    %583 = arith.truncf %582 : vector<16x128xf32> to vector<16x128xbf16>
    %c8_349 = arith.constant 8 : index
    %c0_350 = arith.constant 0 : index
    %c0_351 = arith.constant 0 : index
    %584 = vector.load %arg8[%c8_349, %c0_350, %c0_351] : memref<9x128x128xbf16, #tpu.memory_space<vmem>>, vector<1x128x128xbf16>
    %585 = vector.shape_cast %584 : vector<1x128x128xbf16> to vector<128x128xbf16>
    %cst_352 = arith.constant dense<0.000000e+00> : vector<16x128xf32>
    %586 = tpu.matmul %583, %585, %cst_352 {dimension_numbers = #tpu.dot_dimension_numbers<[1], [0], [0], [1], [0, 0, 1, 1], [], []>} : vector<16x128xbf16>, vector<128x128xbf16>, vector<16x128xf32> -> vector<16x128xf32>
    %587 = arith.addf %574, %586 : vector<16x128xf32>
    %c0_353 = arith.constant 0 : index
    %c0_354 = arith.constant 0 : index
    %588 = vector.load %arg16[%c0_353, %c0_354] : memref<4x16xf32, #tpu.memory_space<vmem>>, vector<4x16xf32>
    %cst_355 = arith.constant dense<0.000000e+00> : vector<4x128xf32>
    %589 = tpu.matmul %588, %587, %cst_355 {dimension_numbers = #tpu.dot_dimension_numbers<[1], [0], [0], [1], [0, 0, 1, 1], [], []>} : vector<4x16xf32>, vector<16x128xf32>, vector<4x128xf32> -> vector<4x128xf32>
    %cst_356 = arith.constant 0.000000e+00 : f32
    %590 = vector.broadcast %cst_356 : f32 to vector<4x128xf32>
    %591 = arith.maximumf %589, %590 : vector<4x128xf32>
    %c7_357 = arith.constant 7 : index
    %c0_358 = arith.constant 0 : index
    %c0_359 = arith.constant 0 : index
    %592 = vector.load %arg13[%c7_357, %c0_358, %c0_359] : memref<9x1x128xf32, #tpu.memory_space<vmem>>, vector<1x1x128xf32>
    %593 = vector.shape_cast %592 : vector<1x1x128xf32> to vector<1x128xf32>
    %594 = tpu.iota {dimensions = array<i32: 0>} : vector<4x128xi32>
    %c1_i32_360 = arith.constant 1 : i32
    %595 = vector.broadcast %c1_i32_360 : i32 to vector<4x128xi32>
    %596 = arith.shrsi %594, %595 : vector<4x128xi32>
    %c1_i32_361 = arith.constant 1 : i32
    %597 = vector.broadcast %c1_i32_361 : i32 to vector<4x128xi32>
    %598 = arith.andi %594, %597 : vector<4x128xi32>
    %599 = vector.shape_cast %593 : vector<1x128xf32> to vector<1x128xf32>
    %600 = vector.broadcast %599 : vector<1x128xf32> to vector<4x128xf32>
    %c3_i32_362 = arith.constant 3 : i32
    %601 = tpu.dynamic_rotate %591 by %c3_i32_362 dim 0 : vector<4x128xf32>, i32 -> vector<4x128xf32>
    %c1_i32_363 = arith.constant 1 : i32
    %602 = vector.broadcast %c1_i32_363 : i32 to vector<4x128xi32>
    %603 = arith.cmpi sge, %596, %602 : vector<4x128xi32>
    %c1_i32_364 = arith.constant 1 : i32
    %604 = vector.broadcast %c1_i32_364 : i32 to vector<4x128xi32>
    %605 = arith.cmpi sge, %598, %604 : vector<4x128xi32>
    %606 = arith.andi %603, %605 : vector<4x128xi1>
    %cst_365 = arith.constant 0.000000e+00 : f32
    %607 = vector.broadcast %cst_365 : f32 to vector<4x128xf32>
    %608 = arith.select %606, %601, %607 : vector<4x128xi1>, vector<4x128xf32>
    %609 = arith.truncf %608 : vector<4x128xf32> to vector<4x128xbf16>
    %c0_366 = arith.constant 0 : index
    %c0_367 = arith.constant 0 : index
    %c0_368 = arith.constant 0 : index
    %610 = vector.load %arg9[%c0_366, %c0_367, %c0_368] : memref<9x128x128xbf16, #tpu.memory_space<vmem>>, vector<1x128x128xbf16>
    %611 = vector.shape_cast %610 : vector<1x128x128xbf16> to vector<128x128xbf16>
    %cst_369 = arith.constant dense<0.000000e+00> : vector<4x128xf32>
    %612 = tpu.matmul %609, %611, %cst_369 {dimension_numbers = #tpu.dot_dimension_numbers<[1], [0], [0], [1], [0, 0, 1, 1], [], []>} : vector<4x128xbf16>, vector<128x128xbf16>, vector<4x128xf32> -> vector<4x128xf32>
    %613 = arith.addf %600, %612 : vector<4x128xf32>
    %c2_i32_370 = arith.constant 2 : i32
    %614 = tpu.dynamic_rotate %591 by %c2_i32_370 dim 0 : vector<4x128xf32>, i32 -> vector<4x128xf32>
    %c1_i32_371 = arith.constant 1 : i32
    %615 = vector.broadcast %c1_i32_371 : i32 to vector<4x128xi32>
    %616 = arith.cmpi sge, %596, %615 : vector<4x128xi32>
    %cst_372 = arith.constant 0.000000e+00 : f32
    %617 = vector.broadcast %cst_372 : f32 to vector<4x128xf32>
    %618 = arith.select %616, %614, %617 : vector<4x128xi1>, vector<4x128xf32>
    %619 = arith.truncf %618 : vector<4x128xf32> to vector<4x128xbf16>
    %c1_373 = arith.constant 1 : index
    %c0_374 = arith.constant 0 : index
    %c0_375 = arith.constant 0 : index
    %620 = vector.load %arg9[%c1_373, %c0_374, %c0_375] : memref<9x128x128xbf16, #tpu.memory_space<vmem>>, vector<1x128x128xbf16>
    %621 = vector.shape_cast %620 : vector<1x128x128xbf16> to vector<128x128xbf16>
    %cst_376 = arith.constant dense<0.000000e+00> : vector<4x128xf32>
    %622 = tpu.matmul %619, %621, %cst_376 {dimension_numbers = #tpu.dot_dimension_numbers<[1], [0], [0], [1], [0, 0, 1, 1], [], []>} : vector<4x128xbf16>, vector<128x128xbf16>, vector<4x128xf32> -> vector<4x128xf32>
    %623 = arith.addf %613, %622 : vector<4x128xf32>
    %c1_i32_377 = arith.constant 1 : i32
    %624 = tpu.dynamic_rotate %591 by %c1_i32_377 dim 0 : vector<4x128xf32>, i32 -> vector<4x128xf32>
    %c1_i32_378 = arith.constant 1 : i32
    %625 = vector.broadcast %c1_i32_378 : i32 to vector<4x128xi32>
    %626 = arith.cmpi sge, %596, %625 : vector<4x128xi32>
    %c0_i32 = arith.constant 0 : i32
    %627 = vector.broadcast %c0_i32 : i32 to vector<4x128xi32>
    %628 = arith.cmpi sle, %598, %627 : vector<4x128xi32>
    %629 = arith.andi %626, %628 : vector<4x128xi1>
    %cst_379 = arith.constant 0.000000e+00 : f32
    %630 = vector.broadcast %cst_379 : f32 to vector<4x128xf32>
    %631 = arith.select %629, %624, %630 : vector<4x128xi1>, vector<4x128xf32>
    %632 = arith.truncf %631 : vector<4x128xf32> to vector<4x128xbf16>
    %c2_380 = arith.constant 2 : index
    %c0_381 = arith.constant 0 : index
    %c0_382 = arith.constant 0 : index
    %633 = vector.load %arg9[%c2_380, %c0_381, %c0_382] : memref<9x128x128xbf16, #tpu.memory_space<vmem>>, vector<1x128x128xbf16>
    %634 = vector.shape_cast %633 : vector<1x128x128xbf16> to vector<128x128xbf16>
    %cst_383 = arith.constant dense<0.000000e+00> : vector<4x128xf32>
    %635 = tpu.matmul %632, %634, %cst_383 {dimension_numbers = #tpu.dot_dimension_numbers<[1], [0], [0], [1], [0, 0, 1, 1], [], []>} : vector<4x128xbf16>, vector<128x128xbf16>, vector<4x128xf32> -> vector<4x128xf32>
    %636 = arith.addf %623, %635 : vector<4x128xf32>
    %c1_i32_384 = arith.constant 1 : i32
    %637 = tpu.dynamic_rotate %591 by %c1_i32_384 dim 0 : vector<4x128xf32>, i32 -> vector<4x128xf32>
    %c1_i32_385 = arith.constant 1 : i32
    %638 = vector.broadcast %c1_i32_385 : i32 to vector<4x128xi32>
    %639 = arith.cmpi sge, %598, %638 : vector<4x128xi32>
    %cst_386 = arith.constant 0.000000e+00 : f32
    %640 = vector.broadcast %cst_386 : f32 to vector<4x128xf32>
    %641 = arith.select %639, %637, %640 : vector<4x128xi1>, vector<4x128xf32>
    %642 = arith.truncf %641 : vector<4x128xf32> to vector<4x128xbf16>
    %c3_387 = arith.constant 3 : index
    %c0_388 = arith.constant 0 : index
    %c0_389 = arith.constant 0 : index
    %643 = vector.load %arg9[%c3_387, %c0_388, %c0_389] : memref<9x128x128xbf16, #tpu.memory_space<vmem>>, vector<1x128x128xbf16>
    %644 = vector.shape_cast %643 : vector<1x128x128xbf16> to vector<128x128xbf16>
    %cst_390 = arith.constant dense<0.000000e+00> : vector<4x128xf32>
    %645 = tpu.matmul %642, %644, %cst_390 {dimension_numbers = #tpu.dot_dimension_numbers<[1], [0], [0], [1], [0, 0, 1, 1], [], []>} : vector<4x128xbf16>, vector<128x128xbf16>, vector<4x128xf32> -> vector<4x128xf32>
    %646 = arith.addf %636, %645 : vector<4x128xf32>
    %647 = arith.truncf %591 : vector<4x128xf32> to vector<4x128xbf16>
    %c4_391 = arith.constant 4 : index
    %c0_392 = arith.constant 0 : index
    %c0_393 = arith.constant 0 : index
    %648 = vector.load %arg9[%c4_391, %c0_392, %c0_393] : memref<9x128x128xbf16, #tpu.memory_space<vmem>>, vector<1x128x128xbf16>
    %649 = vector.shape_cast %648 : vector<1x128x128xbf16> to vector<128x128xbf16>
    %cst_394 = arith.constant dense<0.000000e+00> : vector<4x128xf32>
    %650 = tpu.matmul %647, %649, %cst_394 {dimension_numbers = #tpu.dot_dimension_numbers<[1], [0], [0], [1], [0, 0, 1, 1], [], []>} : vector<4x128xbf16>, vector<128x128xbf16>, vector<4x128xf32> -> vector<4x128xf32>
    %651 = arith.addf %646, %650 : vector<4x128xf32>
    %c3_i32_395 = arith.constant 3 : i32
    %652 = tpu.dynamic_rotate %591 by %c3_i32_395 dim 0 : vector<4x128xf32>, i32 -> vector<4x128xf32>
    %c0_i32_396 = arith.constant 0 : i32
    %653 = vector.broadcast %c0_i32_396 : i32 to vector<4x128xi32>
    %654 = arith.cmpi sle, %598, %653 : vector<4x128xi32>
    %cst_397 = arith.constant 0.000000e+00 : f32
    %655 = vector.broadcast %cst_397 : f32 to vector<4x128xf32>
    %656 = arith.select %654, %652, %655 : vector<4x128xi1>, vector<4x128xf32>
    %657 = arith.truncf %656 : vector<4x128xf32> to vector<4x128xbf16>
    %c5_398 = arith.constant 5 : index
    %c0_399 = arith.constant 0 : index
    %c0_400 = arith.constant 0 : index
    %658 = vector.load %arg9[%c5_398, %c0_399, %c0_400] : memref<9x128x128xbf16, #tpu.memory_space<vmem>>, vector<1x128x128xbf16>
    %659 = vector.shape_cast %658 : vector<1x128x128xbf16> to vector<128x128xbf16>
    %cst_401 = arith.constant dense<0.000000e+00> : vector<4x128xf32>
    %660 = tpu.matmul %657, %659, %cst_401 {dimension_numbers = #tpu.dot_dimension_numbers<[1], [0], [0], [1], [0, 0, 1, 1], [], []>} : vector<4x128xbf16>, vector<128x128xbf16>, vector<4x128xf32> -> vector<4x128xf32>
    %661 = arith.addf %651, %660 : vector<4x128xf32>
    %c3_i32_402 = arith.constant 3 : i32
    %662 = tpu.dynamic_rotate %591 by %c3_i32_402 dim 0 : vector<4x128xf32>, i32 -> vector<4x128xf32>
    %c0_i32_403 = arith.constant 0 : i32
    %663 = vector.broadcast %c0_i32_403 : i32 to vector<4x128xi32>
    %664 = arith.cmpi sle, %596, %663 : vector<4x128xi32>
    %c1_i32_404 = arith.constant 1 : i32
    %665 = vector.broadcast %c1_i32_404 : i32 to vector<4x128xi32>
    %666 = arith.cmpi sge, %598, %665 : vector<4x128xi32>
    %667 = arith.andi %664, %666 : vector<4x128xi1>
    %cst_405 = arith.constant 0.000000e+00 : f32
    %668 = vector.broadcast %cst_405 : f32 to vector<4x128xf32>
    %669 = arith.select %667, %662, %668 : vector<4x128xi1>, vector<4x128xf32>
    %670 = arith.truncf %669 : vector<4x128xf32> to vector<4x128xbf16>
    %c6_406 = arith.constant 6 : index
    %c0_407 = arith.constant 0 : index
    %c0_408 = arith.constant 0 : index
    %671 = vector.load %arg9[%c6_406, %c0_407, %c0_408] : memref<9x128x128xbf16, #tpu.memory_space<vmem>>, vector<1x128x128xbf16>
    %672 = vector.shape_cast %671 : vector<1x128x128xbf16> to vector<128x128xbf16>
    %cst_409 = arith.constant dense<0.000000e+00> : vector<4x128xf32>
    %673 = tpu.matmul %670, %672, %cst_409 {dimension_numbers = #tpu.dot_dimension_numbers<[1], [0], [0], [1], [0, 0, 1, 1], [], []>} : vector<4x128xbf16>, vector<128x128xbf16>, vector<4x128xf32> -> vector<4x128xf32>
    %674 = arith.addf %661, %673 : vector<4x128xf32>
    %c2_i32_410 = arith.constant 2 : i32
    %675 = tpu.dynamic_rotate %591 by %c2_i32_410 dim 0 : vector<4x128xf32>, i32 -> vector<4x128xf32>
    %c0_i32_411 = arith.constant 0 : i32
    %676 = vector.broadcast %c0_i32_411 : i32 to vector<4x128xi32>
    %677 = arith.cmpi sle, %596, %676 : vector<4x128xi32>
    %cst_412 = arith.constant 0.000000e+00 : f32
    %678 = vector.broadcast %cst_412 : f32 to vector<4x128xf32>
    %679 = arith.select %677, %675, %678 : vector<4x128xi1>, vector<4x128xf32>
    %680 = arith.truncf %679 : vector<4x128xf32> to vector<4x128xbf16>
    %c7_413 = arith.constant 7 : index
    %c0_414 = arith.constant 0 : index
    %c0_415 = arith.constant 0 : index
    %681 = vector.load %arg9[%c7_413, %c0_414, %c0_415] : memref<9x128x128xbf16, #tpu.memory_space<vmem>>, vector<1x128x128xbf16>
    %682 = vector.shape_cast %681 : vector<1x128x128xbf16> to vector<128x128xbf16>
    %cst_416 = arith.constant dense<0.000000e+00> : vector<4x128xf32>
    %683 = tpu.matmul %680, %682, %cst_416 {dimension_numbers = #tpu.dot_dimension_numbers<[1], [0], [0], [1], [0, 0, 1, 1], [], []>} : vector<4x128xbf16>, vector<128x128xbf16>, vector<4x128xf32> -> vector<4x128xf32>
    %684 = arith.addf %674, %683 : vector<4x128xf32>
    %c1_i32_417 = arith.constant 1 : i32
    %685 = tpu.dynamic_rotate %591 by %c1_i32_417 dim 0 : vector<4x128xf32>, i32 -> vector<4x128xf32>
    %c0_i32_418 = arith.constant 0 : i32
    %686 = vector.broadcast %c0_i32_418 : i32 to vector<4x128xi32>
    %687 = arith.cmpi sle, %596, %686 : vector<4x128xi32>
    %c0_i32_419 = arith.constant 0 : i32
    %688 = vector.broadcast %c0_i32_419 : i32 to vector<4x128xi32>
    %689 = arith.cmpi sle, %598, %688 : vector<4x128xi32>
    %690 = arith.andi %687, %689 : vector<4x128xi1>
    %cst_420 = arith.constant 0.000000e+00 : f32
    %691 = vector.broadcast %cst_420 : f32 to vector<4x128xf32>
    %692 = arith.select %690, %685, %691 : vector<4x128xi1>, vector<4x128xf32>
    %693 = arith.truncf %692 : vector<4x128xf32> to vector<4x128xbf16>
    %c8_421 = arith.constant 8 : index
    %c0_422 = arith.constant 0 : index
    %c0_423 = arith.constant 0 : index
    %694 = vector.load %arg9[%c8_421, %c0_422, %c0_423] : memref<9x128x128xbf16, #tpu.memory_space<vmem>>, vector<1x128x128xbf16>
    %695 = vector.shape_cast %694 : vector<1x128x128xbf16> to vector<128x128xbf16>
    %cst_424 = arith.constant dense<0.000000e+00> : vector<4x128xf32>
    %696 = tpu.matmul %693, %695, %cst_424 {dimension_numbers = #tpu.dot_dimension_numbers<[1], [0], [0], [1], [0, 0, 1, 1], [], []>} : vector<4x128xbf16>, vector<128x128xbf16>, vector<4x128xf32> -> vector<4x128xf32>
    %697 = arith.addf %684, %696 : vector<4x128xf32>
    %c0_425 = arith.constant 0 : index
    %c0_426 = arith.constant 0 : index
    %698 = vector.load %arg16[%c0_425, %c0_426] : memref<4x16xf32, #tpu.memory_space<vmem>>, vector<4x16xf32>
    %cst_427 = arith.constant dense<0.000000e+00> : vector<4x128xf32>
    %699 = tpu.matmul %698, %481, %cst_427 {dimension_numbers = #tpu.dot_dimension_numbers<[1], [0], [0], [1], [0, 0, 1, 1], [], []>} : vector<4x16xf32>, vector<16x128xf32>, vector<4x128xf32> -> vector<4x128xf32>
    %700 = arith.truncf %699 : vector<4x128xf32> to vector<4x128xbf16>
    %c0_428 = arith.constant 0 : index
    %c0_429 = arith.constant 0 : index
    %701 = vector.load %arg10[%c0_428, %c0_429] : memref<128x128xbf16, #tpu.memory_space<vmem>>, vector<128x128xbf16>
    %cst_430 = arith.constant dense<0.000000e+00> : vector<4x128xf32>
    %702 = tpu.matmul %700, %701, %cst_430 {dimension_numbers = #tpu.dot_dimension_numbers<[1], [0], [0], [1], [0, 0, 1, 1], [], []>} : vector<4x128xbf16>, vector<128x128xbf16>, vector<4x128xf32> -> vector<4x128xf32>
    %c8_431 = arith.constant 8 : index
    %c0_432 = arith.constant 0 : index
    %c0_433 = arith.constant 0 : index
    %703 = vector.load %arg13[%c8_431, %c0_432, %c0_433] : memref<9x1x128xf32, #tpu.memory_space<vmem>>, vector<1x1x128xf32>
    %704 = vector.shape_cast %703 : vector<1x1x128xf32> to vector<1x128xf32>
    %705 = vector.broadcast %704 : vector<1x128xf32> to vector<4x128xf32>
    %706 = arith.addf %702, %705 : vector<4x128xf32>
    %707 = arith.addf %697, %706 : vector<4x128xf32>
    %cst_434 = arith.constant 0.000000e+00 : f32
    %708 = vector.broadcast %cst_434 : f32 to vector<4x128xf32>
    %709 = arith.maximumf %707, %708 : vector<4x128xf32>
    %cst_435 = arith.constant dense<0.000000e+00> : vector<128xf32>
    %710 = vector.multi_reduction <add>, %709, %cst_435 [0] : vector<4x128xf32> to vector<128xf32>
    %711 = vector.shape_cast %710 : vector<128xf32> to vector<1x128xf32>
    %cst_436 = arith.constant 2.500000e-01 : f32
    %712 = vector.broadcast %cst_436 : f32 to vector<1x128xf32>
    %713 = arith.mulf %711, %712 : vector<1x128xf32>
    %714 = arith.truncf %713 : vector<1x128xf32> to vector<1x128xbf16>
    %c0_437 = arith.constant 0 : index
    %c0_438 = arith.constant 0 : index
    %715 = vector.load %arg11[%c0_437, %c0_438] : memref<128x128xbf16, #tpu.memory_space<vmem>>, vector<128x128xbf16>
    %cst_439 = arith.constant dense<0.000000e+00> : vector<1x128xf32>
    %716 = tpu.matmul %714, %715, %cst_439 {dimension_numbers = #tpu.dot_dimension_numbers<[1], [0], [0], [1], [0, 0, 1, 1], [], []>} : vector<1x128xbf16>, vector<128x128xbf16>, vector<1x128xf32> -> vector<1x128xf32>
    %c0_440 = arith.constant 0 : index
    %c0_441 = arith.constant 0 : index
    %717 = vector.load %arg12[%c0_440, %c0_441] : memref<1x128xf32, #tpu.memory_space<vmem>>, vector<1x128xf32>
    %718 = arith.addf %716, %717 : vector<1x128xf32>
    %719 = vector.shape_cast %718 : vector<1x128xf32> to vector<1x1x128xf32>
    %720 = vector.shape_cast %719 : vector<1x1x128xf32> to vector<1x1x128xf32>
    %721 = vector.broadcast %720 : vector<1x1x128xf32> to vector<1x8x128xf32>
    %c0_442 = arith.constant 0 : index
    %c0_443 = arith.constant 0 : index
    %c0_444 = arith.constant 0 : index
    %722 = vector.load %arg17[%c0_442, %c0_443, %c0_444] : memref<1x8x128xf32, #tpu.memory_space<vmem>>, vector<1x8x128xf32>
    tpu.vector_store %arg17[%c0_442, %c0_443, %c0_444], %721 {strides = array<i32>} : memref<1x8x128xf32, #tpu.memory_space<vmem>>, vector<1x8x128xf32>,
    return
  }
  func.func @transform_0(%arg0: i32) -> (i32, i32, i32) {
    %c0_i32 = arith.constant 0 : i32
    %c0_i32_0 = arith.constant 0 : i32
    %c0_i32_1 = arith.constant 0 : i32
    return %arg0, %c0_i32, %c0_i32_0 : i32, i32, i32
  }
  func.func @transform_1(%arg0: i32) -> (i32, i32) {
    %c0_i32 = arith.constant 0 : i32
    %c0_i32_0 = arith.constant 0 : i32
    %c0_i32_1 = arith.constant 0 : i32
    return %c0_i32, %c0_i32_0 : i32, i32
  }
  func.func @transform_2(%arg0: i32) -> (i32, i32, i32) {
    %c0_i32 = arith.constant 0 : i32
    %c0_i32_0 = arith.constant 0 : i32
    %c0_i32_1 = arith.constant 0 : i32
    %c0_i32_2 = arith.constant 0 : i32
    return %c0_i32, %c0_i32_0, %c0_i32_1 : i32, i32, i32
  }
  func.func @transform_3(%arg0: i32) -> (i32, i32, i32) {
    %c0_i32 = arith.constant 0 : i32
    %c0_i32_0 = arith.constant 0 : i32
    %c0_i32_1 = arith.constant 0 : i32
    %c0_i32_2 = arith.constant 0 : i32
    return %c0_i32, %c0_i32_0, %c0_i32_1 : i32, i32, i32
  }
  func.func @transform_4(%arg0: i32) -> (i32, i32, i32) {
    %c0_i32 = arith.constant 0 : i32
    %c0_i32_0 = arith.constant 0 : i32
    %c0_i32_1 = arith.constant 0 : i32
    %c0_i32_2 = arith.constant 0 : i32
    return %c0_i32, %c0_i32_0, %c0_i32_1 : i32, i32, i32
  }
  func.func @transform_5(%arg0: i32) -> (i32, i32, i32) {
    %c0_i32 = arith.constant 0 : i32
    %c0_i32_0 = arith.constant 0 : i32
    %c0_i32_1 = arith.constant 0 : i32
    %c0_i32_2 = arith.constant 0 : i32
    return %c0_i32, %c0_i32_0, %c0_i32_1 : i32, i32, i32
  }
  func.func @transform_6(%arg0: i32) -> (i32, i32) {
    %c0_i32 = arith.constant 0 : i32
    %c0_i32_0 = arith.constant 0 : i32
    %c0_i32_1 = arith.constant 0 : i32
    return %c0_i32, %c0_i32_0 : i32, i32
  }
  func.func @transform_7(%arg0: i32) -> (i32, i32, i32) {
    %c0_i32 = arith.constant 0 : i32
    %c0_i32_0 = arith.constant 0 : i32
    %c0_i32_1 = arith.constant 0 : i32
    %c0_i32_2 = arith.constant 0 : i32
    return %c0_i32, %c0_i32_0, %c0_i32_1 : i32, i32, i32
  }
  func.func @transform_8(%arg0: i32) -> (i32, i32, i32) {
    %c0_i32 = arith.constant 0 : i32
    %c0_i32_0 = arith.constant 0 : i32
    %c0_i32_1 = arith.constant 0 : i32
    %c0_i32_2 = arith.constant 0 : i32
    return %c0_i32, %c0_i32_0, %c0_i32_1 : i32, i32, i32
  }
  func.func @transform_9(%arg0: i32) -> (i32, i32) {
    %c0_i32 = arith.constant 0 : i32
    %c0_i32_0 = arith.constant 0 : i32
    %c0_i32_1 = arith.constant 0 : i32
    return %c0_i32, %c0_i32_0 : i32, i32
  }
  func.func @transform_10(%arg0: i32) -> (i32, i32) {
    %c0_i32 = arith.constant 0 : i32
    %c0_i32_0 = arith.constant 0 : i32
    %c0_i32_1 = arith.constant 0 : i32
    return %c0_i32, %c0_i32_0 : i32, i32
  }
  func.func @transform_11(%arg0: i32) -> (i32, i32) {
    %c0_i32 = arith.constant 0 : i32
    %c0_i32_0 = arith.constant 0 : i32
    %c0_i32_1 = arith.constant 0 : i32
    return %c0_i32, %c0_i32_0 : i32, i32
  }
  func.func @transform_12(%arg0: i32) -> (i32, i32, i32) {
    %c0_i32 = arith.constant 0 : i32
    %c0_i32_0 = arith.constant 0 : i32
    %c0_i32_1 = arith.constant 0 : i32
    %c0_i32_2 = arith.constant 0 : i32
    return %c0_i32, %c0_i32_0, %c0_i32_1 : i32, i32, i32
  }
  func.func @transform_13(%arg0: i32) -> (i32, i32) {
    %c0_i32 = arith.constant 0 : i32
    %c0_i32_0 = arith.constant 0 : i32
    %c0_i32_1 = arith.constant 0 : i32
    return %c0_i32, %c0_i32_0 : i32, i32
  }
  func.func @transform_14(%arg0: i32) -> (i32, i32) {
    %c0_i32 = arith.constant 0 : i32
    %c0_i32_0 = arith.constant 0 : i32
    %c0_i32_1 = arith.constant 0 : i32
    return %c0_i32, %c0_i32_0 : i32, i32
  }
  func.func @transform_15(%arg0: i32) -> (i32, i32) {
    %c0_i32 = arith.constant 0 : i32
    %c0_i32_0 = arith.constant 0 : i32
    %c0_i32_1 = arith.constant 0 : i32
    return %c0_i32, %c0_i32_0 : i32, i32
  }
  func.func @transform_16(%arg0: i32) -> (i32, i32, i32) {
    %c0_i32 = arith.constant 0 : i32
    %c0_i32_0 = arith.constant 0 : i32
    %c0_i32_1 = arith.constant 0 : i32
    return %arg0, %c0_i32, %c0_i32_0 : i32, i32, i32
  }
}

</mosaic_0001>

<bundles_post_ra>
// kernel: resnet2_forward.1
= control target key start
LH: loop header
LB: loop body
LE: loop exit
PB: predicated region body
PF: predicated region fallthrough
CT: control target
= control target key end

     0   :  { %s11573_s21 = smov 0   ;;  %s16302_s0 = inlined_call_operand.vmem [shape: bf16[2,256,256], index: 0, kind: input, shape index: {}]   ;;  %s16303_s1 = inlined_call_operand.vmem [shape: bf16[256,128], index: 1, kind: input, shape index: {}]   ;;  %s16304_s2 = inlined_call_operand.vmem [shape: bf16[9,128,128], index: 2, kind: input, shape index: {}]   ;;  %s16305_s3 = inlined_call_operand.vmem [shape: bf16[9,128,128], index: 3, kind: input, shape index: {}]   ;;  %s16306_s4 = inlined_call_operand.vmem [shape: bf16[9,128,128], index: 4, kind: input, shape index: {}]   ;;  %s16307_s5 = inlined_call_operand.vmem [shape: bf16[9,128,128], index: 5, kind: input, shape index: {}]   ;;  %s16308_s6 = inlined_call_operand.vmem [shape: bf16[128,128], index: 6, kind: input, shape index: {}]   ;;  %s16309_s7 = inlined_call_operand.vmem [shape: bf16[9,128,128], index: 7, kind: input, shape index: {}]   ;;  %s16310_s8 = inlined_call_operand.vmem [shape: bf16[9,128,128], index: 8, kind: input, shape index: {}]   ;;  %s16311_s9 = inlined_call_operand.vmem [shape: bf16[128,128], index: 9, kind: input, shape index: {}]   ;;  %s16312_s10 = inlined_call_operand.vmem [shape: bf16[128,128], index: 10, kind: input, shape index: {}]   ;;  %s16313_s11 = inlined_call_operand.vmem [shape: f32[1,128], index: 11, kind: input, shape index: {}]   ;;  %s16314_s12 = inlined_call_operand.vmem [shape: f32[9,1,128], index: 12, kind: input, shape index: {}]   ;;  %s16315_s13 = inlined_call_operand.vmem [shape: f32[64,256], index: 13, kind: input, shape index: {}]   ;;  %s16316_s14 = inlined_call_operand.vmem [shape: f32[16,64], index: 14, kind: input, shape index: {}]   ;;  %s16317_s15 = inlined_call_operand.vmem [shape: f32[4,16], index: 15, kind: input, shape index: {}]   ;;  %s16318_s16 = inlined_call_operand.vmem [shape: f32[2,8,128], index: 16, kind: output, shape index: {}]  }
   0x1   :  { %16492 = sst [smem:[#allocation39_spill]] %s16302_s0 }
   0x2 LB: > { %s7781_s22 = sadd.s32 4294967295, %s11486_s21   ;;  %p7785_p0 = scmp.ge.s32.totalorder %s11486_s21, 1  ;;  %s11486_s21 = sphi %s11573_s21, %s26_s21  }
   0x3   : > { %p462_p1 = scmp.lt.s32.totalorder %s11486_s21, 3 }
   0x5   : > { %p463_p2 = pnand %p7785_p0, %p462_p1 }
   0x7   : > { %466 = sbr.rel (%p463_p2) target bundleno = 2921 (0xb69), region = 84 }
   0xc   : > { %v10989_v0 = vld [vmem:[%s16303_s1 + $0x38] sm:$0xff]  ;;  %v10988_v2 = vld [vmem:[%s16303_s1 + $0x30] sm:$0xff]  ;;  %v10987_v4 = vld [vmem:[%s16303_s1 + $0x28] sm:$0xff]  ;;  %p511_p3 = scmp.lt.s32.totalorder %s7781_s22, 1  ;;  %s16493_s28 = sld [smem:[#allocation39_spill]] }
   0xd   : > { %v10997_v1 = vld [vmem:[%s16303_s1 + $0x78] sm:$0xff]  ;;  %844 = vmatpush.bf16.msra.mxu0 %v10989_v0  ;;  %v10996_v3 = vld [vmem:[%s16303_s1 + $0x70] sm:$0xff]  ;;  %v10995_v5 = vld [vmem:[%s16303_s1 + $0x68] sm:$0xff] }
   0xe   : > { %933 = vmatpush.bf16.msra.mxu1 %v10997_v1  ;;  %v10986_v6 = vld [vmem:[%s16303_s1 + $0x20] sm:$0xff]  ;;  %v10985_v8 = vld [vmem:[%s16303_s1 + $0x18] sm:$0xff]  ;;  %s17069_s22 = smov (!%p511_p3, %s7781_s22), 1  ;;  %v10984_v10 = vld [vmem:[%s16303_s1 + $0x10] sm:$0xff] }
   0xf   : > { %v10994_v7 = vld [vmem:[%s16303_s1 + $0x60] sm:$0xff]  ;;  %v10993_v9 = vld [vmem:[%s16303_s1 + $0x58] sm:$0xff]  ;;  %v10992_v11 = vld [vmem:[%s16303_s1 + $0x50] sm:$0xff]  ;;  %s10949_s19 = sshll.u32 %s17069_s22, 8  ;;  %s7788_s0 = sshll.u32 %s17069_s22, 3 }
  0x10   : > { %v10983_v12 = vld [vmem:[%s16303_s1 + $0x8] sm:$0xff]  ;;  %v10982_v14 = vld [vmem:[%s16303_s1] sm:$0xff] }
  0x11   : > { %845 = vmatpush.bf16.msra.mxu0 %v10988_v2  ;;  %v10991_v13 = vld [vmem:[%s16303_s1 + $0x48] sm:$0xff]  ;;  %v10990_v15 = vld [vmem:[%s16303_s1 + $0x40] sm:$0xff] }
  0x12   : > { %934 = vmatpush.bf16.msra.mxu1 %v10996_v3  ;;  %s11629_s29 = scalar_lea.vmem %s16493_s28, %s10949_s19  ;;  %s519_s19 = scalar_lea.vmem %s16318_s16, %s7788_s0 }
  0x13   : > { %v7791_v16 = vld [vmem:[%s11629_s29] sm:$0xf]  ;;  %v10951_v17 = vld [vmem:[%s11629_s29 + $0x4] sm:$0xf0]  ;;  %v10950_v18 = vld [vmem:[%s11629_s29 + $0x4] sm:$0xf] }
  0x14   : > { %v7793_v19 = vld [vmem:[%s11629_s29 + $0x8] sm:$0xf0]  ;;  %v7792_v20 = vor.u32 %v10951_v17, %v7791_v16  ;;  %v7799_v22 = vld [vmem:[%s11629_s29 + $0x10] sm:$0xf]  ;;  %v10953_v23 = vld [vmem:[%s11629_s29 + $0x14] sm:$0xf0] }
  0x15   : > { %846 = vmatpush.bf16.msra.mxu0 %v10987_v4  ;;  %v7796_v21 = vor.u32 %v10950_v18, %v7793_v19  ;;  %v10952_v24 = vld [vmem:[%s11629_s29 + $0x14] sm:$0xf]  ;;  %v7801_v25 = vld [vmem:[%s11629_s29 + $0x18] sm:$0xf0]  ;;  %v7800_v26 = vor.u32 %v10953_v23, %v7799_v22  ;;  %v7807_v28 = vld [vmem:[%s11629_s29 + $0x20] sm:$0xf] }
  0x16   : > { %935 = vmatpush.bf16.msra.mxu1 %v10995_v5  ;;  %v7804_v27 = vor.u32 %v10952_v24, %v7801_v25  ;;  %v10955_v29 = vld [vmem:[%s11629_s29 + $0x24] sm:$0xf0]  ;;  %v10954_v30 = vld [vmem:[%s11629_s29 + $0x24] sm:$0xf]  ;;  %v7809_v31 = vld [vmem:[%s11629_s29 + $0x28] sm:$0xf0] }
  0x17   : > { %v7808_v32 = vor.u32 %v10955_v29, %v7807_v28  ;;  %v7812_v33 = vor.u32 %v10954_v30, %v7809_v31  ;;  %v7815_v34 = vld [vmem:[%s11629_s29 + $0x30] sm:$0xf]  ;;  %v10957_v35 = vld [vmem:[%s11629_s29 + $0x34] sm:$0xf0]  ;;  %v10956_v36 = vld [vmem:[%s11629_s29 + $0x34] sm:$0xf] }
  0x18   : > { %v7817_v37 = vld [vmem:[%s11629_s29 + $0x38] sm:$0xf0]  ;;  %v7816_v38 = vor.u32 %v10957_v35, %v7815_v34  ;;  %v7823_v40 = vld [vmem:[%s11629_s29 + $0x40] sm:$0xf]  ;;  %v10959_v41 = vld [vmem:[%s11629_s29 + $0x44] sm:$0xf0] }
  0x19   : > { %847 = vmatpush.bf16.msra.mxu0 %v10986_v6  ;;  %v7820_v39 = vor.u32 %v10956_v36, %v7817_v37  ;;  %v10958_v42 = vld [vmem:[%s11629_s29 + $0x44] sm:$0xf]  ;;  %v7825_v43 = vld [vmem:[%s11629_s29 + $0x48] sm:$0xf0]  ;;  %v7824_v44 = vor.u32 %v10959_v41, %v7823_v40  ;;  %v7831_v46 = vld [vmem:[%s11629_s29 + $0x50] sm:$0xf] }
  0x1a   : > { %936 = vmatpush.bf16.msra.mxu1 %v10994_v7  ;;  %v7828_v45 = vor.u32 %v10958_v42, %v7825_v43  ;;  %v10961_v47 = vld [vmem:[%s11629_s29 + $0x54] sm:$0xf0]  ;;  %v10960_v48 = vld [vmem:[%s11629_s29 + $0x54] sm:$0xf]  ;;  %v7833_v49 = vld [vmem:[%s11629_s29 + $0x58] sm:$0xf0] }
  0x1b   : > { %v7832_v50 = vor.u32 %v10961_v47, %v7831_v46  ;;  %v7836_v51 = vor.u32 %v10960_v48, %v7833_v49  ;;  %v7839_v52 = vld [vmem:[%s11629_s29 + $0x60] sm:$0xf]  ;;  %v10963_v53 = vld [vmem:[%s11629_s29 + $0x64] sm:$0xf0]  ;;  %v10962_v54 = vld [vmem:[%s11629_s29 + $0x64] sm:$0xf] }
  0x1c   : > { %v7841_v55 = vld [vmem:[%s11629_s29 + $0x68] sm:$0xf0]  ;;  %v7840_v56 = vor.u32 %v10963_v53, %v7839_v52  ;;  %v7847_v58 = vld [vmem:[%s11629_s29 + $0x70] sm:$0xf]  ;;  %v10965_v59 = vld [vmem:[%s11629_s29 + $0x74] sm:$0xf0] }
  0x1d   : > { %848 = vmatpush.bf16.msra.mxu0 %v10985_v8  ;;  %v7844_v57 = vor.u32 %v10962_v54, %v7841_v55  ;;  %v10964_v60 = vld [vmem:[%s11629_s29 + $0x74] sm:$0xf]  ;;  %v7849_v61 = vld [vmem:[%s11629_s29 + $0x78] sm:$0xf0]  ;;  %v7848_v62 = vor.u32 %v10965_v59, %v7847_v58  ;;  %v7855_v0 = vld [vmem:[%s11629_s29 + $0x80] sm:$0xf] }
  0x1e   : > { %937 = vmatpush.bf16.msra.mxu1 %v10993_v9  ;;  %v7852_v63 = vor.u32 %v10964_v60, %v7849_v61  ;;  %v10967_v1 = vld [vmem:[%s11629_s29 + $0x84] sm:$0xf0]  ;;  %v10966_v2 = vld [vmem:[%s11629_s29 + $0x84] sm:$0xf]  ;;  %v7857_v3 = vld [vmem:[%s11629_s29 + $0x88] sm:$0xf0] }
  0x1f   : > { %v11676_v4 = vld [vmem:[%s16314_s12] ss:$0 sm:$0xff]  ;;  %v7856_v5 = vor.u32 %v10967_v1, %v7855_v0  ;;  %v7860_v6 = vor.u32 %v10966_v2, %v7857_v3  ;;  %v7863_v17 = vld [vmem:[%s11629_s29 + $0x90] sm:$0xf]  ;;  %v10969_v18 = vld [vmem:[%s11629_s29 + $0x94] sm:$0xf0] }
  0x20   : > { %v10968_v19 = vld [vmem:[%s11629_s29 + $0x94] sm:$0xf]  ;;  %v7864_v23 = vor.u32 %v10969_v18, %v7863_v17  ;;  %v7871_v48 = vld [vmem:[%s11629_s29 + $0xa0] sm:$0xf]  ;;  %v10970_v52 = vld [vmem:[%s11629_s29 + $0xa4] sm:$0xf] }
  0x21   : > { %849 = vmatpush.bf16.msra.mxu0 %v10984_v10  ;;  %v7873_v53 = vld [vmem:[%s11629_s29 + $0xa8] sm:$0xf0] }
  0x22   : > { %938 = vmatpush.bf16.msra.mxu1 %v10992_v11  ;;  %v1054_v11 = vlaneseq }
  0x24   : > { %v11680_v16 = vshrl.u32 %v1054_v11, 7 }
  0x25   : > { %850 = vmatpush.bf16.msra.mxu0 %v10983_v12 }
  0x26   : > { %939 = vmatpush.bf16.msra.mxu1 %v10991_v13  ;;  %v11690_v22 = vadd.s32 8, %v11680_v16  ;;  %vm16338_vm0 = vcmp.lt.s32.totalorder %v11680_v16, 1  ;;  %vm16337_vm3 = vcmp.lt.s32.totalorder %v11680_v16, 7  ;;  %v11730_v60 = vadd.s32 24, %v11680_v16 }
  0x27   : > { %v11733_v61 = vadd.s32 32, %v11680_v16 }
  0x28   : > { %16495 = vst [vmem:[#allocation3_spill] sm:$0xff] %v11690_v22  ;;  %v1120_v31 = vand.u32 15, %v11690_v22 }
  0x29   : > { %851 = vmatpush.bf16.msra.mxu0 %v10982_v14  ;;  %16498 = vst [vmem:[#allocation4_spill] sm:$0xff] %v11730_v60 }
  0x2a   : > { %940 = vmatpush.bf16.msra.mxu1 %v10990_v15  ;;  %vm1281_vm2 = vcmp.le.s32.totalorder %v1120_v31, 14  ;;  %16499 = vst [vmem:[#allocation5_spill] sm:$0xff] %v11733_v61 }
  0x2c   : > { %852 = vmatmul.bf16.vlgmr.msra.gmra.mxu0 %v7792_v20  ;;  %v7865_v20 = vld [vmem:[%s11629_s29 + $0x98] sm:$0xf0] }
  0x2d   : > { %941 = vmatmul.bf16.vlgmr.msra.gmra.mxu1 %v7796_v21  ;;  %v11687_v21 = vadd.s32 16, %v11680_v16  ;;  %v7868_v24 = vor.u32 %v10968_v19, %v7865_v20 }
  0x2f   : > { %16494 = vst [vmem:[#allocation2_spill] sm:$0xff] %v11687_v21  ;;  %v1121_v29 = vand.u32 15, %v11687_v21 }
  0x31   : > { %vm11701_vm1 = vcmp.ge.s32.totalorder %v1121_v29, 1  ;;  %v7881_v29 = vld [vmem:[%s11629_s29 + $0xb8] sm:$0xf0] }
  0x3c   : > { %857 = vmatmul.bf16.gmra.mxu0 %v7800_v26 }
  0x3d   : > { %946 = vmatmul.bf16.gmra.mxu1 %v7804_v27 }
  0x4c   : > { %862 = vmatmul.bf16.gmra.mxu0 %v7808_v32 }
  0x4d   : > { %951 = vmatmul.bf16.gmra.mxu1 %v7812_v33 }
  0x5c   : > { %867 = vmatmul.bf16.gmra.mxu0 %v7816_v38 }
  0x5d   : > { %956 = vmatmul.bf16.gmra.mxu1 %v7820_v39 }
  0x6c   : > { %872 = vmatmul.bf16.gmra.mxu0 %v7824_v44 }
  0x6d   : > { %961 = vmatmul.bf16.gmra.mxu1 %v7828_v45 }
  0x7c   : > { %877 = vmatmul.bf16.gmra.mxu0 %v7832_v50 }
  0x7d   : > { %966 = vmatmul.bf16.gmra.mxu1 %v7836_v51  ;;  %v10971_v51 = vld [vmem:[%s11629_s29 + $0xa4] sm:$0xf0] }
  0x8c   : > { %882 = vmatmul.bf16.gmra.mxu0 %v7840_v56  ;;  %v7872_v56 = vor.u32 %v10971_v51, %v7871_v48 }
  0x8d   : > { %971 = vmatmul.bf16.gmra.mxu1 %v7844_v57  ;;  %v7876_v57 = vor.u32 %v10970_v52, %v7873_v53 }
  0x9c   : > { %887 = vmatmul.bf16.gmra.mxu0 %v7848_v62 }
  0x9d   : > { %976 = vmatmul.bf16.gmra.mxu1 %v7852_v63 }
  0xa9   : > { %v853_v7 = vpop.f32.mrf.mxu0 }
  0xaa   : > { %v942_v8 = vpop.f32.mrf.mxu1  ;;  %v854_v9 = vadd.f32 %v11676_v4, %v853_v7  ;;  %v1123_v7 = vand.u32 15, %v11733_v61 }
  0xac   : > { %v943_v10 = vadd.f32 %v942_v8, %v854_v9  ;;  %892 = vmatmul.bf16.gmra.mxu0 %v7856_v5  ;;  %vm11744_vm4 = vcmp.ge.s32.totalorder %v1123_v7, 1  ;;  %v10975_v7 = vld [vmem:[%s11629_s29 + $0xc4] sm:$0xf0] }
  0xad   : > { %981 = vmatmul.bf16.gmra.mxu1 %v7860_v6  ;;  %v1122_v6 = vand.u32 15, %v11730_v60 }
  0xae   : > { %v11697_v32 = vmax.f32 %v943_v10, 0.0  ;;  %v7889_v10 = vld [vmem:[%s11629_s29 + $0xc8] sm:$0xf0] }
  0xaf   : > { %vm1283_vm5 = vcmp.le.s32.totalorder %v1122_v6, 14 }
  0xb0   : > { %v16319_v39 = vrot.slane %v11697_v32, 7 }
  0xb1   : > { %v855_v12 = vpop.f32.mrf.mxu0 }
  0xb2   : > { %v944_v13 = vpop.f32.mrf.mxu1  ;;  %v856_v14 = vadd.f32 %v11676_v4, %v855_v12 }
  0xb4   : > { %v945_v15 = vadd.f32 %v944_v13, %v856_v14 }
  0xb6   : > { %v11693_v28 = vmax.f32 %v945_v15, 0.0 }
  0xb8   : > { %v1184_v34 = vrot.slane %v11693_v28, 7  ;;  %v16320_v36 = vrot.slane %v11693_v28, 1 }
  0xb9   : > { %v858_v25 = vpop.f32.mrf.mxu0 }
  0xba   : > { %v947_v26 = vpop.f32.mrf.mxu1  ;;  %v859_v27 = vadd.f32 %v11676_v4, %v858_v25  ;;  %v1246_v45 = vsel %vm16338_vm0, %v16319_v39, %v1184_v34 }
  0xbc   : > { %v948_v30 = vadd.f32 %v947_v26, %v859_v27  ;;  %897 = vmatmul.bf16.gmra.mxu0 %v7864_v23  ;;  %v7879_v23 = vld [vmem:[%s11629_s29 + $0xb0] sm:$0xf]  ;;  %v10973_v26 = vld [vmem:[%s11629_s29 + $0xb4] sm:$0xf0]  ;;  %v10972_v27 = vld [vmem:[%s11629_s29 + $0xb4] sm:$0xf] }
  0xbd   : > { %986 = vmatmul.bf16.gmra.mxu1 %v7868_v24 }
  0xbe   : > { %v1024_v33 = vmax.f32 %v948_v30, 0.0 }
  0xc0   : > { %v1185_v37 = vrot.slane %v1024_v33, 7  ;;  %v1314_v38 = vrot.slane %v1024_v33, 1 }
  0xc1   : > { %v860_v40 = vpop.f32.mrf.mxu0 }
  0xc2   : > { %v949_v41 = vpop.f32.mrf.mxu1  ;;  %v1245_v42 = vsel %vm16338_vm0, %v1184_v34, %v1185_v37  ;;  %v1374_v43 = vsel %vm16337_vm3, %v16320_v36, %v1314_v38  ;;  %v861_v44 = vadd.f32 %v11676_v4, %v860_v40  ;;  %v7884_v34 = vor.u32 %v10972_v27, %v7881_v29 }
  0xc3   : > { %v1250_v46 = vsel %vm11701_vm1, %v1245_v42, %v1024_v33  ;;  %v1378_v47 = vsel %vm1281_vm2, %v1374_v43, %v11693_v28  ;;  %v11765_v40 = vadd.s32 48, %v11680_v16 }
  0xc4   : > { %v1410_v49 = vmax.f32 %v1246_v45, %v1378_v47  ;;  %v950_v50 = vadd.f32 %v949_v41, %v861_v44 }
  0xc5   : > { %16503 = vst [vmem:[#allocation7_spill] sm:$0xff] %v11765_v40 }
  0xc6   : > { %v1025_v54 = vmax.f32 %v950_v50, 0.0  ;;  %v11727_v55 = vmax.f32 %v1410_v49, %v11693_v28  ;;  %v1125_v49 = vand.u32 15, %v11765_v40 }
  0xc8   : > { %v1186_v58 = vrot.slane %v1025_v54, 7  ;;  %v1315_v59 = vrot.slane %v1025_v54, 1  ;;  %vm11776_vm6 = vcmp.ge.s32.totalorder %v1125_v49, 1 }
  0xc9   : > { %v863_v62 = vpop.f32.mrf.mxu0 }
  0xca   : > { %v952_v63 = vpop.f32.mrf.mxu1  ;;  %v1244_v0 = vsel %vm16338_vm0, %v1185_v37, %v1186_v58  ;;  %v1373_v1 = vsel %vm16337_vm3, %v1314_v38, %v1315_v59  ;;  %v864_v2 = vadd.f32 %v11676_v4, %v863_v62  ;;  %v11762_v38 = vadd.s32 40, %v11680_v16 }
  0xcb   : > { %v1411_v3 = vmax.f32 %v1250_v46, %v1373_v1 }
  0xcc   : > { %v953_v5 = vadd.f32 %v952_v63, %v864_v2  ;;  %902 = vmatmul.bf16.gmra.mxu0 %v7872_v56  ;;  %16502 = vst [vmem:[#allocation6_spill] sm:$0xff] %v11762_v38  ;;  %v1124_v48 = vand.u32 15, %v11762_v38  ;;  %v1092_v63 = vshra.s32 %v11762_v38, 4  ;;  %v7887_v2 = vld [vmem:[%s11629_s29 + $0xc0] sm:$0xf] }
  0xcd   : > { %991 = vmatmul.bf16.gmra.mxu1 %v7876_v57  ;;  %v11742_v8 = vmax.f32 %v1411_v3, %v1024_v33  ;;  %v7880_v33 = vor.u32 %v10973_v26, %v7879_v23  ;;  %v1090_v3 = vshra.s32 %v11730_v60, 4 }
  0xce   : > { %v1026_v9 = vmax.f32 %v953_v5, 0.0  ;;  %vm1285_vm7 = vcmp.le.s32.totalorder %v1124_v48, 14  ;;  %vm11797_vm8 = vcmp.ge.s32.totalorder %v1092_v63, 1  ;;  %vm1542_vm2 = vcmp.le.s32.totalorder %v1092_v63, 14 }
  0xcf   : > { %vm11801_vm9 = vcmp.le.s32.totalorder %v1090_v3, 14  ;;  %vm11808_vm10 = vcmp.ge.s32.totalorder %v1090_v3, 1 }
  0xd0   : > { %v1187_v11 = vrot.slane %v1026_v9, 7  ;;  %v1316_v12 = vrot.slane %v1026_v9, 1 }
  0xd1   : > { %v865_v13 = vpop.f32.mrf.mxu0 }
  0xd2   : > { %v954_v14 = vpop.f32.mrf.mxu1  ;;  %v1243_v15 = vsel %vm16338_vm0, %v1186_v58, %v1187_v11  ;;  %v1372_v17 = vsel %vm16337_vm3, %v1315_v59, %v1316_v12  ;;  %v866_v18 = vadd.f32 %v11676_v4, %v865_v13 }
  0xd3   : > { %v1252_v19 = vsel %vm11744_vm4, %v1243_v15, %v1026_v9  ;;  %v1380_v20 = vsel %vm1283_vm5, %v1372_v17, %v1025_v54  ;;  %v11806_v15 = vadd.s32 64, %v11680_v16  ;;  %v7888_v17 = vor.u32 %v10975_v7, %v7887_v2 }
  0xd4   : > { %v1412_v24 = vmax.f32 %v1244_v0, %v1380_v20  ;;  %v955_v25 = vadd.f32 %v954_v14, %v866_v18  ;;  %v7895_v14 = vld [vmem:[%s11629_s29 + $0xd0] sm:$0xf] }
  0xd6   : > { %v1027_v30 = vmax.f32 %v955_v25, 0.0  ;;  %v11759_v31 = vmax.f32 %v1412_v24, %v1025_v54  ;;  %v11813_v24 = vadd.s32 56, %v11680_v16  ;;  %v1093_v25 = vshra.s32 %v11765_v40, 4 }
  0xd8   : > { %v1188_v35 = vrot.slane %v1027_v30, 7  ;;  %v1317_v37 = vrot.slane %v1027_v30, 1  ;;  %16512 = vst [vmem:[#allocation8_spill] sm:$0xff] %v11813_v24  ;;  %vm11840_vm11 = vcmp.ge.s32.totalorder %v1093_v25, 1  ;;  %vm1543_vm5 = vcmp.le.s32.totalorder %v1093_v25, 14 }
  0xd9   : > { %v868_v41 = vpop.f32.mrf.mxu0 }
  0xda   : > { %v957_v42 = vpop.f32.mrf.mxu1  ;;  %v1242_v43 = vsel %vm16338_vm0, %v1187_v11, %v1188_v35  ;;  %v1371_v44 = vsel %vm16337_vm3, %v1316_v12, %v1317_v37  ;;  %v869_v45 = vadd.f32 %v11676_v4, %v868_v41  ;;  %v1508_v41 = vsel %vm11808_vm10, %v11727_v55, %v11759_v31 }
  0xdb   : > { %v1413_v46 = vmax.f32 %v1252_v19, %v1371_v44  ;;  %v7897_v19 = vld [vmem:[%s11629_s29 + $0xd8] sm:$0xf0] }
  0xdc   : > { %v958_v47 = vadd.f32 %v957_v42, %v869_v45  ;;  %907 = vmatmul.bf16.gmra.mxu0 %v7880_v33 }
  0xdd   : > { %996 = vmatmul.bf16.gmra.mxu1 %v7884_v34  ;;  %v11774_v50 = vmax.f32 %v1413_v46, %v1026_v9  ;;  %v10974_v9 = vld [vmem:[%s11629_s29 + $0xc4] sm:$0xf]  ;;  %v1126_v46 = vand.u32 15, %v11813_v24 }
  0xde   : > { %v1028_v51 = vmax.f32 %v958_v47, 0.0  ;;  %v7892_v18 = vor.u32 %v10974_v9, %v7889_v10 }
  0xdf   : > { %vm1287_vm15 = vcmp.le.s32.totalorder %v1126_v46, 14 }
  0xe0   : > { %v1189_v53 = vrot.slane %v1028_v51, 7  ;;  %v1318_v54 = vrot.slane %v1028_v51, 1 }
  0xe1   : > { %v870_v56 = vpop.f32.mrf.mxu0 }
  0xe2   : > { %v959_v57 = vpop.f32.mrf.mxu1  ;;  %v1241_v58 = vsel %vm16338_vm0, %v1188_v35, %v1189_v53  ;;  %v1370_v59 = vsel %vm16337_vm3, %v1317_v37, %v1318_v54  ;;  %v871_v62 = vadd.f32 %v11676_v4, %v870_v56 }
  0xe3   : > { %v1254_v0 = vsel %vm11776_vm6, %v1241_v58, %v1028_v51  ;;  %v1382_v1 = vsel %vm1285_vm7, %v1370_v59, %v1027_v30 }
  0xe4   : > { %v1414_v5 = vmax.f32 %v1242_v43, %v1382_v1  ;;  %v960_v6 = vadd.f32 %v959_v57, %v871_v62  ;;  %v1127_v43 = vand.u32 15, %v11806_v15 }
  0xe6   : > { %v1029_v11 = vmax.f32 %v960_v6, 0.0  ;;  %v11793_v12 = vmax.f32 %v1414_v5, %v1027_v30  ;;  %v1091_v30 = vshra.s32 %v11733_v61, 4  ;;  %vm11850_vm14 = vcmp.ge.s32.totalorder %v1127_v43, 1 }
  0xe7   : > { %v1094_v5 = vshra.s32 %v11813_v24, 4 }
  0xe8   : > { %v1190_v20 = vrot.slane %v1029_v11, 7  ;;  %v1319_v23 = vrot.slane %v1029_v11, 1  ;;  %v1510_v29 = vsel %vm11797_vm8, %v11759_v31, %v11793_v12  ;;  %v1572_v33 = vsel %vm11801_vm9, %v11793_v12, %v11759_v31 }
  0xe9   : > { %v873_v26 = vpop.f32.mrf.mxu0  ;;  %v11835_v44 = vmax.f32 %v1508_v41, %v1572_v33  ;;  %vm1541_vm12 = vcmp.le.s32.totalorder %v1091_v30, 14  ;;  %vm1477_vm13 = vcmp.ge.s32.totalorder %v1091_v30, 1  ;;  %vm11883_vm1 = vcmp.ge.s32.totalorder %v1094_v5, 1 }
  0xea   : > { %v962_v27 = vpop.f32.mrf.mxu1  ;;  %v1240_v34 = vsel %vm16338_vm0, %v1189_v53, %v1190_v20  ;;  %v1369_v35 = vsel %vm16337_vm3, %v1318_v54, %v1319_v23  ;;  %v874_v37 = vadd.f32 %v11676_v4, %v873_v26  ;;  %v1509_v58 = vsel %vm1477_vm13, %v11742_v8, %v11774_v50 }
  0xeb   : > { %v1415_v42 = vmax.f32 %v1254_v0, %v1369_v35  ;;  %v11890_v33 = vadd.s32 72, %v11680_v16  ;;  %v1095_v35 = vshra.s32 %v11806_v15, 4  ;;  %vm1544_vm8 = vcmp.le.s32.totalorder %v1094_v5, 14 }
  0xec   : > { %v963_v45 = vadd.f32 %v962_v27, %v874_v37  ;;  %912 = vmatmul.bf16.gmra.mxu0 %v7888_v17  ;;  %v10977_v17 = vld [vmem:[%s11629_s29 + $0xd4] sm:$0xf0] }
  0xed   : > { %1001 = vmatmul.bf16.gmra.mxu1 %v7892_v18  ;;  %v11844_v48 = vmax.f32 %v1415_v42, %v1028_v51  ;;  %v10976_v18 = vld [vmem:[%s11629_s29 + $0xd4] sm:$0xf]  ;;  %v7896_v27 = vor.u32 %v10977_v17, %v7895_v14  ;;  %v1128_v53 = vand.u32 15, %v11890_v33  ;;  %vm11907_vm4 = vcmp.ge.s32.totalorder %v1095_v35, 1 }
  0xee   : > { %v11848_v52 = vmax.f32 %v963_v45, 0.0 }
  0xef   : > { %v1511_v54 = vsel %vm11840_vm11, %v11774_v50, %v11844_v48  ;;  %v1573_v56 = vsel %vm1541_vm12, %v11844_v48, %v11774_v50  ;;  %vm1289_vm6 = vcmp.le.s32.totalorder %v1128_v53, 14  ;;  %vm1545_vm11 = vcmp.le.s32.totalorder %v1095_v35, 14 }
  0xf0   : > { %v1191_v51 = vrot.slane %v11848_v52, 7  ;;  %v1320_v57 = vrot.slane %v11848_v52, 1  ;;  %v11864_v0 = vmax.f32 %v1509_v58, %v1573_v56  ;;  %v11958_v56 = vadd.s32 88, %v11680_v16 }
  0xf1   : > { %v875_v59 = vpop.f32.mrf.mxu0 }
  0xf2   : > { %v964_v62 = vpop.f32.mrf.mxu1  ;;  %v1239_v1 = vsel %vm16338_vm0, %v1190_v20, %v1191_v51  ;;  %v1368_v2 = vsel %vm16337_vm3, %v1319_v23, %v1320_v57  ;;  %v876_v3 = vadd.f32 %v11676_v4, %v875_v59  ;;  %v11921_v59 = vadd.s32 80, %v11680_v16 }
  0xf3   : > { %v1256_v6 = vsel %vm11850_vm14, %v1239_v1, %v11848_v52  ;;  %v1384_v7 = vsel %vm1287_vm15, %v1368_v2, %v1029_v11 }
  0xf4   : > { %v1416_v10 = vmax.f32 %v1240_v34, %v1384_v7  ;;  %v965_v13 = vadd.f32 %v964_v62, %v876_v3  ;;  %v7900_v34 = vor.u32 %v10976_v18, %v7897_v19 }
  0xf6   : > { %v1031_v20 = vmax.f32 %v965_v13, 0.0  ;;  %v11881_v23 = vmax.f32 %v1416_v10, %v1029_v11  ;;  %v1129_v10 = vand.u32 15, %v11921_v59 }
  0xf8   : > { %v1321_v30 = vrot.slane %v1031_v20, 1  ;;  %v1512_v11 = vsel %vm11883_vm1, %v11793_v12, %v11881_v23  ;;  %v1574_v42 = vsel %vm1542_vm2, %v11881_v23, %v11793_v12  ;;  %v1192_v62 = vrot.slane %v1031_v20, 7 }
  0xf9   : > { %v878_v37 = vpop.f32.mrf.mxu0  ;;  %v11902_v46 = vmax.f32 %v1510_v29, %v1574_v42  ;;  %v7905_v42 = vld [vmem:[%s11629_s29 + $0xe8] sm:$0xf0]  ;;  %vm1161_vm9 = vcmp.ge.s32.totalorder %v1129_v10, 1 }
  0xfa   : > { %v967_v41 = vpop.f32.mrf.mxu1  ;;  %v1367_v63 = vsel %vm16337_vm3, %v1320_v57, %v1321_v30  ;;  %v879_v43 = vadd.f32 %v11676_v4, %v878_v37  ;;  %v1238_v17 = vsel %vm16338_vm0, %v1191_v51, %v1192_v62  ;;  %v10979_v37 = vld [vmem:[%s11629_s29 + $0xe4] sm:$0xf0] }
  0xfb   : > { %v1417_v45 = vmax.f32 %v1256_v6, %v1367_v63  ;;  %v1096_v6 = vshra.s32 %v11890_v33, 4 }
  0xfc   : > { %v968_v47 = vadd.f32 %v967_v41, %v879_v43  ;;  %917 = vmatmul.bf16.gmra.mxu0 %v7896_v27  ;;  %v10978_v41 = vld [vmem:[%s11629_s29 + $0xe4] sm:$0xf] }
  0xfd   : > { %1006 = vmatmul.bf16.gmra.mxu1 %v7900_v34  ;;  %v11914_v57 = vmax.f32 %v1417_v45, %v11848_v52  ;;  %vm11948_vm7 = vcmp.ge.s32.totalorder %v1096_v6, 1  ;;  %vm1546_vm14 = vcmp.le.s32.totalorder %v1096_v6, 14 }
  0xfe   : > { %v11918_v58 = vmax.f32 %v968_v47, 0.0  ;;  %v1097_v47 = vshra.s32 %v11921_v59, 4 }
  0xff   : > { %v1513_v1 = vsel %vm11907_vm4, %v11844_v48, %v11914_v57  ;;  %v1575_v25 = vsel %vm1543_vm5, %v11914_v57, %v11844_v48 }
 0x100   : > { %v1322_v52 = vrot.slane %v11918_v58, 1  ;;  %v11931_v7 = vmax.f32 %v1511_v54, %v1575_v25  ;;  %v1193_v18 = vrot.slane %v11918_v58, 7  ;;  %v7903_v54 = vld [vmem:[%s11629_s29 + $0xe0] sm:$0xf]  ;;  %v7908_v25 = vor.u32 %v10978_v41, %v7905_v42 }
 0x101   : > { %v880_v2 = vpop.f32.mrf.mxu0  ;;  %v7904_v45 = vor.u32 %v10979_v37, %v7903_v54  ;;  %vm11974_vm10 = vcmp.ge.s32.totalorder %v1097_v47, 1  ;;  %v11987_v37 = vadd.s32 96, %v11680_v16  ;;  %vm1547_vm1 = vcmp.le.s32.totalorder %v1097_v47, 14 }
 0x102   : > { %v969_v3 = vpop.f32.mrf.mxu1  ;;  %v1366_v13 = vsel %vm16337_vm3, %v1321_v30, %v1322_v52  ;;  %v881_v14 = vadd.f32 %v11676_v4, %v880_v2  ;;  %v1237_v43 = vsel %vm16338_vm0, %v1192_v62, %v1193_v18 }
 0x103   : > { %v1386_v19 = vsel %vm1289_vm6, %v1366_v13, %v1031_v20  ;;  %v1258_v62 = vsel %vm1161_vm9, %v1237_v43, %v11918_v58  ;;  %v1098_v43 = vshra.s32 %v11958_v56, 4 }
 0x104   : > { %v1418_v27 = vmax.f32 %v1238_v17, %v1386_v19  ;;  %v970_v34 = vadd.f32 %v969_v3, %v881_v14 }
 0x105   : > { %vm12010_vm13 = vcmp.ge.s32.totalorder %v1098_v43, 1  ;;  %vm1548_vm4 = vcmp.le.s32.totalorder %v1098_v43, 14  ;;  %v12071_v43 = vadd.s32 112, %v11680_v16 }
 0x106   : > { %v1033_v63 = vmax.f32 %v970_v34, 0.0  ;;  %v11952_v51 = vmax.f32 %v1418_v27, %v1031_v20  ;;  %v1130_v34 = vand.u32 15, %v11958_v56 }
 0x108   : > { %v1323_v53 = vrot.slane %v1033_v63, 1  ;;  %v1514_v2 = vsel %vm11948_vm7, %v11881_v23, %v11952_v51  ;;  %v1576_v5 = vsel %vm1544_vm8, %v11952_v51, %v11881_v23  ;;  %v1194_v41 = vrot.slane %v1033_v63, 7 }
 0x109   : > { %v883_v20 = vpop.f32.mrf.mxu0  ;;  %v11970_v14 = vmax.f32 %v1512_v11, %v1576_v5  ;;  %vm1291_vm12 = vcmp.le.s32.totalorder %v1130_v34, 14  ;;  %v7913_v34 = vld [vmem:[%s11629_s29 + $0xf8] sm:$0xf0] }
 0x10a   : > { %v972_v3 = vpop.f32.mrf.mxu1  ;;  %v1365_v10 = vsel %vm16337_vm3, %v1322_v52, %v1323_v53  ;;  %v884_v13 = vadd.f32 %v11676_v4, %v883_v20  ;;  %v1236_v5 = vsel %vm16338_vm0, %v1193_v18, %v1194_v41 }
 0x10b   : > { %v1419_v17 = vmax.f32 %v1258_v62, %v1365_v10 }
 0x10c   : > { %v973_v27 = vadd.f32 %v972_v3, %v884_v13  ;;  %922 = vmatmul.bf16.gmra.mxu0 %v7904_v45  ;;  %v7911_v13 = vld [vmem:[%s11629_s29 + $0xf0] sm:$0xf] }
 0x10d   : > { %1011 = vmatmul.bf16.gmra.mxu1 %v7908_v25  ;;  %v11984_v11 = vmax.f32 %v1419_v17, %v11918_v58  ;;  %v1131_v25 = vand.u32 15, %v11987_v37  ;;  %v1101_v17 = vshra.s32 %v12071_v43, 4 }
 0x10e   : > { %v1034_v54 = vmax.f32 %v973_v27, 0.0  ;;  %v10980_v27 = vld [vmem:[%s11629_s29 + $0xf4] sm:$0xf] }
 0x10f   : > { %v1515_v42 = vsel %vm11974_vm10, %v11914_v57, %v11984_v11  ;;  %v1577_v15 = vsel %vm1545_vm11, %v11984_v11, %v11914_v57  ;;  %vm1163_vm15 = vcmp.ge.s32.totalorder %v1131_v25, 1 }
 0x110   : > { %v1324_v35 = vrot.slane %v1034_v54, 1  ;;  %v11996_v45 = vmax.f32 %v1513_v1, %v1577_v15  ;;  %v1195_v62 = vrot.slane %v1034_v54, 7  ;;  %v10981_v1 = vld [vmem:[%s11629_s29 + $0xf4] sm:$0xf0] }
 0x111   : > { %v885_v58 = vpop.f32.mrf.mxu0 }
 0x112   : > { %v974_v30 = vpop.f32.mrf.mxu1  ;;  %v1364_v20 = vsel %vm16337_vm3, %v1323_v53, %v1324_v35  ;;  %v886_v3 = vadd.f32 %v11676_v4, %v885_v58  ;;  %v1235_v58 = vsel %vm16338_vm0, %v1194_v41, %v1195_v62 }
 0x113   : > { %v1388_v10 = vsel %vm1291_vm12, %v1364_v20, %v1033_v63  ;;  %v7912_v20 = vor.u32 %v10981_v1, %v7911_v13  ;;  %v1260_v41 = vsel %vm1163_vm15, %v1235_v58, %v1034_v54  ;;  %vm12163_vm12 = vcmp.le.s32.totalorder %v1101_v17, 14 }
 0x114   : > { %v1420_v19 = vmax.f32 %v1236_v5, %v1388_v10  ;;  %v975_v56 = vadd.f32 %v974_v30, %v886_v3  ;;  %v7916_v30 = vor.u32 %v10980_v27, %v7913_v34  ;;  %v12024_v5 = vadd.s32 104, %v11680_v16 }
 0x116   : > { %v12016_v53 = vmax.f32 %v975_v56, 0.0  ;;  %v12018_v18 = vmax.f32 %v1420_v19, %v1033_v63  ;;  %v1132_v34 = vand.u32 15, %v12024_v5 }
 0x118   : > { %v1325_v3 = vrot.slane %v12016_v53, 1  ;;  %v1516_v33 = vsel %vm12010_vm13, %v11952_v51, %v12018_v18  ;;  %v1578_v6 = vsel %vm1546_vm14, %v12018_v18, %v11952_v51  ;;  %vm1293_vm2 = vcmp.le.s32.totalorder %v1132_v34, 14 }
 0x119   : > { %v888_v63 = vpop.f32.mrf.mxu0  ;;  %v12032_v10 = vmax.f32 %v1514_v2, %v1578_v6  ;;  %vm12179_vm14 = vcmp.ge.s32.totalorder %v1101_v17, 1 }
 0x11a   : > { %v977_v25 = vpop.f32.mrf.mxu1  ;;  %v1363_v13 = vsel %vm16337_vm3, %v1324_v35, %v1325_v3  ;;  %v889_v19 = vadd.f32 %v11676_v4, %v888_v63  ;;  %v1196_v35 = vrot.slane %v12016_v53, 7 }
 0x11b   : > { %v1421_v56 = vmax.f32 %v1260_v41, %v1363_v13 }
 0x11c   : > { %v978_v27 = vadd.f32 %v977_v25, %v889_v19  ;;  %927 = vmatmul.bf16.gmra.mxu0 %v7912_v20  ;;  %v1234_v47 = vsel %vm16338_vm0, %v1195_v62, %v1196_v35 }
 0x11d   : > { %1016 = vmatmul.bf16.gmra.mxu1 %v7916_v30  ;;  %v12042_v2 = vmax.f32 %v1421_v56, %v1034_v54 }
 0x11e   : > { %v12044_v15 = vmax.f32 %v978_v27, 0.0 }
 0x11f   : > { %v1579_v58 = vsel %vm1547_vm1, %v12042_v2, %v11984_v11 }
 0x120   : > { %v1326_v6 = vrot.slane %v12044_v15, 1  ;;  %v12050_v41 = vmax.f32 %v1515_v42, %v1579_v58 }
 0x121   : > { %v890_v63 = vpop.f32.mrf.mxu0 }
 0x122   : > { %v979_v25 = vpop.f32.mrf.mxu1  ;;  %v1362_v59 = vsel %vm16337_vm3, %v1325_v3, %v1326_v6  ;;  %v891_v13 = vadd.f32 %v11676_v4, %v890_v63 }
 0x123   : > { %v1390_v54 = vsel %vm1293_vm2, %v1362_v59, %v12016_v53 }
 0x124   : > { %v1422_v30 = vmax.f32 %v1234_v47, %v1390_v54  ;;  %v980_v62 = vadd.f32 %v979_v25, %v891_v13  ;;  %v12078_v47 = vadd.s32 128, %v11680_v16  ;;  %v1197_v25 = vrot.slane %v12044_v15, 7 }
 0x125   : > { %v12083_v13 = vadd.s32 120, %v11680_v16 }
 0x126   : > { %v12061_v19 = vmax.f32 %v1422_v30, %v12016_v53  ;;  %v12073_v59 = vmax.f32 %v980_v62, 0.0 }
 0x127   : > { %v1134_v49 = vand.u32 15, %v12083_v13 }
 0x128   : > { %v1580_v42 = vsel %vm1548_vm4, %v12061_v19, %v12018_v18  ;;  %v1198_v39 = vrot.slane %v12073_v59, 7 }
 0x129   : > { %v893_v56 = vpop.f32.mrf.mxu0  ;;  %v12065_v27 = vmax.f32 %v1516_v33, %v1580_v42  ;;  %v1133_v33 = vand.u32 15, %v12071_v43  ;;  %v1327_v42 = vrot.slane %v12073_v59, 1  ;;  %vm12108_vm7 = vcmp.le.s32.totalorder %v1134_v49, 14 }
 0x12a   : > { %v982_v3 = vpop.f32.mrf.mxu1  ;;  %v894_v34 = vadd.f32 %v11676_v4, %v893_v56 }
 0x12b   : > { %vm1165_vm5 = vcmp.ge.s32.totalorder %v1133_v33, 1  ;;  %v1361_v9 = vsel %vm16337_vm3, %v1326_v6, %v1327_v42  ;;  %v12099_v33 = vadd.s32 136, %v11680_v16 }
 0x12c   : > { %v983_v63 = vadd.f32 %v982_v3, %v894_v34  ;;  %v1135_v3 = vand.u32 15, %v12078_v47 }
 0x12d   : > { %v1136_v26 = vand.u32 15, %v12099_v33 }
 0x12e   : > { %v12075_v53 = vmax.f32 %v983_v63, 0.0  ;;  %v1233_v63 = vsel %vm16338_vm0, %v1196_v35, %v1197_v25  ;;  %vm1167_vm6 = vcmp.ge.s32.totalorder %v1135_v3, 1 }
 0x12f   : > { %vm1297_vm10 = vcmp.le.s32.totalorder %v1136_v26, 14 }
 0x130   : > { %v1199_v62 = vrot.slane %v12075_v53, 7  ;;  %v1328_v36 = vrot.slane %v12075_v53, 1 }
 0x131   : > { %v895_v54 = vpop.f32.mrf.mxu0 }
 0x132   : > { %v984_v30 = vpop.f32.mrf.mxu1  ;;  %v896_v56 = vadd.f32 %v11676_v4, %v895_v54  ;;  %v1231_v54 = vsel %vm16338_vm0, %v1198_v39, %v1199_v62  ;;  %v1360_v6 = vsel %vm16337_vm3, %v1327_v42, %v1328_v36  ;;  %v16529_v42 = vshra.s32 %v12078_v47, 4 }
 0x133   : > { %v1264_v1 = vsel %vm1167_vm6, %v1231_v54, %v12075_v53  ;;  %v1392_v49 = vsel %vm12108_vm7, %v1360_v6, %v12073_v59  ;;  %v1232_v54 = vsel %vm16338_vm0, %v1197_v25, %v1198_v39 }
 0x134   : > { %v985_v34 = vadd.f32 %v984_v30, %v896_v56  ;;  %v1262_v30 = vsel %vm1165_vm5, %v1233_v63, %v12044_v15  ;;  %v12103_v56 = vadd.s32 144, %v11680_v16  ;;  %vm12123_vm8 = vcmp.ge.s32.totalorder %v16529_v42, 1 }
 0x135   : > { %v1423_v52 = vmax.f32 %v1262_v30, %v1361_v9 }
 0x136   : > { %v1039_v29 = vmax.f32 %v985_v34, 0.0  ;;  %v1137_v30 = vand.u32 15, %v12103_v56 }
 0x138   : > { %v1329_v35 = vrot.slane %v1039_v29, 1  ;;  %v1200_v6 = vrot.slane %v1039_v29, 7  ;;  %vm12144_vm9 = vcmp.ge.s32.totalorder %v1137_v30, 1 }
 0x139   : > { %v898_v34 = vpop.f32.mrf.mxu0 }
 0x13a   : > { %v987_v3 = vpop.f32.mrf.mxu1  ;;  %v1359_v63 = vsel %vm16337_vm3, %v1328_v36, %v1329_v35  ;;  %v899_v20 = vadd.f32 %v11676_v4, %v898_v34  ;;  %v12128_v36 = vmax.f32 %v1423_v52, %v12044_v15 }
 0x13b   : > { %v1425_v58 = vmax.f32 %v1264_v1, %v1359_v63  ;;  %v1424_v63 = vmax.f32 %v1232_v54, %v1392_v49 }
 0x13c   : > { %v988_v9 = vadd.f32 %v987_v3, %v899_v20  ;;  %v1099_v20 = vshra.s32 %v11987_v37, 4  ;;  %v1102_v3 = vshra.s32 %v12083_v13, 4 }
 0x13d   : > { %v12131_v1 = vmax.f32 %v1425_v58, %v12075_v53  ;;  %v1100_v53 = vshra.s32 %v12024_v5, 4  ;;  %v1230_v5 = vsel %vm16338_vm0, %v1199_v62, %v1200_v6  ;;  %v12173_v52 = vmax.f32 %v1424_v63, %v12073_v59 }
 0x13e   : > { %v12136_v34 = vmax.f32 %v988_v9, 0.0  ;;  %vm12151_vm11 = vcmp.ge.s32.totalorder %v1099_v20, 1  ;;  %vm12175_vm13 = vcmp.ge.s32.totalorder %v1102_v3, 1  ;;  %vm12183_vm15 = vcmp.le.s32.totalorder %v1102_v3, 14 }
 0x13f   : > { %16532 = vst [vmem:[#allocation9_spill] sm:$0xff] %v12131_v1  ;;  %vm12187_vm1 = vcmp.ge.s32.totalorder %v1100_v53, 1  ;;  %vm12191_vm2 = vcmp.le.s32.totalorder %v1100_v53, 14  ;;  %v16549_v63 = vshra.s32 %v12099_v33, 4  ;;  %vm12209_vm5 = vcmp.le.s32.totalorder %v1099_v20, 14 }
 0x140   : > { %v16323_v37 = vrot.slane %v12136_v34, 7  ;;  %v1330_v39 = vrot.slane %v12136_v34, 1  ;;  %v1518_v59 = vsel %vm12187_vm1, %v12018_v18, %v12061_v19  ;;  %v1581_v15 = vsel %vm12209_vm5, %v12128_v36, %v12042_v2 }
 0x141   : > { %v900_v58 = vpop.f32.mrf.mxu0  ;;  %vm12197_vm4 = vcmp.ge.s32.totalorder %v16549_v63, 1  ;;  %v16557_v53 = vshra.s32 %v12078_v47, 4 }
 0x142   : > { %v989_v43 = vpop.f32.mrf.mxu1  ;;  %v1229_v9 = vsel %vm16338_vm0, %v1200_v6, %v16323_v37  ;;  %v1358_v26 = vsel %vm16337_vm3, %v1329_v35, %v1330_v39  ;;  %v901_v30 = vadd.f32 %v11676_v4, %v900_v58  ;;  %v16554_v6 = vshra.s32 %v12103_v56, 4 }
 0x143   : > { %v1266_v42 = vsel %vm12144_vm9, %v1229_v9, %v12136_v34  ;;  %v1394_v54 = vsel %vm1297_vm10, %v1358_v26, %v1039_v29  ;;  %v12214_v9 = vadd.s32 152, %v11680_v16  ;;  %vm12263_vm7 = vcmp.le.s32.totalorder %v16557_v53, 14 }
 0x144   : > { %v1426_v37 = vmax.f32 %v1230_v5, %v1394_v54  ;;  %v990_v13 = vadd.f32 %v989_v43, %v901_v30  ;;  %v1583_v43 = vsel %vm12163_vm12, %v12131_v1, %v12128_v36  ;;  %v1582_v30 = vsel %vm12191_vm2, %v12173_v52, %v12061_v19 }
 0x145   : > { %vm12257_vm6 = vcmp.ge.s32.totalorder %v16554_v6, 1 }
 0x146   : > { %v12201_v17 = vmax.f32 %v990_v13, 0.0  ;;  %v12203_v3 = vmax.f32 %v1426_v37, %v1039_v29  ;;  %v1520_v13 = vsel %vm12175_vm13, %v12061_v19, %v12173_v52  ;;  %v1519_v29 = vsel %vm12179_vm14, %v12042_v2, %v12128_v36 }
 0x147   : > { %v1615_v58 = vmax.f32 %v1519_v29, %v1583_v43  ;;  %v1138_v29 = vand.u32 15, %v12214_v9 }
 0x148   : > { %v1331_v20 = vrot.slane %v12201_v17, 1  ;;  %v1584_v26 = vsel %vm12183_vm15, %v12203_v3, %v12173_v52  ;;  %v1522_v49 = vsel %vm12197_vm4, %v12173_v52, %v12203_v3 }
 0x149   : > { %v903_v5 = vpop.f32.mrf.mxu0  ;;  %v1616_v35 = vmax.f32 %v1520_v13, %v1584_v26  ;;  %v1614_v13 = vmax.f32 %v1518_v59, %v1582_v30  ;;  %vm1299_vm9 = vcmp.le.s32.totalorder %v1138_v29, 14  ;;  %v16562_v29 = vrot.slane %v12136_v34, 7 }
 0x14a   : > { %v992_v54 = vpop.f32.mrf.mxu1  ;;  %v1357_v63 = vsel %vm16337_vm3, %v1330_v39, %v1331_v20  ;;  %v904_v62 = vadd.f32 %v11676_v4, %v903_v5  ;;  %v1517_v39 = vsel %vm12151_vm11, %v11984_v11, %v12042_v2 }
 0x14b   : > { %v1427_v37 = vmax.f32 %v1266_v42, %v1357_v63  ;;  %v1648_v40 = vmax.f32 %v1616_v35, %v12173_v52  ;;  %v1647_v52 = vmax.f32 %v1615_v58, %v12128_v36  ;;  %v1613_v25 = vmax.f32 %v1517_v39, %v1581_v15 }
 0x14c   : > { %v993_v43 = vadd.f32 %v992_v54, %v904_v62  ;;  %v12274_v54 = vadd.s32 160, %v11680_v16  ;;  %v1202_v35 = vrot.slane %v12201_v17, 7  ;;  %v1646_v47 = vmax.f32 %v1614_v13, %v12061_v19 }
 0x14d   : > { %1681 = vmatpush.msra.mxu2 %v1648_v40  ;;  %v12269_v30 = vmax.f32 %v1427_v37, %v12136_v34  ;;  %v1645_v59 = vmax.f32 %v1613_v25, %v12042_v2  ;;  %v1106_v19 = vshra.s32 %v12214_v9, 4  ;;  %v16560_v15 = vsel %vm12123_vm8, %v12128_v36, %v12131_v1 }
 0x14e   : > { %v12271_v5 = vmax.f32 %v993_v43, 0.0  ;;  %v1228_v6 = vsel %vm16338_vm0, %v16562_v29, %v1202_v35  ;;  %v1139_v2 = vand.u32 15, %v12274_v54  ;;  %v16575_v34 = vmax.f32 %v11902_v46, %v11793_v12 }
 0x14f   : > { %1682 = vmatpush.msra.mxu2 %v1647_v52  ;;  %v1523_v40 = vsel %vm12257_vm6, %v12131_v1, %v12269_v30  ;;  %v1585_v37 = vsel %vm12263_vm7, %v12269_v30, %v12131_v1  ;;  %vm12313_vm8 = vcmp.ge.s32.totalorder %v1106_v19, 1  ;;  %v16566_v52 = vshra.s32 %v12099_v33, 4 }
 0x150   : > { %v1332_v58 = vrot.slane %v12271_v5, 1  ;;  %v12294_v13 = vmax.f32 %v16560_v15, %v1585_v37  ;;  %v1203_v26 = vrot.slane %v12271_v5, 7  ;;  %vm1171_vm11 = vcmp.ge.s32.totalorder %v1139_v2, 1 }
 0x151   : > { %v905_v63 = vpop.f32.mrf.mxu0  ;;  %1683 = vmatpush.msra.mxu2 %v1646_v47  ;;  %vm1554_vm10 = vcmp.le.s32.totalorder %v16566_v52, 14  ;;  %vm1556_vm1 = vcmp.le.s32.totalorder %v1106_v19, 14  ;;  %v16592_v42 = vrot.slane %v11693_v28, 1 }
 0x152   : > { %v994_v62 = vpop.f32.mrf.mxu1  ;;  %16561 = vst [vmem:[#allocation10_spill] sm:$0xff] %v12294_v13  ;;  %v1356_v39 = vsel %vm16337_vm3, %v1331_v20, %v1332_v58  ;;  %v906_v43 = vadd.f32 %v11676_v4, %v905_v63  ;;  %v16563_v20 = vmax.f32 %v12065_v27, %v12018_v18  ;;  %v1227_v37 = vsel %vm16338_vm0, %v1202_v35, %v1203_v26 }
 0x153   : > { %v1396_v24 = vsel %vm1299_vm9, %v1356_v39, %v12201_v17  ;;  %1684 = vmatpush.msra.mxu2 %v1645_v59  ;;  %v16567_v18 = vmax.f32 %v12050_v41, %v11984_v11  ;;  %v12328_v27 = vadd.s32 168, %v11680_v16  ;;  %v16568_v11 = vmax.f32 %v12032_v10, %v11952_v51 }
 0x154   : > { %v1428_v36 = vmax.f32 %v1228_v6, %v1396_v24  ;;  %v995_v53 = vadd.f32 %v994_v62, %v906_v43  ;;  %v1107_v62 = vshra.s32 %v12274_v54, 4  ;;  %v1268_v15 = vsel %vm1171_vm11, %v1227_v37, %v12271_v5  ;;  %v12392_v37 = vld [vmem:[%s16314_s12] ss:$0 sm:$0xff] }
 0x155   : > { %1685 = vmatpush.msra.mxu2 %v16563_v20  ;;  %v16569_v6 = vmax.f32 %v11996_v45, %v11914_v57  ;;  %v1140_v51 = vand.u32 15, %v12328_v27 }
 0x156   : > { %v1043_v25 = vmax.f32 %v995_v53, 0.0  ;;  %v12320_v47 = vmax.f32 %v1428_v36, %v12201_v17  ;;  %vm12354_vm12 = vcmp.ge.s32.totalorder %v1107_v62, 1  ;;  %v12369_v36 = vadd.s32 176, %v11680_v16 }
 0x157   : > { %1686 = vmatpush.msra.mxu2 %v16567_v18  ;;  %v16574_v53 = vmax.f32 %v11931_v7, %v11844_v48  ;;  %vm1301_vm14 = vcmp.le.s32.totalorder %v1140_v51, 14  ;;  %v1108_v48 = vshra.s32 %v12328_v27, 4  ;;  %vm1557_vm5 = vcmp.le.s32.totalorder %v1107_v62, 14 }
 0x158   : > { %v1333_v63 = vrot.slane %v1043_v25, 1  ;;  %v1524_v33 = vsel %vm12313_vm8, %v12203_v3, %v12320_v47  ;;  %v1586_v17 = vsel %vm1554_vm10, %v12320_v47, %v12203_v3  ;;  %v1141_v12 = vand.u32 15, %v12369_v36 }
 0x159   : > { %v908_v59 = vpop.f32.mrf.mxu0  ;;  %1687 = vmatpush.msra.mxu2 %v16568_v11  ;;  %v12340_v41 = vmax.f32 %v1522_v49, %v1586_v17  ;;  %v16572_v49 = vshra.s32 %v12103_v56, 4  ;;  %v16577_v11 = vmax.f32 %v11835_v44, %v11759_v31  ;;  %vm12407_vm15 = vcmp.ge.s32.totalorder %v1108_v48, 1 }
 0x15a   : > { %v997_v35 = vpop.f32.mrf.mxu1  ;;  %v1355_v39 = vsel %vm16337_vm3, %v1332_v58, %v1333_v63  ;;  %v909_v43 = vadd.f32 %v11676_v4, %v908_v59  ;;  %v16573_v4 = vmax.f32 %v11970_v14, %v11881_v23  ;;  %v1204_v58 = vrot.slane %v1043_v25, 7 }
 0x15b   : > { %v1429_v29 = vmax.f32 %v1268_v15, %v1355_v39  ;;  %1688 = vmatpush.msra.mxu2 %v16569_v6  ;;  %vm1555_vm13 = vcmp.le.s32.totalorder %v16572_v49, 14  ;;  %vm1173_vm2 = vcmp.ge.s32.totalorder %v1141_v12, 1  ;;  %v1109_v44 = vshra.s32 %v12369_v36, 4 }
 0x15c   : > { %v998_v24 = vadd.f32 %v997_v35, %v909_v43  ;;  %v1226_v17 = vsel %vm16338_vm0, %v1203_v26, %v1204_v58  ;;  %v12418_v43 = vadd.s32 184, %v11680_v16  ;;  %vm1558_vm9 = vcmp.le.s32.totalorder %v1108_v48, 14 }
 0x15d   : > { %1689 = vmatpush.msra.mxu2 %v16573_v4  ;;  %v12364_v57 = vmax.f32 %v1429_v29, %v12271_v5  ;;  %vm12436_vm4 = vcmp.ge.s32.totalorder %v1109_v44, 1  ;;  %vm1559_vm11 = vcmp.le.s32.totalorder %v1109_v44, 14 }
 0x15e   : > { %v12366_v45 = vmax.f32 %v998_v24, 0.0 }
 0x15f   : > { %1690 = vmatpush.msra.mxu2 %v16574_v53  ;;  %v1525_v56 = vsel %vm12354_vm12, %v12269_v30, %v12364_v57  ;;  %v1587_v23 = vsel %vm1555_vm13, %v12364_v57, %v12269_v30  ;;  %v1142_v53 = vand.u32 15, %v12418_v43 }
 0x160   : > { %v1334_v14 = vrot.slane %v12366_v45, 1  ;;  %v12385_v7 = vmax.f32 %v1523_v40, %v1587_v23  ;;  %v1205_v46 = vrot.slane %v12366_v45, 7  ;;  %v16576_v40 = vmax.f32 %v11864_v0, %v11774_v50 }
 0x161   : > { %v910_v5 = vpop.f32.mrf.mxu0  ;;  %1691 = vmatpush.msra.mxu2 %v16575_v34  ;;  %vm1303_vm6 = vcmp.le.s32.totalorder %v1142_v53, 14 }
 0x162   : > { %v999_v20 = vpop.f32.mrf.mxu1  ;;  %v1354_v52 = vsel %vm16337_vm3, %v1333_v63, %v1334_v14  ;;  %v911_v18 = vadd.f32 %v12392_v37, %v910_v5  ;;  %v1225_v0 = vsel %vm16338_vm0, %v1204_v58, %v1205_v46 }
 0x163   : > { %v1398_v27 = vsel %vm1301_vm14, %v1354_v52, %v1043_v25  ;;  %1692 = vmatpush.msra.mxu2 %v16576_v40  ;;  %v1270_v51 = vsel %vm1173_vm2, %v1225_v0, %v12366_v45 }
 0x164   : > { %v1430_v63 = vmax.f32 %v1226_v17, %v1398_v27  ;;  %v1000_v59 = vadd.f32 %v999_v20, %v911_v18  ;;  %v12446_v20 = vadd.s32 192, %v11680_v16 }
 0x165   : > { %1693 = vmatpush.msra.mxu2 %v16577_v11 }
 0x166   : > { %v1045_v15 = vmax.f32 %v1000_v59, 0.0  ;;  %v12413_v39 = vmax.f32 %v1430_v63, %v1043_v25  ;;  %v1143_v63 = vand.u32 15, %v12446_v20 }
 0x168   : > { %v1335_v29 = vrot.slane %v1045_v15, 1  ;;  %v1526_v6 = vsel %vm12407_vm15, %v12320_v47, %v12413_v39  ;;  %v1588_v9 = vsel %vm1556_vm1, %v12413_v39, %v12320_v47  ;;  %v1206_v5 = vrot.slane %v1045_v15, 7 }
 0x169   : > { %v913_v19 = vpop.f32.mrf.mxu0  ;;  %v12427_v24 = vmax.f32 %v1524_v33, %v1588_v9  ;;  %vm1175_vm8 = vcmp.ge.s32.totalorder %v1143_v63, 1 }
 0x16a   : > { %v1002_v25 = vpop.f32.mrf.mxu1  ;;  %v1353_v10 = vsel %vm16337_vm3, %v1334_v14, %v1335_v29  ;;  %v914_v49 = vadd.f32 %v12392_v37, %v913_v19  ;;  %v1224_v40 = vsel %vm16338_vm0, %v1205_v46, %v1206_v5  ;;  %v12474_v19 = vadd.s32 200, %v11680_v16 }
 0x16b   : > { %v1431_v4 = vmax.f32 %v1270_v51, %v1353_v10  ;;  %v1111_v51 = vshra.s32 %v12446_v20, 4 }
 0x16c   : > { %v1003_v36 = vadd.f32 %v1002_v25, %v914_v49 }
 0x16d   : > { %v12443_v33 = vmax.f32 %v1431_v4, %v12366_v45  ;;  %v1110_v45 = vshra.s32 %v12418_v43, 4  ;;  %vm12491_vm10 = vcmp.ge.s32.totalorder %v1111_v51, 1  ;;  %vm1561_vm1 = vcmp.le.s32.totalorder %v1111_v51, 14 }
 0x16e   : > { %v1046_v14 = vmax.f32 %v1003_v36, 0.0 }
 0x16f   : > { %v1527_v34 = vsel %vm12436_vm4, %v12364_v57, %v12443_v33  ;;  %v1589_v52 = vsel %vm1557_vm5, %v12443_v33, %v12364_v57  ;;  %vm12465_vm7 = vcmp.ge.s32.totalorder %v1110_v45, 1  ;;  %vm1560_vm14 = vcmp.le.s32.totalorder %v1110_v45, 14 }
 0x170   : > { %v1336_v18 = vrot.slane %v1046_v14, 1  ;;  %v12455_v17 = vmax.f32 %v1525_v56, %v1589_v52  ;;  %v1207_v59 = vrot.slane %v1046_v14, 7 }
 0x171   : > { %v915_v54 = vpop.f32.mrf.mxu0 }
 0x172   : > { %v1004_v62 = vpop.f32.mrf.mxu1  ;;  %v1352_v12 = vsel %vm16337_vm3, %v1335_v29, %v1336_v18  ;;  %v916_v27 = vadd.f32 %v12392_v37, %v915_v54  ;;  %v1223_v46 = vsel %vm16338_vm0, %v1206_v5, %v1207_v59  ;;  %v1144_v54 = vand.u32 15, %v12474_v19 }
 0x173   : > { %v1400_v11 = vsel %vm1303_vm6, %v1352_v12, %v1045_v15  ;;  %v1272_v36 = vsel %vm1175_vm8, %v1223_v46, %v1046_v14  ;;  %v1112_v46 = vshra.s32 %v12474_v19, 4 }
 0x174   : > { %v1432_v26 = vmax.f32 %v1224_v40, %v1400_v11  ;;  %v1005_v0 = vadd.f32 %v1004_v62, %v916_v27  ;;  %vm1305_vm12 = vcmp.le.s32.totalorder %v1144_v54, 14  ;;  %v12529_v54 = vadd.s32 216, %v11680_v16 }
 0x175   : > { %vm12521_vm13 = vcmp.ge.s32.totalorder %v1112_v46, 1  ;;  %vm1562_vm4 = vcmp.le.s32.totalorder %v1112_v46, 14 }
 0x176   : > { %v1047_v43 = vmax.f32 %v1005_v0, 0.0  ;;  %v12469_v29 = vmax.f32 %v1432_v26, %v1045_v15 }
 0x178   : > { %v1337_v25 = vrot.slane %v1047_v43, 1  ;;  %v1528_v10 = vsel %vm12465_vm7, %v12413_v39, %v12469_v29  ;;  %v1590_v48 = vsel %vm1558_vm9, %v12469_v29, %v12413_v39  ;;  %v1208_v27 = vrot.slane %v1047_v43, 7 }
 0x179   : > { %v918_v15 = vpop.f32.mrf.mxu0  ;;  %v12483_v4 = vmax.f32 %v1526_v6, %v1590_v48 }
 0x17a   : > { %v1007_v49 = vpop.f32.mrf.mxu1  ;;  %v1351_v53 = vsel %vm16337_vm3, %v1336_v18, %v1337_v25  ;;  %v919_v23 = vadd.f32 %v12392_v37, %v918_v15  ;;  %v12498_v18 = vadd.s32 208, %v11680_v16  ;;  %v1222_v48 = vsel %vm16338_vm0, %v1207_v59, %v1208_v27 }
 0x17b   : > { %v1433_v5 = vmax.f32 %v1272_v36, %v1351_v53 }
 0x17c   : > { %v1008_v52 = vadd.f32 %v1007_v49, %v919_v23  ;;  %v1145_v15 = vand.u32 15, %v12498_v18 }
 0x17d   : > { %v12495_v6 = vmax.f32 %v1433_v5, %v1046_v14 }
 0x17e   : > { %v1048_v12 = vmax.f32 %v1008_v52, 0.0  ;;  %vm1177_vm15 = vcmp.ge.s32.totalorder %v1145_v15, 1  ;;  %v1146_v15 = vand.u32 15, %v12529_v54 }
 0x17f   : > { %v1529_v40 = vsel %vm12491_vm10, %v12443_v33, %v12495_v6  ;;  %v1591_v63 = vsel %vm1559_vm11, %v12495_v6, %v12443_v33 }
 0x180   : > { %v1338_v11 = vrot.slane %v1048_v12, 1  ;;  %v12506_v44 = vmax.f32 %v1527_v34, %v1591_v63  ;;  %v1209_v49 = vrot.slane %v1048_v12, 7  ;;  %vm1307_vm2 = vcmp.le.s32.totalorder %v1146_v15, 14 }
 0x181   : > { %v920_v26 = vpop.f32.mrf.mxu0 }
 0x182   : > { %v1009_v0 = vpop.f32.mrf.mxu1  ;;  %v1350_v14 = vsel %vm16337_vm3, %v1337_v25, %v1338_v11  ;;  %v921_v56 = vadd.f32 %v12392_v37, %v920_v26  ;;  %v1221_v59 = vsel %vm16338_vm0, %v1208_v27, %v1209_v49 }
 0x183   : > { %v1402_v36 = vsel %vm1305_vm12, %v1350_v14, %v1047_v43  ;;  %v1274_v45 = vsel %vm1177_vm15, %v1221_v59, %v1048_v12 }
 0x184   : > { %v1434_v53 = vmax.f32 %v1222_v48, %v1402_v36  ;;  %v1010_v23 = vadd.f32 %v1009_v0, %v921_v56 }
 0x186   : > { %v12517_v5 = vmax.f32 %v1010_v23, 0.0  ;;  %v12519_v52 = vmax.f32 %v1434_v53, %v1047_v43 }
 0x188   : > { %v1339_v19 = vrot.slane %v12517_v5, 1  ;;  %v1530_v43 = vsel %vm12521_vm13, %v12469_v29, %v12519_v52  ;;  %v1592_v26 = vsel %vm1560_vm14, %v12519_v52, %v12469_v29  ;;  %v1210_v25 = vrot.slane %v12517_v5, 7 }
 0x189   : > { %v923_v62 = vpop.f32.mrf.mxu0  ;;  %v12540_v56 = vmax.f32 %v1528_v10, %v1592_v26 }
 0x18a   : > { %v1012_v63 = vpop.f32.mrf.mxu1  ;;  %v1349_v0 = vsel %vm16337_vm3, %v1338_v11, %v1339_v19  ;;  %v924_v27 = vadd.f32 %v12392_v37, %v923_v62 }
 0x18b   : > { %v1435_v14 = vmax.f32 %v1274_v45, %v1349_v0 }
 0x18c   : > { %v1013_v48 = vadd.f32 %v1012_v63, %v924_v27 }
 0x18d   : > { %v12543_v36 = vmax.f32 %v1435_v14, %v1048_v12  ;;  %v1220_v12 = vsel %vm16338_vm0, %v1209_v49, %v1210_v25  ;;  %v1089_v49 = vshra.s32 %v11687_v21, 4 }
 0x18e   : > { %v12547_v23 = vmax.f32 %v1013_v48, 0.0 }
 0x18f   : > { %v1593_v11 = vsel %vm1561_vm1, %v12543_v36, %v12495_v6  ;;  %vm12586_vm5 = vcmp.le.s32.totalorder %v1089_v49, 14  ;;  %vm12654_vm11 = vcmp.ge.s32.totalorder %v1089_v49, 1 }
 0x190   : > { %v1340_v10 = vrot.slane %v12547_v23, 1  ;;  %v12553_v59 = vmax.f32 %v1529_v40, %v1593_v11  ;;  %v16326_v11 = vshra.s32 %v11690_v22, 4  ;;  %v1211_v9 = vrot.slane %v12547_v23, 7 }
 0x191   : > { %v925_v62 = vpop.f32.mrf.mxu0 }
 0x192   : > { %v1014_v63 = vpop.f32.mrf.mxu1  ;;  %v1348_v51 = vsel %vm16337_vm3, %v1339_v19, %v1340_v10  ;;  %v926_v27 = vadd.f32 %v12392_v37, %v925_v62  ;;  %vm12592_vm6 = vcmp.le.s32.totalorder %v16326_v11, 14 }
 0x193   : > { %v1404_v26 = vsel %vm1307_vm2, %v1348_v51, %v12517_v5 }
 0x194   : > { %v1436_v45 = vmax.f32 %v1220_v12, %v1404_v26  ;;  %v1015_v48 = vadd.f32 %v1014_v63, %v926_v27  ;;  %v12573_v12 = vadd.s32 224, %v11680_v16 }
 0x196   : > { %v12564_v40 = vmax.f32 %v1436_v45, %v12517_v5  ;;  %v12577_v5 = vadd.s32 232, %v11680_v16  ;;  %v12581_v26 = vmax.f32 %v1015_v48, 0.0  ;;  %v12584_v45 = vadd.s32 240, %v11680_v16 }
 0x198   : > { %v1594_v14 = vsel %vm1562_vm4, %v12564_v40, %v12519_v52  ;;  %v1148_v48 = vand.u32 15, %v12577_v5  ;;  %v1341_v20 = vrot.slane %v12581_v26, 1  ;;  %v1149_v28 = vand.u32 15, %v12584_v45 }
 0x199   : > { %v928_v19 = vpop.f32.mrf.mxu0  ;;  %v12570_v51 = vmax.f32 %v1530_v43, %v1594_v14  ;;  %v1312_v14 = vrot.slane %v11697_v32, 1  ;;  %v1212_v60 = vrot.slane %v12581_v26, 7  ;;  %v1116_v1 = vshra.s32 %v12577_v5, 4 }
 0x19a   : > { %v1017_v15 = vpop.f32.mrf.mxu1  ;;  %v929_v46 = vadd.f32 %v12392_v37, %v928_v19  ;;  %v1147_v19 = vand.u32 15, %v12573_v12  ;;  %vm12626_vm9 = vcmp.le.s32.totalorder %v1148_v48, 14  ;;  %vm12638_vm8 = vcmp.ge.s32.totalorder %v1149_v28, 1 }
 0x19b   : > { %v1375_v2 = vsel %vm16337_vm3, %v1312_v14, %v16592_v42  ;;  %v1119_v42 = vand.u32 15, %v11680_v16  ;;  %vm12668_vm13 = vcmp.ge.s32.totalorder %v1116_v1, 1 }
 0x19c   : > { %v1018_v63 = vadd.f32 %v1017_v15, %v929_v46  ;;  %v1086_v46 = vadd.s32 248, %v11680_v16  ;;  %vm12619_vm7 = vcmp.ge.s32.totalorder %v1147_v19, 1  ;;  %v1114_v19 = vshra.s32 %v12529_v54, 4 }
 0x19d   : > { %vm12642_vm10 = vcmp.ge.s32.totalorder %v1119_v42, 1  ;;  %v1117_v54 = vshra.s32 %v12584_v45, 4  ;;  %v1087_v45 = vshra.s32 %v11680_v16, 4 }
 0x19e   : > { %v12598_v15 = vmax.f32 %v1018_v63, 0.0  ;;  %v1150_v61 = vand.u32 15, %v1086_v46  ;;  %v1118_v28 = vshra.s32 %v1086_v46, 4  ;;  %vm12683_vm1 = vcmp.le.s32.totalorder %v1114_v19, 14 }
 0x19f   : > { %vm12675_vm14 = vcmp.ge.s32.totalorder %v1117_v54, 1  ;;  %vm12706_vm4 = vcmp.ge.s32.totalorder %v1114_v19, 1  ;;  %v16625_v19 = vshra.s32 %v11690_v22, 4 }
 0x1a0   : > { %v1342_v35 = vrot.slane %v12598_v15, 1  ;;  %v1213_v0 = vrot.slane %v12598_v15, 7  ;;  %vm12658_vm12 = vcmp.le.s32.totalorder %v1150_v61, 14  ;;  %vm12702_vm2 = vcmp.ge.s32.totalorder %v1118_v28, 1 }
 0x1a1   : > { %v930_v34 = vpop.f32.mrf.mxu0  ;;  %v1532_v49 = vsel %vm12706_vm4, %v12519_v52, %v12564_v40 }
 0x1a2   : > { %v931_v62 = vadd.f32 %v12392_v37, %v930_v34  ;;  %v1346_v11 = vsel %vm16337_vm3, %v1341_v20, %v1342_v35  ;;  %v1019_v38 = vpop.f32.mrf.mxu1  ;;  %v1115_v37 = vshra.s32 %v12573_v12, 4  ;;  %v1219_v34 = vsel %vm16338_vm0, %v1210_v25, %v1211_v9 }
 0x1a3   : > { %v1217_v5 = vsel %vm16338_vm0, %v1212_v60, %v1213_v0  ;;  %v1406_v25 = vsel %vm12626_vm9, %v1346_v11, %v12581_v26  ;;  %vm12716_vm9 = vcmp.le.s32.totalorder %v1118_v28, 14 }
 0x1a4   : > { %v1020_v21 = vadd.f32 %v1019_v38, %v931_v62  ;;  %v1347_v38 = vsel %vm16337_vm3, %v1340_v10, %v1341_v20  ;;  %v1276_v20 = vsel %vm12619_vm7, %v1219_v34, %v12547_v23  ;;  %v1218_v10 = vsel %vm16338_vm0, %v1211_v9, %v1212_v60 }
 0x1a5   : > { %v1437_v46 = vmax.f32 %v1276_v20, %v1347_v38  ;;  %v1278_v61 = vsel %vm12638_vm8, %v1217_v5, %v12598_v15  ;;  %v1438_v63 = vmax.f32 %v1218_v10, %v1406_v25  ;;  %vm12679_vm15 = vcmp.ge.s32.totalorder %v1115_v37, 1 }
 0x1a6   : > { %v1053_v12 = vmax.f32 %v1020_v21, 0.0  ;;  %v16613_v34 = vrot.slane %v11697_v32, 7  ;;  %vm12720_vm8 = vcmp.le.s32.totalorder %v1115_v37, 14  ;;  %v16637_v62 = vsel %vm12592_vm6, %v11759_v31, %v11727_v55 }
 0x1a7   : > { %v1470_v37 = vmax.f32 %v1438_v63, %v12581_v26 }
 0x1a8   : > { %v1214_v11 = vrot.slane %v1053_v12, 7  ;;  %v1343_v21 = vrot.slane %v1053_v12, 1 }
 0x1a9   : > { %v1534_v31 = vsel %vm12668_vm13, %v12564_v40, %v1470_v37  ;;  %v1596_v42 = vsel %vm12683_vm1, %v1470_v37, %v12564_v40 }
 0x1aa   : > { %v1216_v9 = vsel %vm16338_vm0, %v1213_v0, %v1214_v11  ;;  %v1247_v48 = vsel %vm16338_vm0, %v1214_v11, %v16613_v34  ;;  %v1345_v38 = vsel %vm16337_vm3, %v1342_v35, %v1343_v21  ;;  %v1376_v5 = vsel %vm16337_vm3, %v1343_v21, %v1312_v14 }
 0x1ab   : > { %v1248_v25 = vsel %vm12642_vm10, %v1247_v48, %v11697_v32  ;;  %v1439_v20 = vmax.f32 %v1278_v61, %v1345_v38  ;;  %v1408_v10 = vsel %vm12658_vm12, %v1376_v5, %v1053_v12  ;;  %v16618_v35 = vshra.s32 %v12498_v18, 4 }
 0x1ac   : > { %v16619_v14 = vmov 0  ;;  %v1409_v58 = vmax.f32 %v1248_v25, %v1375_v2  ;;  %v1440_v21 = vmax.f32 %v1216_v9, %v1408_v10  ;;  %vm12726_vm10 = vcmp.ge.s32.totalorder %v16625_v19, 1 }
 0x1ad   : > { %vm12712_vm7 = vcmp.le.s32.totalorder %v16618_v35, 14  ;;  %v1469_v48 = vmax.f32 %v1437_v46, %v12547_v23  ;;  %v1471_v38 = vmax.f32 %v1439_v20, %v12598_v15  ;;  %vm12732_vm12 = vcmp.le.s32.totalorder %v1117_v54, 14  ;;  %v1669_v23 = vld [vmem:[%s16315_s13 + $0x20] sm:$0xff]  ;;  %v12883_v15 = vld [vmem:[%s16304_s2 + $0x1f0] sm:$0xff] }
 0x1ae   : > { %v16620_v14 = vsel %vm12712_vm7, 4294967295, %v16619_v14  ;;  %v1441_v28 = vmax.f32 %v1409_v58, %v11697_v32  ;;  %v1472_v9 = vmax.f32 %v1440_v21, %v1053_v12  ;;  %vm12738_vm3 = vcmp.ge.s32.totalorder %v1087_v45, 1 }
 0x1af   : > { %v1535_v25 = vsel %vm12675_vm14, %v1469_v48, %v1471_v38  ;;  %vm12744_vm0 = vcmp.le.s32.totalorder %v1087_v45, 14  ;;  %vm12748_vm7 = vcmp.le.s32.totalorder %v1116_v1, 14  ;;  %v1597_v32 = vsel %vm12720_vm8, %v1471_v38, %v1469_v48 }
 0x1b0   : > { %v1507_v26 = vsel %vm12654_vm11, %v1441_v28, %v11742_v8  ;;  %v1536_v54 = vsel %vm12702_vm2, %v1470_v37, %v1472_v9  ;;  %v1600_v13 = vsel %vm12716_vm9, %v11727_v55, %v1472_v9  ;;  %v1506_v1 = vsel %vm12726_vm10, %v1472_v9, %v11727_v55 }
 0x1b1   : > { %v16636_v12 = vsel %vm12586_vm5, %v11774_v50, %v11742_v8  ;;  %v1632_v46 = vmax.f32 %v1536_v54, %v1600_v13  ;;  %v1602_v63 = vmax.f32 %v1506_v1, %v16637_v62  ;;  %v1599_v20 = vsel %vm12732_vm12, %v1441_v28, %v1471_v38  ;;  %v1674_v54 = vld [vmem:[%s16315_s13 + $0x48] sm:$0xff]  ;;  %v1676_v1 = vld [vmem:[%s16315_s13 + $0x58] sm:$0xff]  ;;  %v12916_v62 = vld [vmem:[%s16304_s2 + $0x1e0] sm:$0xff] }
 0x1b2   : > { %v1603_v45 = vmax.f32 %v1507_v26, %v16636_v12  ;;  %v1631_v10 = vmax.f32 %v1535_v25, %v1599_v20  ;;  %v1505_v0 = vsel %vm12738_vm3, %v1471_v38, %v1441_v28  ;;  %v1569_v43 = vsel %vm12744_vm0, %v11742_v8, %v1441_v28  ;;  %v11052_v26 = vld [vmem:[%s16304_s2 + $0x1b0] sm:$0xff]  ;;  %v12898_v13 = vld [vmem:[%s16304_s2 + $0x1e8] sm:$0xff]  ;;  %v12925_v20 = vld [vmem:[%s16304_s2 + $0x1d8] sm:$0xff] }
 0x1b3   : > { %v1598_v50 = vsel %vm12748_vm7, %v1472_v9, %v1470_v37  ;;  %v1664_v35 = vmax.f32 %v1632_v46, %v1472_v9  ;;  %v1601_v58 = vmax.f32 %v1505_v0, %v1569_v43  ;;  %v1533_v61 = vsel %vm12679_vm15, %v12543_v36, %v1469_v48  ;;  %v1678_v12 = vld [vmem:[%s16315_s13 + $0x68] sm:$0xff]  ;;  %v12934_v0 = vld [vmem:[%s16304_s2 + $0x1d0] sm:$0xff] }
 0x1b4   : > { %v1635_v27 = vmax.f32 %v1603_v45, %v11742_v8  ;;  %v1630_v21 = vmax.f32 %v1534_v31, %v1598_v50  ;;  %v1634_v19 = vmax.f32 %v1602_v63, %v11727_v55  ;;  %v1663_v8 = vmax.f32 %v1631_v10, %v1471_v38  ;;  %v1665_v55 = vld [vmem:[%s16315_s13] sm:$0xff]  ;;  %v1680_v45 = vld [vmem:[%s16315_s13 + $0x78] sm:$0xff]  ;;  %v11051_v46 = vld [vmem:[%s16304_s2 + $0x1a8] sm:$0xff] }
 0x1b5   : > { %1722 = vmatpush.msra.mxu3 %v1664_v35  ;;  %v1629_v34 = vmax.f32 %v1533_v61, %v1597_v32  ;;  %v16638_v2 = vshra.s32 %v12498_v18, 4  ;;  %vm16639_vm3 = vnez %v16620_v14  ;;  %v1633_v60 = vmax.f32 %v1601_v58, %v1441_v28  ;;  %v1679_v32 = vld [vmem:[%s16315_s13 + $0x70] sm:$0xff]  ;;  %v11050_v63 = vld [vmem:[%s16304_s2 + $0x1a0] sm:$0xff]  ;;  %v11049_v10 = vld [vmem:[%s16304_s2 + $0x198] sm:$0xff] }
 0x1b6   : > { %1694 = vmatpush.msra.mxu2 %v1635_v27  ;;  %v1595_v53 = vsel %vm16639_vm3, %v1469_v48, %v12543_v36  ;;  %v1662_v9 = vmax.f32 %v1630_v21, %v1470_v37  ;;  %v1628_v5 = vmax.f32 %v1532_v49, %v1596_v42  ;;  %v1667_v37 = vld [vmem:[%s16315_s13 + $0x10] sm:$0xff]  ;;  %v16640_v25 = vmax.f32 %v12570_v51, %v12519_v52  ;;  %v11053_v51 = vld [vmem:[%s16304_s2 + $0x1b8] sm:$0xff]  ;;  %v12943_v50 = vld [vmem:[%s16304_s2 + $0x1c8] sm:$0xff] }
 0x1b7   : > { %vm1499_vm0 = vcmp.ge.s32.totalorder %v16638_v2, 1  ;;  %1723 = vmatpush.msra.mxu3 %v1663_v8  ;;  %v1661_v11 = vmax.f32 %v1629_v34, %v1469_v48  ;;  %v16641_v48 = vmax.f32 %v12553_v59, %v12495_v6  ;;  %v16644_v52 = vmax.f32 %v12483_v4, %v12413_v39  ;;  %v1677_v4 = vld [vmem:[%s16315_s13 + $0x60] sm:$0xff]  ;;  %v12874_v59 = vld [vmem:[%s16304_s2 + $0x1f8] sm:$0xff]  ;;  %2624 = vmatpush.bf16.msrb.mxu0 %v11053_v51  ;;  %v11048_v43 = vld [vmem:[%s16304_s2 + $0x190] sm:$0xff] }
 0x1b8   : > { %1695 = vmatpush.msra.mxu2 %v1634_v19  ;;  %v1531_v18 = vsel %vm1499_vm0, %v12495_v6, %v12543_v36  ;;  %v1660_v14 = vmax.f32 %v1628_v5, %v12564_v40  ;;  %v16642_v40 = vmax.f32 %v12540_v56, %v12469_v29  ;;  %v16645_v6 = vmax.f32 %v12455_v17, %v12364_v57  ;;  %v1666_v57 = vld [vmem:[%s16315_s13 + $0x8] sm:$0xff]  ;;  %v16649_v17 = vld [vmem:[#allocation10_spill] sm:$0xff]  ;;  %v1672_v56 = vld [vmem:[%s16315_s13 + $0x38] sm:$0xff] }
 0x1b9   : > { %1724 = vmatpush.msra.mxu3 %v1662_v9  ;;  %v1627_v38 = vmax.f32 %v1531_v18, %v1595_v53  ;;  %v16646_v29 = vmax.f32 %v12427_v24, %v12320_v47  ;;  %v16648_v39 = vmax.f32 %v12340_v41, %v12203_v3  ;;  %v16650_v47 = vld [vmem:[#allocation9_spill] sm:$0xff]  ;;  %v1675_v3 = vld [vmem:[%s16315_s13 + $0x50] sm:$0xff]  ;;  %v1670_v41 = vld [vmem:[%s16315_s13 + $0x28] sm:$0xff]  ;;  %2738 = vmatpush.bf16.msrb.mxu1 %v12874_v59  ;;  %v1766_v9 = vshra.s32 %v11690_v22, 3 }
 0x1ba   : > { %1696 = vmatpush.msra.mxu2 %v1633_v60  ;;  %v16651_v24 = vmax.f32 %v16649_v17, %v16650_v47  ;;  %v11047_v35 = vld [vmem:[%s16304_s2 + $0x188] sm:$0xff]  ;;  %v12952_v58 = vld [vmem:[%s16304_s2 + $0x1c0] sm:$0xff]  ;;  %v11013_v21 = vld [vmem:[%s16304_s2 + $0x78] sm:$0xff]  ;;  %v1765_v60 = vshra.s32 %v11680_v16, 3  ;;  %v16354_v18 = vand.u32 7, %v11680_v16  ;;  %vm16664_vm2 = vcmp.lt.s32.totalorder %v11680_v16, 1 }
 0x1bb   : > { %1697 = vmatmul.f32.vlgmr.msra.gmra.mxu2 %v1665_v55  ;;  %1725 = vmatpush.msra.mxu3 %v1661_v11  ;;  %v1659_v28 = vmax.f32 %v1627_v38, %v12543_v36  ;;  %v16643_v36 = vmax.f32 %v12506_v44, %v12443_v33  ;;  %v16647_v33 = vmax.f32 %v12385_v7, %v12269_v30  ;;  %v1671_v44 = vld [vmem:[%s16315_s13 + $0x30] sm:$0xff]  ;;  %v1673_v30 = vld [vmem:[%s16315_s13 + $0x40] sm:$0xff]  ;;  %v1668_v7 = vld [vmem:[%s16315_s13 + $0x18] sm:$0xff]  ;;  %v16353_v11 = vand.u32 7, %v11690_v22 }
 0x1bc   : > { %2625 = vmatpush.bf16.msrb.mxu0 %v11052_v26  ;;  %v11046_v31 = vld [vmem:[%s16304_s2 + $0x180] sm:$0xff]  ;;  %v11005_v19 = vld [vmem:[%s16304_s2 + $0x38] sm:$0xff]  ;;  %v11012_v8 = vld [vmem:[%s16304_s2 + $0x70] sm:$0xff]  ;;  %vm12993_vm5 = vcmp.le.s32.totalorder %v1765_v60, 6  ;;  %vm12999_vm6 = vcmp.le.s32.totalorder %v1766_v9, 6  ;;  %vm13005_vm11 = vcmp.ge.s32.totalorder %v16354_v18, 1 }
 0x1bd   : > { %1726 = vmatpush.msra.mxu3 %v1660_v14  ;;  %2739 = vmatpush.bf16.msrb.mxu1 %v12883_v15  ;;  %v11004_v34 = vld [vmem:[%s16304_s2 + $0x30] sm:$0xff]  ;;  %v11011_v49 = vld [vmem:[%s16304_s2 + $0x68] sm:$0xff]  ;;  %v11010_v55 = vld [vmem:[%s16304_s2 + $0x60] sm:$0xff]  ;;  %vm13013_vm13 = vcmp.ge.s32.totalorder %v16353_v11, 1  ;;  %v16717_v18 = vmov 0 }
 0x1be   : > { %1900 = vmatpush.bf16.msrb.mxu2 %v11005_v19  ;;  %v11003_v5 = vld [vmem:[%s16304_s2 + $0x28] sm:$0xff]  ;;  %v11002_v38 = vld [vmem:[%s16304_s2 + $0x20] sm:$0xff]  ;;  %v11009_v14 = vld [vmem:[%s16304_s2 + $0x58] sm:$0xff] }
 0x1bf   : > { %1727 = vmatpush.msra.mxu3 %v1659_v28  ;;  %vm13021_vm14 = vmpackc.low %vm12999_vm6, %vm12993_vm5  ;;  %v16670_v26 = vld [vmem:[#allocation2_spill] sm:$0xff] }
 0x1c0   : > { %2626 = vmatpush.bf16.msrb.mxu0 %v11051_v46  ;;  %vm2539_vm15 = vmand %vm12993_vm5, %vm13005_vm11 }
 0x1c1   : > { %1728 = vmatpush.msra.mxu3 %v16640_v25  ;;  %2740 = vmatpush.bf16.msrb.mxu1 %v12898_v13  ;;  %v16654_v25 = vmov 0  ;;  %vm2540_vm1 = vmand %vm12999_vm6, %vm13013_vm13 }
 0x1c2   : > { %1901 = vmatpush.bf16.msrb.mxu2 %v11004_v34  ;;  %v16655_v25 = vsel %vm12999_vm6, 4294967295, %v16654_v25  ;;  %vm16665_vm4 = vmmov %vm16664_vm2  ;;  %v16682_v34 = vmov 0 }
 0x1c3   : > { %1700 = vmatmul.f32.gmra.mxu2 %v1667_v37  ;;  %1729 = vmatpush.msra.mxu3 %v16641_v48  ;;  %v16652_v37 = vmov 0  ;;  %vm13067_vm7 = vmpackc.low %vm2540_vm1, %vm2539_vm15 }
 0x1c4   : > { %2627 = vmatpush.bf16.msrb.mxu0 %v11050_v63  ;;  %v16653_v37 = vsel %vm12993_vm5, 4294967295, %v16652_v37  ;;  %vm16677_vm10 = vmmov %vm16664_vm2 }
 0x1c5   : > { %1730 = vmatpush.msra.mxu3 %v16642_v40  ;;  %2741 = vmatpush.bf16.msrb.mxu1 %v12916_v62 }
 0x1c6   : > { %1902 = vmatpush.bf16.msrb.mxu2 %v11003_v5 }
 0x1c7   : > { %1731 = vmatpush.msra.mxu3 %v16643_v36 }
 0x1c8   : > { %2628 = vmatpush.bf16.msrb.mxu0 %v11049_v10  ;;  %v10999_v10 = vld [vmem:[%s16304_s2 + $0x8] sm:$0xff] }
 0x1c9   : > { %1732 = vmatpush.msra.mxu3 %v16644_v52  ;;  %2742 = vmatpush.bf16.msrb.mxu1 %v12925_v20 }
 0x1ca   : > { %1903 = vmatpush.bf16.msrb.mxu2 %v11002_v38  ;;  %v16686_v38 = vmov 0 }
 0x1cb   : > { %1703 = vmatmul.f32.gmra.mxu2 %v1669_v23  ;;  %1733 = vmatpush.msra.mxu3 %v16645_v6  ;;  %v16660_v6 = vmov 0 }
 0x1cc   : > { %2629 = vmatpush.bf16.msrb.mxu0 %v11048_v43  ;;  %v16661_v6 = vsel %vm13021_vm14, 4294967295, %v16660_v6  ;;  %v11006_v43 = vld [vmem:[%s16304_s2 + $0x40] sm:$0xff] }
 0x1cd   : > { %1734 = vmatpush.msra.mxu3 %v16646_v29  ;;  %2743 = vmatpush.bf16.msrb.mxu1 %v12934_v0  ;;  %16662 = vst [vmem:[#allocation10_spill] sm:$0xff] %v16661_v6 }
 0x1cf   : > { %1735 = vmatpush.msra.mxu3 %v16647_v33 }
 0x1d0   : > { %2630 = vmatpush.bf16.msrb.mxu0 %v11047_v35  ;;  %v16674_v35 = vmov 0 }
 0x1d1   : > { %1736 = vmatpush.msra.mxu3 %v16648_v39  ;;  %2744 = vmatpush.bf16.msrb.mxu1 %v12943_v50  ;;  %v11008_v39 = vld [vmem:[%s16304_s2 + $0x50] sm:$0xff] }
 0x1d3   : > { %1706 = vmatmul.f32.gmra.mxu2 %v1671_v44  ;;  %1737 = vmatpush.msra.mxu3 %v16651_v24  ;;  %v11001_v44 = vld [vmem:[%s16304_s2 + $0x18] sm:$0xff]  ;;  %v11000_v24 = vld [vmem:[%s16304_s2 + $0x10] sm:$0xff] }
 0x1d4   : > { %1738 = vmatmul.f32.vlgmr.msra.gmra.mxu3 %v1666_v57  ;;  %2631 = vmatpush.bf16.msrb.mxu0 %v11046_v31 }
 0x1d5   : > { %2745 = vmatpush.bf16.msrb.mxu1 %v12952_v58  ;;  %2014 = vmatpush.bf16.msrb.mxu3 %v11013_v21  ;;  %v10998_v21 = vld [vmem:[%s16304_s2] sm:$0xff] }
 0x1d6   : > { %1904 = vmatpush.bf16.msrb.mxu2 %v11001_v44 }
 0x1d9   : > { %2015 = vmatpush.bf16.msrb.mxu3 %v11012_v8 }
 0x1da   : > { %1905 = vmatpush.bf16.msrb.mxu2 %v11000_v24 }
 0x1db   : > { %1709 = vmatmul.f32.gmra.mxu2 %v1673_v30  ;;  %v11007_v30 = vld [vmem:[%s16304_s2 + $0x48] sm:$0xff] }
 0x1dc   : > { %1741 = vmatmul.f32.gmra.mxu3 %v1668_v7 }
 0x1dd   : > { %2016 = vmatpush.bf16.msrb.mxu3 %v11011_v49 }
 0x1de   : > { %1906 = vmatpush.bf16.msrb.mxu2 %v10999_v10 }
 0x1e1   : > { %2017 = vmatpush.bf16.msrb.mxu3 %v11010_v55 }
 0x1e2   : > { %1907 = vmatpush.bf16.msrb.mxu2 %v10998_v21 }
 0x1e3   : > { %1712 = vmatmul.f32.gmra.mxu2 %v1675_v3 }
 0x1e4   : > { %1744 = vmatmul.f32.gmra.mxu3 %v1670_v41  ;;  %v16666_v41 = vmov 0 }
 0x1e5   : > { %2018 = vmatpush.bf16.msrb.mxu3 %v11009_v14  ;;  %v16667_v41 = vsel %vm13067_vm7, 4294967295, %v16666_v41 }
 0x1e6   : > { %16668 = vst [vmem:[#allocation11_spill] sm:$0xff] %v16667_v41  ;;  %v16730_v41 = vmov 0 }
 0x1e9   : > { %2019 = vmatpush.bf16.msrb.mxu3 %v11008_v39 }
 0x1eb   : > { %1715 = vmatmul.f32.gmra.mxu2 %v1677_v4 }
 0x1ec   : > { %1747 = vmatmul.f32.gmra.mxu3 %v1672_v56 }
 0x1ed   : > { %2020 = vmatpush.bf16.msrb.mxu3 %v11007_v30 }
 0x1f1   : > { %2021 = vmatpush.bf16.msrb.mxu3 %v11006_v43  ;;  %v16695_v43 = vmov 0 }
 0x1f3   : > { %1718 = vmatmul.f32.gmra.mxu2 %v1679_v32 }
 0x1f4   : > { %1750 = vmatmul.f32.gmra.mxu3 %v1674_v54  ;;  %v16360_v54 = vshra.s32 %v16670_v26, 3 }
 0x1f6   : > { %vm13093_vm9 = vcmp.le.s32.totalorder %v16360_v54, 6 }
 0x1fc   : > { %1753 = vmatmul.f32.gmra.mxu3 %v1676_v1  ;;  %v16671_v1 = vld [vmem:[#allocation4_spill] sm:$0xff] }
 0x1fd   : > { %v16351_v46 = vand.u32 7, %v16671_v1 }
 0x1ff   : > { %vm13120_vm0 = vcmp.ge.s32.totalorder %v16351_v46, 1 }
 0x204   : > { %1756 = vmatmul.f32.gmra.mxu3 %v1678_v12  ;;  %v16357_v12 = vshra.s32 %v16671_v1, 3 }
 0x206   : > { %vm13099_vm8 = vcmp.le.s32.totalorder %v16357_v12, 6 }
 0x207   : > { %v16675_v35 = vsel %vm13099_vm8, 4294967295, %v16674_v35  ;;  %vm13128_vm3 = vmpackc.low %vm13099_vm8, %vm13093_vm9 }
 0x208   : > { %16676 = vst [vmem:[#allocation2_spill] sm:$0xff] %v16675_v35  ;;  %v16683_v34 = vsel %vm13128_vm3, 4294967295, %v16682_v34  ;;  %vm2542_vm1 = vmand %vm13099_vm8, %vm13120_vm0  ;;  %vm13223_vm8 = vcmp.ge.s32.totalorder %v1765_v60, 1  ;;  %v16709_v60 = vmov 0  ;;  %v11026_v35 = vld [vmem:[%s16304_s2 + $0xe0] sm:$0xff] }
 0x209   : > { %16684 = vst [vmem:[#allocation4_spill] sm:$0xff] %v16683_v34  ;;  %v16732_v34 = vmov 0 }
 0x20c   : > { %1759 = vmatmul.f32.gmra.mxu3 %v1680_v45  ;;  %v16352_v45 = vand.u32 7, %v16670_v26 }
 0x20e   : > { %vm13112_vm12 = vcmp.ge.s32.totalorder %v16352_v45, 1  ;;  %v16712_v45 = vld [vmem:[#allocation7_spill] sm:$0xff] }
 0x20f   : > { %vm2541_vm15 = vmand %vm13093_vm9, %vm13112_vm12 }
 0x23e   : > { %v1698_v27 = vpop.f32.mrf.mxu2 }
 0x246   : > { %v1701_v61 = vpop.f32.mrf.mxu2 }
 0x24e   : > { %v1704_v2 = vpop.f32.mrf.mxu2 }
 0x256   : > { %v1707_v48 = vpop.f32.mrf.mxu2 }
 0x257   : > { %v1739_v42 = vpop.f32.mrf.mxu3 }
 0x258   : > { %v13009_v36 = vadd.f32 %v1739_v42, %v1698_v27  ;;  %v16672_v27 = vmov 0 }
 0x259   : > { %v16673_v27 = vsel %vm13093_vm9, 4294967295, %v16672_v27  ;;  %vm13229_vm9 = vcmp.ge.s32.totalorder %v1766_v9, 1 }
 0x25a   : > { %v1784_v57 = vrot.slane %v13009_v36, 7 }
 0x25e   : > { %v1710_v51 = vpop.f32.mrf.mxu2 }
 0x25f   : > { %v1742_v53 = vpop.f32.mrf.mxu3 }
 0x260   : > { %v12989_v28 = vadd.f32 %v1742_v53, %v1701_v61 }
 0x262   : > { %v1785_v29 = vrot.slane %v12989_v28, 7 }
 0x264   : > { %v13065_v3 = vsel %vm16665_vm4, %v1784_v57, %v1785_v29  ;;  %vm13154_vm4 = vmpackc.low %vm2542_vm1, %vm2541_vm15 }
 0x265   : > { %v16687_v38 = vsel %vm13154_vm4, 4294967295, %v16686_v38 }
 0x266   : > { %v1713_v49 = vpop.f32.mrf.mxu2  ;;  %16688 = vst [vmem:[#allocation14_spill] sm:$0xff] %v16687_v38 }
 0x267   : > { %v1745_v52 = vpop.f32.mrf.mxu3 }
 0x268   : > { %v13026_v33 = vadd.f32 %v1745_v52, %v1704_v2 }
 0x26a   : > { %16663 = vst [vmem:[#allocation9_spill] sm:$0xff] %v13026_v33  ;;  %v1786_v17 = vrot.slane %v13026_v33, 7  ;;  %v13046_v47 = vpack.c.bf16 %v13026_v33, %v12989_v28 }
 0x26c   : > { %8424 = vmatmul.msk.bf16.vlgmr.msrb.gmra.mxu1 %vm13021_vm14, %v13046_v47  ;;  %v13059_v7 = vsel %vm16664_vm2, %v1785_v29, %v1786_v17  ;;  %v16690_v29 = vld [vmem:[#allocation5_spill] sm:$0xff]  ;;  %vm16701_vm14 = vcmp.lt.s32.totalorder %v11680_v16, 1 }
 0x26d   : > { %v13073_v4 = vpack.c.bf16 %v13059_v7, %v13065_v3  ;;  %v16356_v44 = vshra.s32 %v16690_v29, 3  ;;  %v16348_v39 = vand.u32 7, %v16690_v29 }
 0x26f   : > { %v1748_v56 = vpop.f32.mrf.mxu3  ;;  %8364 = vmatmul.msk.bf16.vlgmr.msrb.gmra.mxu0 %vm13067_vm7, %v13073_v4  ;;  %vm13178_vm15 = vcmp.ge.s32.totalorder %v16348_v39, 1  ;;  %vm13184_vm1 = vcmp.le.s32.totalorder %v16356_v44, 6  ;;  %v16702_v39 = vmov 0  ;;  %v11029_v44 = vld [vmem:[%s16304_s2 + $0xf8] sm:$0xff] }
 0x270   : > { %v13078_v32 = vadd.f32 %v1748_v56, %v1707_v48  ;;  %v16696_v43 = vsel %vm13184_vm1, 4294967295, %v16695_v43  ;;  %2274 = vmatpush.bf16.msra.mxu3 %v11029_v44  ;;  %v11020_v44 = vld [vmem:[%s16304_s2 + $0xb0] sm:$0xff] }
 0x272   : > { %16669 = vst [vmem:[#allocation12_spill] sm:$0xff] %v13078_v32  ;;  %v1787_v63 = vrot.slane %v13078_v32, 7 }
 0x274   : > { %v13105_v31 = vsel %vm16677_vm10, %v1786_v17, %v1787_v63  ;;  %v16691_v17 = vld [vmem:[#allocation6_spill] sm:$0xff]  ;;  %vm16692_vm10 = vmmov %vm16664_vm2 }
 0x275   : > { %v16355_v24 = vshra.s32 %v16691_v17, 3  ;;  %v16345_v30 = vand.u32 7, %v16691_v17  ;;  %v16797_v61 = vpack.c.bf16 %v13105_v31, %v13059_v7 }
 0x277   : > { %v1751_v8 = vpop.f32.mrf.mxu3 }
 0x278   : > { %v13132_v2 = vadd.f32 %v1751_v8, %v1710_v51  ;;  %v1716_v51 = vpop.f32.mrf.mxu2  ;;  %v11030_v8 = vld [vmem:[%s16304_s2 + $0x100] sm:$0xff] }
 0x27a   : > { %16685 = vst [vmem:[#allocation13_spill] sm:$0xff] %v13132_v2  ;;  %v13144_v53 = vpack.c.bf16 %v13132_v2, %v13078_v32  ;;  %v1788_v5 = vrot.slane %v13132_v2, 7 }
 0x27c   : > { %8427 = vmatmul.msk.bf16.gmra.mxu1 %vm13128_vm3, %v13144_v53  ;;  %v13152_v55 = vsel %vm16664_vm2, %v1787_v63, %v1788_v5  ;;  %vm13192_vm2 = vcmp.ge.s32.totalorder %v16345_v30, 1  ;;  %vm2543_vm3 = vmand %vm13184_vm1, %vm13178_vm15 }
 0x27d   : > { %v13160_v14 = vpack.c.bf16 %v13152_v55, %v13105_v31  ;;  %v11033_v31 = vld [vmem:[%s16304_s2 + $0x118] sm:$0xff] }
 0x27f   : > { %v1754_v48 = vpop.f32.mrf.mxu3  ;;  %8367 = vmatmul.msk.bf16.gmra.mxu0 %vm13154_vm4, %v13160_v14 }
 0x280   : > { %v13165_v52 = vadd.f32 %v1754_v48, %v1713_v49  ;;  %v16699_v49 = vmov 0  ;;  %v1719_v42 = vpop.f32.mrf.mxu2 }
 0x282   : > { %16689 = vst [vmem:[#allocation15_spill] sm:$0xff] %v13165_v52  ;;  %v1789_v56 = vrot.slane %v13165_v52, 7 }
 0x284   : > { %v13174_v63 = vsel %vm16692_vm10, %v1788_v5, %v1789_v56  ;;  %vm13198_vm10 = vcmp.le.s32.totalorder %v16355_v24, 6 }
 0x285   : > { %v16700_v49 = vsel %vm13198_vm10, 4294967295, %v16699_v49  ;;  %vm2544_vm4 = vmand %vm13198_vm10, %vm13192_vm2 }
 0x286   : > { %vm13217_vm7 = vmpackc.low %vm2544_vm4, %vm2543_vm3 }
 0x287   : > { %v1757_v5 = vpop.f32.mrf.mxu3  ;;  %v16703_v39 = vsel %vm13217_vm7, 4294967295, %v16702_v39  ;;  %vm1816_vm3 = vmand %vm13223_vm8, %vm13005_vm11 }
 0x288   : > { %v13202_v48 = vadd.f32 %v1757_v5, %v1716_v51  ;;  %16704 = vst [vmem:[#allocation5_spill] sm:$0xff] %v16703_v39  ;;  %vm1817_vm4 = vmand %vm13229_vm9, %vm13013_vm13  ;;  %v11037_v5 = vld [vmem:[%s16304_s2 + $0x138] sm:$0xff] }
 0x289   : > { %vm13280_vm5 = vmpackc.low %vm1817_vm4, %vm1816_vm3 }
 0x28a   : > { %v1790_v21 = vrot.slane %v13202_v48, 7  ;;  %v16718_v18 = vsel %vm13280_vm5, 4294967295, %v16717_v18 }
 0x28c   : > { %v13215_v30 = vsel %vm16701_vm14, %v1789_v56, %v1790_v21  ;;  %vm13244_vm14 = vmpackc.low %vm13229_vm9, %vm13223_vm8 }
 0x28d   : > { %v13235_v56 = vpack.c.bf16 %v13215_v30, %v13174_v63  ;;  %v16710_v60 = vsel %vm13244_vm14, 4294967295, %v16709_v60 }
 0x28e   : > { %16711 = vst [vmem:[#allocation6_spill] sm:$0xff] %v16710_v60  ;;  %v16736_v60 = vmov 0 }
 0x28f   : > { %v1760_v46 = vpop.f32.mrf.mxu3  ;;  %8370 = vmatmul.msk.bf16.gmra.mxu0 %vm13217_vm7, %v13235_v56  ;;  %vm16715_vm7 = vcmp.lt.s32.totalorder %v11680_v16, 1 }
 0x290   : > { %v13248_v9 = vadd.f32 %v1760_v46, %v1719_v42  ;;  %v16714_v42 = vld [vmem:[#allocation8_spill] sm:$0xff]  ;;  %vm16716_vm6 = vmmov %vm16715_vm7 }
 0x291   : > { %16719 = vst [vmem:[#allocation8_spill] sm:$0xff] %v16718_v18  ;;  %v16726_v38 = vand.u32 7, %v16714_v42  ;;  %v16735_v18 = vshra.s32 %v16670_v26, 3 }
 0x292   : > { %v13262_v24 = vpack.c.bf16 %v13009_v36, %v13248_v9  ;;  %v1791_v46 = vrot.slane %v13248_v9, 7  ;;  %v16830_v6 = vrot.slane %v13248_v9, 1 }
 0x293   : > { %vm13305_vm3 = vcmp.ge.s32.totalorder %v16726_v38, 1  ;;  %v11028_v38 = vld [vmem:[%s16304_s2 + $0xf0] sm:$0xff] }
 0x294   : > { %16713 = vst [vmem:[#allocation7_spill] sm:$0xff] %v13262_v24  ;;  %8076 = vmatmul.msk.bf16.vlgmr.msrb.gmra.mxu3 %vm13244_vm14, %v13262_v24  ;;  %v13272_v54 = vsel %vm16715_vm7, %v1790_v21, %v1791_v46  ;;  %v13278_v11 = vsel %vm16716_vm6, %v1791_v46, %v1784_v57  ;;  %v16720_v21 = vand.u32 7, %v16712_v45  ;;  %v16723_v57 = vshra.s32 %v16712_v45, 3 }
 0x295   : > { %v8015_v12 = vpack.c.bf16 %v13278_v11, %v13272_v54  ;;  %v16724_v46 = vmov 0  ;;  %2275 = vmatpush.bf16.msra.mxu3 %v11028_v38  ;;  %v16739_v24 = vmov 0  ;;  %v11019_v38 = vld [vmem:[%s16304_s2 + $0xa8] sm:$0xff]  ;;  %v8195_v40 = vpack.c.bf16 %v13065_v3, %v13278_v11  ;;  %v11045_v11 = vld [vmem:[%s16304_s2 + $0x178] sm:$0xff] }
 0x296   : > { %vm13291_vm7 = vcmp.ge.s32.totalorder %v16720_v21, 1  ;;  %vm13297_vm6 = vcmp.le.s32.totalorder %v16723_v57, 6  ;;  %v16729_v21 = vshra.s32 %v16714_v42, 3  ;;  %v11021_v57 = vld [vmem:[%s16304_s2 + $0xb8] sm:$0xff] }
 0x297   : > { %v16725_v46 = vsel %vm13297_vm6, 4294967295, %v16724_v46  ;;  %8016 = vmatmul.msk.bf16.vlgmr.msrb.gmra.mxu2 %vm13280_vm5, %v8015_v12  ;;  %vm2545_vm14 = vmand %vm13297_vm6, %vm13291_vm7  ;;  %vm13343_vm6 = vcmp.ge.s32.totalorder %v16735_v18, 1  ;;  %v16741_v18 = vmov 0 }
 0x298   : > { %vm13311_vm4 = vcmp.le.s32.totalorder %v16729_v21, 6  ;;  %2160 = vmatpush.bf16.msra.mxu2 %v11021_v57  ;;  %v11027_v21 = vld [vmem:[%s16304_s2 + $0xe8] sm:$0xff]  ;;  %v16737_v60 = vsel %vm13343_vm6, 4294967295, %v16736_v60  ;;  %v16738_v57 = vshra.s32 %v16671_v1, 3 }
 0x299   : > { %v16731_v41 = vsel %vm13311_vm4, 4294967295, %v16730_v41  ;;  %vm2546_vm10 = vmand %vm13311_vm4, %vm13305_vm3  ;;  %2276 = vmatpush.bf16.msra.mxu3 %v11027_v21  ;;  %v11025_v21 = vld [vmem:[%s16304_s2 + $0xd8] sm:$0xff] }
 0x29a   : > { %vm13337_vm5 = vmpackc.low %vm2546_vm10, %vm2545_vm14  ;;  %vm13349_vm4 = vcmp.ge.s32.totalorder %v16738_v57, 1  ;;  %v11016_v57 = vld [vmem:[%s16304_s2 + $0x90] sm:$0xff] }
 0x29b   : > { %v16733_v34 = vsel %vm13337_vm5, 4294967295, %v16732_v34  ;;  %v16740_v24 = vsel %vm13349_vm4, 4294967295, %v16739_v24  ;;  %vm13365_vm10 = vmpackc.low %vm13349_vm4, %vm13343_vm6 }
 0x29c   : > { %16734 = vst [vmem:[#allocation16_spill] sm:$0xff] %v16733_v34  ;;  %2161 = vmatpush.bf16.msra.mxu2 %v11020_v44  ;;  %v16742_v18 = vsel %vm13365_vm10, 4294967295, %v16741_v18  ;;  %vm1818_vm14 = vmand %vm13343_vm6, %vm13112_vm12  ;;  %v11018_v44 = vld [vmem:[%s16304_s2 + $0xa0] sm:$0xff]  ;;  %v16751_v34 = vmov 0 }
 0x29d   : > { %16743 = vst [vmem:[#allocation17_spill] sm:$0xff] %v16742_v18  ;;  %vm1819_vm1 = vmand %vm13349_vm4, %vm13120_vm0  ;;  %2277 = vmatpush.bf16.msra.mxu3 %v11026_v35  ;;  %v11024_v35 = vld [vmem:[%s16304_s2 + $0xd0] sm:$0xff]  ;;  %v2054_v18 = vrot.slane %v13078_v32, 1 }
 0x29f   : > { %8373 = vmatmul.msk.bf16.gmra.mxu0 %vm13337_vm5, %v8015_v12  ;;  %vm13380_vm5 = vmpackc.low %vm1819_vm1, %vm1818_vm14  ;;  %v16744_v12 = vmov 0 }
 0x2a0   : > { %2162 = vmatpush.bf16.msra.mxu2 %v11019_v38  ;;  %v16745_v12 = vsel %vm13380_vm5, 4294967295, %v16744_v12  ;;  %v11023_v38 = vld [vmem:[%s16304_s2 + $0xc8] sm:$0xff] }
 0x2a1   : > { %16746 = vst [vmem:[#allocation18_spill] sm:$0xff] %v16745_v12  ;;  %2278 = vmatpush.bf16.msra.mxu3 %v11025_v21  ;;  %v16750_v21 = vshra.s32 %v16691_v17, 3  ;;  %v16774_v12 = vand.u32 7, %v11690_v22 }
 0x2a3   : > { %vm13413_vm14 = vcmp.ge.s32.totalorder %v16750_v21, 1  ;;  %v16759_v21 = vshra.s32 %v16712_v45, 3 }
 0x2a4   : > { %8079 = vmatmul.msk.bf16.gmra.mxu3 %vm13365_vm10, %v13046_v47  ;;  %2163 = vmatpush.bf16.msra.mxu2 %v11018_v44  ;;  %v11017_v47 = vld [vmem:[%s16304_s2 + $0x98] sm:$0xff]  ;;  %v16748_v44 = vmov 0  ;;  %v16752_v34 = vsel %vm13413_vm14, 4294967295, %v16751_v34  ;;  %vm1821_vm4 = vmand %vm13413_vm14, %vm13192_vm2 }
 0x2a5   : > { %2279 = vmatpush.bf16.msra.mxu3 %v11024_v35  ;;  %v11022_v35 = vld [vmem:[%s16304_s2 + $0xc0] sm:$0xff] }
 0x2a7   : > { %8019 = vmatmul.msk.bf16.gmra.mxu2 %vm13380_vm5, %v13073_v4  ;;  %v16747_v4 = vshra.s32 %v16690_v29, 3 }
 0x2a8   : > { %2164 = vmatpush.bf16.msra.mxu2 %v11017_v47  ;;  %v11015_v47 = vld [vmem:[%s16304_s2 + $0x88] sm:$0xff] }
 0x2a9   : > { %vm13407_vm1 = vcmp.ge.s32.totalorder %v16747_v4, 1  ;;  %2280 = vmatpush.bf16.msra.mxu3 %v11023_v38  ;;  %v16753_v4 = vmov 0  ;;  %v16756_v38 = vmov 0 }
 0x2aa   : > { %v16749_v44 = vsel %vm13407_vm1, 4294967295, %v16748_v44  ;;  %vm13427_vm5 = vmpackc.low %vm13413_vm14, %vm13407_vm1  ;;  %vm13454_vm14 = vcmp.ge.s32.totalorder %v16759_v21, 1  ;;  %v16771_v21 = vand.u32 7, %v11680_v16 }
 0x2ab   : > { %v16754_v4 = vsel %vm13427_vm5, 4294967295, %v16753_v4  ;;  %vm1820_vm10 = vmand %vm13407_vm1, %vm13178_vm15 }
 0x2ac   : > { %2165 = vmatpush.bf16.msra.mxu2 %v11016_v57  ;;  %16755 = vst [vmem:[#allocation19_spill] sm:$0xff] %v16754_v4  ;;  %v11014_v57 = vld [vmem:[%s16304_s2 + $0x80] sm:$0xff]  ;;  %vm13445_vm6 = vmpackc.low %vm1821_vm4, %vm1820_vm10  ;;  %v16763_v4 = vmov 0 }
 0x2ad   : > { %2281 = vmatpush.bf16.msra.mxu3 %v11022_v35  ;;  %v16757_v38 = vsel %vm13445_vm6, 4294967295, %v16756_v38  ;;  %v16762_v35 = vshra.s32 %v16714_v42, 3  ;;  %vm1822_vm10 = vmand %vm13454_vm14, %vm13291_vm7 }
 0x2ae   : > { %16758 = vst [vmem:[#allocation20_spill] sm:$0xff] %v16757_v38  ;;  %v16421_v38 = vrot.slane %v13248_v9, 1 }
 0x2af   : > { %vm13460_vm1 = vcmp.ge.s32.totalorder %v16762_v35, 1 }
 0x2b0   : > { %2166 = vmatpush.bf16.msra.mxu2 %v11015_v47  ;;  %v16760_v47 = vmov 0  ;;  %v16764_v4 = vsel %vm13460_vm1, 4294967295, %v16763_v4  ;;  %vm13468_vm4 = vmpackc.low %vm13460_vm1, %vm13454_vm14 }
 0x2b1   : > { %v16761_v47 = vsel %vm13454_vm14, 4294967295, %v16760_v47  ;;  %vm13496_vm14 = vcmp.le.s32.totalorder %v16771_v21, 6  ;;  %v2051_v21 = vrot.slane %v13009_v36, 1  ;;  %2494 = vmatpush.bf16.msrb.mxu3 %v11045_v11  ;;  %v11043_v11 = vld [vmem:[%s16304_s2 + $0x168] sm:$0xff] }
 0x2b4   : > { %8082 = vmatmul.msk.bf16.gmra.mxu3 %vm13427_vm5, %v13144_v53  ;;  %2167 = vmatpush.bf16.msra.mxu2 %v11014_v57  ;;  %v16765_v53 = vmov 0  ;;  %v16768_v57 = vmov 0 }
 0x2b5   : > { %v16766_v53 = vsel %vm13468_vm4, 4294967295, %v16765_v53 }
 0x2b6   : > { %16767 = vst [vmem:[#allocation21_spill] sm:$0xff] %v16766_v53 }
 0x2b7   : > { %8022 = vmatmul.msk.bf16.gmra.mxu2 %vm13445_vm6, %v13160_v14  ;;  %vm1823_vm6 = vmand %vm13460_vm1, %vm13305_vm3  ;;  %v13482_v14 = vpack.c.bf16 %v13202_v48, %v13165_v52  ;;  %vm13503_vm1 = vcmp.le.s32.totalorder %v16774_v12, 6  ;;  %v16782_v12 = vmov 0 }
 0x2b8   : > { %vm13487_vm5 = vmpackc.low %vm1823_vm6, %vm1822_vm10  ;;  %2380 = vmatpush.bf16.msrb.mxu2 %v11037_v5  ;;  %v11035_v5 = vld [vmem:[%s16304_s2 + $0x128] sm:$0xff] }
 0x2b9   : > { %v16769_v57 = vsel %vm13487_vm5, 4294967295, %v16768_v57  ;;  %vm13511_vm6 = vmpackc.low %vm13013_vm13, %vm13005_vm11  ;;  %vm16780_vm11 = vcmp.lt.s32.totalorder %v11680_v16, 7 }
 0x2ba   : > { %16770 = vst [vmem:[#allocation22_spill] sm:$0xff] %v16769_v57  ;;  %v2052_v57 = vrot.slane %v12989_v28, 1  ;;  %vm2075_vm10 = vmand %vm13223_vm8, %vm13496_vm14  ;;  %v13531_v23 = vsel %vm16780_vm11, %v16421_v38, %v2051_v21  ;;  %v16785_v38 = vand.u32 7, %v16670_v26  ;;  %v11042_v26 = vld [vmem:[%s16304_s2 + $0x160] sm:$0xff] }
 0x2bb   : > { %vm16781_vm13 = vmmov %vm16780_vm11  ;;  %vm16794_vm11 = vnez %v16737_v60  ;;  %v16799_v60 = vmov 0 }
 0x2bc   : > { %v13537_v51 = vsel %vm16781_vm13, %v2051_v21, %v2052_v57  ;;  %v11044_v21 = vld [vmem:[%s16304_s2 + $0x170] sm:$0xff] }
 0x2bd   : > { %v13548_v3 = vpack.c.bf16 %v13537_v51, %v13531_v23  ;;  %2495 = vmatpush.bf16.msrb.mxu3 %v11044_v21 }
 0x2c1   : > { %2496 = vmatpush.bf16.msrb.mxu3 %v11043_v11  ;;  %v11032_v11 = vld [vmem:[%s16304_s2 + $0x110] sm:$0xff] }
 0x2c4   : > { %8085 = vmatmul.msk.bf16.gmra.mxu3 %vm13468_vm4, %v13482_v14  ;;  %vm16795_vm4 = vnez %v16740_v24  ;;  %v11034_v24 = vld [vmem:[%s16304_s2 + $0x120] sm:$0xff] }
 0x2c5   : > { %2497 = vmatpush.bf16.msrb.mxu3 %v11042_v26  ;;  %v16802_v26 = vand.u32 7, %v16690_v29  ;;  %v11038_v29 = vld [vmem:[%s16304_s2 + $0x140] sm:$0xff] }
 0x2c7   : > { %8025 = vmatmul.msk.bf16.gmra.mxu2 %vm13487_vm5, %v13235_v56  ;;  %v16777_v56 = vmov 0  ;;  %vm2076_vm5 = vmand %vm13229_vm9, %vm13503_vm1 }
 0x2c8   : > { %v16778_v56 = vsel %vm13511_vm6, 4294967295, %v16777_v56  ;;  %vm13539_vm8 = vmpackc.low %vm2076_vm5, %vm2075_vm10  ;;  %vm13567_vm5 = vcmp.le.s32.totalorder %v16785_v38, 6  ;;  %v16791_v38 = vmov 0 }
 0x2c9   : > { %16779 = vst [vmem:[#allocation23_spill] sm:$0xff] %v16778_v56  ;;  %v16783_v12 = vsel %vm13539_vm8, 4294967295, %v16782_v12  ;;  %v16788_v56 = vand.u32 7, %v16671_v1  ;;  %vm13588_vm10 = vmpackc.low %vm13120_vm0, %vm13112_vm12 }
 0x2ca   : > { %16784 = vst [vmem:[#allocation24_spill] sm:$0xff] %v16783_v12  ;;  %v16792_v38 = vsel %vm13588_vm10, 4294967295, %v16791_v38  ;;  %vm2077_vm13 = vmand %vm16794_vm11, %vm13567_vm5  ;;  %vm16811_vm11 = vnez %v16749_v44  ;;  %v16814_v44 = vpack.c.bf16 %v13174_v63, %v13152_v55  ;;  %v16822_v63 = vand.u32 7, %v16714_v42 }
 0x2cb   : > { %vm13577_vm9 = vcmp.le.s32.totalorder %v16788_v56, 6  ;;  %16793 = vst [vmem:[#allocation25_spill] sm:$0xff] %v16792_v38  ;;  %v11041_v56 = vld [vmem:[%s16304_s2 + $0x158] sm:$0xff]  ;;  %v16834_v42 = vmov 0 }
 0x2cc   : > { %2498 = vmatpush.bf16.msrb.mxu3 %v11041_v56  ;;  %v16874_v56 = vmov 0 }
 0x2d4   : > { %8196 = vmatmul.msk.bf16.vlgmr.msra.gmra.mxu3 %vm13511_vm6, %v8195_v40  ;;  %v11036_v40 = vld [vmem:[%s16304_s2 + $0x130] sm:$0xff]  ;;  %vm2078_vm6 = vmand %vm16795_vm4, %vm13577_vm9  ;;  %vm13642_vm4 = vcmp.le.s32.totalorder %v16802_v26, 6 }
 0x2d5   : > { %2381 = vmatpush.bf16.msrb.mxu2 %v11036_v40  ;;  %v2053_v40 = vrot.slane %v13026_v33, 1  ;;  %vm13612_vm0 = vmpackc.low %vm2078_vm6, %vm2077_vm13 }
 0x2d6   : > { %v16800_v60 = vsel %vm13612_vm0, 4294967295, %v16799_v60  ;;  %vm2079_vm13 = vmand %vm16811_vm11, %vm13642_vm4 }
 0x2d7   : > { %8136 = vmatmul.msk.bf16.vlgmr.msra.gmra.mxu2 %vm13539_vm8, %v13548_v3  ;;  %vm16796_vm8 = vcmp.lt.s32.totalorder %v11680_v16, 7  ;;  %16801 = vst [vmem:[#allocation26_spill] sm:$0xff] %v16800_v60  ;;  %vm13719_vm11 = vmpackc.low %vm13305_vm3, %vm13291_vm7  ;;  %vm16831_vm7 = vcmp.lt.s32.totalorder %v11680_v16, 7 }
 0x2d8   : > { %v13603_v1 = vsel %vm16796_vm8, %v2053_v40, %v2054_v18  ;;  %vm16798_vm12 = vmmov %vm16796_vm8 }
 0x2d9   : > { %2382 = vmatpush.bf16.msrb.mxu2 %v11035_v5  ;;  %v2064_v19 = vsel %vm16798_vm12, %v2052_v57, %v2053_v40  ;;  %v11040_v57 = vld [vmem:[%s16304_s2 + $0x150] sm:$0xff]  ;;  %v11039_v5 = vld [vmem:[%s16304_s2 + $0x148] sm:$0xff]  ;;  %vm13663_vm8 = vmpackc.low %vm13192_vm2, %vm13178_vm15  ;;  %vm16812_vm12 = vnez %v16752_v34 }
 0x2da   : > { %v13623_v7 = vpack.c.bf16 %v13603_v1, %v2064_v19  ;;  %2499 = vmatpush.bf16.msrb.mxu3 %v11040_v57  ;;  %v2055_v57 = vrot.slane %v13132_v2, 1  ;;  %vm16833_vm3 = vmmov %vm16831_vm7 }
 0x2dd   : > { %2383 = vmatpush.bf16.msrb.mxu2 %v11034_v24  ;;  %v16805_v24 = vand.u32 7, %v16691_v17  ;;  %v16808_v17 = vmov 0 }
 0x2de   : > { %2500 = vmatpush.bf16.msrb.mxu3 %v11039_v5  ;;  %v16809_v17 = vsel %vm13663_vm8, 4294967295, %v16808_v17 }
 0x2df   : > { %vm13649_vm6 = vcmp.le.s32.totalorder %v16805_v24, 6  ;;  %16810 = vst [vmem:[#allocation27_spill] sm:$0xff] %v16809_v17  ;;  %v11067_v24 = vld [vmem:[%s16304_s2 + $0x228] sm:$0xff] }
 0x2e1   : > { %2384 = vmatpush.bf16.msrb.mxu2 %v11033_v31  ;;  %v11031_v31 = vld [vmem:[%s16304_s2 + $0x108] sm:$0xff] }
 0x2e2   : > { %2501 = vmatpush.bf16.msrb.mxu3 %v11038_v29 }
 0x2e4   : > { %8199 = vmatmul.msk.bf16.gmra.mxu3 %vm13588_vm10, %v16797_v61  ;;  %v2056_v61 = vrot.slane %v13165_v52, 1  ;;  %vm2080_vm10 = vmand %vm16812_vm12, %vm13649_vm6 }
 0x2e5   : > { %2385 = vmatpush.bf16.msrb.mxu2 %v11032_v11  ;;  %vm13691_vm2 = vmpackc.low %vm2080_vm10, %vm2079_vm13  ;;  %v16816_v11 = vmov 0  ;;  %vm13711_vm10 = vcmp.le.s32.totalorder %v16822_v63, 6  ;;  %vm16828_vm13 = vnez %v16761_v47 }
 0x2e6   : > { %11454 = vmatpush.bf16.msra.mxu3 %v12874_v59  ;;  %v16817_v11 = vsel %vm13691_vm2, 4294967295, %v16816_v11  ;;  %v16819_v59 = vand.u32 7, %v16712_v45 }
 0x2e7   : > { %8139 = vmatmul.msk.bf16.gmra.mxu2 %vm13612_vm0, %v13623_v7  ;;  %vm16813_vm0 = vcmp.lt.s32.totalorder %v11680_v16, 7  ;;  %16818 = vst [vmem:[#allocation28_spill] sm:$0xff] %v16817_v11 }
 0x2e8   : > { %v13678_v10 = vsel %vm16813_vm0, %v2055_v57, %v2056_v61  ;;  %vm16815_vm15 = vmmov %vm16813_vm0  ;;  %vm13705_vm0 = vcmp.le.s32.totalorder %v16819_v59, 6  ;;  %v2312_v59 = vpack.c.bf16 %v13078_v32, %v13026_v33  ;;  %v11116_v33 = vld [vmem:[%s16305_s3 + $0x170] sm:$0xff] }
 0x2e9   : > { %2386 = vmatpush.bf16.msrb.mxu2 %v11031_v31  ;;  %v2062_v34 = vsel %vm16815_vm15, %v2054_v18, %v2055_v57  ;;  %vm2081_vm12 = vmand %vm16828_vm13, %vm13705_vm0  ;;  %vm16829_vm15 = vnez %v16764_v4  ;;  %v16840_v31 = vmov 0 }
 0x2ea   : > { %v13696_v5 = vpack.c.bf16 %v13678_v10, %v2062_v34  ;;  %11455 = vmatpush.bf16.msra.mxu3 %v12883_v15  ;;  %v16825_v15 = vmov 0  ;;  %v8306_v29 = vpack.c.bf16 %v2062_v34, %v13603_v1  ;;  %v11065_v1 = vld [vmem:[%s16304_s2 + $0x218] sm:$0xff] }
 0x2eb   : > { %v16826_v15 = vsel %vm13719_vm11, 4294967295, %v16825_v15 }
 0x2ec   : > { %16827 = vst [vmem:[#allocation29_spill] sm:$0xff] %v16826_v15 }
 0x2ed   : > { %2387 = vmatpush.bf16.msrb.mxu2 %v11030_v8 }
 0x2ee   : > { %11456 = vmatpush.bf16.msra.mxu3 %v12898_v13  ;;  %v2057_v13 = vrot.slane %v13202_v48, 1 }
 0x2f0   : > { %v13737_v45 = vsel %vm16831_vm7, %v2057_v13, %v16830_v6  ;;  %v2060_v39 = vsel %vm16833_vm3, %v2056_v61, %v2057_v13  ;;  %vm13843_vm7 = vmpackc.low %vm13711_vm10, %vm13705_vm0  ;;  %vm16849_vm3 = vnez %v16696_v43 }
 0x2f1   : > { %v13752_v4 = vpack.c.bf16 %v13737_v45, %v2060_v39 }
 0x2f2   : > { %11457 = vmatpush.bf16.msra.mxu3 %v12916_v62  ;;  %v16832_v62 = vpack.c.bf16 %v13272_v54, %v13215_v30  ;;  %v8303_v54 = vpack.c.bf16 %v2064_v19, %v13537_v51  ;;  %v11068_v19 = vld [vmem:[%s16304_s2 + $0x230] sm:$0xff] }
 0x2f4   : > { %8202 = vmatmul.msk.bf16.gmra.mxu3 %vm13663_vm8, %v16814_v44  ;;  %vm2082_vm8 = vmand %vm16829_vm15, %vm13711_vm10  ;;  %v11066_v44 = vld [vmem:[%s16304_s2 + $0x220] sm:$0xff] }
 0x2f5   : > { %vm13747_vm13 = vmpackc.low %vm2082_vm8, %vm2081_vm12 }
 0x2f6   : > { %11458 = vmatpush.bf16.msra.mxu3 %v12925_v20  ;;  %v16835_v42 = vsel %vm13747_vm13, 4294967295, %v16834_v42  ;;  %vm13764_vm8 = vmpackc.low %vm13503_vm1, %vm13496_vm14  ;;  %v16837_v20 = vmov 0 }
 0x2f7   : > { %8142 = vmatmul.msk.bf16.gmra.mxu2 %vm13691_vm2, %v13696_v5  ;;  %16836 = vst [vmem:[#allocation30_spill] sm:$0xff] %v16835_v42  ;;  %v16838_v20 = vsel %vm13764_vm8, 4294967295, %v16837_v20  ;;  %vm13792_vm12 = vmpackc.low %vm13577_vm9, %vm13567_vm5 }
 0x2f8   : > { %16839 = vst [vmem:[#allocation31_spill] sm:$0xff] %v16838_v20  ;;  %v16841_v31 = vsel %vm13792_vm12, 4294967295, %v16840_v31  ;;  %vm13821_vm15 = vmpackc.low %vm13649_vm6, %vm13642_vm4 }
 0x2f9   : > { %16842 = vst [vmem:[#allocation32_spill] sm:$0xff] %v16841_v31 }
 0x2fa   : > { %11459 = vmatpush.bf16.msra.mxu3 %v12934_v0  ;;  %v2311_v0 = vpack.c.bf16 %v12989_v28, %v13009_v36 }
 0x2fe   : > { %11460 = vmatpush.bf16.msra.mxu3 %v12943_v50  ;;  %v13776_v50 = vld [vmem:[%s16314_s12 + $0x1] ss:$0 sm:$0xff] }
 0x302   : > { %11461 = vmatpush.bf16.msra.mxu3 %v12952_v58  ;;  %v11069_v58 = vld [vmem:[%s16304_s2 + $0x238] sm:$0xff] }
 0x303   : > { %2860 = vmatpush.bf16.msra.mxu2 %v11069_v58  ;;  %v16843_v58 = vmov 0 }
 0x304   : > { %8205 = vmatmul.msk.bf16.gmra.mxu3 %vm13719_vm11, %v16832_v62  ;;  %v11064_v62 = vld [vmem:[%s16304_s2 + $0x210] sm:$0xff]  ;;  %v16844_v58 = vsel %vm13821_vm15, 4294967295, %v16843_v58  ;;  %vm16855_vm11 = vnez %v16655_v25 }
 0x305   : > { %16845 = vst [vmem:[#allocation33_spill] sm:$0xff] %v16844_v58 }
 0x307   : > { %8145 = vmatmul.msk.bf16.gmra.mxu2 %vm13747_vm13, %v13752_v4  ;;  %vm2776_vm13 = vmand %vm16855_vm11, %vm13503_vm1  ;;  %vm16859_vm1 = vnez %v16725_v46 }
 0x308   : > { %2861 = vmatpush.bf16.msra.mxu2 %v11068_v19 }
 0x30c   : > { %2862 = vmatpush.bf16.msra.mxu2 %v11067_v24  ;;  %v2313_v24 = vpack.c.bf16 %v13165_v52, %v13132_v2 }
 0x310   : > { %2863 = vmatpush.bf16.msra.mxu2 %v11066_v44 }
 0x314   : > { %8304 = vmatmul.msk.bf16.vlgmr.msrb.gmra.mxu3 %vm13764_vm8, %v8303_v54  ;;  %2864 = vmatpush.bf16.msra.mxu2 %v11065_v1 }
 0x317   : > { %v2023_v30 = vpop.f32.mrf.mxu3  ;;  %2388 = vmatmul.bf16.vlgmr.msrb.gmra.mxu2 %v2311_v0 }
 0x318   : > { %2865 = vmatpush.bf16.msra.mxu2 %v11064_v62 }
 0x31a   : > { %v1909_v47 = vpop.f32.mrf.mxu2 }
 0x31b   : > { %v1929_v51 = vadd.f32 %v13776_v50, %v1909_v47  ;;  %v8309_v47 = vpack.c.bf16 %v2060_v39, %v13678_v10 }
 0x31d   : > { %v2043_v26 = vadd.f32 %v2023_v30, %v1929_v51  ;;  %v11063_v30 = vld [vmem:[%s16304_s2 + $0x208] sm:$0xff] }
 0x31e   : > { %2866 = vmatpush.bf16.msra.mxu2 %v11063_v30 }
 0x31f   : > { %v2025_v61 = vpop.f32.mrf.mxu3 }
 0x322   : > { %v1911_v57 = vpop.f32.mrf.mxu2 }
 0x323   : > { %v1930_v8 = vadd.f32 %v13776_v50, %v1911_v57 }
 0x324   : > { %8307 = vmatmul.msk.bf16.gmra.mxu3 %vm13792_vm12, %v8306_v29 }
 0x325   : > { %v13805_v63 = vadd.f32 %v2025_v61, %v1930_v8  ;;  %v11062_v61 = vld [vmem:[%s16304_s2 + $0x200] sm:$0xff] }
 0x326   : > { %2867 = vmatpush.bf16.msra.mxu2 %v11062_v61  ;;  %v16861_v61 = vmov 0 }
 0x327   : > { %v2028_v13 = vpop.f32.mrf.mxu3  ;;  %2393 = vmatmul.bf16.gmra.mxu2 %v2312_v59  ;;  %v16846_v59 = vmov 0 }
 0x328   : > { %v16847_v59 = vsel %vm13843_vm7, 4294967295, %v16846_v59 }
 0x329   : > { %16848 = vst [vmem:[#allocation34_spill] sm:$0xff] %v16847_v59 }
 0x32a   : > { %v1914_v34 = vpop.f32.mrf.mxu2 }
 0x32b   : > { %v1931_v6 = vadd.f32 %v13776_v50, %v1914_v34  ;;  %v2314_v34 = vpack.c.bf16 %v13248_v9, %v13202_v48 }
 0x32d   : > { %v2045_v54 = vadd.f32 %v2028_v13, %v1931_v6  ;;  %v8312_v13 = vpack.c.bf16 %v13531_v23, %v13737_v45  ;;  %v16851_v23 = vmov 0 }
 0x32f   : > { %v2030_v0 = vpop.f32.mrf.mxu3 }
 0x332   : > { %v1916_v51 = vpop.f32.mrf.mxu2 }
 0x333   : > { %v1932_v19 = vadd.f32 %v13776_v50, %v1916_v51  ;;  %v16856_v51 = vmov 0 }
 0x334   : > { %8310 = vmatmul.msk.bf16.gmra.mxu3 %vm13821_vm15, %v8309_v47  ;;  %vm16850_vm15 = vnez %v16700_v49 }
 0x335   : > { %v13834_v29 = vadd.f32 %v2030_v0, %v1932_v19  ;;  %vm13862_vm12 = vmpackc.low %vm16850_vm15, %vm16849_vm3 }
 0x336   : > { %v16852_v23 = vsel %vm13862_vm12, 4294967295, %v16851_v23 }
 0x337   : > { %v2033_v57 = vpop.f32.mrf.mxu3  ;;  %2398 = vmatmul.bf16.gmra.mxu2 %v2313_v24  ;;  %16853 = vst [vmem:[#allocation35_spill] sm:$0xff] %v16852_v23  ;;  %v16868_v24 = vmov 0 }
 0x33a   : > { %v1919_v10 = vpop.f32.mrf.mxu2 }
 0x33b   : > { %v1933_v39 = vadd.f32 %v13776_v50, %v1919_v10 }
 0x33d   : > { %v2047_v8 = vadd.f32 %v2033_v57, %v1933_v39 }
 0x33f   : > { %v13837_v44 = vpop.f32.mrf.mxu3 }
 0x342   : > { %v13849_v1 = vpop.f32.mrf.mxu2 }
 0x344   : > { %8313 = vmatmul.msk.bf16.gmra.mxu3 %vm13843_vm7, %v8312_v13  ;;  %vm16854_vm7 = vnez %v16653_v37  ;;  %v16871_v13 = vmov 0 }
 0x345   : > { %vm2775_vm8 = vmand %vm16854_vm7, %vm13496_vm14  ;;  %vm16860_vm14 = vnez %v16731_v41 }
 0x346   : > { %vm13879_vm2 = vmpackc.low %vm2776_vm13, %vm2775_vm8  ;;  %vm16864_vm13 = vnez %v16673_v27 }
 0x347   : > { %v2038_v6 = vpop.f32.mrf.mxu3  ;;  %2403 = vmatmul.bf16.gmra.mxu2 %v2314_v34  ;;  %v16857_v51 = vsel %vm13879_vm2, 4294967295, %v16856_v51  ;;  %vm13890_vm11 = vmpackc.low %vm16860_vm14, %vm16859_vm1 }
 0x348   : > { %16858 = vst [vmem:[#allocation36_spill] sm:$0xff] %v16857_v51  ;;  %v16862_v61 = vsel %vm13890_vm11, 4294967295, %v16861_v61  ;;  %vm2777_vm8 = vmand %vm16864_vm13, %vm13567_vm5 }
 0x349   : > { %16863 = vst [vmem:[#allocation37_spill] sm:$0xff] %v16862_v61  ;;  %vm2779_vm5 = vmand %vm16849_vm3, %vm13642_vm4 }
 0x34a   : > { %v1924_v62 = vpop.f32.mrf.mxu2  ;;  %vm2781_vm4 = vmand %vm16859_vm1, %vm13705_vm0  ;;  %vm16877_vm0 = vcmp.lt.s32.totalorder %v11680_v16, 1 }
 0x34b   : > { %v1935_v0 = vadd.f32 %v13776_v50, %v1924_v62  ;;  %vm16879_vm3 = vmmov %vm16877_vm0 }
 0x34c   : > { %vm16882_vm13 = vmmov %vm16877_vm0 }
 0x34d   : > { %v2049_v30 = vadd.f32 %v2038_v6, %v1935_v0 }
 0x34f   : > { %v13856_v47 = vpop.f32.mrf.mxu3 }
 0x352   : > { %v13874_v45 = vpop.f32.mrf.mxu2 }
 0x354   : > { %8430 = vmatmul.msk.bf16.vlgmr.msra.gmra.mxu3 %vm13862_vm12, %v13482_v14  ;;  %v16865_v14 = vld [vmem:[#allocation2_spill] sm:$0xff] }
 0x355   : > { %vm16866_vm7 = vnez %v16865_v14 }
 0x357   : > { %v2283_v19 = vpop.f32.mrf.mxu3  ;;  %8484 = vmatmul.msk.bf16.vlgmr.msra.gmra.mxu2 %vm13879_vm2, %v13623_v7  ;;  %vm2778_vm2 = vmand %vm16866_vm7, %vm13577_vm9 }
 0x358   : > { %vm13905_vm12 = vmpackc.low %vm2778_vm2, %vm2777_vm8 }
 0x359   : > { %v16869_v24 = vsel %vm13905_vm12, 4294967295, %v16868_v24  ;;  %vm2780_vm9 = vmand %vm16850_vm15, %vm13649_vm6 }
 0x35a   : > { %v2169_v37 = vpop.f32.mrf.mxu2  ;;  %16870 = vst [vmem:[#allocation2_spill] sm:$0xff] %v16869_v24  ;;  %vm13922_vm2 = vmpackc.low %vm2780_vm9, %vm2779_vm5 }
 0x35b   : > { %v2189_v53 = vadd.f32 %v2169_v37, %v2043_v26  ;;  %v16867_v26 = vld [vmem:[#allocation7_spill] sm:$0xff]  ;;  %v16872_v13 = vsel %vm13922_vm2, 4294967295, %v16871_v13  ;;  %vm2782_vm6 = vmand %vm16860_vm14, %vm13711_vm10  ;;  %vm16878_vm10 = vcmp.lt.s32.totalorder %v11680_v16, 7 }
 0x35c   : > { %16873 = vst [vmem:[#allocation7_spill] sm:$0xff] %v16872_v13  ;;  %vm13941_vm15 = vmpackc.low %vm2782_vm6, %vm2781_vm4 }
 0x35d   : > { %v2303_v35 = vadd.f32 %v2283_v19, %v2189_v53  ;;  %v16875_v56 = vsel %vm13941_vm15, 4294967295, %v16874_v56  ;;  %vm16880_vm1 = vmmov %vm16878_vm10 }
 0x35e   : > { %16876 = vst [vmem:[#allocation38_spill] sm:$0xff] %v16875_v56  ;;  %vm16881_vm14 = vmmov %vm16880_vm1 }
 0x35f   : > { %v2285_v25 = vpop.f32.mrf.mxu3  ;;  %vm16883_vm8 = vmmov %vm16877_vm0 }
 0x360   : > { %vm16884_vm7 = vmmov %vm16880_vm1 }
 0x361   : > { %vm16885_vm5 = vmmov %vm16880_vm1 }
 0x362   : > { %v2171_v7 = vpop.f32.mrf.mxu2  ;;  %vm16886_vm9 = vmmov %vm16877_vm0 }
 0x363   : > { %vm16887_vm4 = vmmov %vm16877_vm0 }
 0x364   : > { %8433 = vmatmul.msk.bf16.gmra.mxu3 %vm13890_vm11, %v16867_v26  ;;  %vm16888_vm6 = vmmov %vm16880_vm1 }
 0x367   : > { %v2288_v57 = vpop.f32.mrf.mxu3  ;;  %8487 = vmatmul.msk.bf16.gmra.mxu2 %vm13905_vm12, %v13696_v5 }
 0x36a   : > { %v2174_v22 = vpop.f32.mrf.mxu2 }
 0x36b   : > { %v2191_v27 = vadd.f32 %v2174_v22, %v2045_v54 }
 0x36d   : > { %v2305_v21 = vadd.f32 %v2288_v57, %v2191_v27 }
 0x36f   : > { %v13912_v10 = vpop.f32.mrf.mxu3 }
 0x372   : > { %v2176_v39 = vpop.f32.mrf.mxu2 }
 0x377   : > { %v2293_v5 = vpop.f32.mrf.mxu3  ;;  %8490 = vmatmul.msk.bf16.gmra.mxu2 %vm13922_vm2, %v13752_v4 }
 0x37a   : > { %v2179_v54 = vpop.f32.mrf.mxu2 }
 0x37b   : > { %v2193_v40 = vadd.f32 %v2179_v54, %v2047_v8 }
 0x37d   : > { %v2307_v34 = vadd.f32 %v2293_v5, %v2193_v40 }
 0x37f   : > { %v13929_v43 = vpop.f32.mrf.mxu3 }
 0x382   : > { %v13939_v49 = vpop.f32.mrf.mxu2 }
 0x387   : > { %v2298_v4 = vpop.f32.mrf.mxu3  ;;  %8493 = vmatmul.msk.bf16.gmra.mxu2 %vm13941_vm15, %v13548_v3 }
 0x38a   : > { %v2184_v55 = vpop.f32.mrf.mxu2 }
 0x38b   : > { %v2195_v8 = vadd.f32 %v2184_v55, %v2049_v30  ;;  %v2633_v55 = vpop.f32.mrf.mxu0 }
 0x38d   : > { %v2309_v46 = vadd.f32 %v2298_v4, %v2195_v8 }
 0x38f   : > { %v13948_v6 = vpop.f32.mrf.mxu3 }
 0x392   : > { %v13950_v18 = vpop.f32.mrf.mxu2 }
 0x397   : > { %v2503_v41 = vpop.f32.mrf.mxu3 }
 0x39a   : > { %v2389_v62 = vpop.f32.mrf.mxu2 }
 0x39b   : > { %v2409_v0 = vadd.f32 %v2389_v62, %v2303_v35  ;;  %v2747_v62 = vpop.f32.mrf.mxu1 }
 0x39d   : > { %v2523_v19 = vadd.f32 %v2503_v41, %v2409_v0  ;;  %v2190_v41 = vadd.f32 %v2171_v7, %v13805_v63  ;;  %v2635_v0 = vpop.f32.mrf.mxu0  ;;  %v11085_v63 = vld [vmem:[%s16305_s3 + $0x78] sm:$0xff] }
 0x39e   : > { %3116 = vmatpush.bf16.msra.mxu0 %v11085_v63 }
 0x39f   : > { %v2505_v37 = vpop.f32.mrf.mxu3 }
 0x3a2   : > { %v2391_v53 = vpop.f32.mrf.mxu2 }
 0x3a3   : > { %v2749_v52 = vpop.f32.mrf.mxu1 }
 0x3a7   : > { %v2508_v14 = vpop.f32.mrf.mxu3 }
 0x3aa   : > { %v2394_v26 = vpop.f32.mrf.mxu2 }
 0x3ab   : > { %v2411_v57 = vadd.f32 %v2394_v26, %v2305_v21  ;;  %v2304_v26 = vadd.f32 %v2285_v25, %v2190_v41  ;;  %v11077_v25 = vld [vmem:[%s16305_s3 + $0x38] sm:$0xff]  ;;  %v2752_v63 = vpop.f32.mrf.mxu1 }
 0x3ac   : > { %3002 = vmatpush.bf16.msrb.mxu3 %v11077_v25  ;;  %v11091_v25 = vld [vmem:[%s16305_s3 + $0xa8] sm:$0xff] }
 0x3ad   : > { %v2525_v22 = vadd.f32 %v2508_v14, %v2411_v57  ;;  %v2410_v57 = vadd.f32 %v2391_v53, %v2304_v26  ;;  %v11084_v53 = vld [vmem:[%s16305_s3 + $0x70] sm:$0xff] }
 0x3ae   : > { %3117 = vmatpush.bf16.msra.mxu0 %v11084_v53  ;;  %v11082_v53 = vld [vmem:[%s16305_s3 + $0x60] sm:$0xff] }
 0x3af   : > { %v13952_v27 = vpop.f32.mrf.mxu3 }
 0x3b2   : > { %v2396_v3 = vpop.f32.mrf.mxu2 }
 0x3b7   : > { %v2513_v54 = vpop.f32.mrf.mxu3 }
 0x3ba   : > { %v2399_v5 = vpop.f32.mrf.mxu2 }
 0x3bb   : > { %v2413_v30 = vadd.f32 %v2399_v5, %v2307_v34  ;;  %v2653_v34 = vadd.f32 %v2633_v55, %v2523_v19  ;;  %v2524_v5 = vadd.f32 %v2505_v37, %v2410_v57  ;;  %v11093_v19 = vld [vmem:[%s16305_s3 + $0xb8] sm:$0xff]  ;;  %v11083_v57 = vld [vmem:[%s16305_s3 + $0x68] sm:$0xff] }
 0x3bc   : > { %v11101_v37 = vld [vmem:[%s16305_s3 + $0xf8] sm:$0xff]  ;;  %3246 = vmatpush.bf16.msra.mxu1 %v11093_v19  ;;  %3118 = vmatpush.bf16.msra.mxu0 %v11083_v57  ;;  %v11099_v19 = vld [vmem:[%s16305_s3 + $0xe8] sm:$0xff] }
 0x3bd   : > { %v13954_v40 = vadd.f32 %v2513_v54, %v2413_v30  ;;  %v2638_v54 = vpop.f32.mrf.mxu0  ;;  %v2767_v32 = vadd.f32 %v2747_v62, %v2653_v34  ;;  %v2654_v7 = vadd.f32 %v2635_v0, %v2524_v5  ;;  %3360 = vmatpush.bf16.msrb.mxu2 %v11101_v37  ;;  %v11100_v62 = vld [vmem:[%s16305_s3 + $0xf0] sm:$0xff]  ;;  %v11081_v57 = vld [vmem:[%s16305_s3 + $0x58] sm:$0xff] }
 0x3be   : > { %v2655_v26 = vadd.f32 %v2638_v54, %v2525_v22 }
 0x3bf   : > { %v13961_v21 = vpop.f32.mrf.mxu3 }
 0x3c0   : > { %v2769_v37 = vadd.f32 %v2752_v63, %v2655_v26  ;;  %3119 = vmatpush.bf16.msra.mxu0 %v11082_v53  ;;  %v11089_v53 = vld [vmem:[%s16305_s3 + $0x98] sm:$0xff] }
 0x3c1   : > { %3361 = vmatpush.bf16.msrb.mxu2 %v11100_v62  ;;  %v1934_v62 = vadd.f32 %v13776_v50, %v13849_v1 }
 0x3c2   : > { %v13956_v4 = vpop.f32.mrf.mxu2 }
 0x3c4   : > { %3120 = vmatpush.bf16.msra.mxu0 %v11081_v57 }
 0x3c5   : > { %v2640_v34 = vpop.f32.mrf.mxu0  ;;  %3362 = vmatpush.bf16.msrb.mxu2 %v11099_v19 }
 0x3c7   : > { %v13965_v2 = vpop.f32.mrf.mxu3 }
 0x3ca   : > { %v2404_v8 = vpop.f32.mrf.mxu2 }
 0x3cb   : > { %v13958_v35 = vadd.f32 %v2404_v8, %v2309_v46  ;;  %v2192_v8 = vadd.f32 %v2176_v39, %v13834_v29  ;;  %v11076_v29 = vld [vmem:[%s16305_s3 + $0x30] sm:$0xff] }
 0x3cc   : > { %v11092_v39 = vld [vmem:[%s16305_s3 + $0xb0] sm:$0xff]  ;;  %3003 = vmatpush.bf16.msrb.mxu3 %v11076_v29 }
 0x3cd   : > { %3247 = vmatpush.bf16.msra.mxu1 %v11092_v39  ;;  %v2643_v1 = vpop.f32.mrf.mxu0 }
 0x3d1   : > { %3248 = vmatpush.bf16.msra.mxu1 %v11091_v25 }
 0x3d2   : > { %v13963_v14 = vpop.f32.mrf.mxu2 }
 0x3da   : > { %v2869_v30 = vpop.f32.mrf.mxu2 }
 0x3db   : > { %v2889_v46 = vadd.f32 %v2869_v30, %v2767_v32  ;;  %v2768_v32 = vadd.f32 %v2749_v52, %v2654_v7  ;;  %v2306_v52 = vadd.f32 %v13912_v10, %v2192_v8  ;;  %v14000_v7 = vpop.f32.mrf.mxu3  ;;  %v11075_v8 = vld [vmem:[%s16305_s3 + $0x28] sm:$0xff] }
 0x3dc   : > { %3004 = vmatpush.bf16.msrb.mxu3 %v11075_v8  ;;  %v2048_v8 = vadd.f32 %v13837_v44, %v1934_v62  ;;  %v11080_v62 = vld [vmem:[%s16305_s3 + $0x50] sm:$0xff] }
 0x3dd   : > { %v13989_v55 = vmax.f32 %v2889_v46, 0.0  ;;  %v2412_v5 = vadd.f32 %v2396_v3, %v2306_v52  ;;  %3121 = vmatpush.bf16.msra.mxu0 %v11080_v62  ;;  %v2657_v62 = vadd.f32 %v2643_v1, %v13954_v40  ;;  %v11095_v40 = vld [vmem:[%s16305_s3 + $0xc8] sm:$0xff] }
 0x3df   : > { %v16462_v46 = vrot.slane %v13989_v55, 7  ;;  %v16461_v10 = vrot.slane %v13989_v55, 1 }
 0x3e2   : > { %v2871_v41 = vpop.f32.mrf.mxu2 }
 0x3e3   : > { %v2890_v0 = vadd.f32 %v2871_v41, %v2768_v32  ;;  %v2526_v32 = vadd.f32 %v13952_v27, %v2412_v5  ;;  %v11074_v41 = vld [vmem:[%s16305_s3 + $0x20] sm:$0xff] }
 0x3e4   : > { %v11090_v27 = vld [vmem:[%s16305_s3 + $0xa0] sm:$0xff]  ;;  %3005 = vmatpush.bf16.msrb.mxu3 %v11074_v41  ;;  %v2194_v41 = vadd.f32 %v13939_v49, %v2048_v8 }
 0x3e5   : > { %v13998_v30 = vmax.f32 %v2890_v0, 0.0  ;;  %v11098_v0 = vld [vmem:[%s16305_s3 + $0xe0] sm:$0xff]  ;;  %v2656_v63 = vadd.f32 %v2640_v34, %v2526_v32  ;;  %3249 = vmatpush.bf16.msra.mxu1 %v11090_v27  ;;  %v11097_v34 = vld [vmem:[%s16305_s3 + $0xd8] sm:$0xff]  ;;  %v2754_v32 = vpop.f32.mrf.mxu1  ;;  %v2757_v27 = vpop.f32.mrf.mxu3 }
 0x3e6   : > { %3363 = vmatpush.bf16.msrb.mxu2 %v11098_v0  ;;  %v11072_v0 = vld [vmem:[%s16305_s3 + $0x10] sm:$0xff] }
 0x3e7   : > { %v2911_v22 = vrot.slane %v13998_v30, 7  ;;  %v3154_v54 = vrot.slane %v13998_v30, 1 }
 0x3e9   : > { %v14025_v29 = vsel %vm16877_vm0, %v16462_v46, %v2911_v22  ;;  %v14031_v39 = vsel %vm16878_vm10, %v16461_v10, %v3154_v54  ;;  %3250 = vmatpush.bf16.msra.mxu1 %v11089_v53  ;;  %vm16890_vm10 = vmmov %vm16877_vm0 }
 0x3ea   : > { %v2874_v52 = vpop.f32.mrf.mxu2  ;;  %3364 = vmatpush.bf16.msrb.mxu2 %v11097_v34 }
 0x3eb   : > { %v2891_v26 = vadd.f32 %v2874_v52, %v2769_v37  ;;  %v11073_v37 = vld [vmem:[%s16305_s3 + $0x18] sm:$0xff]  ;;  %v2770_v52 = vadd.f32 %v2754_v32, %v2656_v63  ;;  %v11096_v63 = vld [vmem:[%s16305_s3 + $0xd0] sm:$0xff]  ;;  %v2308_v32 = vadd.f32 %v13929_v43, %v2194_v41  ;;  %v11087_v43 = vld [vmem:[%s16305_s3 + $0x88] sm:$0xff]  ;;  %v2645_v41 = vpop.f32.mrf.mxu0 }
 0x3ec   : > { %3006 = vmatpush.bf16.msrb.mxu3 %v11073_v37 }
 0x3ed   : > { %v14047_v5 = vmax.f32 %v2891_v26, 0.0  ;;  %v11088_v26 = vld [vmem:[%s16305_s3 + $0x90] sm:$0xff]  ;;  %v2414_v3 = vadd.f32 %v13956_v4, %v2308_v32  ;;  %v11078_v4 = vld [vmem:[%s16305_s3 + $0x40] sm:$0xff] }
 0x3ee   : > { %3251 = vmatpush.bf16.msra.mxu1 %v11088_v26  ;;  %3365 = vmatpush.bf16.msrb.mxu2 %v11096_v63 }
 0x3ef   : > { %v2912_v25 = vrot.slane %v14047_v5, 7  ;;  %v3155_v19 = vrot.slane %v14047_v5, 1  ;;  %v14063_v44 = vpack.c.bf16 %v14047_v5, %v13998_v30 }
 0x3f0   : > { %3007 = vmatpush.bf16.msrb.mxu3 %v11072_v0  ;;  %v2771_v0 = vadd.f32 %v2757_v27, %v2657_v62  ;;  %v11070_v27 = vld [vmem:[%s16305_s3] sm:$0xff] }
 0x3f1   : > { %v14077_v57 = vsel %vm16879_vm3, %v2911_v22, %v2912_v25  ;;  %v14081_v49 = vsel %vm16880_vm1, %v3154_v54, %v3155_v19  ;;  %v11079_v54 = vld [vmem:[%s16305_s3 + $0x48] sm:$0xff]  ;;  %vm16892_vm3 = vmmov %vm16880_vm1 }
 0x3f2   : > { %v2876_v8 = vpop.f32.mrf.mxu2  ;;  %v14088_v37 = vpack.c.bf16 %v14077_v57, %v14025_v29  ;;  %3122 = vmatpush.bf16.msra.mxu0 %v11079_v54  ;;  %3252 = vmatpush.bf16.msra.mxu1 %v11087_v43  ;;  %v2759_v54 = vpop.f32.mrf.mxu3 }
 0x3f3   : > { %v2892_v22 = vadd.f32 %v2876_v8, %v2770_v52  ;;  %v11071_v8 = vld [vmem:[%s16305_s3 + $0x8] sm:$0xff]  ;;  %3366 = vmatpush.bf16.msrb.mxu2 %v11095_v40 }
 0x3f4   : > { %3008 = vmatpush.bf16.msrb.mxu3 %v11071_v8 }
 0x3f5   : > { %v14096_v34 = vmax.f32 %v2892_v22, 0.0  ;;  %v1936_v22 = vadd.f32 %v13776_v50, %v13874_v45  ;;  %v2528_v45 = vadd.f32 %v13961_v21, %v2414_v3 }
 0x3f6   : > { %3123 = vmatpush.bf16.msra.mxu0 %v11078_v4 }
 0x3f7   : > { %v2913_v10 = vrot.slane %v14096_v34, 7  ;;  %v3156_v52 = vrot.slane %v14096_v34, 1  ;;  %v2050_v40 = vadd.f32 %v13856_v47, %v1936_v22  ;;  %v2658_v4 = vadd.f32 %v2645_v41, %v2528_v45 }
 0x3f8   : > { %3009 = vmatpush.bf16.msrb.mxu3 %v11070_v27  ;;  %v2529_v41 = vadd.f32 %v13965_v2, %v13958_v35 }
 0x3f9   : > { %v14118_v26 = vsel %vm16881_vm14, %v3155_v19, %v3156_v52  ;;  %v14122_v63 = vsel %vm16882_vm13, %v2912_v25, %v2913_v10  ;;  %v11086_v19 = vld [vmem:[%s16305_s3 + $0x80] sm:$0xff]  ;;  %v2196_v50 = vadd.f32 %v13950_v18, %v2050_v40  ;;  %v2772_v21 = vadd.f32 %v2759_v54, %v2658_v4  ;;  %vm16895_vm14 = vmmov %vm16892_vm3 }
 0x3fa   : > { %v2879_v32 = vpop.f32.mrf.mxu2  ;;  %v11094_v25 = vld [vmem:[%s16305_s3 + $0xc0] sm:$0xff]  ;;  %v14137_v62 = vpack.c.bf16 %v14118_v26, %v14081_v49  ;;  %3253 = vmatpush.bf16.msra.mxu1 %v11086_v19  ;;  %v2762_v27 = vpop.f32.mrf.mxu3 }
 0x3fb   : > { %v2893_v8 = vadd.f32 %v2879_v32, %v2771_v0  ;;  %3367 = vmatpush.bf16.msrb.mxu2 %v11094_v25  ;;  %v2648_v32 = vpop.f32.mrf.mxu0  ;;  %v16893_v18 = vld [vmem:[#allocation6_spill] sm:$0xff] }
 0x3fc   : > { %vm16894_vm1 = vnez %v16893_v18  ;;  %v11189_v18 = vld [vmem:[%s16306_s4 + $0x178] sm:$0xff] }
 0x3fd   : > { %v14142_v43 = vmax.f32 %v2893_v8, 0.0 }
 0x3ff   : > { %v2914_v1 = vrot.slane %v14142_v43, 7  ;;  %v3157_v53 = vrot.slane %v14142_v43, 1  ;;  %v14149_v46 = vpack.c.bf16 %v14142_v43, %v14096_v34 }
 0x401   : > { %v14154_v3 = vsel %vm16883_vm8, %v2913_v10, %v2914_v1  ;;  %v14158_v47 = vsel %vm16884_vm7, %v3156_v52, %v3157_v53  ;;  %v2310_v10 = vadd.f32 %v13948_v6, %v2196_v50  ;;  %v2659_v52 = vadd.f32 %v2648_v32, %v2529_v41 }
 0x402   : > { %v2881_v0 = vpop.f32.mrf.mxu2  ;;  %v14164_v22 = vpack.c.bf16 %v14154_v3, %v14122_v63  ;;  %vm16898_vm8 = vnez %v16783_v12  ;;  %v11132_v12 = vld [vmem:[%s16305_s3 + $0x1f0] sm:$0xff] }
 0x403   : > { %v2894_v54 = vadd.f32 %v2881_v0, %v2772_v21  ;;  %v2416_v25 = vadd.f32 %v13963_v14, %v2310_v10  ;;  %v2773_v8 = vadd.f32 %v2762_v27, %v2659_v52 }
 0x405   : > { %v14169_v19 = vmax.f32 %v2894_v54, 0.0  ;;  %v2530_v21 = vadd.f32 %v14000_v7, %v2416_v25  ;;  %v2650_v54 = vpop.f32.mrf.mxu0 }
 0x407   : > { %v2915_v2 = vrot.slane %v14169_v19, 7  ;;  %v3158_v35 = vrot.slane %v14169_v19, 1  ;;  %v2660_v32 = vadd.f32 %v2650_v54, %v2530_v21 }
 0x409   : > { %v14178_v40 = vsel %vm16885_vm5, %v3157_v53, %v3158_v35  ;;  %v14182_v6 = vsel %vm16886_vm9, %v2914_v1, %v2915_v2  ;;  %v2764_v53 = vpop.f32.mrf.mxu3 }
 0x40a   : > { %v2884_v50 = vpop.f32.mrf.mxu2  ;;  %v14186_v14 = vpack.c.bf16 %v14178_v40, %v14158_v47  ;;  %v2774_v52 = vadd.f32 %v2764_v53, %v2660_v32 }
 0x40b   : > { %v2895_v41 = vadd.f32 %v2884_v50, %v2773_v8  ;;  %v16889_v50 = vrot.slane %v13989_v55, 7 }
 0x40d   : > { %v14191_v0 = vmax.f32 %v2895_v41, 0.0 }
 0x40f   : > { %v2916_v27 = vrot.slane %v14191_v0, 7  ;;  %v3159_v1 = vrot.slane %v14191_v0, 1  ;;  %v14197_v10 = vpack.c.bf16 %v14191_v0, %v14169_v19 }
 0x411   : > { %v14201_v45 = vsel %vm16887_vm4, %v2915_v2, %v2916_v27  ;;  %v14205_v7 = vsel %vm16888_vm6, %v3158_v35, %v3159_v1  ;;  %vm16905_vm4 = vnez %v16800_v60  ;;  %vm16907_vm6 = vnez %v16792_v38 }
 0x412   : > { %v2886_v25 = vpop.f32.mrf.mxu2  ;;  %v14209_v8 = vpack.c.bf16 %v14201_v45, %v14182_v6 }
 0x413   : > { %v2896_v21 = vadd.f32 %v2886_v25, %v2774_v52  ;;  %v16891_v25 = vrot.slane %v13989_v55, 1 }
 0x415   : > { %v14213_v41 = vmax.f32 %v2896_v21, 0.0 }
 0x417   : > { %v2917_v54 = vrot.slane %v14213_v41, 7  ;;  %v14218_v2 = vpack.c.bf16 %v13989_v55, %v14213_v41  ;;  %v3160_v35 = vrot.slane %v14213_v41, 1 }
 0x419   : > { %v14225_v32 = vsel %vm16877_vm0, %v2916_v27, %v2917_v54  ;;  %v2925_v52 = vsel %vm16890_vm10, %v2917_v54, %v16889_v50  ;;  %v14235_v21 = vsel %vm16892_vm3, %v3160_v35, %v16891_v25  ;;  %8589 = vmatmul.msk.bf16.vlgmr.msra.gmra.mxu0 %vm16894_vm1, %v14218_v2  ;;  %v11117_v27 = vld [vmem:[%s16305_s3 + $0x178] sm:$0xff]  ;;  %v14245_v53 = vsel %vm16895_vm14, %v3159_v1, %v3160_v35  ;;  %v16896_v35 = vld [vmem:[#allocation8_spill] sm:$0xff] }
 0x41a   : > { %v14248_v50 = vpack.c.bf16 %v2925_v52, %v14225_v32  ;;  %v14252_v54 = vpack.c.bf16 %v14031_v39, %v14235_v21  ;;  %v8708_v25 = vpack.c.bf16 %v14025_v29, %v2925_v52  ;;  %v14257_v4 = vpack.c.bf16 %v14245_v53, %v14205_v7  ;;  %3580 = vmatpush.bf16.msrb.mxu0 %v11117_v27  ;;  %v16899_v29 = vld [vmem:[#allocation23_spill] sm:$0xff]  ;;  %v11109_v52 = vld [vmem:[%s16305_s3 + $0x138] sm:$0xff] }
 0x41b   : > { %vm16897_vm13 = vnez %v16896_v35  ;;  %vm16900_vm7 = vnez %v16899_v29  ;;  %v11125_v27 = vld [vmem:[%s16305_s3 + $0x1b8] sm:$0xff]  ;;  %3466 = vmatpush.bf16.msra.mxu3 %v11109_v52  ;;  %v11124_v29 = vld [vmem:[%s16305_s3 + $0x1b0] sm:$0xff]  ;;  %v11115_v35 = vld [vmem:[%s16305_s3 + $0x168] sm:$0xff]  ;;  %vm16912_vm3 = vnez %v16817_v11  ;;  %vm16914_vm14 = vnez %v16809_v17 }
 0x41c   : > { %8529 = vmatmul.msk.bf16.vlgmr.msrb.gmra.mxu3 %vm16897_vm13, %v14248_v50  ;;  %8649 = vmatmul.msk.bf16.vlgmr.msra.gmra.mxu1 %vm16898_vm8, %v14252_v54  ;;  %v11133_v1 = vld [vmem:[%s16305_s3 + $0x1f8] sm:$0xff]  ;;  %v11107_v52 = vld [vmem:[%s16305_s3 + $0x128] sm:$0xff] }
 0x41d   : > { %8709 = vmatmul.msk.bf16.vlgmr.msrb.gmra.mxu2 %vm16900_vm7, %v8708_v25  ;;  %3694 = vmatpush.bf16.msrb.mxu1 %v11125_v27  ;;  %v11108_v25 = vld [vmem:[%s16305_s3 + $0x130] sm:$0xff]  ;;  %v11123_v27 = vld [vmem:[%s16305_s3 + $0x1a8] sm:$0xff] }
 0x41e   : > { %3808 = vmatpush.bf16.msra.mxu2 %v11133_v1  ;;  %3581 = vmatpush.bf16.msrb.mxu0 %v11116_v33  ;;  %v11131_v33 = vld [vmem:[%s16305_s3 + $0x1e8] sm:$0xff]  ;;  %v11114_v1 = vld [vmem:[%s16305_s3 + $0x160] sm:$0xff] }
 0x41f   : > { %3467 = vmatpush.bf16.msra.mxu3 %v11108_v25  ;;  %v11130_v25 = vld [vmem:[%s16305_s3 + $0x1e0] sm:$0xff] }
 0x421   : > { %3695 = vmatpush.bf16.msrb.mxu1 %v11124_v29  ;;  %v16901_v29 = vld [vmem:[#allocation17_spill] sm:$0xff] }
 0x422   : > { %3809 = vmatpush.bf16.msra.mxu2 %v11132_v12  ;;  %3582 = vmatpush.bf16.msrb.mxu0 %v11115_v35  ;;  %vm16902_vm5 = vnez %v16901_v29  ;;  %v11106_v12 = vld [vmem:[%s16305_s3 + $0x120] sm:$0xff] }
 0x423   : > { %3468 = vmatpush.bf16.msra.mxu3 %v11107_v52  ;;  %v11122_v35 = vld [vmem:[%s16305_s3 + $0x1a0] sm:$0xff]  ;;  %v11113_v52 = vld [vmem:[%s16305_s3 + $0x158] sm:$0xff] }
 0x425   : > { %3696 = vmatpush.bf16.msrb.mxu1 %v11123_v27  ;;  %v16903_v27 = vld [vmem:[#allocation18_spill] sm:$0xff] }
 0x426   : > { %3810 = vmatpush.bf16.msra.mxu2 %v11131_v33  ;;  %3583 = vmatpush.bf16.msrb.mxu0 %v11114_v1  ;;  %vm16904_vm9 = vnez %v16903_v27  ;;  %v16906_v33 = vpack.c.bf16 %v14122_v63, %v14077_v57  ;;  %v11105_v1 = vld [vmem:[%s16305_s3 + $0x118] sm:$0xff]  ;;  %v11112_v57 = vld [vmem:[%s16305_s3 + $0x150] sm:$0xff] }
 0x427   : > { %3469 = vmatpush.bf16.msra.mxu3 %v11106_v12  ;;  %v11121_v12 = vld [vmem:[%s16305_s3 + $0x198] sm:$0xff]  ;;  %v11104_v63 = vld [vmem:[%s16305_s3 + $0x110] sm:$0xff] }
 0x428   : > { %v11201_v27 = vld [vmem:[%s16306_s4 + $0x1d8] sm:$0xff] }
 0x429   : > { %8592 = vmatmul.msk.bf16.gmra.mxu0 %vm16902_vm5, %v14063_v44  ;;  %3697 = vmatpush.bf16.msrb.mxu1 %v11122_v35  ;;  %v11129_v35 = vld [vmem:[%s16305_s3 + $0x1d8] sm:$0xff] }
 0x42a   : > { %3584 = vmatpush.bf16.msrb.mxu0 %v11113_v52  ;;  %3811 = vmatpush.bf16.msra.mxu2 %v11130_v25  ;;  %v11120_v52 = vld [vmem:[%s16305_s3 + $0x190] sm:$0xff]  ;;  %v11111_v25 = vld [vmem:[%s16305_s3 + $0x148] sm:$0xff] }
 0x42b   : > { %3470 = vmatpush.bf16.msra.mxu3 %v11105_v1  ;;  %v11103_v1 = vld [vmem:[%s16305_s3 + $0x108] sm:$0xff] }
 0x42c   : > { %8532 = vmatmul.msk.bf16.gmra.mxu3 %vm16904_vm9, %v14088_v37  ;;  %8652 = vmatmul.msk.bf16.gmra.mxu1 %vm16905_vm4, %v14137_v62 }
 0x42d   : > { %8712 = vmatmul.msk.bf16.gmra.mxu2 %vm16907_vm6, %v16906_v33  ;;  %3698 = vmatpush.bf16.msrb.mxu1 %v11121_v12  ;;  %v11128_v33 = vld [vmem:[%s16305_s3 + $0x1d0] sm:$0xff]  ;;  %v11119_v12 = vld [vmem:[%s16305_s3 + $0x188] sm:$0xff] }
 0x42e   : > { %3585 = vmatpush.bf16.msrb.mxu0 %v11112_v57  ;;  %3812 = vmatpush.bf16.msra.mxu2 %v11129_v35  ;;  %v11127_v35 = vld [vmem:[%s16305_s3 + $0x1c8] sm:$0xff]  ;;  %v11110_v57 = vld [vmem:[%s16305_s3 + $0x140] sm:$0xff] }
 0x42f   : > { %3471 = vmatpush.bf16.msra.mxu3 %v11104_v63  ;;  %v11102_v63 = vld [vmem:[%s16305_s3 + $0x100] sm:$0xff] }
 0x431   : > { %3699 = vmatpush.bf16.msrb.mxu1 %v11120_v52  ;;  %v16908_v52 = vld [vmem:[#allocation19_spill] sm:$0xff] }
 0x432   : > { %3586 = vmatpush.bf16.msrb.mxu0 %v11111_v25  ;;  %3813 = vmatpush.bf16.msra.mxu2 %v11128_v33  ;;  %vm16909_vm0 = vnez %v16908_v52  ;;  %v11118_v25 = vld [vmem:[%s16305_s3 + $0x180] sm:$0xff] }
 0x433   : > { %3472 = vmatpush.bf16.msra.mxu3 %v11103_v1  ;;  %v11126_v33 = vld [vmem:[%s16305_s3 + $0x1c0] sm:$0xff]  ;;  %v16910_v1 = vld [vmem:[#allocation20_spill] sm:$0xff] }
 0x434   : > { %vm16911_vm10 = vnez %v16910_v1  ;;  %v11158_v1 = vld [vmem:[%s16306_s4 + $0x80] sm:$0xff] }
 0x435   : > { %3700 = vmatpush.bf16.msrb.mxu1 %v11119_v12  ;;  %v16913_v12 = vpack.c.bf16 %v14182_v6, %v14154_v3  ;;  %v16922_v3 = vpack.c.bf16 %v14081_v49, %v14031_v39  ;;  %v16924_v6 = vpack.c.bf16 %v13998_v30, %v13989_v55  ;;  %v11140_v39 = vld [vmem:[%s16305_s3 + $0x230] sm:$0xff]  ;;  %v11139_v55 = vld [vmem:[%s16305_s3 + $0x228] sm:$0xff]  ;;  %v16929_v30 = vpack.c.bf16 %v14158_v47, %v14118_v26  ;;  %v11137_v26 = vld [vmem:[%s16305_s3 + $0x218] sm:$0xff] }
 0x436   : > { %3814 = vmatpush.bf16.msra.mxu2 %v11127_v35  ;;  %3587 = vmatpush.bf16.msrb.mxu0 %v11110_v57  ;;  %v16915_v35 = vld [vmem:[#allocation21_spill] sm:$0xff]  ;;  %v16917_v57 = vld [vmem:[#allocation22_spill] sm:$0xff]  ;;  %v16931_v49 = vpack.c.bf16 %v14096_v34, %v14047_v5  ;;  %v11136_v47 = vld [vmem:[%s16305_s3 + $0x210] sm:$0xff]  ;;  %v16936_v34 = vpack.c.bf16 %v14205_v7, %v14178_v40  ;;  %v16942_v40 = vpack.c.bf16 %v14235_v21, %v14245_v53 }
 0x437   : > { %3473 = vmatpush.bf16.msra.mxu3 %v11102_v63  ;;  %vm16918_vm6 = vnez %v16917_v57  ;;  %v16920_v63 = vpack.c.bf16 %v14225_v32, %v14201_v45  ;;  %v11141_v45 = vld [vmem:[%s16305_s3 + $0x238] sm:$0xff]  ;;  %v16934_v32 = vld [vmem:[#allocation4_spill] sm:$0xff]  ;;  %v11135_v5 = vld [vmem:[%s16305_s3 + $0x208] sm:$0xff]  ;;  %v16944_v7 = vpack.c.bf16 %v14213_v41, %v14191_v0 }
 0x439   : > { %8595 = vmatmul.msk.bf16.gmra.mxu0 %vm16909_vm0, %v14149_v46  ;;  %3701 = vmatpush.bf16.msrb.mxu1 %v11118_v25  ;;  %vm16916_vm0 = vnez %v16915_v35  ;;  %v16925_v25 = vld [vmem:[#allocation11_spill] sm:$0xff] }
 0x43a   : > { %3815 = vmatpush.bf16.msra.mxu2 %v11126_v33  ;;  %v16927_v33 = vld [vmem:[#allocation10_spill] sm:$0xff] }
 0x43b   : > { %3922 = vmatpush.bf16.msrb.mxu3 %v11141_v45 }
 0x43c   : > { %8535 = vmatmul.msk.bf16.gmra.mxu3 %vm16911_vm10, %v14164_v22  ;;  %8655 = vmatmul.msk.bf16.gmra.mxu1 %vm16912_vm3, %v14186_v14  ;;  %vm16919_vm10 = vnez %v16835_v42  ;;  %vm16921_vm3 = vnez %v16826_v15  ;;  %v11170_v42 = vld [vmem:[%s16306_s4 + $0xe0] sm:$0xff] }
 0x43d   : > { %8715 = vmatmul.msk.bf16.gmra.mxu2 %vm16914_vm14, %v16913_v12  ;;  %vm16923_vm14 = vnez %v16838_v20  ;;  %v16939_v12 = vld [vmem:[#allocation5_spill] sm:$0xff]  ;;  %v11171_v20 = vld [vmem:[%s16306_s4 + $0xe8] sm:$0xff] }
 0x43f   : > { %3923 = vmatpush.bf16.msrb.mxu3 %v11140_v39 }
 0x443   : > { %3924 = vmatpush.bf16.msrb.mxu3 %v11139_v55 }
 0x449   : > { %8598 = vmatmul.msk.bf16.gmra.mxu0 %vm16916_vm0, %v14197_v10 }
 0x44c   : > { %8538 = vmatmul.msk.bf16.gmra.mxu3 %vm16918_vm6, %v14209_v8  ;;  %8658 = vmatmul.msk.bf16.gmra.mxu1 %vm16919_vm10, %v14257_v4  ;;  %vm16926_vm6 = vnez %v16925_v25  ;;  %vm16928_vm10 = vnez %v16927_v33  ;;  %v11148_v33 = vld [vmem:[%s16306_s4 + $0x30] sm:$0xff] }
 0x44d   : > { %8718 = vmatmul.msk.bf16.gmra.mxu2 %vm16921_vm3, %v16920_v63  ;;  %v11172_v25 = vld [vmem:[%s16306_s4 + $0xf0] sm:$0xff] }
 0x459   : > { %8817 = vmatmul.msk.bf16.vlgmr.msrb.gmra.mxu0 %vm16923_vm14, %v16922_v3  ;;  %vm16935_vm14 = vnez %v16934_v32  ;;  %v11156_v32 = vld [vmem:[%s16306_s4 + $0x70] sm:$0xff] }
 0x45c   : > { %3474 = vmatmul.bf16.vlgmr.msra.gmra.mxu3 %v16924_v6  ;;  %8877 = vmatmul.msk.bf16.vlgmr.msrb.gmra.mxu1 %vm16926_vm6, %v14088_v37  ;;  %v16932_v37 = vld [vmem:[#allocation14_spill] sm:$0xff] }
 0x45d   : > { %8937 = vmatmul.msk.bf16.vlgmr.msra.gmra.mxu2 %vm16928_vm10, %v14063_v44  ;;  %vm16930_vm10 = vnez %v16841_v31  ;;  %v11138_v44 = vld [vmem:[%s16305_s3 + $0x220] sm:$0xff]  ;;  %vm16933_vm6 = vnez %v16932_v37 }
 0x45e   : > { %3925 = vmatpush.bf16.msrb.mxu3 %v11138_v44 }
 0x462   : > { %3926 = vmatpush.bf16.msrb.mxu3 %v11137_v26 }
 0x466   : > { %3927 = vmatpush.bf16.msrb.mxu3 %v11136_v47 }
 0x469   : > { %8820 = vmatmul.msk.bf16.gmra.mxu0 %vm16930_vm10, %v16929_v30  ;;  %vm16941_vm10 = vnez %v16852_v23  ;;  %v11165_v23 = vld [vmem:[%s16306_s4 + $0xb8] sm:$0xff] }
 0x46a   : > { %3928 = vmatpush.bf16.msrb.mxu3 %v11135_v5  ;;  %4316 = vmatpush.bf16.msrb.mxu2 %v11165_v23  ;;  %v11155_v23 = vld [vmem:[%s16306_s4 + $0x68] sm:$0xff] }
 0x46c   : > { %3479 = vmatmul.bf16.gmra.mxu3 %v16931_v49  ;;  %8880 = vmatmul.msk.bf16.gmra.mxu1 %vm16933_vm6, %v14164_v22  ;;  %v16938_v22 = vpack.c.bf16 %v14169_v19, %v14142_v43  ;;  %vm16940_vm6 = vnez %v16939_v12  ;;  %v16945_v43 = vld [vmem:[#allocation16_spill] sm:$0xff]  ;;  %v11173_v12 = vld [vmem:[%s16306_s4 + $0xf8] sm:$0xff] }
 0x46d   : > { %8940 = vmatmul.msk.bf16.gmra.mxu2 %vm16935_vm14, %v14149_v46  ;;  %vm16937_vm14 = vnez %v16844_v58  ;;  %v11134_v46 = vld [vmem:[%s16305_s3 + $0x200] sm:$0xff]  ;;  %vm16946_vm3 = vnez %v16945_v43 }
 0x46e   : > { %3929 = vmatpush.bf16.msrb.mxu3 %v11134_v46 }
 0x472   : > { %4430 = vmatpush.bf16.msra.mxu3 %v11173_v12  ;;  %v11163_v12 = vld [vmem:[%s16306_s4 + $0xa8] sm:$0xff] }
 0x476   : > { %4431 = vmatpush.bf16.msra.mxu3 %v11172_v25  ;;  %v11146_v25 = vld [vmem:[%s16306_s4 + $0x20] sm:$0xff] }
 0x479   : > { %8823 = vmatmul.msk.bf16.gmra.mxu0 %vm16937_vm14, %v16936_v34  ;;  %vm16943_vm14 = vnez %v16847_v59 }
 0x47a   : > { %4432 = vmatpush.bf16.msra.mxu3 %v11171_v20  ;;  %v11153_v20 = vld [vmem:[%s16306_s4 + $0x58] sm:$0xff] }
 0x47c   : > { %3484 = vmatmul.bf16.gmra.mxu3 %v16938_v22  ;;  %8883 = vmatmul.msk.bf16.gmra.mxu1 %vm16940_vm6, %v14209_v8  ;;  %v14492_v8 = vld [vmem:[%s16314_s12 + $0x2] ss:$0 sm:$0xff] }
 0x47d   : > { %8943 = vmatmul.msk.bf16.gmra.mxu2 %vm16941_vm10, %v14197_v10  ;;  %vm16947_vm10 = vnez %v16857_v51 }
 0x47e   : > { %4433 = vmatpush.bf16.msra.mxu3 %v11170_v42  ;;  %v11152_v42 = vld [vmem:[%s16306_s4 + $0x50] sm:$0xff] }
 0x489   : > { %8826 = vmatmul.msk.bf16.gmra.mxu0 %vm16943_vm14, %v16942_v40 }
 0x48c   : > { %3489 = vmatmul.bf16.gmra.mxu3 %v16944_v7  ;;  %8886 = vmatmul.msk.bf16.gmra.mxu1 %vm16946_vm3, %v14248_v50 }
 0x48d   : > { %8946 = vmatmul.msk.bf16.gmra.mxu2 %vm13890_vm11, %v14218_v2 }
 0x496   : > { %v3125_v19 = vpop.f32.mrf.mxu0 }
 0x499   : > { %v3255_v10 = vpop.f32.mrf.mxu1 }
 0x49c   : > { %8997 = vmatmul.msk.bf16.vlgmr.msrb.gmra.mxu3 %vm16947_vm10, %v14137_v62 }
 0x49e   : > { %v14494_v0 = vpop.f32.mrf.mxu0 }
 0x49f   : > { %v3011_v41 = vpop.f32.mrf.mxu3 }
 0x4a0   : > { %v3031_v53 = vadd.f32 %v14492_v8, %v3011_v41  ;;  %v3369_v21 = vpop.f32.mrf.mxu2 }
 0x4a1   : > { %v14497_v50 = vpop.f32.mrf.mxu1 }
 0x4a2   : > { %v3145_v2 = vadd.f32 %v3125_v19, %v3031_v53 }
 0x4a4   : > { %v3275_v63 = vadd.f32 %v3255_v10, %v3145_v2 }
 0x4a6   : > { %v3389_v3 = vadd.f32 %v3369_v21, %v3275_v63  ;;  %v3130_v62 = vpop.f32.mrf.mxu0 }
 0x4a7   : > { %v14499_v6 = vpop.f32.mrf.mxu3 }
 0x4a8   : > { %v14501_v45 = vpop.f32.mrf.mxu2  ;;  %v3032_v57 = vadd.f32 %v14492_v8, %v14499_v6  ;;  %v11169_v6 = vld [vmem:[%s16306_s4 + $0xd8] sm:$0xff] }
 0x4a9   : > { %v3260_v39 = vpop.f32.mrf.mxu1  ;;  %4434 = vmatpush.bf16.msra.mxu3 %v11169_v6 }
 0x4ac   : > { %9000 = vmatmul.msk.bf16.gmra.mxu3 %vm13905_vm12, %v14186_v14 }
 0x4ae   : > { %v14507_v26 = vpop.f32.mrf.mxu0 }
 0x4af   : > { %v3016_v55 = vpop.f32.mrf.mxu3 }
 0x4b0   : > { %v3033_v30 = vadd.f32 %v14492_v8, %v3016_v55  ;;  %v3374_v44 = vpop.f32.mrf.mxu2 }
 0x4b1   : > { %v14509_v5 = vpop.f32.mrf.mxu1 }
 0x4b2   : > { %v3147_v49 = vadd.f32 %v3130_v62, %v3033_v30 }
 0x4b4   : > { %v3277_v47 = vadd.f32 %v3260_v39, %v3147_v49 }
 0x4b6   : > { %v3391_v34 = vadd.f32 %v3374_v44, %v3277_v47  ;;  %v3135_v14 = vpop.f32.mrf.mxu0 }
 0x4b7   : > { %v14511_v46 = vpop.f32.mrf.mxu3 }
 0x4b8   : > { %v14513_v22 = vpop.f32.mrf.mxu2 }
 0x4b9   : > { %v3265_v40 = vpop.f32.mrf.mxu1 }
 0x4bc   : > { %9003 = vmatmul.msk.bf16.gmra.mxu3 %vm13922_vm2, %v14257_v4  ;;  %vm16949_vm2 = vcmp.lt.s32.totalorder %v11680_v16, 1 }
 0x4bd   : > { %vm16950_vm12 = vmmov %vm16949_vm2 }
 0x4be   : > { %v14519_v2 = vpop.f32.mrf.mxu0 }
 0x4bf   : > { %v3021_v7 = vpop.f32.mrf.mxu3 }
 0x4c0   : > { %v3035_v19 = vadd.f32 %v14492_v8, %v3021_v7  ;;  %v3379_v10 = vpop.f32.mrf.mxu2 }
 0x4c1   : > { %v14523_v62 = vpop.f32.mrf.mxu1 }
 0x4c2   : > { %v3149_v41 = vadd.f32 %v3135_v14, %v3035_v19 }
 0x4c4   : > { %v3279_v53 = vadd.f32 %v3265_v40, %v3149_v41 }
 0x4c6   : > { %v3393_v21 = vadd.f32 %v3379_v10, %v3279_v53  ;;  %v3140_v30 = vpop.f32.mrf.mxu0 }
 0x4c7   : > { %v14521_v63 = vpop.f32.mrf.mxu3 }
 0x4c8   : > { %v14525_v39 = vpop.f32.mrf.mxu2 }
 0x4c9   : > { %v3270_v49 = vpop.f32.mrf.mxu1 }
 0x4cc   : > { %9006 = vmatmul.msk.bf16.gmra.mxu3 %vm13941_vm15, %v14252_v54  ;;  %vm16948_vm15 = vcmp.lt.s32.totalorder %v11680_v16, 7 }
 0x4cd   : > { %vm16951_vm10 = vmmov %vm16948_vm15 }
 0x4ce   : > { %v14541_v56 = vpop.f32.mrf.mxu0 }
 0x4cf   : > { %v3026_v4 = vpop.f32.mrf.mxu3 }
 0x4d0   : > { %v3037_v55 = vadd.f32 %v14492_v8, %v3026_v4  ;;  %v3384_v14 = vpop.f32.mrf.mxu2 }
 0x4d2   : > { %v3151_v44 = vadd.f32 %v3140_v30, %v3037_v55  ;;  %v14545_v30 = vpop.f32.mrf.mxu1 }
 0x4d4   : > { %v3281_v47 = vadd.f32 %v3270_v49, %v3151_v44 }
 0x4d6   : > { %v3395_v40 = vadd.f32 %v3384_v14, %v3281_v47  ;;  %v14549_v49 = vpop.f32.mrf.mxu0 }
 0x4d7   : > { %v14531_v7 = vpop.f32.mrf.mxu3 }
 0x4d8   : > { %v14547_v44 = vpop.f32.mrf.mxu2 }
 0x4da   : > { %v14553_v47 = vpop.f32.mrf.mxu1 }
 0x4df   : > { %v3475_v19 = vpop.f32.mrf.mxu3 }
 0x4e0   : > { %v14533_v10 = vadd.f32 %v3475_v19, %v3389_v3  ;;  %v14555_v14 = vpop.f32.mrf.mxu2 }
 0x4e2   : > { %v14561_v24 = vpop.f32.mrf.mxu1 }
 0x4e7   : > { %v14535_v41 = vpop.f32.mrf.mxu3 }
 0x4ea   : > { %v14569_v61 = vpop.f32.mrf.mxu1 }
 0x4ef   : > { %v3480_v53 = vpop.f32.mrf.mxu3 }
 0x4f0   : > { %v14537_v13 = vadd.f32 %v3480_v53, %v3391_v34  ;;  %v14559_v53 = vpop.f32.mrf.mxu0 }
 0x4f2   : > { %v14594_v31 = vpop.f32.mrf.mxu1 }
 0x4f7   : > { %v14539_v54 = vpop.f32.mrf.mxu3 }
 0x4f8   : > { %v14567_v51 = vpop.f32.mrf.mxu0 }
 0x4fa   : > { %v14637_v35 = vpop.f32.mrf.mxu1 }
 0x4ff   : > { %v3485_v4 = vpop.f32.mrf.mxu3 }
 0x500   : > { %v14543_v55 = vadd.f32 %v3485_v4, %v3393_v21  ;;  %v14565_v4 = vpop.f32.mrf.mxu2  ;;  %v14587_v58 = vpop.f32.mrf.mxu0 }
 0x502   : > { %v14676_v6 = vpop.f32.mrf.mxu1 }
 0x507   : > { %v14551_v3 = vpop.f32.mrf.mxu3 }
 0x508   : > { %v14573_v59 = vpop.f32.mrf.mxu2 }
 0x50f   : > { %v3490_v34 = vpop.f32.mrf.mxu3 }
 0x510   : > { %v14557_v19 = vadd.f32 %v3490_v34, %v3395_v40  ;;  %v11157_v40 = vld [vmem:[%s16306_s4 + $0x78] sm:$0xff] }
 0x511   : > { %v11149_v34 = vld [vmem:[%s16306_s4 + $0x38] sm:$0xff]  ;;  %4186 = vmatpush.bf16.msra.mxu1 %v11157_v40  ;;  %v11164_v40 = vld [vmem:[%s16306_s4 + $0xb0] sm:$0xff] }
 0x512   : > { %4072 = vmatpush.bf16.msra.mxu0 %v11149_v34  ;;  %4317 = vmatpush.bf16.msrb.mxu2 %v11164_v40  ;;  %v14614_v34 = vpop.f32.mrf.mxu2  ;;  %v14622_v40 = vpop.f32.mrf.mxu0 }
 0x515   : > { %4187 = vmatpush.bf16.msra.mxu1 %v11156_v32  ;;  %v11147_v32 = vld [vmem:[%s16306_s4 + $0x28] sm:$0xff] }
 0x516   : > { %4073 = vmatpush.bf16.msra.mxu0 %v11148_v33  ;;  %v11154_v33 = vld [vmem:[%s16306_s4 + $0x60] sm:$0xff]  ;;  %4318 = vmatpush.bf16.msrb.mxu2 %v11163_v12  ;;  %v11161_v12 = vld [vmem:[%s16306_s4 + $0x98] sm:$0xff] }
 0x517   : > { %v14563_v21 = vpop.f32.mrf.mxu3 }
 0x519   : > { %4188 = vmatpush.bf16.msra.mxu1 %v11155_v23  ;;  %v11162_v23 = vld [vmem:[%s16306_s4 + $0xa0] sm:$0xff] }
 0x51a   : > { %4074 = vmatpush.bf16.msra.mxu0 %v11147_v32  ;;  %4319 = vmatpush.bf16.msrb.mxu2 %v11162_v23  ;;  %v11145_v32 = vld [vmem:[%s16306_s4 + $0x18] sm:$0xff]  ;;  %v14652_v17 = vpop.f32.mrf.mxu2  ;;  %v14659_v23 = vpop.f32.mrf.mxu0 }
 0x51d   : > { %4189 = vmatpush.bf16.msra.mxu1 %v11154_v33  ;;  %v3146_v33 = vadd.f32 %v14494_v0, %v3032_v57  ;;  %v11160_v57 = vld [vmem:[%s16306_s4 + $0x90] sm:$0xff] }
 0x51e   : > { %4075 = vmatpush.bf16.msra.mxu0 %v11146_v25  ;;  %4320 = vmatpush.bf16.msrb.mxu2 %v11161_v12  ;;  %v11168_v0 = vld [vmem:[%s16306_s4 + $0xd0] sm:$0xff]  ;;  %v3038_v12 = vadd.f32 %v14492_v8, %v14531_v7 }
 0x51f   : > { %v14571_v43 = vpop.f32.mrf.mxu3  ;;  %v3276_v11 = vadd.f32 %v14497_v50, %v3146_v33  ;;  %4435 = vmatpush.bf16.msra.mxu3 %v11168_v0  ;;  %v11159_v50 = vld [vmem:[%s16306_s4 + $0x88] sm:$0xff] }
 0x520   : > { %v11167_v33 = vld [vmem:[%s16306_s4 + $0xc8] sm:$0xff]  ;;  %v3152_v0 = vadd.f32 %v14541_v56, %v3038_v12  ;;  %v11166_v56 = vld [vmem:[%s16306_s4 + $0xc0] sm:$0xff] }
 0x521   : > { %4190 = vmatpush.bf16.msra.mxu1 %v11153_v20  ;;  %v11144_v20 = vld [vmem:[%s16306_s4 + $0x10] sm:$0xff]  ;;  %v3390_v7 = vadd.f32 %v14501_v45, %v3276_v11  ;;  %v3034_v11 = vadd.f32 %v14492_v8, %v14511_v46  ;;  %v3609_v46 = vadd.f32 %v14549_v49, %v14533_v10 }
 0x522   : > { %4076 = vmatpush.bf16.msra.mxu0 %v11145_v32  ;;  %v11151_v32 = vld [vmem:[%s16306_s4 + $0x48] sm:$0xff]  ;;  %4321 = vmatpush.bf16.msrb.mxu2 %v11160_v57  ;;  %v11150_v57 = vld [vmem:[%s16306_s4 + $0x40] sm:$0xff]  ;;  %v14703_v52 = vpop.f32.mrf.mxu2  ;;  %v3604_v12 = vpop.f32.mrf.mxu0 }
 0x523   : > { %v3496_v45 = vadd.f32 %v14535_v41, %v3390_v7  ;;  %4436 = vmatpush.bf16.msra.mxu3 %v11167_v33  ;;  %v3718_v41 = vpop.f32.mrf.mxu1 }
 0x525   : > { %4191 = vmatpush.bf16.msra.mxu1 %v11152_v42  ;;  %v11143_v42 = vld [vmem:[%s16306_s4 + $0x8] sm:$0xff]  ;;  %v3610_v38 = vadd.f32 %v14559_v53, %v3496_v45 }
 0x526   : > { %4077 = vmatpush.bf16.msra.mxu0 %v11144_v20  ;;  %4322 = vmatpush.bf16.msrb.mxu2 %v11159_v50  ;;  %v3148_v50 = vadd.f32 %v14507_v26, %v3034_v11  ;;  %v3723_v26 = vadd.f32 %v14553_v47, %v3609_v46 }
 0x527   : > { %v14592_v37 = vpop.f32.mrf.mxu3  ;;  %4437 = vmatpush.bf16.msra.mxu3 %v11166_v56 }
 0x528   : > { %v3278_v60 = vadd.f32 %v14509_v5, %v3148_v50 }
 0x529   : > { %4192 = vmatpush.bf16.msra.mxu1 %v11151_v32  ;;  %v11142_v32 = vld [vmem:[%s16306_s4] sm:$0xff] }
 0x52a   : > { %4078 = vmatpush.bf16.msra.mxu0 %v11143_v42  ;;  %v3282_v42 = vadd.f32 %v14545_v30, %v3152_v0  ;;  %4323 = vmatpush.bf16.msrb.mxu2 %v11158_v1  ;;  %v3724_v30 = vadd.f32 %v14561_v24, %v3610_v38  ;;  %v3832_v53 = vpop.f32.mrf.mxu2  ;;  %v3606_v49 = vpop.f32.mrf.mxu0  ;;  %v3036_v38 = vadd.f32 %v14492_v8, %v14521_v63 }
 0x52b   : > { %v3720_v47 = vpop.f32.mrf.mxu1 }
 0x52c   : > { %v3396_v7 = vadd.f32 %v14547_v44, %v3282_v42  ;;  %v3838_v10 = vadd.f32 %v14565_v4, %v3724_v30  ;;  %v3837_v44 = vadd.f32 %v14555_v14, %v3723_v26 }
 0x52d   : > { %4193 = vmatpush.bf16.msra.mxu1 %v11150_v57  ;;  %v3615_v57 = vadd.f32 %v3604_v12, %v14557_v19 }
 0x52e   : > { %4079 = vmatpush.bf16.msra.mxu0 %v11142_v32  ;;  %v3502_v1 = vadd.f32 %v14563_v21, %v3396_v7  ;;  %v3392_v32 = vadd.f32 %v14513_v22, %v3278_v60  ;;  %v3952_v5 = vadd.f32 %v14592_v37, %v3838_v10  ;;  %v3951_v21 = vadd.f32 %v14571_v43, %v3837_v44 }
 0x52f   : > { %v14624_v15 = vpop.f32.mrf.mxu3  ;;  %v3729_v0 = vadd.f32 %v3718_v41, %v3615_v57  ;;  %v3611_v22 = vadd.f32 %v14567_v51, %v14537_v13 }
 0x530   : > { %v3616_v11 = vadd.f32 %v3606_v49, %v3502_v1  ;;  %v3498_v19 = vadd.f32 %v14539_v54, %v3392_v32  ;;  %v3960_v14 = vadd.f32 %v3952_v5, %v12989_v28  ;;  %v3150_v54 = vadd.f32 %v14519_v2, %v3036_v38  ;;  %v16953_v32 = vld [vmem:[#allocation9_spill] sm:$0xff] }
 0x531   : > { %v3843_v24 = vadd.f32 %v3832_v53, %v3729_v0  ;;  %v3959_v12 = vadd.f32 %v3951_v21, %v13009_v36  ;;  %v3725_v63 = vadd.f32 %v14569_v61, %v3611_v22  ;;  %4650 = vmatpush.bf16.msrb.mxu1 %v11189_v18  ;;  %v11205_v22 = vld [vmem:[%s16306_s4 + $0x1f8] sm:$0xff]  ;;  %v11183_v21 = vld [vmem:[%s16306_s4 + $0x148] sm:$0xff] }
 0x532   : > { %v3730_v56 = vadd.f32 %v3720_v47, %v3616_v11  ;;  %v3612_v4 = vadd.f32 %v14587_v58, %v3498_v19  ;;  %v3834_v37 = vpop.f32.mrf.mxu2  ;;  %v14738_v50 = vmax.f32 %v3960_v14, 0.0  ;;  %v3280_v51 = vadd.f32 %v14523_v62, %v3150_v54  ;;  %v16954_v19 = vld [vmem:[#allocation12_spill] sm:$0xff]  ;;  %4878 = vmatpush.bf16.msrb.mxu3 %v11205_v22 }
 0x533   : > { %v14741_v13 = vmax.f32 %v3959_v12, 0.0  ;;  %v3839_v36 = vadd.f32 %v14573_v59, %v3725_v63  ;;  %v11196_v14 = vld [vmem:[%s16306_s4 + $0x1b0] sm:$0xff] }
 0x534   : > { %v3844_v42 = vadd.f32 %v3834_v37, %v3730_v56  ;;  %v3726_v43 = vadd.f32 %v14594_v31, %v3612_v4  ;;  %v4224_v61 = vrot.slane %v14738_v50, 1  ;;  %v3394_v31 = vadd.f32 %v14525_v39, %v3280_v51  ;;  %v11181_v56 = vld [vmem:[%s16306_s4 + $0x138] sm:$0xff]  ;;  %v11204_v54 = vld [vmem:[%s16306_s4 + $0x1f0] sm:$0xff]  ;;  %v11187_v37 = vld [vmem:[%s16306_s4 + $0x168] sm:$0xff] }
 0x535   : > { %v3981_v41 = vrot.slane %v14738_v50, 7  ;;  %v3980_v62 = vrot.slane %v14741_v13, 7  ;;  %v4223_v57 = vrot.slane %v14741_v13, 1  ;;  %v3953_v30 = vadd.f32 %v14624_v15, %v3839_v36  ;;  %4536 = vmatpush.bf16.msrb.mxu0 %v11181_v56  ;;  %v11200_v56 = vld [vmem:[%s16306_s4 + $0x1d0] sm:$0xff] }
 0x536   : > { %v3500_v26 = vadd.f32 %v14551_v3, %v3394_v31  ;;  %4879 = vmatpush.bf16.msrb.mxu3 %v11204_v54 }
 0x537   : > { %v14654_v25 = vpop.f32.mrf.mxu3  ;;  %v14769_v53 = vsel %vm16948_vm15, %v4223_v57, %v4224_v61  ;;  %vm16952_vm15 = vmmov %vm16949_vm2  ;;  %v3961_v10 = vadd.f32 %v3953_v30, %v16953_v32 }
 0x538   : > { %v3994_v0 = vsel %vm16952_vm15, %v3980_v62, %v3981_v41  ;;  %v3614_v47 = vadd.f32 %v14659_v23, %v3500_v26  ;;  %v11180_v23 = vld [vmem:[%s16306_s4 + $0x130] sm:$0xff] }
 0x539   : > { %v14822_v4 = vmax.f32 %v3961_v10, 0.0  ;;  %4537 = vmatpush.bf16.msrb.mxu0 %v11180_v23  ;;  %v16965_v10 = vld [vmem:[#allocation25_spill] sm:$0xff]  ;;  %v11191_v23 = vld [vmem:[%s16306_s4 + $0x188] sm:$0xff] }
 0x53b   : > { %v4225_v36 = vrot.slane %v14822_v4, 1 }
 0x53f   : > { %v14688_v20 = vpop.f32.mrf.mxu3 }
 0x547   : > { %v14713_v33 = vpop.f32.mrf.mxu3 }
 0x54f   : > { %v3946_v45 = vpop.f32.mrf.mxu3 }
 0x550   : > { %v3957_v60 = vadd.f32 %v3946_v45, %v3843_v24  ;;  %v3613_v24 = vadd.f32 %v14622_v40, %v14543_v55  ;;  %v11188_v55 = vld [vmem:[%s16306_s4 + $0x170] sm:$0xff] }
 0x551   : > { %4651 = vmatpush.bf16.msrb.mxu1 %v11188_v55  ;;  %v11175_v55 = vld [vmem:[%s16306_s4 + $0x108] sm:$0xff] }
 0x552   : > { %v3965_v8 = vadd.f32 %v3957_v60, %v13202_v48  ;;  %v3840_v48 = vadd.f32 %v14614_v34, %v3726_v43  ;;  %v11197_v60 = vld [vmem:[%s16306_s4 + $0x1b8] sm:$0xff]  ;;  %v3727_v12 = vadd.f32 %v14637_v35, %v3613_v24  ;;  %v11179_v43 = vld [vmem:[%s16306_s4 + $0x128] sm:$0xff]  ;;  %v11176_v24 = vld [vmem:[%s16306_s4 + $0x110] sm:$0xff] }
 0x553   : > { %4764 = vmatpush.bf16.msra.mxu2 %v11197_v60  ;;  %v11203_v35 = vld [vmem:[%s16306_s4 + $0x1e8] sm:$0xff]  ;;  %4538 = vmatpush.bf16.msrb.mxu0 %v11179_v43 }
 0x554   : > { %v14743_v28 = vmax.f32 %v3965_v8, 0.0  ;;  %v3982_v8 = vrot.slane %v14822_v4, 7  ;;  %4880 = vmatpush.bf16.msrb.mxu3 %v11203_v35 }
 0x555   : > { %4652 = vmatpush.bf16.msrb.mxu1 %v11187_v37  ;;  %v11199_v37 = vld [vmem:[%s16306_s4 + $0x1c8] sm:$0xff] }
 0x556   : > { %v3986_v59 = vrot.slane %v14743_v28, 7 }
 0x557   : > { %v3948_v46 = vpop.f32.mrf.mxu3  ;;  %4765 = vmatpush.bf16.msra.mxu2 %v11196_v14 }
 0x558   : > { %v3958_v58 = vadd.f32 %v3948_v46, %v3844_v42  ;;  %v3728_v42 = vadd.f32 %v14676_v6, %v3614_v47  ;;  %v11195_v46 = vld [vmem:[%s16306_s4 + $0x1a8] sm:$0xff]  ;;  %v11186_v6 = vld [vmem:[%s16306_s4 + $0x160] sm:$0xff]  ;;  %v11192_v47 = vld [vmem:[%s16306_s4 + $0x190] sm:$0xff] }
 0x559   : > { %4653 = vmatpush.bf16.msrb.mxu1 %v11186_v6  ;;  %v16970_v6 = vld [vmem:[#allocation19_spill] sm:$0xff] }
 0x55a   : > { %v3966_v2 = vadd.f32 %v3958_v58, %v13248_v9  ;;  %v3954_v9 = vadd.f32 %v14654_v25, %v3840_v48  ;;  %v3841_v58 = vadd.f32 %v14652_v17, %v3727_v12  ;;  %v14863_v48 = vpack.c.bf16 %v14822_v4, %v14738_v50  ;;  %v11182_v12 = vld [vmem:[%s16306_s4 + $0x140] sm:$0xff] }
 0x55b   : > { %4766 = vmatpush.bf16.msra.mxu2 %v11195_v46  ;;  %v11174_v46 = vld [vmem:[%s16306_s4 + $0x100] sm:$0xff] }
 0x55c   : > { %v14751_v7 = vmax.f32 %v3966_v2, 0.0  ;;  %v3962_v5 = vadd.f32 %v3954_v9, %v16954_v19  ;;  %v3842_v2 = vadd.f32 %v14703_v52, %v3728_v42  ;;  %v11202_v9 = vld [vmem:[%s16306_s4 + $0x1e0] sm:$0xff]  ;;  %v11193_v19 = vld [vmem:[%s16306_s4 + $0x198] sm:$0xff] }
 0x55d   : > { %4881 = vmatpush.bf16.msrb.mxu3 %v11202_v9  ;;  %v4229_v9 = vrot.slane %v14743_v28, 1 }
 0x55e   : > { %v3987_v34 = vrot.slane %v14751_v7, 7  ;;  %v14761_v1 = vpack.c.bf16 %v14741_v13, %v14751_v7  ;;  %v4230_v39 = vrot.slane %v14751_v7, 1  ;;  %v14827_v40 = vmax.f32 %v3962_v5, 0.0  ;;  %v11184_v5 = vld [vmem:[%s16306_s4 + $0x150] sm:$0xff] }
 0x560   : > { %9102 = vmatmul.msk.bf16.vlgmr.msra.gmra.mxu1 %vm16894_vm1, %v14761_v1  ;;  %v14778_v15 = vsel %vm16949_vm2, %v3986_v59, %v3987_v34  ;;  %v3995_v25 = vsel %vm16950_vm12, %v3987_v34, %v3980_v62  ;;  %v14786_v3 = vsel %vm16951_vm10, %v4230_v39, %v4223_v57  ;;  %v4226_v63 = vrot.slane %v14827_v40, 1  ;;  %vm16958_vm12 = vmmov %vm16949_vm2  ;;  %v16962_v34 = vld [vmem:[#allocation13_spill] sm:$0xff] }
 0x561   : > { %v14795_v49 = vpack.c.bf16 %v3995_v25, %v14778_v15  ;;  %v14799_v11 = vpack.c.bf16 %v14769_v53, %v14786_v3  ;;  %v9221_v44 = vpack.c.bf16 %v3994_v0, %v3995_v25  ;;  %v3983_v51 = vrot.slane %v14827_v40, 7  ;;  %vm16959_vm2 = vmmov %vm16951_vm10  ;;  %v16963_v25 = vld [vmem:[#allocation15_spill] sm:$0xff]  ;;  %4882 = vmatpush.bf16.msrb.mxu3 %v11201_v27  ;;  %v11210_v27 = vld [vmem:[%s16306_s4 + $0x220] sm:$0xff] }
 0x562   : > { %v3993_v31 = vsel %vm16958_vm12, %v3981_v41, %v3982_v8  ;;  %v3955_v62 = vadd.f32 %v14688_v20, %v3841_v58  ;;  %v3956_v57 = vadd.f32 %v14713_v33, %v3842_v2  ;;  %v14873_v17 = vsel %vm16959_vm2, %v4225_v36, %v4226_v63  ;;  %vm16960_vm1 = vmmov %vm16958_vm12  ;;  %v11178_v33 = vld [vmem:[%s16306_s4 + $0x120] sm:$0xff] }
 0x563   : > { %9042 = vmatmul.msk.bf16.vlgmr.msra.gmra.mxu0 %vm16897_vm13, %v14795_v49  ;;  %9162 = vmatmul.msk.bf16.vlgmr.msrb.gmra.mxu2 %vm16898_vm8, %v14799_v11  ;;  %v3992_v52 = vsel %vm16960_vm1, %v3982_v8, %v3983_v51  ;;  %vm16961_vm13 = vmmov %vm16959_vm2  ;;  %v11194_v41 = vld [vmem:[%s16306_s4 + $0x1a0] sm:$0xff]  ;;  %v14894_v30 = vpack.c.bf16 %v3993_v31, %v3994_v0  ;;  %vm16966_vm8 = vnez %v16965_v10 }
 0x564   : > { %9222 = vmatmul.msk.bf16.vlgmr.msra.gmra.mxu3 %vm16900_vm7, %v9221_v44  ;;  %v14886_v20 = vsel %vm16961_vm13, %v4224_v61, %v4225_v36  ;;  %v11185_v61 = vld [vmem:[%s16306_s4 + $0x158] sm:$0xff]  ;;  %v3963_v26 = vadd.f32 %v3955_v62, %v16962_v34  ;;  %v3964_v18 = vadd.f32 %v3956_v57, %v16963_v25  ;;  %v9224_v32 = vpack.c.bf16 %v3992_v52, %v3993_v31  ;;  %vm16967_vm7 = vmmov %vm16960_vm1  ;;  %v11190_v58 = vld [vmem:[%s16306_s4 + $0x180] sm:$0xff] }
 0x565   : > { %v14898_v29 = vpack.c.bf16 %v14873_v17, %v14886_v20  ;;  %4539 = vmatpush.bf16.msrb.mxu0 %v11178_v33  ;;  %4767 = vmatpush.bf16.msra.mxu2 %v11194_v41  ;;  %v11177_v44 = vld [vmem:[%s16306_s4 + $0x118] sm:$0xff]  ;;  %vm16972_vm10 = vmmov %vm16959_vm2  ;;  %v11198_v31 = vld [vmem:[%s16306_s4 + $0x1c0] sm:$0xff] }
 0x566   : > { %4654 = vmatpush.bf16.msrb.mxu1 %v11185_v61  ;;  %v14928_v45 = vmax.f32 %v3963_v26, 0.0  ;;  %v14930_v38 = vmax.f32 %v3964_v18, 0.0  ;;  %4883 = vmatpush.bf16.msrb.mxu3 %v11200_v56  ;;  %v16973_v57 = vld [vmem:[#allocation20_spill] sm:$0xff]  ;;  %v11213_v33 = vld [vmem:[%s16306_s4 + $0x238] sm:$0xff]  ;;  %v4467_v56 = vpack.c.bf16 %v14738_v50, %v14741_v13 }
 0x567   : > { %vm16974_vm15 = vnez %v16973_v57  ;;  %v11212_v41 = vld [vmem:[%s16306_s4 + $0x230] sm:$0xff] }
 0x568   : > { %v3984_v60 = vrot.slane %v14928_v45, 7  ;;  %v4228_v22 = vrot.slane %v14930_v38, 1  ;;  %v3985_v14 = vrot.slane %v14930_v38, 7  ;;  %v4227_v54 = vrot.slane %v14928_v45, 1 }
 0x569   : > { %4540 = vmatpush.bf16.msrb.mxu0 %v11177_v44  ;;  %4768 = vmatpush.bf16.msra.mxu2 %v11193_v19  ;;  %v14962_v42 = vpack.c.bf16 %v14928_v45, %v14827_v40  ;;  %v9110_v61 = vpack.c.bf16 %v14743_v28, %v14930_v38  ;;  %v16982_v44 = vld [vmem:[#allocation22_spill] sm:$0xff]  ;;  %v16986_v19 = vld [vmem:[#allocation29_spill] sm:$0xff] }
 0x56a   : > { %4655 = vmatpush.bf16.msrb.mxu1 %v11184_v5  ;;  %v3991_v8 = vsel %vm16967_vm7, %v3983_v51, %v3984_v60  ;;  %v4234_v51 = vsel %vm16972_vm10, %v4226_v63, %v4227_v54  ;;  %4884 = vmatpush.bf16.msrb.mxu3 %v11199_v37  ;;  %v16975_v63 = vld [vmem:[#allocation28_spill] sm:$0xff]  ;;  %v3989_v34 = vsel %vm16960_vm1, %v3985_v14, %v3986_v59  ;;  %v16996_v37 = vld [vmem:[#allocation14_spill] sm:$0xff] }
 0x56b   : > { %v9047_v2 = vpack.c.bf16 %v3991_v8, %v3992_v52  ;;  %vm16976_vm12 = vnez %v16975_v63  ;;  %v16977_v52 = vld [vmem:[#allocation27_spill] sm:$0xff]  ;;  %v9230_v59 = vpack.c.bf16 %v14778_v15, %v3989_v34  ;;  %vm16983_vm7 = vnez %v16982_v44  ;;  %v11209_v15 = vld [vmem:[%s16306_s4 + $0x218] sm:$0xff]  ;;  %v11208_v5 = vld [vmem:[%s16306_s4 + $0x210] sm:$0xff] }
 0x56d   : > { %4541 = vmatpush.bf16.msrb.mxu0 %v11176_v24  ;;  %4769 = vmatpush.bf16.msra.mxu2 %v11192_v47  ;;  %v9329_v24 = vpack.c.bf16 %v14886_v20, %v14769_v53  ;;  %v16988_v47 = vld [vmem:[#allocation31_spill] sm:$0xff]  ;;  %v11206_v53 = vld [vmem:[%s16306_s4 + $0x200] sm:$0xff]  ;;  %v11261_v20 = vld [vmem:[%s16307_s5 + $0x178] sm:$0xff] }
 0x56e   : > { %4656 = vmatpush.bf16.msrb.mxu1 %v11183_v21  ;;  %4885 = vmatpush.bf16.msrb.mxu3 %v11198_v31  ;;  %v11207_v21 = vld [vmem:[%s16306_s4 + $0x208] sm:$0xff] }
 0x570   : > { %9105 = vmatmul.msk.bf16.gmra.mxu1 %vm16902_vm5, %v14863_v48  ;;  %vm16968_vm5 = vmmov %vm16959_vm2  ;;  %vm16978_vm2 = vnez %v16977_v52 }
 0x571   : > { %v14970_v43 = vsel %vm16968_vm5, %v4227_v54, %v4228_v22  ;;  %4542 = vmatpush.bf16.msrb.mxu0 %v11175_v55  ;;  %4770 = vmatpush.bf16.msra.mxu2 %v11191_v23  ;;  %vm16979_vm13 = vmmov %vm16968_vm5  ;;  %v11260_v55 = vld [vmem:[%s16307_s5 + $0x170] sm:$0xff]  ;;  %v4468_v54 = vpack.c.bf16 %v14827_v40, %v14822_v4 }
 0x572   : > { %v14988_v36 = vpack.c.bf16 %v14970_v43, %v4234_v51  ;;  %4657 = vmatpush.bf16.msrb.mxu1 %v11182_v12  ;;  %v4231_v26 = vsel %vm16979_vm13, %v4229_v9, %v4230_v39  ;;  %v16984_v39 = vld [vmem:[#allocation30_spill] sm:$0xff]  ;;  %v16994_v23 = vld [vmem:[#allocation32_spill] sm:$0xff] }
 0x573   : > { %9045 = vmatmul.msk.bf16.gmra.mxu0 %vm16904_vm9, %v14894_v30  ;;  %9165 = vmatmul.msk.bf16.gmra.mxu2 %vm16905_vm4, %v14898_v29  ;;  %vm16969_vm9 = vmmov %vm16960_vm1  ;;  %vm16971_vm4 = vnez %v16970_v6  ;;  %v16998_v12 = vld [vmem:[#allocation4_spill] sm:$0xff]  ;;  %v17000_v6 = vld [vmem:[#allocation33_spill] sm:$0xff] }
 0x574   : > { %9225 = vmatmul.msk.bf16.gmra.mxu3 %vm16966_vm8, %v9224_v32  ;;  %v3990_v35 = vsel %vm16969_vm9, %v3984_v60, %v3985_v14  ;;  %vm16981_vm8 = vmmov %vm16968_vm5  ;;  %v11211_v32 = vld [vmem:[%s16306_s4 + $0x228] sm:$0xff]  ;;  %vm16985_vm5 = vnez %v16984_v39  ;;  %vm16989_vm9 = vnez %v16988_v47  ;;  %v11258_v14 = vld [vmem:[%s16307_s5 + $0x160] sm:$0xff]  ;;  %vm17001_vm1 = vnez %v17000_v6 }
 0x575   : > { %v9227_v62 = vpack.c.bf16 %v3990_v35, %v3991_v8  ;;  %4543 = vmatpush.bf16.msrb.mxu0 %v11174_v46  ;;  %4771 = vmatpush.bf16.msra.mxu2 %v11190_v58  ;;  %v4232_v18 = vsel %vm16981_vm8, %v4228_v22, %v4229_v9  ;;  %v9050_v0 = vpack.c.bf16 %v3989_v34, %v3990_v35  ;;  %v16990_v60 = vld [vmem:[#allocation11_spill] sm:$0xff]  ;;  %v16992_v22 = vld [vmem:[#allocation10_spill] sm:$0xff]  ;;  %v11256_v8 = vld [vmem:[%s16307_s5 + $0x150] sm:$0xff]  ;;  %vm5031_vm8 = vcmask 523264  }
 0x576   : > { %v15024_v10 = vpack.c.bf16 %v4231_v26, %v4232_v18  ;;  %vm16993_vm10 = vnez %v16992_v22  ;;  %v11255_v46 = vld [vmem:[%s16307_s5 + $0x148] sm:$0xff]  ;;  %v9335_v35 = vpack.c.bf16 %v4232_v18, %v14970_v43  ;;  %v9338_v43 = vpack.c.bf16 %v14786_v3, %v4231_v26  ;;  %v15118_v3 = vld [vmem:[%s16314_s12 + $0x3] ss:$0 sm:$0xff]  ;;  %v17008_v9 = vld [vmem:[#allocation36_spill] sm:$0xff] }
 0x579   : > { %4992 = vmatpush.bf16.msra.mxu0 %v11213_v33 }
 0x57d   : > { %4993 = vmatpush.bf16.msra.mxu0 %v11212_v41 }
 0x580   : > { %9108 = vmatmul.msk.bf16.gmra.mxu1 %vm16971_vm4, %v14962_v42  ;;  %vm16991_vm4 = vnez %v16990_v60 }
 0x581   : > { %4994 = vmatpush.bf16.msra.mxu0 %v11211_v32 }
 0x583   : > { %9048 = vmatmul.msk.bf16.gmra.mxu0 %vm16974_vm15, %v9047_v2  ;;  %9168 = vmatmul.msk.bf16.gmra.mxu2 %vm16976_vm12, %v14988_v36  ;;  %vm16995_vm15 = vnez %v16994_v23  ;;  %vm16997_vm12 = vnez %v16996_v37 }
 0x584   : > { %9228 = vmatmul.msk.bf16.gmra.mxu3 %vm16978_vm2, %v9227_v62  ;;  %vm16999_vm2 = vnez %v16998_v12  ;;  %v4470_v62 = vpack.c.bf16 %v14751_v7, %v14743_v28 }
 0x585   : > { %4995 = vmatpush.bf16.msra.mxu0 %v11210_v27 }
 0x589   : > { %4996 = vmatpush.bf16.msra.mxu0 %v11209_v15 }
 0x58d   : > { %4997 = vmatpush.bf16.msra.mxu0 %v11208_v5  ;;  %v17012_v5 = vld [vmem:[#allocation7_spill] sm:$0xff] }
 0x590   : > { %9111 = vmatmul.msk.bf16.gmra.mxu1 %vm16916_vm0, %v9110_v61  ;;  %vm16987_vm0 = vnez %v16986_v19 }
 0x591   : > { %4998 = vmatpush.bf16.msra.mxu0 %v11207_v21 }
 0x593   : > { %9051 = vmatmul.msk.bf16.gmra.mxu0 %vm16983_vm7, %v9050_v0  ;;  %9171 = vmatmul.msk.bf16.gmra.mxu2 %vm16985_vm5, %v15024_v10 }
 0x594   : > { %9231 = vmatmul.msk.bf16.gmra.mxu3 %vm16987_vm0, %v9230_v59 }
 0x595   : > { %4999 = vmatpush.bf16.msra.mxu0 %v11206_v53 }
 0x5a0   : > { %9330 = vmatmul.msk.bf16.vlgmr.msrb.gmra.mxu1 %vm16989_vm9, %v9329_v24 }
 0x5a3   : > { %4544 = vmatmul.bf16.vlgmr.msrb.gmra.mxu0 %v4467_v56  ;;  %9390 = vmatmul.msk.bf16.vlgmr.msra.gmra.mxu2 %vm16991_vm4, %v14894_v30  ;;  %v11259_v30 = vld [vmem:[%s16307_s5 + $0x168] sm:$0xff] }
 0x5a4   : > { %9450 = vmatmul.msk.bf16.vlgmr.msrb.gmra.mxu3 %vm16993_vm10, %v14863_v48  ;;  %5590 = vmatpush.bf16.msrb.mxu0 %v11261_v20  ;;  %v9332_v48 = vpack.c.bf16 %v4234_v51, %v14873_v17  ;;  %v11257_v17 = vld [vmem:[%s16307_s5 + $0x158] sm:$0xff]  ;;  %v11254_v51 = vld [vmem:[%s16307_s5 + $0x140] sm:$0xff] }
 0x5a8   : > { %5591 = vmatpush.bf16.msrb.mxu0 %v11260_v55 }
 0x5ac   : > { %5592 = vmatpush.bf16.msrb.mxu0 %v11259_v30 }
 0x5b0   : > { %9333 = vmatmul.msk.bf16.gmra.mxu1 %vm16995_vm15, %v9332_v48  ;;  %5593 = vmatpush.bf16.msrb.mxu0 %v11258_v14  ;;  %v17014_v48 = vld [vmem:[#allocation38_spill] sm:$0xff] }
 0x5b3   : > { %4549 = vmatmul.bf16.gmra.mxu0 %v4468_v54  ;;  %9393 = vmatmul.msk.bf16.gmra.mxu2 %vm16997_vm12, %v9047_v2  ;;  %v17003_v2 = vld [vmem:[#allocation35_spill] sm:$0xff] }
 0x5b4   : > { %9453 = vmatmul.msk.bf16.gmra.mxu3 %vm16999_vm2, %v14962_v42  ;;  %5594 = vmatpush.bf16.msrb.mxu0 %v11257_v17  ;;  %v4469_v42 = vpack.c.bf16 %v14930_v38, %v14928_v45  ;;  %vm17004_vm13 = vnez %v17003_v2  ;;  %vm16488_vm2 = vcmp.lt.s32.totalorder %v11680_v16, 5 }
 0x5b8   : > { %5595 = vmatpush.bf16.msrb.mxu0 %v11256_v8 }
 0x5bc   : > { %5596 = vmatpush.bf16.msrb.mxu0 %v11255_v46 }
 0x5c0   : > { %9336 = vmatmul.msk.bf16.gmra.mxu1 %vm17001_vm1, %v9335_v35  ;;  %5597 = vmatpush.bf16.msrb.mxu0 %v11254_v51 }
 0x5c3   : > { %4554 = vmatmul.bf16.gmra.mxu0 %v4469_v42  ;;  %9396 = vmatmul.msk.bf16.gmra.mxu2 %vm16940_vm6, %v9050_v0  ;;  %vm17009_vm6 = vnez %v17008_v9 }
 0x5c4   : > { %9456 = vmatmul.msk.bf16.gmra.mxu3 %vm17004_vm13, %v9110_v61  ;;  %vm16484_vm13 = vcmp.lt.s32.totalorder %v11680_v16, 4 }
 0x5d0   : > { %9339 = vmatmul.msk.bf16.gmra.mxu1 %vm16943_vm14, %v9338_v43  ;;  %vm17015_vm14 = vnez %v17014_v48 }
 0x5d3   : > { %4559 = vmatmul.bf16.gmra.mxu0 %v4470_v62  ;;  %9399 = vmatmul.msk.bf16.gmra.mxu2 %vm16946_vm3, %v14795_v49  ;;  %vm17013_vm3 = vnez %v17012_v5 }
 0x5d4   : > { %9459 = vmatmul.msk.bf16.gmra.mxu3 %vm13890_vm11, %v14761_v1 }
 0x5dd   : > { %v4195_v52 = vpop.f32.mrf.mxu1 }
 0x5e0   : > { %v4081_v33 = vpop.f32.mrf.mxu0 }
 0x5e1   : > { %v4101_v41 = vadd.f32 %v15118_v3, %v4081_v33 }
 0x5e3   : > { %9510 = vmatmul.msk.bf16.vlgmr.msra.gmra.mxu0 %vm17009_vm6, %v14898_v29  ;;  %v4215_v61 = vadd.f32 %v4195_v52, %v4101_v41 }
 0x5e4   : > { %5872 = vmatpush.msra.mxu0 %v14751_v7 }
 0x5e5   : > { %v15125_v49 = vpop.f32.mrf.mxu1 }
 0x5e6   : > { %5873 = vmatpush.msra.mxu0 %v14743_v28  ;;  %v4325_v1 = vpop.f32.mrf.mxu2 }
 0x5e7   : > { %v4345_v34 = vadd.f32 %v4325_v1, %v4215_v61  ;;  %v4439_v26 = vpop.f32.mrf.mxu3 }
 0x5e8   : > { %5874 = vmatpush.msra.mxu0 %v14930_v38  ;;  %v15129_v25 = vpop.f32.mrf.mxu0  ;;  %v17010_v38 = vld [vmem:[#allocation2_spill] sm:$0xff] }
 0x5e9   : > { %v4459_v18 = vadd.f32 %v4439_v26, %v4345_v34  ;;  %vm17011_vm11 = vnez %v17010_v38 }
 0x5ea   : > { %5875 = vmatpush.msra.mxu0 %v14928_v45 }
 0x5ec   : > { %5876 = vmatpush.msra.mxu0 %v14827_v40 }
 0x5ed   : > { %v4200_v29 = vpop.f32.mrf.mxu1 }
 0x5ee   : > { %5877 = vmatpush.msra.mxu0 %v14822_v4  ;;  %v15134_v7 = vpop.f32.mrf.mxu2 }
 0x5ef   : > { %v15136_v32 = vpop.f32.mrf.mxu3 }
 0x5f0   : > { %5878 = vmatpush.msra.mxu0 %v14738_v50  ;;  %v4086_v28 = vpop.f32.mrf.mxu0 }
 0x5f1   : > { %v4103_v0 = vadd.f32 %v15118_v3, %v4086_v28 }
 0x5f2   : > { %5879 = vmatpush.msra.mxu0 %v14741_v13 }
 0x5f3   : > { %9513 = vmatmul.msk.bf16.gmra.mxu0 %vm17011_vm11, %v14988_v36  ;;  %v4217_v40 = vadd.f32 %v4200_v29, %v4103_v0  ;;  %vm16487_vm11 = vcmp.lt.s32.totalorder %v11680_v16, 3 }
 0x5f5   : > { %v15144_v45 = vpop.f32.mrf.mxu1 }
 0x5f6   : > { %v4330_v59 = vpop.f32.mrf.mxu2 }
 0x5f7   : > { %v4347_v4 = vadd.f32 %v4330_v59, %v4217_v40  ;;  %v4444_v44 = vpop.f32.mrf.mxu3 }
 0x5f8   : > { %v15146_v39 = vpop.f32.mrf.mxu0 }
 0x5f9   : > { %v4461_v62 = vadd.f32 %v4444_v44, %v4347_v4 }
 0x5fd   : > { %v4205_v19 = vpop.f32.mrf.mxu1 }
 0x5fe   : > { %v15148_v27 = vpop.f32.mrf.mxu2 }
 0x5ff   : > { %v15150_v50 = vpop.f32.mrf.mxu3 }
 0x600   : > { %v4091_v15 = vpop.f32.mrf.mxu0 }
 0x601   : > { %v4105_v13 = vadd.f32 %v15118_v3, %v4091_v15 }
 0x603   : > { %9516 = vmatmul.msk.bf16.gmra.mxu0 %vm17013_vm3, %v15024_v10  ;;  %v4219_v36 = vadd.f32 %v4205_v19, %v4105_v13 }
 0x605   : > { %v15156_v24 = vpop.f32.mrf.mxu1 }
 0x606   : > { %v4335_v47 = vpop.f32.mrf.mxu2 }
 0x607   : > { %v4349_v21 = vadd.f32 %v4335_v47, %v4219_v36  ;;  %v4449_v56 = vpop.f32.mrf.mxu3 }
 0x608   : > { %v4093_v60 = vpop.f32.mrf.mxu0 }
 0x609   : > { %v4463_v52 = vadd.f32 %v4449_v56, %v4349_v21 }
 0x60d   : > { %v4210_v22 = vpop.f32.mrf.mxu1 }
 0x60e   : > { %v15158_v53 = vpop.f32.mrf.mxu2 }
 0x60f   : > { %v15160_v20 = vpop.f32.mrf.mxu3 }
 0x610   : > { %v4096_v55 = vpop.f32.mrf.mxu0 }
 0x611   : > { %v4107_v30 = vadd.f32 %v15118_v3, %v4096_v55 }
 0x613   : > { %9519 = vmatmul.msk.bf16.gmra.mxu0 %vm17015_vm14, %v14799_v11  ;;  %v4221_v10 = vadd.f32 %v4210_v22, %v4107_v30 }
 0x615   : > { %v4212_v37 = vpop.f32.mrf.mxu1 }
 0x616   : > { %v4340_v23 = vpop.f32.mrf.mxu2 }
 0x617   : > { %v4351_v14 = vadd.f32 %v4340_v23, %v4221_v10  ;;  %v4454_v54 = vpop.f32.mrf.mxu3  ;;  %v4106_v23 = vadd.f32 %v15118_v3, %v4093_v60 }
 0x618   : > { %v4098_v12 = vpop.f32.mrf.mxu0 }
 0x619   : > { %v4465_v61 = vadd.f32 %v4454_v54, %v4351_v14  ;;  %v4108_v48 = vadd.f32 %v15118_v3, %v4098_v12 }
 0x61b   : > { %v4222_v14 = vadd.f32 %v4212_v37, %v4108_v48 }
 0x61d   : > { %v4659_v6 = vpop.f32.mrf.mxu1 }
 0x61e   : > { %v4342_v17 = vpop.f32.mrf.mxu2 }
 0x61f   : > { %v4456_v8 = vpop.f32.mrf.mxu3 }
 0x620   : > { %v4545_v46 = vpop.f32.mrf.mxu0 }
 0x621   : > { %v4565_v35 = vadd.f32 %v4545_v46, %v4459_v18 }
 0x623   : > { %v4679_v42 = vadd.f32 %v4659_v6, %v4565_v35  ;;  %v4352_v35 = vadd.f32 %v4342_v17, %v4222_v14 }
 0x625   : > { %v15174_v26 = vpop.f32.mrf.mxu1 }
 0x626   : > { %v4773_v51 = vpop.f32.mrf.mxu2 }
 0x627   : > { %v4793_v58 = vadd.f32 %v4773_v51, %v4679_v42  ;;  %v4887_v2 = vpop.f32.mrf.mxu3  ;;  %v4104_v42 = vadd.f32 %v15118_v3, %v15146_v39  ;;  %v4220_v51 = vadd.f32 %v15156_v24, %v4106_v23 }
 0x628   : > { %v15166_v43 = vpop.f32.mrf.mxu0 }
 0x629   : > { %v4907_v31 = vadd.f32 %v4887_v2, %v4793_v58  ;;  %v4350_v58 = vadd.f32 %v15158_v53, %v4220_v51  ;;  %v4466_v2 = vadd.f32 %v4456_v8, %v4352_v35 }
 0x62b   : > { %v4464_v17 = vadd.f32 %v15160_v20, %v4350_v58 }
 0x62d   : > { %v15180_v0 = vpop.f32.mrf.mxu1 }
 0x62e   : > { %v15176_v18 = vpop.f32.mrf.mxu2 }
 0x62f   : > { %v15178_v28 = vpop.f32.mrf.mxu3 }
 0x630   : > { %v4550_v11 = vpop.f32.mrf.mxu0 }
 0x631   : > { %v15168_v57 = vadd.f32 %v4550_v11, %v4461_v62  ;;  %v4218_v62 = vadd.f32 %v15144_v45, %v4104_v42  ;;  %v11218_v42 = vld [vmem:[%s16307_s5 + $0x20] sm:$0xff] }
 0x633   : > { %v4348_v37 = vadd.f32 %v15148_v27, %v4218_v62  ;;  %v11222_v62 = vld [vmem:[%s16307_s5 + $0x40] sm:$0xff] }
 0x635   : > { %v4666_v44 = vpop.f32.mrf.mxu1  ;;  %v4462_v45 = vadd.f32 %v15150_v50, %v4348_v37  ;;  %v15305_v37 = vld [vmem:[%s16316_s14 + $0x8] sm:$0xff] }
 0x636   : > { %v15182_v38 = vpop.f32.mrf.mxu2 }
 0x637   : > { %v15186_v4 = vpop.f32.mrf.mxu3 }
 0x638   : > { %v15170_v63 = vpop.f32.mrf.mxu0 }
 0x639   : > { %v4568_v8 = vadd.f32 %v15170_v63, %v4462_v45  ;;  %v11227_v63 = vld [vmem:[%s16307_s5 + $0x68] sm:$0xff]  ;;  %v11250_v45 = vld [vmem:[%s16307_s5 + $0x120] sm:$0xff] }
 0x63d   : > { %v4669_v36 = vpop.f32.mrf.mxu1 }
 0x63e   : > { %v15188_v19 = vpop.f32.mrf.mxu2 }
 0x63f   : > { %v15192_v13 = vpop.f32.mrf.mxu3 }
 0x640   : > { %v4555_v33 = vpop.f32.mrf.mxu0 }
 0x641   : > { %v15172_v41 = vadd.f32 %v4555_v33, %v4463_v52 }
 0x643   : > { %v4683_v50 = vadd.f32 %v4669_v36, %v15172_v41  ;;  %v4681_v41 = vadd.f32 %v15180_v0, %v15168_v57 }
 0x645   : > { %v4671_v22 = vpop.f32.mrf.mxu1  ;;  %v4795_v51 = vadd.f32 %v15182_v38, %v4681_v41  ;;  %v17016_v41 = vld [vmem:[#allocation3_spill] sm:$0xff] }
 0x646   : > { %v4783_v47 = vpop.f32.mrf.mxu2 }
 0x647   : > { %v15196_v21 = vpop.f32.mrf.mxu3  ;;  %v4909_v38 = vadd.f32 %v15186_v4, %v4795_v51 }
 0x648   : > { %v4557_v9 = vpop.f32.mrf.mxu0 }
 0x649   : > { %v4570_v24 = vadd.f32 %v4557_v9, %v4464_v17  ;;  %v11235_v17 = vld [vmem:[%s16307_s5 + $0xa8] sm:$0xff] }
 0x64b   : > { %v4684_v9 = vadd.f32 %v4671_v22, %v4570_v24  ;;  %v4682_v22 = vadd.f32 %v4666_v44, %v4568_v8  ;;  %v11226_v44 = vld [vmem:[%s16307_s5 + $0x60] sm:$0xff]  ;;  %v11251_v24 = vld [vmem:[%s16307_s5 + $0x128] sm:$0xff]  ;;  %v11268_v8 = vld [vmem:[%s16307_s5 + $0x1b0] sm:$0xff] }
 0x64d   : > { %v4674_v54 = vpop.f32.mrf.mxu1 }
 0x64e   : > { %v4785_v55 = vpop.f32.mrf.mxu2 }
 0x64f   : > { %v4899_v10 = vpop.f32.mrf.mxu3 }
 0x650   : > { %v4560_v1 = vpop.f32.mrf.mxu0 }
 0x651   : > { %v4571_v34 = vadd.f32 %v4560_v1, %v4465_v61 }
 0x653   : > { %v4685_v27 = vadd.f32 %v4674_v54, %v4571_v34  ;;  %v4798_v34 = vadd.f32 %v4785_v55, %v4684_v9  ;;  %v11219_v54 = vld [vmem:[%s16307_s5 + $0x28] sm:$0xff]  ;;  %v11240_v9 = vld [vmem:[%s16307_s5 + $0xd0] sm:$0xff] }
 0x655   : > { %v4676_v11 = vpop.f32.mrf.mxu1  ;;  %v4912_v36 = vadd.f32 %v4899_v10, %v4798_v34  ;;  %v11266_v34 = vld [vmem:[%s16307_s5 + $0x1a0] sm:$0xff] }
 0x656   : > { %v4788_v46 = vpop.f32.mrf.mxu2 }
 0x657   : > { %v4902_v12 = vpop.f32.mrf.mxu3  ;;  %v4799_v1 = vadd.f32 %v4788_v46, %v4685_v27  ;;  %v11230_v27 = vld [vmem:[%s16307_s5 + $0x80] sm:$0xff] }
 0x658   : > { %v4562_v29 = vpop.f32.mrf.mxu0 }
 0x659   : > { %v4572_v60 = vadd.f32 %v4562_v29, %v4466_v2  ;;  %v4913_v46 = vadd.f32 %v4902_v12, %v4799_v1  ;;  %v11217_v2 = vld [vmem:[%s16307_s5 + $0x18] sm:$0xff]  ;;  %v11214_v12 = vld [vmem:[%s16307_s5] sm:$0xff]  ;;  %v11248_v1 = vld [vmem:[%s16307_s5 + $0x110] sm:$0xff] }
 0x65b   : > { %v4686_v61 = vadd.f32 %v4676_v11, %v4572_v60  ;;  %v11253_v60 = vld [vmem:[%s16307_s5 + $0x138] sm:$0xff]  ;;  %v11244_v11 = vld [vmem:[%s16307_s5 + $0xf0] sm:$0xff] }
 0x65e   : > { %v4790_v39 = vpop.f32.mrf.mxu2 }
 0x65f   : > { %v4800_v20 = vadd.f32 %v4790_v39, %v4686_v61  ;;  %v11234_v39 = vld [vmem:[%s16307_s5 + $0xa0] sm:$0xff]  ;;  %v11233_v61 = vld [vmem:[%s16307_s5 + $0x98] sm:$0xff] }
 0x660   : > { %v5001_v40 = vpop.f32.mrf.mxu0 }
 0x661   : > { %v15184_v59 = vadd.f32 %v5001_v40, %v4907_v31  ;;  %v4102_v31 = vadd.f32 %v15118_v3, %v15129_v25  ;;  %v11221_v3 = vld [vmem:[%s16307_s5 + $0x38] sm:$0xff]  ;;  %v4904_v40 = vpop.f32.mrf.mxu3 }
 0x662   : > { %v11229_v25 = vld [vmem:[%s16307_s5 + $0x78] sm:$0xff]  ;;  %5150 = vmatpush.bf16.msrb.mxu2 %v11221_v3  ;;  %v4914_v48 = vadd.f32 %v4904_v40, %v4800_v20  ;;  %v11231_v3 = vld [vmem:[%s16307_s5 + $0x88] sm:$0xff] }
 0x663   : > { %v4216_v52 = vadd.f32 %v15125_v49, %v4102_v31  ;;  %5239 = vmatpush.bf16.msra.mxu3 %v11229_v25  ;;  %v11220_v49 = vld [vmem:[%s16307_s5 + $0x30] sm:$0xff]  ;;  %v11242_v25 = vld [vmem:[%s16307_s5 + $0xe0] sm:$0xff]  ;;  %v11269_v20 = vld [vmem:[%s16307_s5 + $0x1b8] sm:$0xff] }
 0x664   : > { %v11236_v31 = vld [vmem:[%s16307_s5 + $0xb0] sm:$0xff]  ;;  %v11239_v40 = vld [vmem:[%s16307_s5 + $0xc8] sm:$0xff] }
 0x665   : > { %v4346_v53 = vadd.f32 %v15134_v7, %v4216_v52  ;;  %v11228_v7 = vld [vmem:[%s16307_s5 + $0x70] sm:$0xff] }
 0x666   : > { %5151 = vmatpush.bf16.msrb.mxu2 %v11220_v49  ;;  %v11252_v52 = vld [vmem:[%s16307_s5 + $0x130] sm:$0xff]  ;;  %v11241_v49 = vld [vmem:[%s16307_s5 + $0xd8] sm:$0xff] }
 0x667   : > { %v4460_v29 = vadd.f32 %v15136_v32, %v4346_v53  ;;  %5240 = vmatpush.bf16.msra.mxu3 %v11228_v7  ;;  %v4797_v32 = vadd.f32 %v4783_v47, %v4683_v50  ;;  %v11232_v53 = vld [vmem:[%s16307_s5 + $0x90] sm:$0xff]  ;;  %v11249_v7 = vld [vmem:[%s16307_s5 + $0x118] sm:$0xff]  ;;  %v11247_v50 = vld [vmem:[%s16307_s5 + $0x108] sm:$0xff] }
 0x668   : > { %v15190_v15 = vpop.f32.mrf.mxu0 }
 0x669   : > { %v4566_v23 = vadd.f32 %v15166_v43, %v4460_v29  ;;  %v4796_v43 = vadd.f32 %v15188_v19, %v4682_v22  ;;  %v4911_v57 = vadd.f32 %v15196_v21, %v4797_v32  ;;  %v11267_v29 = vld [vmem:[%s16307_s5 + $0x1a8] sm:$0xff]  ;;  %v5065_v22 = vshra.s32 %v11680_v16, 2 }
 0x66a   : > { %5152 = vmatpush.bf16.msrb.mxu2 %v11219_v54  ;;  %v11264_v54 = vld [vmem:[%s16307_s5 + $0x190] sm:$0xff]  ;;  %v5067_v32 = vand.u32 3, %v11680_v16 }
 0x66b   : > { %5241 = vmatpush.bf16.msra.mxu3 %v11227_v63  ;;  %v4680_v47 = vadd.f32 %v15174_v26, %v4566_v23  ;;  %v4910_v10 = vadd.f32 %v15192_v13, %v4796_v43  ;;  %v11225_v26 = vld [vmem:[%s16307_s5 + $0x58] sm:$0xff]  ;;  %v11246_v23 = vld [vmem:[%s16307_s5 + $0x100] sm:$0xff]  ;;  %v11263_v63 = vld [vmem:[%s16307_s5 + $0x188] sm:$0xff]  ;;  %v5066_v43 = vshra.s32 %v17016_v41, 2  ;;  %vm15399_vm7 = vcmp.ge.s32.totalorder %v5065_v22, 1 }
 0x66c   : > { %vm15403_vm5 = vcmp.ge.s32.totalorder %v5067_v32, 1  ;;  %vm15427_vm15 = vcmp.le.s32.totalorder %v5067_v32, 2  ;;  %v11270_v32 = vld [vmem:[%s16307_s5 + $0x1c0] sm:$0xff] }
 0x66d   : > { %v4794_v19 = vadd.f32 %v15176_v18, %v4680_v47  ;;  %vm15409_vm0 = vcmp.ge.s32.totalorder %v5066_v43, 1  ;;  %vm5081_vm4 = vmand %vm15399_vm7, %vm15403_vm5 }
 0x66e   : > { %5153 = vmatpush.bf16.msrb.mxu2 %v11218_v42  ;;  %vm5262_vm6 = vmand %vm15399_vm7, %vm15427_vm15 }
 0x66f   : > { %5242 = vmatpush.bf16.msra.mxu3 %v11226_v44  ;;  %v4908_v18 = vadd.f32 %v15178_v28, %v4794_v19  ;;  %v15273_v28 = vld [vmem:[%s16316_s14] sm:$0xff]  ;;  %vm16486_vm14 = vmpackc.low %vm15409_vm0, %vm15399_vm7 }
 0x670   : > { %v15194_v5 = vpop.f32.mrf.mxu0 }
 0x671   : > { %v5023_v13 = vadd.f32 %v15194_v5, %v4909_v38  ;;  %v5022_v4 = vadd.f32 %v15190_v15, %v4908_v18  ;;  %v11237_v5 = vld [vmem:[%s16307_s5 + $0xb8] sm:$0xff]  ;;  %v11223_v15 = vld [vmem:[%s16307_s5 + $0x48] sm:$0xff] }
 0x672   : > { %5154 = vmatpush.bf16.msrb.mxu2 %v11217_v2  ;;  %v11362_v2 = vld [vmem:[%s16309_s7 + $0x220] sm:$0xff] }
 0x673   : > { %5243 = vmatpush.bf16.msra.mxu3 %v11225_v26 }
 0x678   : > { %v15198_v56 = vpop.f32.mrf.mxu0 }
 0x679   : > { %v5024_v21 = vadd.f32 %v15198_v56, %v4910_v10  ;;  %v11215_v56 = vld [vmem:[%s16307_s5 + $0x8] sm:$0xff]  ;;  %v11358_v10 = vld [vmem:[%s16309_s7 + $0x200] sm:$0xff] }
 0x680   : > { %v15200_v30 = vpop.f32.mrf.mxu0 }
 0x681   : > { %v5025_v58 = vadd.f32 %v15200_v30, %v4911_v57  ;;  %v11216_v30 = vld [vmem:[%s16307_s5 + $0x10] sm:$0xff] }
 0x682   : > { %5155 = vmatpush.bf16.msrb.mxu2 %v11216_v30 }
 0x686   : > { %5156 = vmatpush.bf16.msrb.mxu2 %v11215_v56 }
 0x688   : > { %v5013_v6 = vpop.f32.mrf.mxu0 }
 0x689   : > { %v5026_v0 = vadd.f32 %v5013_v6, %v4912_v36  ;;  %v11224_v6 = vld [vmem:[%s16307_s5 + $0x50] sm:$0xff]  ;;  %v5068_v36 = vand.u32 3, %v17016_v41 }
 0x68a   : > { %5244 = vmatpush.bf16.msra.mxu3 %v11224_v6  ;;  %5157 = vmatpush.bf16.msrb.mxu2 %v11214_v12 }
 0x68b   : > { %vm15413_vm9 = vcmp.ge.s32.totalorder %v5068_v36, 1  ;;  %vm15433_vm12 = vcmp.le.s32.totalorder %v5068_v36, 2  ;;  %v11291_v36 = vld [vmem:[%s16308_s6 + $0x28] sm:$0xff] }
 0x68c   : > { %vm5082_vm10 = vmand %vm15409_vm0, %vm15413_vm9 }
 0x68d   : > { %vm15439_vm1 = vmpackc.low %vm5082_vm10, %vm5081_vm4  ;;  %vm17031_vm4 = vcmp.lt.s32.totalorder %v11680_v16, 7 }
 0x68e   : > { %5245 = vmatpush.bf16.msra.mxu3 %v11223_v15  ;;  %vm5263_vm3 = vmand %vm15409_vm0, %vm15433_vm12 }
 0x68f   : > { %vm17032_vm10 = vmmov %vm17031_vm4 }
 0x690   : > { %v5016_v33 = vpop.f32.mrf.mxu0 }
 0x691   : > { %v5027_v55 = vadd.f32 %v5016_v33, %v4913_v46  ;;  %v11243_v33 = vld [vmem:[%s16307_s5 + $0xe8] sm:$0xff]  ;;  %v11262_v46 = vld [vmem:[%s16307_s5 + $0x180] sm:$0xff] }
 0x692   : > { %5246 = vmatpush.bf16.msra.mxu3 %v11222_v62 }
 0x696   : > { %5502 = vmatpush.bf16.msrb.mxu3 %v11253_v60 }
 0x698   : > { %v5018_v14 = vpop.f32.mrf.mxu0 }
 0x699   : > { %v5028_v35 = vadd.f32 %v5018_v14, %v4914_v48  ;;  %v11238_v48 = vld [vmem:[%s16307_s5 + $0xc0] sm:$0xff]  ;;  %v11265_v14 = vld [vmem:[%s16307_s5 + $0x198] sm:$0xff] }
 0x69a   : > { %5503 = vmatpush.bf16.msrb.mxu3 %v11252_v52 }
 0x69b   : > { %5046 = vmatpush.msra.mxu1 %v5028_v35 }
 0x69d   : > { %5047 = vmatpush.msra.mxu1 %v5027_v55  ;;  %v11363_v55 = vld [vmem:[%s16309_s7 + $0x228] sm:$0xff] }
 0x69e   : > { %5504 = vmatpush.bf16.msrb.mxu3 %v11251_v24 }
 0x69f   : > { %5048 = vmatpush.msra.mxu1 %v5026_v0  ;;  %v11359_v0 = vld [vmem:[%s16309_s7 + $0x208] sm:$0xff] }
 0x6a1   : > { %5049 = vmatpush.msra.mxu1 %v5025_v58 }
 0x6a2   : > { %5505 = vmatpush.bf16.msrb.mxu3 %v11250_v45  ;;  %v11283_v45 = vld [vmem:[%s16307_s5 + $0x228] sm:$0xff] }
 0x6a3   : > { %5050 = vmatpush.msra.mxu1 %v5024_v21 }
 0x6a5   : > { %5051 = vmatpush.msra.mxu1 %v5023_v13 }
 0x6a6   : > { %5506 = vmatpush.bf16.msrb.mxu3 %v11249_v7  ;;  %v11274_v7 = vld [vmem:[%s16307_s5 + $0x1e0] sm:$0xff] }
 0x6a7   : > { %5052 = vmatpush.msra.mxu1 %v5022_v4 }
 0x6a9   : > { %5053 = vmatpush.msra.mxu1 %v15184_v59  ;;  %v11245_v59 = vld [vmem:[%s16307_s5 + $0xf8] sm:$0xff] }
 0x6aa   : > { %9520 = vmatmul.msk.f32.vlgmr.msra.gmra.mxu1 %vm5031_vm8, %v15273_v28  ;;  %5420 = vmatpush.bf16.msra.mxu2 %v11245_v59 }
 0x6ab   : > { %5332 = vmatpush.bf16.msrb.mxu1 %v11237_v5  ;;  %5507 = vmatpush.bf16.msrb.mxu3 %v11248_v1 }
 0x6ae   : > { %5421 = vmatpush.bf16.msra.mxu2 %v11244_v11 }
 0x6af   : > { %5333 = vmatpush.bf16.msrb.mxu1 %v11236_v31  ;;  %5508 = vmatpush.bf16.msrb.mxu3 %v11247_v50  ;;  %v11277_v31 = vld [vmem:[%s16307_s5 + $0x1f8] sm:$0xff] }
 0x6b2   : > { %9521 = vmatmul.msk.f32.gmra.mxu1 %vm5031_vm8, %v15305_v37  ;;  %5422 = vmatpush.bf16.msra.mxu2 %v11243_v33 }
 0x6b3   : > { %5334 = vmatpush.bf16.msrb.mxu1 %v11235_v17  ;;  %5509 = vmatpush.bf16.msrb.mxu3 %v11246_v23  ;;  %v11285_v17 = vld [vmem:[%s16307_s5 + $0x238] sm:$0xff] }
 0x6b6   : > { %5423 = vmatpush.bf16.msra.mxu2 %v11242_v25  ;;  %v11275_v25 = vld [vmem:[%s16307_s5 + $0x1e8] sm:$0xff] }
 0x6b7   : > { %5335 = vmatpush.bf16.msrb.mxu1 %v11234_v39 }
 0x6ba   : > { %5424 = vmatpush.bf16.msra.mxu2 %v11241_v49 }
 0x6bb   : > { %5336 = vmatpush.bf16.msrb.mxu1 %v11233_v61  ;;  %v11276_v61 = vld [vmem:[%s16307_s5 + $0x1f0] sm:$0xff] }
 0x6be   : > { %5425 = vmatpush.bf16.msra.mxu2 %v11240_v9  ;;  %v11282_v9 = vld [vmem:[%s16307_s5 + $0x220] sm:$0xff] }
 0x6bf   : > { %5337 = vmatpush.bf16.msrb.mxu1 %v11232_v53  ;;  %v11293_v53 = vld [vmem:[%s16308_s6 + $0x38] sm:$0xff] }
 0x6c2   : > { %5426 = vmatpush.bf16.msra.mxu2 %v11239_v40  ;;  %v11273_v40 = vld [vmem:[%s16307_s5 + $0x1d8] sm:$0xff] }
 0x6c3   : > { %5338 = vmatpush.bf16.msrb.mxu1 %v11231_v3  ;;  %v11284_v3 = vld [vmem:[%s16307_s5 + $0x230] sm:$0xff] }
 0x6c6   : > { %5427 = vmatpush.bf16.msra.mxu2 %v11238_v48  ;;  %v11281_v48 = vld [vmem:[%s16307_s5 + $0x218] sm:$0xff] }
 0x6c7   : > { %5339 = vmatpush.bf16.msrb.mxu1 %v11230_v27 }
 0x6cb   : > { %5678 = vmatpush.bf16.msra.mxu1 %v11269_v20 }
 0x6cf   : > { %5679 = vmatpush.bf16.msra.mxu1 %v11268_v8 }
 0x6d3   : > { %5680 = vmatpush.bf16.msra.mxu1 %v11267_v29 }
 0x6d7   : > { %5681 = vmatpush.bf16.msra.mxu1 %v11266_v34 }
 0x6db   : > { %5682 = vmatpush.bf16.msra.mxu1 %v11265_v14 }
 0x6df   : > { %5683 = vmatpush.bf16.msra.mxu1 %v11264_v54  ;;  %v11272_v54 = vld [vmem:[%s16307_s5 + $0x1d0] sm:$0xff] }
 0x6e3   : > { %5684 = vmatpush.bf16.msra.mxu1 %v11263_v63  ;;  %v11280_v63 = vld [vmem:[%s16307_s5 + $0x210] sm:$0xff] }
 0x6e7   : > { %5685 = vmatpush.bf16.msra.mxu1 %v11262_v46  ;;  %v11278_v46 = vld [vmem:[%s16307_s5 + $0x200] sm:$0xff] }
 0x727   : > { %v5055_v35 = vpop.f32.mrf.mxu1 }
 0x728   : > { %v15417_v51 = vmax.f32 %v5055_v35, 0.0  ;;  %v17043_v35 = vmov 0 }
 0x72a   : > { %v5072_v58 = vrot.slane %v15417_v51, 3  ;;  %v5166_v26 = vrot.slane %v15417_v51, 4  ;;  %v5255_v13 = vrot.slane %v15417_v51, 5  ;;  %v5518_v30 = vrot.slane %v15417_v51, 1 }
 0x72b   : > { %v5348_v49 = vrot.slane %v15417_v51, 7 }
 0x72f   : > { %v5058_v57 = vpop.f32.mrf.mxu1 }
 0x730   : > { %v15431_v19 = vmax.f32 %v5058_v57, 0.0  ;;  %v11289_v57 = vld [vmem:[%s16308_s6 + $0x18] sm:$0xff] }
 0x732   : > { %v5073_v38 = vrot.slane %v15431_v19, 3  ;;  %v5167_v21 = vrot.slane %v15431_v19, 4  ;;  %v5256_v18 = vrot.slane %v15431_v19, 5  ;;  %v5519_v6 = vrot.slane %v15431_v19, 1 }
 0x733   : > { %v5349_v27 = vrot.slane %v15431_v19, 7  ;;  %v5436_v34 = vpack.c.bf16 %v15431_v19, %v15417_v51  ;;  %v11290_v51 = vld [vmem:[%s16308_s6 + $0x20] sm:$0xff]  ;;  %v11288_v19 = vld [vmem:[%s16308_s6 + $0x10] sm:$0xff] }
 0x734   : > { %v5075_v4 = vsel %vm16488_vm2, %v5072_v58, %v5073_v38  ;;  %v5076_v5 = vsel %vm16488_vm2, %v5073_v38, %v5072_v58  ;;  %v15466_v56 = vsel %vm16484_vm13, %v5166_v26, %v5167_v21  ;;  %v15470_v15 = vsel %vm16484_vm13, %v5167_v21, %v5166_v26  ;;  %vm16485_vm13 = vmpackc.low %vm15433_vm12, %vm15427_vm15  ;;  %v11287_v58 = vld [vmem:[%s16308_s6 + $0x8] sm:$0xff]  ;;  %v11286_v26 = vld [vmem:[%s16308_s6] sm:$0xff] }
 0x735   : > { %v9556_v12 = vpack.c.bf16 %v5075_v4, %v5076_v5  ;;  %v9607_v62 = vpack.c.bf16 %v15466_v56, %v15470_v15  ;;  %v5520_v59 = vsel %vm17031_vm4, %v5518_v30, %v5519_v6  ;;  %v5521_v60 = vsel %vm17032_vm10, %v5519_v6, %v5518_v30  ;;  %vm15510_vm4 = vmpackc.low %vm5263_vm3, %vm5262_vm6  ;;  %v11309_v30 = vld [vmem:[%s16309_s7 + $0x78] sm:$0xff] }
 0x736   : > { %v9808_v11 = vpack.c.bf16 %v5521_v60, %v5520_v59  ;;  %v15494_v52 = vsel %vm16487_vm11, %v5255_v13, %v5256_v18  ;;  %v15498_v39 = vsel %vm16487_vm11, %v5256_v18, %v5255_v13  ;;  %vm15548_vm6 = vcmp.le.s32.totalorder %v5065_v22, 2  ;;  %vm16490_vm2 = vmpackc.low %vm15413_vm9, %vm15403_vm5  ;;  %v11271_v22 = vld [vmem:[%s16307_s5 + $0x1c8] sm:$0xff]  ;;  %v11301_v13 = vld [vmem:[%s16309_s7 + $0x38] sm:$0xff] }
 0x737   : > { %9557 = vmatmul.msk.bf16.vlgmr.msrb.gmra.mxu2 %vm15439_vm1, %v9556_v12  ;;  %9608 = vmatmul.msk.bf16.vlgmr.msra.gmra.mxu3 %vm16486_vm14, %v9607_v62  ;;  %v9658_v24 = vpack.c.bf16 %v15494_v52, %v15498_v39  ;;  %vm15558_vm3 = vcmp.le.s32.totalorder %v5066_v43, 2  ;;  %vm17039_vm10 = vcmp.lt.s32.totalorder %v11680_v16, 1  ;;  %vm5608_vm14 = vmand %vm15548_vm6, %vm15403_vm5  ;;  %v9859_v14 = vpack.c.bf16 %v5076_v5, %v5075_v4  ;;  %v11292_v43 = vld [vmem:[%s16308_s6 + $0x30] sm:$0xff]  ;;  %v11317_v6 = vld [vmem:[%s16309_s7 + $0xb8] sm:$0xff] }
 0x738   : > { %9809 = vmatmul.msk.bf16.vlgmr.msrb.gmra.mxu0 %vm16485_vm13, %v9808_v11  ;;  %5762 = vmatpush.bf16.msrb.mxu2 %v11277_v31  ;;  %v5350_v1 = vsel %vm17039_vm10, %v5348_v49, %v5349_v27  ;;  %vm17040_vm13 = vmmov %vm17039_vm10  ;;  %v9961_v41 = vpack.c.bf16 %v15498_v39, %v15494_v52  ;;  %v11300_v4 = vld [vmem:[%s16309_s7 + $0x30] sm:$0xff]  ;;  %v11325_v5 = vld [vmem:[%s16309_s7 + $0xf8] sm:$0xff] }
 0x739   : > { %5848 = vmatpush.bf16.msra.mxu3 %v11285_v17  ;;  %9659 = vmatmul.msk.bf16.vlgmr.msrb.gmra.mxu1 %vm15510_vm4, %v9658_v24  ;;  %v5351_v29 = vsel %vm17040_vm13, %v5349_v27, %v5348_v49  ;;  %vm5609_vm11 = vmand %vm15558_vm3, %vm15413_vm9  ;;  %v11324_v31 = vld [vmem:[%s16309_s7 + $0xf0] sm:$0xff]  ;;  %v11299_v12 = vld [vmem:[%s16309_s7 + $0x28] sm:$0xff] }
 0x73a   : > { %5957 = vmatpush.bf16.msrb.mxu1 %v11293_v53  ;;  %v9709_v50 = vpack.c.bf16 %v5350_v1, %v5351_v29  ;;  %vm15589_vm13 = vmpackc.low %vm5609_vm11, %vm5608_vm14  ;;  %6227 = vmatpush.bf16.msrb.mxu0 %v11317_v6  ;;  %v11307_v62 = vld [vmem:[%s16309_s7 + $0x68] sm:$0xff]  ;;  %v11298_v52 = vld [vmem:[%s16309_s7 + $0x20] sm:$0xff] }
 0x73b   : > { %vm5778_vm11 = vmand %vm15548_vm6, %vm15427_vm15  ;;  %v11315_v60 = vld [vmem:[%s16309_s7 + $0xa8] sm:$0xff]  ;;  %v11306_v39 = vld [vmem:[%s16309_s7 + $0x60] sm:$0xff] }
 0x73c   : > { %5763 = vmatpush.bf16.msrb.mxu2 %v11276_v61  ;;  %vm16489_vm14 = vmpackc.low %vm15558_vm3, %vm15548_vm6  ;;  %v11323_v17 = vld [vmem:[%s16309_s7 + $0xe8] sm:$0xff]  ;;  %v11314_v24 = vld [vmem:[%s16309_s7 + $0xa0] sm:$0xff] }
 0x73d   : > { %5849 = vmatpush.bf16.msra.mxu3 %v11284_v3  ;;  %v11322_v61 = vld [vmem:[%s16309_s7 + $0xe0] sm:$0xff]  ;;  %v11297_v53 = vld [vmem:[%s16309_s7 + $0x18] sm:$0xff]  ;;  %v11296_v27 = vld [vmem:[%s16309_s7 + $0x10] sm:$0xff] }
 0x73e   : > { %5958 = vmatpush.bf16.msrb.mxu1 %v11292_v43  ;;  %v11305_v3 = vld [vmem:[%s16309_s7 + $0x58] sm:$0xff]  ;;  %v11304_v49 = vld [vmem:[%s16309_s7 + $0x50] sm:$0xff]  ;;  %v11295_v1 = vld [vmem:[%s16309_s7 + $0x8] sm:$0xff] }
 0x73f   : > { %v11294_v29 = vld [vmem:[%s16309_s7] sm:$0xff] }
 0x740   : > { %5764 = vmatpush.bf16.msrb.mxu2 %v11275_v25  ;;  %v11313_v25 = vld [vmem:[%s16309_s7 + $0x98] sm:$0xff] }
 0x741   : > { %5850 = vmatpush.bf16.msra.mxu3 %v11283_v45  ;;  %v11321_v45 = vld [vmem:[%s16309_s7 + $0xd8] sm:$0xff] }
 0x742   : > { %5959 = vmatpush.bf16.msrb.mxu1 %v11291_v36  ;;  %v11302_v36 = vld [vmem:[%s16309_s7 + $0x40] sm:$0xff] }
 0x744   : > { %5765 = vmatpush.bf16.msrb.mxu2 %v11274_v7  ;;  %v11312_v7 = vld [vmem:[%s16309_s7 + $0x90] sm:$0xff] }
 0x745   : > { %5851 = vmatpush.bf16.msra.mxu3 %v11282_v9  ;;  %v11320_v9 = vld [vmem:[%s16309_s7 + $0xd0] sm:$0xff] }
 0x746   : > { %5960 = vmatpush.bf16.msrb.mxu1 %v11290_v51  ;;  %v11310_v51 = vld [vmem:[%s16309_s7 + $0x80] sm:$0xff] }
 0x747   : > { %9710 = vmatmul.msk.bf16.vlgmr.msra.gmra.mxu2 %vm16490_vm2, %v9709_v50  ;;  %5510 = vmatmul.bf16.vlgmr.msrb.gmra.mxu3 %v5436_v34  ;;  %v11332_v50 = vld [vmem:[%s16309_s7 + $0x130] sm:$0xff] }
 0x748   : > { %9963 = vmatmul.msk.f32.vlgmr.msra.gmra.mxu0 %vm5031_vm8, %v15273_v28  ;;  %5766 = vmatpush.bf16.msrb.mxu2 %v11273_v40  ;;  %v11279_v28 = vld [vmem:[%s16307_s5 + $0x208] sm:$0xff]  ;;  %v11333_v40 = vld [vmem:[%s16309_s7 + $0x138] sm:$0xff] }
 0x749   : > { %5852 = vmatpush.bf16.msra.mxu3 %v11281_v48  ;;  %9860 = vmatmul.msk.bf16.vlgmr.msra.gmra.mxu1 %vm15589_vm13, %v9859_v14 }
 0x74a   : > { %5961 = vmatpush.bf16.msrb.mxu1 %v11289_v57  ;;  %v11318_v57 = vld [vmem:[%s16309_s7 + $0xc0] sm:$0xff] }
 0x74c   : > { %5767 = vmatpush.bf16.msrb.mxu2 %v11272_v54 }
 0x74d   : > { %5853 = vmatpush.bf16.msra.mxu3 %v11280_v63 }
 0x74e   : > { %5962 = vmatpush.bf16.msrb.mxu1 %v11288_v19  ;;  %v11330_v19 = vld [vmem:[%s16309_s7 + $0x120] sm:$0xff] }
 0x750   : > { %9964 = vmatmul.msk.f32.gmra.mxu0 %vm5031_vm8, %v15305_v37  ;;  %5768 = vmatpush.bf16.msrb.mxu2 %v11271_v22  ;;  %vm5779_vm8 = vmand %vm15558_vm3, %vm15433_vm12  ;;  %v9910_v37 = vpack.c.bf16 %v15470_v15, %v15466_v56  ;;  %v11308_v56 = vld [vmem:[%s16309_s7 + $0x70] sm:$0xff]  ;;  %v11303_v22 = vld [vmem:[%s16309_s7 + $0x48] sm:$0xff] }
 0x751   : > { %5854 = vmatpush.bf16.msra.mxu3 %v11279_v28  ;;  %vm15636_vm10 = vmpackc.low %vm5779_vm8, %vm5778_vm11  ;;  %v11316_v15 = vld [vmem:[%s16309_s7 + $0xb0] sm:$0xff]  ;;  %v11311_v28 = vld [vmem:[%s16309_s7 + $0x88] sm:$0xff]  ;;  %vm17045_vm11 = vcmp.lt.s32.totalorder %v11680_v16, 5 }
 0x752   : > { %v17044_v35 = vsel %vm15636_vm10, 4294967295, %v17043_v35  ;;  %5963 = vmatpush.bf16.msrb.mxu1 %v11287_v58  ;;  %6228 = vmatpush.bf16.msrb.mxu0 %v11316_v15  ;;  %v11341_v58 = vld [vmem:[%s16309_s7 + $0x178] sm:$0xff]  ;;  %vm17046_vm8 = vmmov %vm17045_vm11 }
 0x754   : > { %5769 = vmatpush.bf16.msrb.mxu2 %v11270_v32  ;;  %v11319_v32 = vld [vmem:[%s16309_s7 + $0xc8] sm:$0xff] }
 0x755   : > { %5855 = vmatpush.bf16.msra.mxu3 %v11278_v46  ;;  %v11331_v46 = vld [vmem:[%s16309_s7 + $0x128] sm:$0xff] }
 0x756   : > { %5964 = vmatpush.bf16.msrb.mxu1 %v11286_v26  ;;  %6229 = vmatpush.bf16.msrb.mxu0 %v11315_v60  ;;  %v11349_v26 = vld [vmem:[%s16309_s7 + $0x1b8] sm:$0xff] }
 0x757   : > { %9911 = vmatmul.msk.bf16.vlgmr.msrb.gmra.mxu2 %vm16489_vm14, %v9910_v37  ;;  %v11474_v37 = vld [vmem:[%s16314_s12 + $0x4] ss:$0 sm:$0xff]  ;;  %vm17047_vm14 = vcmp.lt.s32.totalorder %v11680_v16, 4 }
 0x758   : > { %9962 = vmatmul.msk.bf16.vlgmr.msra.gmra.mxu3 %vm15636_vm10, %v9961_v41  ;;  %6051 = vmatpush.bf16.msra.mxu2 %v11301_v13  ;;  %vm17048_vm2 = vmmov %vm17047_vm14  ;;  %vm17049_vm10 = vcmp.lt.s32.totalorder %v11680_v16, 3 }
 0x759   : > { %6139 = vmatpush.bf16.msrb.mxu3 %v11309_v30  ;;  %v11329_v30 = vld [vmem:[%s16309_s7 + $0x118] sm:$0xff] }
 0x75a   : > { %6315 = vmatpush.bf16.msra.mxu1 %v11325_v5  ;;  %6230 = vmatpush.bf16.msrb.mxu0 %v11314_v24  ;;  %v11348_v5 = vld [vmem:[%s16309_s7 + $0x1b0] sm:$0xff] }
 0x75c   : > { %6052 = vmatpush.bf16.msra.mxu2 %v11300_v4  ;;  %v11340_v4 = vld [vmem:[%s16309_s7 + $0x170] sm:$0xff] }
 0x75d   : > { %6140 = vmatpush.bf16.msrb.mxu3 %v11308_v56  ;;  %v11356_v56 = vld [vmem:[%s16309_s7 + $0x1f0] sm:$0xff] }
 0x75e   : > { %6316 = vmatpush.bf16.msra.mxu1 %v11324_v31  ;;  %6231 = vmatpush.bf16.msrb.mxu0 %v11313_v25  ;;  %v11354_v25 = vld [vmem:[%s16309_s7 + $0x1e0] sm:$0xff] }
 0x760   : > { %6053 = vmatpush.bf16.msra.mxu2 %v11299_v12  ;;  %v11328_v12 = vld [vmem:[%s16309_s7 + $0x110] sm:$0xff] }
 0x761   : > { %6141 = vmatpush.bf16.msrb.mxu3 %v11307_v62  ;;  %v11339_v62 = vld [vmem:[%s16309_s7 + $0x168] sm:$0xff] }
 0x762   : > { %6317 = vmatpush.bf16.msra.mxu1 %v11323_v17  ;;  %6232 = vmatpush.bf16.msrb.mxu0 %v11312_v7 }
 0x764   : > { %6054 = vmatpush.bf16.msra.mxu2 %v11298_v52 }
 0x765   : > { %6142 = vmatpush.bf16.msrb.mxu3 %v11306_v39  ;;  %v11327_v39 = vld [vmem:[%s16309_s7 + $0x108] sm:$0xff] }
 0x766   : > { %6318 = vmatpush.bf16.msra.mxu1 %v11322_v61  ;;  %6233 = vmatpush.bf16.msrb.mxu0 %v11311_v28  ;;  %v11338_v61 = vld [vmem:[%s16309_s7 + $0x160] sm:$0xff]  ;;  %v11335_v28 = vld [vmem:[%s16309_s7 + $0x148] sm:$0xff] }
 0x768   : > { %6055 = vmatpush.bf16.msra.mxu2 %v11297_v53  ;;  %v11346_v53 = vld [vmem:[%s16309_s7 + $0x1a0] sm:$0xff] }
 0x769   : > { %6143 = vmatpush.bf16.msrb.mxu3 %v11305_v3 }
 0x76a   : > { %6319 = vmatpush.bf16.msra.mxu1 %v11321_v45  ;;  %6234 = vmatpush.bf16.msrb.mxu0 %v11310_v51 }
 0x76c   : > { %6056 = vmatpush.bf16.msra.mxu2 %v11296_v27 }
 0x76d   : > { %6144 = vmatpush.bf16.msrb.mxu3 %v11304_v49  ;;  %v11326_v49 = vld [vmem:[%s16309_s7 + $0x100] sm:$0xff] }
 0x76e   : > { %6320 = vmatpush.bf16.msra.mxu1 %v11320_v9  ;;  %6569 = vmatpush.bf16.msra.mxu0 %v11349_v26  ;;  %v11337_v9 = vld [vmem:[%s16309_s7 + $0x158] sm:$0xff] }
 0x770   : > { %6057 = vmatpush.bf16.msra.mxu2 %v11295_v1  ;;  %v11345_v1 = vld [vmem:[%s16309_s7 + $0x198] sm:$0xff] }
 0x771   : > { %6145 = vmatpush.bf16.msrb.mxu3 %v11303_v22 }
 0x772   : > { %6321 = vmatpush.bf16.msra.mxu1 %v11319_v32  ;;  %6570 = vmatpush.bf16.msra.mxu0 %v11348_v5  ;;  %v11343_v32 = vld [vmem:[%s16309_s7 + $0x188] sm:$0xff] }
 0x774   : > { %6058 = vmatpush.bf16.msra.mxu2 %v11294_v29  ;;  %v11353_v29 = vld [vmem:[%s16309_s7 + $0x1d8] sm:$0xff] }
 0x775   : > { %6146 = vmatpush.bf16.msrb.mxu3 %v11302_v36 }
 0x776   : > { %6322 = vmatpush.bf16.msra.mxu1 %v11318_v57  ;;  %v11334_v57 = vld [vmem:[%s16309_s7 + $0x140] sm:$0xff] }
 0x778   : > { %6397 = vmatpush.bf16.msrb.mxu2 %v11333_v40 }
 0x779   : > { %6485 = vmatpush.bf16.msra.mxu3 %v11341_v58 }
 0x77c   : > { %6398 = vmatpush.bf16.msrb.mxu2 %v11332_v50 }
 0x77d   : > { %6486 = vmatpush.bf16.msra.mxu3 %v11340_v4 }
 0x780   : > { %6399 = vmatpush.bf16.msrb.mxu2 %v11331_v46 }
 0x781   : > { %6487 = vmatpush.bf16.msra.mxu3 %v11339_v62 }
 0x784   : > { %6400 = vmatpush.bf16.msrb.mxu2 %v11330_v19  ;;  %v11342_v19 = vld [vmem:[%s16309_s7 + $0x180] sm:$0xff] }
 0x785   : > { %6488 = vmatpush.bf16.msra.mxu3 %v11338_v61 }
 0x788   : > { %6401 = vmatpush.bf16.msrb.mxu2 %v11329_v30 }
 0x789   : > { %6489 = vmatpush.bf16.msra.mxu3 %v11337_v9 }
 0x78c   : > { %6402 = vmatpush.bf16.msrb.mxu2 %v11328_v12 }
 0x790   : > { %6403 = vmatpush.bf16.msrb.mxu2 %v11327_v39 }
 0x794   : > { %6404 = vmatpush.bf16.msrb.mxu2 %v11326_v49 }
 0x7b5   : > { %v15670_v38 = vpop.f32.mrf.mxu0 }
 0x7b6   : > { %v5341_v14 = vpop.f32.mrf.mxu1 }
 0x7ba   : > { %v5159_v34 = vpop.f32.mrf.mxu2  ;;  %v5248_v48 = vpop.f32.mrf.mxu3 }
 0x7bb   : > { %v5164_v13 = vadd.f32 %v11474_v37, %v5159_v34 }
 0x7bd   : > { %v15672_v21 = vpop.f32.mrf.mxu0  ;;  %v5253_v15 = vadd.f32 %v5248_v48, %v5164_v13  ;;  %v11336_v48 = vld [vmem:[%s16309_s7 + $0x150] sm:$0xff] }
 0x7be   : > { %v5343_v41 = vpop.f32.mrf.mxu1  ;;  %6490 = vmatpush.bf16.msra.mxu3 %v11336_v48  ;;  %v11364_v48 = vld [vmem:[%s16309_s7 + $0x230] sm:$0xff] }
 0x7bf   : > { %v5346_v52 = vadd.f32 %v5341_v14, %v5253_v15  ;;  %v11344_v14 = vld [vmem:[%s16309_s7 + $0x190] sm:$0xff] }
 0x7c2   : > { %v5161_v54 = vpop.f32.mrf.mxu2  ;;  %v5250_v63 = vpop.f32.mrf.mxu3  ;;  %6491 = vmatpush.bf16.msra.mxu3 %v11335_v28 }
 0x7c3   : > { %v5165_v31 = vadd.f32 %v11474_v37, %v5161_v54 }
 0x7c5   : > { %v5881_v18 = vpop.f32.mrf.mxu0  ;;  %v5254_v24 = vadd.f32 %v5250_v63, %v5165_v31  ;;  %v11352_v63 = vld [vmem:[%s16309_s7 + $0x1d0] sm:$0xff] }
 0x7c6   : > { %v5687_v60 = vpop.f32.mrf.mxu1  ;;  %6492 = vmatpush.bf16.msra.mxu3 %v11334_v57 }
 0x7c7   : > { %v5347_v27 = vadd.f32 %v5343_v41, %v5254_v24  ;;  %v11351_v41 = vld [vmem:[%s16309_s7 + $0x1c8] sm:$0xff] }
 0x7ca   : > { %v5429_v43 = vpop.f32.mrf.mxu2  ;;  %v5511_v6 = vpop.f32.mrf.mxu3 }
 0x7cb   : > { %v5434_v3 = vadd.f32 %v5429_v43, %v5346_v52 }
 0x7cd   : > { %v5884_v59 = vpop.f32.mrf.mxu0  ;;  %v5516_v7 = vadd.f32 %v5511_v6, %v5434_v3 }
 0x7ce   : > { %v5887_v11 = vpack.c.bf16 %v5884_v59, %v5881_v18  ;;  %v11357_v18 = vld [vmem:[%s16309_s7 + $0x1f8] sm:$0xff]  ;;  %v11347_v59 = vld [vmem:[%s16309_s7 + $0x1a8] sm:$0xff]  ;;  %v5689_v50 = vpop.f32.mrf.mxu1 }
 0x7cf   : > { %6571 = vmatpush.bf16.msra.mxu0 %v11347_v59  ;;  %v5604_v54 = vadd.f32 %v15670_v38, %v5516_v7  ;;  %v11475_v38 = vld [vmem:[%s16314_s12 + $0x5] ss:$0 sm:$0xff] }
 0x7d0   : > { %5965 = vmatmul.bf16.vlgmr.msrb.gmra.mxu1 %v5887_v11  ;;  %v11355_v11 = vld [vmem:[%s16309_s7 + $0x1e8] sm:$0xff] }
 0x7d1   : > { %6653 = vmatpush.bf16.msrb.mxu1 %v11357_v18  ;;  %v5692_v46 = vadd.f32 %v5687_v60, %v5604_v54  ;;  %v11350_v18 = vld [vmem:[%s16309_s7 + $0x1c0] sm:$0xff] }
 0x7d2   : > { %v5431_v17 = vpop.f32.mrf.mxu2  ;;  %v5513_v45 = vpop.f32.mrf.mxu3 }
 0x7d3   : > { %6572 = vmatpush.bf16.msra.mxu0 %v11346_v53  ;;  %v5435_v40 = vadd.f32 %v5431_v17, %v5347_v27  ;;  %v11365_v27 = vld [vmem:[%s16309_s7 + $0x238] sm:$0xff] }
 0x7d5   : > { %6654 = vmatpush.bf16.msrb.mxu1 %v11356_v56  ;;  %v5517_v22 = vadd.f32 %v5513_v45, %v5435_v40 }
 0x7d7   : > { %6573 = vmatpush.bf16.msra.mxu0 %v11345_v1  ;;  %v5605_v43 = vadd.f32 %v15672_v21, %v5517_v22 }
 0x7d9   : > { %6655 = vmatpush.bf16.msrb.mxu1 %v11355_v11  ;;  %v5693_v21 = vadd.f32 %v5689_v50, %v5605_v43  ;;  %v11476_v43 = vld [vmem:[%s16314_s12 + $0x6] ss:$0 sm:$0xff] }
 0x7da   : > { %v5771_v34 = vpop.f32.mrf.mxu2 }
 0x7db   : > { %6574 = vmatpush.bf16.msra.mxu0 %v11344_v14  ;;  %v5857_v37 = vpop.f32.mrf.mxu3  ;;  %v5776_v36 = vadd.f32 %v5771_v34, %v5692_v46  ;;  %v11361_v14 = vld [vmem:[%s16309_s7 + $0x218] sm:$0xff] }
 0x7dd   : > { %6656 = vmatpush.bf16.msrb.mxu1 %v11354_v25  ;;  %v5862_v13 = vadd.f32 %v5857_v37, %v5776_v36 }
 0x7df   : > { %6575 = vmatpush.bf16.msra.mxu0 %v11343_v32  ;;  %v11360_v32 = vld [vmem:[%s16309_s7 + $0x210] sm:$0xff] }
 0x7e1   : > { %6657 = vmatpush.bf16.msrb.mxu1 %v11353_v29 }
 0x7e2   : > { %v5773_v58 = vpop.f32.mrf.mxu2 }
 0x7e3   : > { %v5777_v30 = vadd.f32 %v5773_v58, %v5693_v21  ;;  %6576 = vmatpush.bf16.msra.mxu0 %v11342_v19  ;;  %v5859_v4 = vpop.f32.mrf.mxu3 }
 0x7e5   : > { %6658 = vmatpush.bf16.msrb.mxu1 %v11352_v63  ;;  %v5863_v56 = vadd.f32 %v5859_v4, %v5777_v30 }
 0x7e9   : > { %6659 = vmatpush.bf16.msrb.mxu1 %v11351_v41 }
 0x7ed   : > { %6660 = vmatpush.bf16.msrb.mxu1 %v11350_v18 }
 0x84d   : > { %v5966_v51 = vpop.f32.mrf.mxu1 }
 0x84e   : > { %v5967_v26 = vadd.f32 %v11475_v38, %v5966_v51 }
 0x850   : > { %v5971_v6 = vadd.f32 %v5967_v26, %v5862_v13 }
 0x852   : > { %v15874_v31 = vmax.f32 %v5971_v6, 0.0  ;;  %v11372_v6 = vld [vmem:[%s16310_s8 + $0x30] sm:$0xff] }
 0x854   : > { %v5980_v59 = vrot.slane %v15874_v31, 3  ;;  %v6067_v60 = vrot.slane %v15874_v31, 4  ;;  %v6155_v24 = vrot.slane %v15874_v31, 5  ;;  %v6243_v61 = vrot.slane %v15874_v31, 7 }
 0x855   : > { %v5968_v5 = vpop.f32.mrf.mxu1  ;;  %v6413_v33 = vrot.slane %v15874_v31, 1 }
 0x856   : > { %v5969_v15 = vadd.f32 %v11475_v38, %v5968_v5 }
 0x858   : > { %v5972_v12 = vadd.f32 %v5969_v15, %v5863_v56 }
 0x85a   : > { %v15876_v62 = vmax.f32 %v5972_v12, 0.0 }
 0x85c   : > { %v5981_v17 = vrot.slane %v15876_v62, 3  ;;  %v6068_v11 = vrot.slane %v15876_v62, 4  ;;  %v6156_v52 = vrot.slane %v15876_v62, 5  ;;  %v6244_v39 = vrot.slane %v15876_v62, 7 }
 0x85d   : > { %v6414_v44 = vrot.slane %v15876_v62, 1  ;;  %v6331_v54 = vpack.c.bf16 %v15876_v62, %v15874_v31 }
 0x85e   : > { %v5982_v53 = vsel %vm17045_vm11, %v5980_v59, %v5981_v17  ;;  %v5983_v3 = vsel %vm17046_vm8, %v5981_v17, %v5980_v59  ;;  %v6069_v25 = vsel %vm17047_vm14, %v6067_v60, %v6068_v11  ;;  %v6070_v45 = vsel %vm17048_vm2, %v6068_v11, %v6067_v60  ;;  %vm17050_vm11 = vmmov %vm17049_vm10  ;;  %v11371_v59 = vld [vmem:[%s16310_s8 + $0x28] sm:$0xff] }
 0x85f   : > { %v10032_v49 = vpack.c.bf16 %v5982_v53, %v5983_v3  ;;  %v10083_v7 = vpack.c.bf16 %v6069_v25, %v6070_v45  ;;  %v6157_v9 = vsel %vm17049_vm10, %v6155_v24, %v6156_v52  ;;  %v6158_v1 = vsel %vm17050_vm11, %v6156_v52, %v6155_v24  ;;  %vm17053_vm2 = vmpackc.low %vm15409_vm0, %vm15399_vm7 }
 0x860   : > { %v10134_v29 = vpack.c.bf16 %v6157_v9, %v6158_v1  ;;  %vm17051_vm8 = vcmp.lt.s32.totalorder %v11680_v16, 1  ;;  %vm17055_vm7 = vcmp.lt.s32.totalorder %v11680_v16, 7  ;;  %v10335_v22 = vpack.c.bf16 %v5983_v3, %v5982_v53  ;;  %vm17057_vm0 = vmpackc.low %vm15433_vm12, %vm15427_vm15 }
 0x861   : > { %v6245_v40 = vsel %vm17051_vm8, %v6243_v61, %v6244_v39  ;;  %vm17052_vm14 = vmmov %vm17051_vm8  ;;  %10033 = vmatmul.msk.bf16.vlgmr.msra.gmra.mxu2 %vm15439_vm1, %v10032_v49  ;;  %10084 = vmatmul.msk.bf16.vlgmr.msrb.gmra.mxu3 %vm17053_vm2, %v10083_v7  ;;  %v6415_v47 = vsel %vm17055_vm7, %v6413_v33, %v6414_v44  ;;  %v10386_v28 = vpack.c.bf16 %v6070_v45, %v6069_v25  ;;  %v11369_v25 = vld [vmem:[%s16310_s8 + $0x18] sm:$0xff]  ;;  %v11368_v7 = vld [vmem:[%s16310_s8 + $0x10] sm:$0xff]  ;;  %vm6754_vm12 = vcmask 130048  }
 0x862   : > { %v6246_v50 = vsel %vm17052_vm14, %v6244_v39, %v6243_v61  ;;  %10135 = vmatmul.msk.bf16.vlgmr.msrb.gmra.mxu0 %vm15510_vm4, %v10134_v29  ;;  %6737 = vmatpush.bf16.msra.mxu2 %v11365_v27  ;;  %vm17054_vm1 = vmpackc.low %vm15413_vm9, %vm15403_vm5  ;;  %v10437_v23 = vpack.c.bf16 %v6158_v1, %v6157_v9  ;;  %vm17059_vm15 = vnez %v17044_v35  ;;  %v11373_v35 = vld [vmem:[%s16310_s8 + $0x38] sm:$0xff]  ;;  %v11370_v39 = vld [vmem:[%s16310_s8 + $0x20] sm:$0xff]  ;;  %vm6786_vm4 = vcmask 1047556  }
 0x863   : > { %v10185_v34 = vpack.c.bf16 %v6245_v40, %v6246_v50  ;;  %vm17056_vm5 = vmmov %vm17055_vm7  ;;  %6863 = vmatpush.bf16.msrb.mxu0 %v11373_v35  ;;  %v15986_v50 = vld [vmem:[%s16317_s15] sm:$0xf] }
 0x864   : > { %v6416_v42 = vsel %vm17056_vm5, %v6414_v44, %v6413_v33  ;;  %vm17058_vm9 = vmpackc.low %vm15558_vm3, %vm15548_vm6  ;;  %v11380_v44 = vld [vmem:[%s16310_s8 + $0x70] sm:$0xff]  ;;  %v11397_v33 = vld [vmem:[%s16310_s8 + $0xf8] sm:$0xff] }
 0x865   : > { %10186 = vmatmul.msk.bf16.vlgmr.msra.gmra.mxu1 %vm17054_vm1, %v10185_v34  ;;  %v10284_v63 = vpack.c.bf16 %v6416_v42, %v6415_v47  ;;  %v11381_v34 = vld [vmem:[%s16310_s8 + $0x78] sm:$0xff]  ;;  %v11379_v42 = vld [vmem:[%s16310_s8 + $0x68] sm:$0xff]  ;;  %v11402_v35 = vld [vmem:[%s16310_s8 + $0x120] sm:$0xff] }
 0x866   : > { %6738 = vmatpush.bf16.msra.mxu2 %v11364_v48  ;;  %v11367_v48 = vld [vmem:[%s16310_s8 + $0x8] sm:$0xff]  ;;  %v11405_v47 = vld [vmem:[%s16310_s8 + $0x138] sm:$0xff] }
 0x867   : > { %6864 = vmatpush.bf16.msrb.mxu0 %v11372_v6  ;;  %v11429_v6 = vld [vmem:[%s16310_s8 + $0x1f8] sm:$0xff] }
 0x86a   : > { %6739 = vmatpush.bf16.msra.mxu2 %v11363_v55  ;;  %v11366_v55 = vld [vmem:[%s16310_s8] sm:$0xff] }
 0x86b   : > { %6865 = vmatpush.bf16.msrb.mxu0 %v11371_v59  ;;  %v11400_v59 = vld [vmem:[%s16310_s8 + $0x110] sm:$0xff] }
 0x86e   : > { %6740 = vmatpush.bf16.msra.mxu2 %v11362_v2  ;;  %v11389_v2 = vld [vmem:[%s16310_s8 + $0xb8] sm:$0xff] }
 0x86f   : > { %6866 = vmatpush.bf16.msrb.mxu0 %v11370_v39  ;;  %7031 = vmatpush.bf16.msra.mxu1 %v11389_v2  ;;  %v11406_v39 = vld [vmem:[%s16310_s8 + $0x140] sm:$0xff]  ;;  %v11448_v2 = vld [vmem:[%s16312_s10 + $0x10] sm:$0xff] }
 0x871   : > { %6405 = vmatmul.bf16.vlgmr.msrb.gmra.mxu2 %v6331_v54  ;;  %10285 = vmatmul.msk.bf16.vlgmr.msra.gmra.mxu3 %vm17057_vm0, %v10284_v63  ;;  %v11396_v54 = vld [vmem:[%s16310_s8 + $0xf0] sm:$0xff] }
 0x872   : > { %10336 = vmatmul.msk.bf16.vlgmr.msra.gmra.mxu0 %vm15589_vm13, %v10335_v22  ;;  %6741 = vmatpush.bf16.msra.mxu2 %v11361_v14  ;;  %v11388_v14 = vld [vmem:[%s16310_s8 + $0xb0] sm:$0xff]  ;;  %v11378_v22 = vld [vmem:[%s16310_s8 + $0x60] sm:$0xff] }
 0x873   : > { %6867 = vmatpush.bf16.msrb.mxu0 %v11369_v25  ;;  %v11404_v63 = vld [vmem:[%s16310_s8 + $0x130] sm:$0xff]  ;;  %7032 = vmatpush.bf16.msra.mxu1 %v11388_v14  ;;  %v11425_v25 = vld [vmem:[%s16310_s8 + $0x1d8] sm:$0xff] }
 0x875   : > { %10387 = vmatmul.msk.bf16.vlgmr.msrb.gmra.mxu1 %vm17058_vm9, %v10386_v28  ;;  %v11387_v28 = vld [vmem:[%s16310_s8 + $0xa8] sm:$0xff] }
 0x876   : > { %6742 = vmatpush.bf16.msra.mxu2 %v11360_v32  ;;  %v11395_v32 = vld [vmem:[%s16310_s8 + $0xe8] sm:$0xff] }
 0x877   : > { %6868 = vmatpush.bf16.msrb.mxu0 %v11368_v7  ;;  %7033 = vmatpush.bf16.msra.mxu1 %v11387_v28  ;;  %v11423_v7 = vld [vmem:[%s16310_s8 + $0x1c8] sm:$0xff] }
 0x87a   : > { %6743 = vmatpush.bf16.msra.mxu2 %v11359_v0  ;;  %v11403_v0 = vld [vmem:[%s16310_s8 + $0x128] sm:$0xff] }
 0x87b   : > { %6869 = vmatpush.bf16.msrb.mxu0 %v11367_v48 }
 0x87e   : > { %6744 = vmatpush.bf16.msra.mxu2 %v11358_v10  ;;  %v11377_v10 = vld [vmem:[%s16310_s8 + $0x58] sm:$0xff] }
 0x87f   : > { %6870 = vmatpush.bf16.msrb.mxu0 %v11366_v55 }
 0x881   : > { %10438 = vmatmul.msk.bf16.vlgmr.msra.gmra.mxu2 %vm17059_vm15, %v10437_v23  ;;  %v11376_v23 = vld [vmem:[%s16310_s8 + $0x50] sm:$0xff] }
 0x882   : > { %7112 = vmatpush.bf16.msrb.mxu2 %v11397_v33 }
 0x883   : > { %7192 = vmatpush.bf16.msra.mxu0 %v11405_v47  ;;  %v11446_v47 = vld [vmem:[%s16312_s10] sm:$0xff] }
 0x886   : > { %7113 = vmatpush.bf16.msrb.mxu2 %v11396_v54 }
 0x887   : > { %7193 = vmatpush.bf16.msra.mxu0 %v11404_v63 }
 0x88a   : > { %7114 = vmatpush.bf16.msrb.mxu2 %v11395_v32 }
 0x88b   : > { %7194 = vmatpush.bf16.msra.mxu0 %v11403_v0 }
 0x88f   : > { %7195 = vmatpush.bf16.msra.mxu0 %v11402_v35 }
 0x8df   : > { %v6236_v20 = vpop.f32.mrf.mxu0 }
 0x8e2   : > { %v6324_v37 = vpop.f32.mrf.mxu1 }
 0x8e4   : > { %v6060_v8 = vpop.f32.mrf.mxu2  ;;  %v6148_v46 = vpop.f32.mrf.mxu3 }
 0x8e5   : > { %v6065_v57 = vadd.f32 %v11476_v43, %v6060_v8  ;;  %v11375_v8 = vld [vmem:[%s16310_s8 + $0x48] sm:$0xff] }
 0x8e7   : > { %v6238_v51 = vpop.f32.mrf.mxu0  ;;  %v6153_v18 = vadd.f32 %v6148_v46, %v6065_v57  ;;  %v11374_v46 = vld [vmem:[%s16310_s8 + $0x40] sm:$0xff]  ;;  %v11393_v57 = vld [vmem:[%s16310_s8 + $0xd8] sm:$0xff] }
 0x8e9   : > { %v6241_v30 = vadd.f32 %v6236_v20, %v6153_v18  ;;  %v11413_v20 = vld [vmem:[%s16310_s8 + $0x178] sm:$0xff]  ;;  %v11391_v18 = vld [vmem:[%s16310_s8 + $0xc8] sm:$0xff] }
 0x8ea   : > { %v6326_v26 = vpop.f32.mrf.mxu1 }
 0x8eb   : > { %v6329_v15 = vadd.f32 %v6324_v37, %v6241_v30  ;;  %v11412_v37 = vld [vmem:[%s16310_s8 + $0x170] sm:$0xff]  ;;  %v11421_v30 = vld [vmem:[%s16310_s8 + $0x1b8] sm:$0xff] }
 0x8ec   : > { %v6062_v38 = vpop.f32.mrf.mxu2  ;;  %v6150_v41 = vpop.f32.mrf.mxu3 }
 0x8ed   : > { %v6066_v36 = vadd.f32 %v11476_v43, %v6062_v38  ;;  %v11411_v38 = vld [vmem:[%s16310_s8 + $0x168] sm:$0xff]  ;;  %v11386_v43 = vld [vmem:[%s16310_s8 + $0xa0] sm:$0xff] }
 0x8ee   : > { %7034 = vmatpush.bf16.msra.mxu1 %v11386_v43  ;;  %v11444_v43 = vld [vmem:[%s16311_s9 + $0x30] sm:$0xff] }
 0x8ef   : > { %v6154_v58 = vadd.f32 %v6150_v41, %v6066_v36  ;;  %v6578_v4 = vpop.f32.mrf.mxu0  ;;  %v11410_v41 = vld [vmem:[%s16310_s8 + $0x160] sm:$0xff] }
 0x8f0   : > { %v11394_v36 = vld [vmem:[%s16310_s8 + $0xe0] sm:$0xff] }
 0x8f1   : > { %v6242_v13 = vadd.f32 %v6238_v51, %v6154_v58  ;;  %7115 = vmatpush.bf16.msrb.mxu2 %v11394_v36  ;;  %v11385_v51 = vld [vmem:[%s16310_s8 + $0x98] sm:$0xff]  ;;  %v11392_v58 = vld [vmem:[%s16310_s8 + $0xd0] sm:$0xff]  ;;  %v11443_v36 = vld [vmem:[%s16311_s9 + $0x28] sm:$0xff] }
 0x8f2   : > { %v6662_v60 = vpop.f32.mrf.mxu1  ;;  %7035 = vmatpush.bf16.msra.mxu1 %v11385_v51  ;;  %v11441_v51 = vld [vmem:[%s16311_s9 + $0x18] sm:$0xff] }
 0x8f3   : > { %v6330_v56 = vadd.f32 %v6326_v26, %v6242_v13  ;;  %v11383_v26 = vld [vmem:[%s16310_s8 + $0x88] sm:$0xff]  ;;  %v11390_v13 = vld [vmem:[%s16310_s8 + $0xc0] sm:$0xff] }
 0x8f4   : > { %v6406_v19 = vpop.f32.mrf.mxu2  ;;  %v6494_v21 = vpop.f32.mrf.mxu3 }
 0x8f5   : > { %v6411_v17 = vadd.f32 %v6406_v19, %v6329_v15  ;;  %7116 = vmatpush.bf16.msrb.mxu2 %v11393_v57  ;;  %v11384_v19 = vld [vmem:[%s16310_s8 + $0x90] sm:$0xff] }
 0x8f6   : > { %7036 = vmatpush.bf16.msra.mxu1 %v11384_v19  ;;  %v11428_v15 = vld [vmem:[%s16310_s8 + $0x1f0] sm:$0xff] }
 0x8f7   : > { %v6499_v61 = vadd.f32 %v6494_v21, %v6411_v17  ;;  %v6580_v53 = vpop.f32.mrf.mxu0  ;;  %v11382_v21 = vld [vmem:[%s16310_s8 + $0x80] sm:$0xff]  ;;  %v11427_v17 = vld [vmem:[%s16310_s8 + $0x1e8] sm:$0xff]  ;;  %v11440_v57 = vld [vmem:[%s16311_s9 + $0x10] sm:$0xff] }
 0x8f9   : > { %v6583_v45 = vadd.f32 %v6578_v4, %v6499_v61  ;;  %7117 = vmatpush.bf16.msrb.mxu2 %v11392_v58  ;;  %v11409_v4 = vld [vmem:[%s16310_s8 + $0x158] sm:$0xff]  ;;  %v11426_v61 = vld [vmem:[%s16310_s8 + $0x1e0] sm:$0xff]  ;;  %v11439_v58 = vld [vmem:[%s16311_s9 + $0x8] sm:$0xff] }
 0x8fa   : > { %v6664_v27 = vpop.f32.mrf.mxu1  ;;  %7037 = vmatpush.bf16.msra.mxu1 %v11383_v26  ;;  %v11477_v26 = vld [vmem:[%s16314_s12 + $0x7] ss:$0 sm:$0xff] }
 0x8fb   : > { %v6667_v1 = vadd.f32 %v6662_v60, %v6583_v45  ;;  %v11419_v60 = vld [vmem:[%s16310_s8 + $0x1a8] sm:$0xff]  ;;  %v11416_v45 = vld [vmem:[%s16310_s8 + $0x190] sm:$0xff] }
 0x8fc   : > { %v6408_v5 = vpop.f32.mrf.mxu2  ;;  %v6496_v11 = vpop.f32.mrf.mxu3 }
 0x8fd   : > { %v6412_v12 = vadd.f32 %v6408_v5, %v6330_v56  ;;  %7118 = vmatpush.bf16.msrb.mxu2 %v11391_v18  ;;  %v11401_v5 = vld [vmem:[%s16310_s8 + $0x118] sm:$0xff]  ;;  %v11420_v56 = vld [vmem:[%s16310_s8 + $0x1b0] sm:$0xff] }
 0x8fe   : > { %7038 = vmatpush.bf16.msra.mxu1 %v11382_v21  ;;  %7196 = vmatpush.bf16.msra.mxu0 %v11401_v5 }
 0x8ff   : > { %v6500_v52 = vadd.f32 %v6496_v11, %v6412_v12  ;;  %v11408_v12 = vld [vmem:[%s16310_s8 + $0x150] sm:$0xff]  ;;  %v11407_v11 = vld [vmem:[%s16310_s8 + $0x148] sm:$0xff] }
 0x901   : > { %v6584_v3 = vadd.f32 %v6580_v53, %v6500_v52  ;;  %7119 = vmatpush.bf16.msrb.mxu2 %v11390_v13  ;;  %v11399_v52 = vld [vmem:[%s16310_s8 + $0x108] sm:$0xff]  ;;  %v11398_v53 = vld [vmem:[%s16310_s8 + $0x100] sm:$0xff] }
 0x902   : > { %7356 = vmatpush.bf16.msrb.mxu1 %v11421_v30  ;;  %7197 = vmatpush.bf16.msra.mxu0 %v11400_v59  ;;  %v11438_v30 = vld [vmem:[%s16311_s9] sm:$0xff]  ;;  %v11452_v59 = vld [vmem:[%s16312_s10 + $0x30] sm:$0xff] }
 0x903   : > { %v6668_v49 = vadd.f32 %v6664_v27, %v6584_v3  ;;  %v11417_v3 = vld [vmem:[%s16310_s8 + $0x198] sm:$0xff]  ;;  %v11424_v27 = vld [vmem:[%s16310_s8 + $0x1d0] sm:$0xff] }
 0x904   : > { %v6746_v24 = vpop.f32.mrf.mxu2 }
 0x905   : > { %v6751_v40 = vadd.f32 %v6746_v24, %v6667_v1  ;;  %7437 = vmatpush.bf16.msra.mxu2 %v11429_v6  ;;  %v11418_v24 = vld [vmem:[%s16310_s8 + $0x1a0] sm:$0xff] }
 0x906   : > { %7357 = vmatpush.bf16.msrb.mxu1 %v11420_v56  ;;  %7198 = vmatpush.bf16.msra.mxu0 %v11399_v52  ;;  %v11422_v1 = vld [vmem:[%s16310_s8 + $0x1c0] sm:$0xff]  ;;  %v11453_v56 = vld [vmem:[%s16312_s10 + $0x38] sm:$0xff] }
 0x909   : > { %7438 = vmatpush.bf16.msra.mxu2 %v11428_v15 }
 0x90a   : > { %7358 = vmatpush.bf16.msrb.mxu1 %v11419_v60  ;;  %7199 = vmatpush.bf16.msra.mxu0 %v11398_v53 }
 0x90c   : > { %v6748_v9 = vpop.f32.mrf.mxu2 }
 0x90d   : > { %v6752_v29 = vadd.f32 %v6748_v9, %v6668_v49  ;;  %7439 = vmatpush.bf16.msra.mxu2 %v11427_v17  ;;  %v11415_v49 = vld [vmem:[%s16310_s8 + $0x188] sm:$0xff]  ;;  %v11414_v9 = vld [vmem:[%s16310_s8 + $0x180] sm:$0xff] }
 0x90e   : > { %7359 = vmatpush.bf16.msrb.mxu1 %v11418_v24 }
 0x90f   : > { %6772 = vmatpush.msrb.mxu3 %v6752_v29 }
 0x911   : > { %6773 = vmatpush.msrb.mxu3 %v6751_v40  ;;  %7440 = vmatpush.bf16.msra.mxu2 %v11426_v61  ;;  %v6781_v40 = vshra.s32 %v11680_v16, 1 }
 0x912   : > { %10439 = vmatmul.msk.f32.vlgmr.msrb.gmra.mxu3 %vm6754_vm12, %v15986_v50  ;;  %7360 = vmatpush.bf16.msrb.mxu1 %v11417_v3 }
 0x913   : > { %6946 = vmatpush.bf16.msra.mxu3 %v11381_v34  ;;  %v6782_v34 = vand.u32 1, %v11680_v16  ;;  %vm16166_vm6 = vcmp.ge.s32.totalorder %v6781_v40, 1  ;;  %vm16203_vm7 = vcmp.le.s32.totalorder %v6781_v40, 0 }
 0x914   : > { %vm10524_vm8 = vmpackc.low %vm16166_vm6, %vm16166_vm6 }
 0x915   : > { %7441 = vmatpush.bf16.msra.mxu2 %v11425_v25  ;;  %vm16170_vm3 = vcmp.ge.s32.totalorder %v6782_v34, 1  ;;  %vm16174_vm13 = vcmp.le.s32.totalorder %v6782_v34, 0  ;;  %vm10827_vm15 = vmpackc.low %vm16203_vm7, %vm16203_vm7 }
 0x916   : > { %7361 = vmatpush.bf16.msrb.mxu1 %v11416_v45  ;;  %vm6793_vm10 = vmand %vm16166_vm6, %vm16170_vm3 }
 0x917   : > { %6947 = vmatpush.bf16.msra.mxu3 %v11380_v44  ;;  %vm6961_vm11 = vmand %vm16166_vm6, %vm16174_vm13  ;;  %v11449_v44 = vld [vmem:[%s16312_s10 + $0x18] sm:$0xff] }
 0x918   : > { %vm10473_vm14 = vmpackc.low %vm6793_vm10, %vm6793_vm10 }
 0x919   : > { %7442 = vmatpush.bf16.msra.mxu2 %v11424_v27  ;;  %vm10575_vm2 = vmpackc.low %vm6961_vm11, %vm6961_vm11 }
 0x91a   : > { %7362 = vmatpush.bf16.msrb.mxu1 %v11415_v49  ;;  %vm10626_vm1 = vmpackc.low %vm16170_vm3, %vm16170_vm3 }
 0x91b   : > { %6948 = vmatpush.bf16.msra.mxu3 %v11379_v42  ;;  %vm7288_vm5 = vmand %vm16203_vm7, %vm16170_vm3 }
 0x91c   : > { %vm10725_vm0 = vmpackc.low %vm16174_vm13, %vm16174_vm13 }
 0x91d   : > { %7443 = vmatpush.bf16.msra.mxu2 %v11423_v7  ;;  %vm10776_vm9 = vmpackc.low %vm7288_vm5, %vm7288_vm5 }
 0x91e   : > { %7363 = vmatpush.bf16.msrb.mxu1 %v11414_v9 }
 0x91f   : > { %6949 = vmatpush.bf16.msra.mxu3 %v11378_v22  ;;  %v11437_v22 = vld [vmem:[%s16310_s8 + $0x238] sm:$0xff] }
 0x921   : > { %7444 = vmatpush.bf16.msra.mxu2 %v11422_v1 }
 0x923   : > { %6950 = vmatpush.bf16.msra.mxu3 %v11377_v10  ;;  %v11436_v10 = vld [vmem:[%s16310_s8 + $0x230] sm:$0xff] }
 0x927   : > { %6951 = vmatpush.bf16.msra.mxu3 %v11376_v23  ;;  %v11435_v23 = vld [vmem:[%s16310_s8 + $0x228] sm:$0xff] }
 0x92b   : > { %6952 = vmatpush.bf16.msra.mxu3 %v11375_v8 }
 0x92f   : > { %6953 = vmatpush.bf16.msra.mxu3 %v11374_v46 }
 0x933   : > { %7273 = vmatpush.bf16.msrb.mxu3 %v11413_v20  ;;  %v11432_v20 = vld [vmem:[%s16310_s8 + $0x210] sm:$0xff] }
 0x937   : > { %7274 = vmatpush.bf16.msrb.mxu3 %v11412_v37  ;;  %v11431_v37 = vld [vmem:[%s16310_s8 + $0x208] sm:$0xff] }
 0x93b   : > { %7275 = vmatpush.bf16.msrb.mxu3 %v11411_v38  ;;  %v11430_v38 = vld [vmem:[%s16310_s8 + $0x200] sm:$0xff] }
 0x93f   : > { %7276 = vmatpush.bf16.msrb.mxu3 %v11410_v41  ;;  %v11445_v41 = vld [vmem:[%s16311_s9 + $0x38] sm:$0xff] }
 0x943   : > { %7277 = vmatpush.bf16.msrb.mxu3 %v11409_v4 }
 0x947   : > { %7278 = vmatpush.bf16.msrb.mxu3 %v11408_v12 }
 0x94b   : > { %7279 = vmatpush.bf16.msrb.mxu3 %v11407_v11 }
 0x94f   : > { %7280 = vmatpush.bf16.msrb.mxu3 %v11406_v39 }
 0x995   : > { %v6775_v29 = vpop.f32.mrf.mxu3 }
 0x996   : > { %v6778_v48 = vmax.f32 %v6775_v29, 0.0 }
 0x998   : > { %v6787_v55 = vrot.slane %v6778_v48, 4  ;;  %v7126_v46 = vpack.c.bf16 %v6778_v48, %v6778_v48 }
 0x99a   : > { %v6788_v33 = vsel %vm6786_vm4, %v6787_v55, %v6778_v48  ;;  %v11450_v55 = vld [vmem:[%s16312_s10 + $0x20] sm:$0xff] }
 0x99b   : > { %v6789_v42 = vrot.slane %v6788_v33, 4  ;;  %v11447_v33 = vld [vmem:[%s16312_s10 + $0x8] sm:$0xff] }
 0x99d   : > { %v6790_v16 = vsel %vm6786_vm4, %v6789_v42, %v6778_v48  ;;  %vm7451_vm4 = vmand %vm16203_vm7, %vm16174_vm13  ;;  %v11451_v48 = vld [vmem:[%s16312_s10 + $0x28] sm:$0xff] }
 0x99e   : > { %v6795_v14 = vrot.slane %v6790_v16, 1  ;;  %v6877_v54 = vrot.slane %v6790_v16, 2  ;;  %v6962_v63 = vrot.slane %v6790_v16, 3  ;;  %vm10878_vm6 = vmpackc.low %vm7451_vm4, %vm7451_vm4  ;;  %v11478_v42 = vld [vmem:[%s16314_s12 + $0x8] ss:$0 sm:$0xff] }
 0x9a0   : > { %v10474_v28 = vpack.c.bf16 %v6795_v14, %v6795_v14  ;;  %v10525_v32 = vpack.c.bf16 %v6877_v54, %v6877_v54  ;;  %v10576_v0 = vpack.c.bf16 %v6962_v63, %v6962_v63 }
 0x9a2   : > { %10526 = vmatmul.msk.bf16.vlgmr.msra.gmra.mxu3 %vm10524_vm8, %v10525_v32  ;;  %10475 = vmatmul.msk.bf16.vlgmr.msrb.gmra.mxu0 %vm10473_vm14, %v10474_v28 }
 0x9a3   : > { %7547 = vmatpush.msra.mxu3 %v15876_v62  ;;  %7519 = vmatpush.bf16.msrb.mxu0 %v11437_v22  ;;  %v11434_v62 = vld [vmem:[%s16310_s8 + $0x220] sm:$0xff] }
 0x9a4   : > { %10577 = vmatmul.msk.bf16.vlgmr.msra.gmra.mxu1 %vm10575_vm2, %v10576_v0  ;;  %10628 = vmatmul.msk.bf16.vlgmr.msrb.gmra.mxu2 %vm10626_vm1, %v10576_v0 }
 0x9a5   : > { %7548 = vmatpush.msra.mxu3 %v15874_v31  ;;  %v11433_v31 = vld [vmem:[%s16310_s8 + $0x218] sm:$0xff]  ;;  %7623 = vmatpush.bf16.msra.mxu1 %v11445_v41 }
 0x9a6   : > { %7713 = vmatpush.bf16.msrb.mxu2 %v11453_v56 }
 0x9a7   : > { %7520 = vmatpush.bf16.msrb.mxu0 %v11436_v10 }
 0x9a9   : > { %7624 = vmatpush.bf16.msra.mxu1 %v11444_v43 }
 0x9aa   : > { %7714 = vmatpush.bf16.msrb.mxu2 %v11452_v59 }
 0x9ab   : > { %7521 = vmatpush.bf16.msrb.mxu0 %v11435_v23 }
 0x9ad   : > { %7625 = vmatpush.bf16.msra.mxu1 %v11443_v36 }
 0x9ae   : > { %7715 = vmatpush.bf16.msrb.mxu2 %v11451_v48 }
 0x9af   : > { %7522 = vmatpush.bf16.msrb.mxu0 %v11434_v62 }
 0x9b2   : > { %10727 = vmatmul.msk.bf16.vlgmr.msrb.gmra.mxu3 %vm10725_vm0, %v10474_v28  ;;  %7200 = vmatmul.bf16.vlgmr.msra.gmra.mxu0 %v7126_v46 }
 0x9b3   : > { %7523 = vmatpush.bf16.msrb.mxu0 %v11433_v31  ;;  %7716 = vmatpush.bf16.msrb.mxu2 %v11450_v55 }
 0x9b4   : > { %10778 = vmatmul.msk.bf16.vlgmr.msrb.gmra.mxu1 %vm10776_vm9, %v10474_v28  ;;  %10829 = vmatmul.msk.bf16.vlgmr.msra.gmra.mxu2 %vm10827_vm15, %v10525_v32 }
 0x9b7   : > { %7524 = vmatpush.bf16.msrb.mxu0 %v11432_v20  ;;  %7717 = vmatpush.bf16.msrb.mxu2 %v11449_v44  ;;  %v7664_v20 = vld [vmem:[%s16313_s11] sm:$0x1] }
 0x9bb   : > { %7525 = vmatpush.bf16.msrb.mxu0 %v11431_v37  ;;  %7718 = vmatpush.bf16.msrb.mxu2 %v11448_v2 }
 0x9bf   : > { %7526 = vmatpush.bf16.msrb.mxu0 %v11430_v38  ;;  %7719 = vmatpush.bf16.msrb.mxu2 %v11447_v33 }
 0x9c2   : > { %10881 = vmatmul.msk.f32.vlgmr.msra.gmra.mxu3 %vm6754_vm12, %v15986_v50  ;;  %10880 = vmatmul.msk.bf16.vlgmr.msrb.gmra.mxu0 %vm10878_vm6, %v10576_v0  ;;  %v11442_v50 = vld [vmem:[%s16311_s9 + $0x20] sm:$0xff]  ;;  %vm7638_vm12 = vcmask 1043456  }
 0x9c3   : > { %7626 = vmatpush.bf16.msra.mxu1 %v11442_v50  ;;  %7720 = vmatpush.bf16.msrb.mxu2 %v11446_v47 }
 0x9c7   : > { %7627 = vmatpush.bf16.msra.mxu1 %v11441_v51 }
 0x9cb   : > { %7628 = vmatpush.bf16.msra.mxu1 %v11440_v57 }
 0x9cf   : > { %7629 = vmatpush.bf16.msra.mxu1 %v11439_v58 }
 0x9d3   : > { %7630 = vmatpush.bf16.msra.mxu1 %v11438_v30 }
 0xa1f   : > { %v6872_v19 = vpop.f32.mrf.mxu0 }
 0xa20   : > { %v6876_v35 = vadd.f32 %v11477_v26, %v6872_v19 }
 0xa21   : > { %v7040_v18 = vpop.f32.mrf.mxu1 }
 0xa25   : > { %v6955_v21 = vpop.f32.mrf.mxu3 }
 0xa26   : > { %v6959_v13 = vadd.f32 %v6955_v21, %v6876_v35 }
 0xa27   : > { %v6874_v6 = vpop.f32.mrf.mxu0  ;;  %v7121_v4 = vpop.f32.mrf.mxu2 }
 0xa28   : > { %v7044_v5 = vadd.f32 %v7040_v18, %v6959_v13 }
 0xa29   : > { %v7042_v15 = vpop.f32.mrf.mxu1 }
 0xa2a   : > { %v7125_v12 = vadd.f32 %v7121_v4, %v7044_v5 }
 0xa2d   : > { %v6957_v60 = vpop.f32.mrf.mxu3 }
 0xa2f   : > { %v7201_v17 = vpop.f32.mrf.mxu0  ;;  %v7123_v11 = vpop.f32.mrf.mxu2 }
 0xa30   : > { %v7205_v52 = vadd.f32 %v7201_v17, %v7125_v12 }
 0xa31   : > { %v7365_v39 = vpop.f32.mrf.mxu1 }
 0xa35   : > { %v7282_v24 = vpop.f32.mrf.mxu3 }
 0xa36   : > { %v7286_v61 = vadd.f32 %v7282_v24, %v7205_v52 }
 0xa37   : > { %v7203_v53 = vpop.f32.mrf.mxu0  ;;  %v7446_v3 = vpop.f32.mrf.mxu2 }
 0xa38   : > { %v7369_v25 = vadd.f32 %v7365_v39, %v7286_v61 }
 0xa39   : > { %v7367_v45 = vpop.f32.mrf.mxu1 }
 0xa3a   : > { %v7450_v27 = vadd.f32 %v7446_v3, %v7369_v25 }
 0xa3d   : > { %v7284_v49 = vpop.f32.mrf.mxu3 }
 0xa3f   : > { %v7528_v7 = vpop.f32.mrf.mxu0  ;;  %v7448_v9 = vpop.f32.mrf.mxu2 }
 0xa40   : > { %v7532_v1 = vadd.f32 %v7528_v7, %v7450_v27 }
 0xa45   : > { %v7550_v29 = vpop.f32.mrf.mxu3 }
 0xa46   : > { %v7553_v40 = vpack.c.bf16 %v7550_v29, %v7550_v29 }
 0xa47   : > { %v7530_v34 = vpop.f32.mrf.mxu0 }
 0xa48   : > { %7631 = vmatmul.bf16.vlgmr.msra.gmra.mxu1 %v7553_v40 }
 0xac5   : > { %v7632_v16 = vpop.f32.mrf.mxu1 }
 0xac6   : > { %v7633_v14 = vadd.f32 %v11478_v42, %v7632_v16 }
 0xac8   : > { %v7636_v54 = vadd.f32 %v7633_v14, %v7532_v1 }
 0xaca   : > { %v7637_v63 = vmax.f32 %v7636_v54, 0.0 }
 0xacc   : > { %v7639_v22 = vsel %vm7638_vm12, %v7637_v63, 0.0 }
 0xacd   : > { %v7640_v28 = vrot.slane %v7639_v22, 4  ;;  %v7634_v32 = vpop.f32.mrf.mxu1 }
 0xacf   : > { %v7641_v0 = vadd.f32 %v7640_v28, %v7639_v22 }
 0xad1   : > { %v7642_v10 = vrot.slane %v7641_v0, 2 }
 0xad3   : > { %v7643_v23 = vadd.f32 %v7642_v10, %v7641_v0 }
 0xad5   : > { %v7644_v8 = vrot.slane %v7643_v23, 1 }
 0xad7   : > { %v7645_v62 = vadd.f32 %v7644_v8, %v7643_v23 }
 0xad9   : > { %v7646_v31 = vmul.f32 0.25, %v7645_v62 }
 0xadb   : > { %v7647_v46 = vpack.c.bf16 %v7646_v31, %v7646_v31 }
 0xadd   : > { %7721 = vmatmul.bf16.vlgmr.msrb.gmra.mxu2 %v7647_v46 }
 0xb60   : > { %v7722_v37 = vpop.f32.mrf.mxu2 }
 0xb61   : > { %v7723_v38 = vadd.f32 %v7722_v37, %v7664_v20 }
 0xb63   : > { %v7726_v41 = vperm.slane %v7723_v38, 0 }
 0xb65   : > { %7727 = vst [vmem:[%s519_s19] sm:$0xff] %v7726_v41 }
 0xb68   : > { %v7724_v43 = vpop.f32.mrf.mxu2 }
 0xb69 PF: > { %s26_s21 = sadd.s32 1, %s11486_s21  }
 0xb6a   : > { %p23_p4 = scmp.ge.s32.totalorder %s26_s21, 4  }
 0xb6c   :  { %25 = sbr.rel (!%p23_p4) target bundleno = 2 (0x2), region = 170 }

</bundles_post_ra>
